<compile_context>
chip_gen: v7x
topology: tpu7x:2x2x1
jax: 0.10.0
libtpu: 0.0.40
codegen_flags: <defaults>
</compile_context>

<pallas_src>
import numpy as np
import jax
import jax.numpy as jnp
from jax import lax
from jax.experimental import pallas as pl
from jax.experimental.pallas import tpu as pltpu


# ----------------------------- in-kernel helpers -----------------------------

def _conv_single(src_ref, z_ref, w_ref, *, h, w, w4):
    """5x5 'same' conv over a flat zero-padded bf16 activation ref.
    Each tap is one contiguous row-slice GEMM; f32 register accumulation;
    a single store into z_ref."""
    m = (h - 1) * w4 + w
    acc = None
    for t in range(25):
        off = (t // 5) * w4 + (t % 5)
        d = jnp.dot(src_ref[pl.ds(off, m), :], w_ref[t],
                    preferred_element_type=jnp.float32)
        acc = d if acc is None else acc + d
    z_ref[...] = acc


def _conv_paired(src_ref, z_ref, wp_ref, wl_ref, *, h, w, w4):
    """Same as _conv_single but adjacent taps are fused along K (K = 2*Cin)
    to better fill the 256-deep MXU on v6e/v7x: 12 paired GEMMs + 1 leftover."""
    m = (h - 1) * w4 + w
    acc = None
    for t in range(12):
        ta, tb = 2 * t, 2 * t + 1
        a = src_ref[pl.ds((ta // 5) * w4 + ta % 5, m), :]
        b = src_ref[pl.ds((tb // 5) * w4 + tb % 5, m), :]
        d = jnp.dot(jnp.concatenate([a, b], axis=1), wp_ref[t],
                    preferred_element_type=jnp.float32)
        acc = d if acc is None else acc + d
    acc = acc + jnp.dot(src_ref[pl.ds((24 // 5) * w4 + 24 % 5, m), :],
                        wl_ref[...], preferred_element_type=jnp.float32)
    z_ref[...] = acc


def _pool_bn_relu(z_ref, dst_ref, scale_ref, shift_ref, *, h, w, zstride, w4n):
    """2x2 stride-2 max-pool (4 strided anchor reads per output row) + folded
    eval-mode BatchNorm + ReLU, written contiguously into the next stage's
    zero-padded flat bf16 scratch (interior offset = 2 rows / 2 cols)."""
    ho, wo = h // 2, w // 2
    scale = scale_ref[...]
    shift = shift_ref[...]
    for yp in range(ho):
        base = 2 * yp * zstride
        t00 = z_ref[pl.ds(base, wo, stride=2), :]
        t01 = z_ref[pl.ds(base + 1, wo, stride=2), :]
        t10 = z_ref[pl.ds(base + zstride, wo, stride=2), :]
        t11 = z_ref[pl.ds(base + zstride + 1, wo, stride=2), :]
        q = jnp.maximum(jnp.maximum(t00, t01), jnp.maximum(t10, t11))
        q = jnp.maximum(q * scale + shift, 0.0)
        dst_ref[pl.ds((2 + yp) * w4n + 2, wo), :] = q.astype(dst_ref.dtype)


# --------------------------------- the kernel --------------------------------

def _fused_kernel(x1_ref,
                  w1_ref, w2_ref, w3p_ref, w3l_ref, w4p_ref, w4l_ref,
                  sc1, sh1, sc2, sh2, sc3, sh3, sc4, sh4,
                  wc_ref, bc_ref,
                  o_ref,
                  z1, pad2, z2, pad3, z3, pad4, z4):
    """Whole network for ONE image (one grid step). All refs live in VMEM."""
    # Zero the padded activation scratch: unwritten rows/columns are the conv
    # zero-padding (scratch persists across grid steps / TensorCores).
    pad2[...] = jnp.zeros_like(pad2)
    pad3[...] = jnp.zeros_like(pad3)
    pad4[...] = jnp.zeros_like(pad4)

    # Stage 1: conv1 as a single im2col GEMM (M=256, K=80), pool/BN/ReLU.
    z1[...] = jnp.dot(x1_ref[...], w1_ref[...],
                      preferred_element_type=jnp.float32)
    _pool_bn_relu(z1, pad2, sc1, sh1, h=16, w=16, zstride=16, w4n=16)

    # Stage 2: conv2 (Cin=32), 25 tap GEMMs, register accumulated.
    _conv_single(pad2, z2, w2_ref, h=8, w=8, w4=16)
    _pool_bn_relu(z2, pad3, sc2, sh2, h=8, w=8, zstride=16, w4n=8)

    # Stage 3: conv3 (Cin=64), paired taps (K=128).
    _conv_paired(pad3, z3, w3p_ref, w3l_ref, h=4, w=4, w4=8)
    _pool_bn_relu(z3, pad4, sc3, sh3, h=4, w=4, zstride=8, w4n=8)

    # Stage 4: conv4 (Cin=128), paired taps (K=256).
    _conv_paired(pad4, z4, w4p_ref, w4l_ref, h=2, w=2, w4=8)
    # 2x2 pool -> 1x1, BN, ReLU.  Global-avg-pool over 1x1 is the identity.
    t = jnp.maximum(jnp.maximum(z4[0:1, :], z4[1:2, :]),
                    jnp.maximum(z4[8:9, :], z4[9:10, :]))
    feats = jnp.maximum(t * sc4[...] + sh4[...], 0.0)           # (1, 256) f32
    # Dropout(0.5) is identity in eval mode; classifier Linear(256 -> 2).
    o_ref[...] = (jnp.dot(feats, wc_ref[...],
                          preferred_element_type=jnp.float32)
                  + bc_ref[...]).astype(o_ref.dtype)


# ---------------------------- one-time param prep ----------------------------

def prepare_params(params, eps=1e-5):
    """Fold conv-bias + eval BatchNorm into per-channel scale/shift, reshape /
    pair / cast the conv weights to bf16.  Batch-size independent."""
    L = params["layers"]

    # Stage 1: full 5x5x3 im2col weight, K padded 75 -> 80.
    w1 = L[0]["w"].reshape(75, 32)
    w1 = jnp.pad(w1, ((0, 5), (0, 0))).astype(jnp.bfloat16)

    # Stage 2: per-tap weights (25, 32, 64).
    w2 = L[1]["w"].reshape(25, 32, 64).astype(jnp.bfloat16)

    # Stages 3/4: adjacent taps paired along K (12 pairs + 1 leftover tap).
    def pair_taps(w):
        _, _, cin, cout = w.shape
        wt = w.reshape(25, cin, cout)
        wp = wt[:24].reshape(12, 2 * cin, cout).astype(jnp.bfloat16)
        wl = wt[24].astype(jnp.bfloat16)
        return wp, wl

    w3p, w3l = pair_taps(L[2]["w"])
    w4p, w4l = pair_taps(L[3]["w"])

    sc, sh = [], []
    for lp in L:
        scale = lp["gamma"] / jnp.sqrt(lp["var"] + eps)
        shift = lp["beta"] + (lp["b"] - lp["mean"]) * scale  # bias commutes w/ max-pool
        sc.append(scale.reshape(1, -1).astype(jnp.float32))
        sh.append(shift.reshape(1, -1).astype(jnp.float32))

    wc = params["w_cls"].astype(jnp.float32)
    bc = params["b_cls"].reshape(1, 2).astype(jnp.float32)
    return (w1, w2, w3p, w3l, w4p, w4l,
            sc[0], sh[0], sc[1], sh[1], sc[2], sh[2], sc[3], sh[3], wc, bc)


# ----------------------------------- forward ----------------------------------

@jax.jit
def network_multi_loss_forward(x_nchw, prepared):
    """Default forward path of NetworkMultiLoss (eval mode) -> (N, 2) logits."""
    n, c, h, w = x_nchw.shape
    assert (c, h, w) == (3, 16, 16), "kernel geometry is specialized to 3x16x16"

    # Stage-1 im2col on the host: (N, 256, 80) bf16.
    y = jnp.transpose(x_nchw, (0, 2, 3, 1)).astype(jnp.float32)
    y = jnp.pad(y, ((0, 0), (2, 2), (2, 2), (0, 0)))
    taps = [y[:, ky:ky + 16, kx:kx + 16, :]
            for ky in range(5) for kx in range(5)]
    col = jnp.concatenate(taps, axis=-1).reshape(n, 256, 75)
    col = jnp.pad(col, ((0, 0), (0, 0), (0, 5))).astype(jnp.bfloat16)

    # Weights stay resident across grid steps (constant block index).
    weight_specs = [pl.BlockSpec(p.shape, lambda i, nd=p.ndim: (0,) * nd)
                    for p in prepared]
    in_specs = ([pl.BlockSpec((None, 256, 80), lambda i: (i, 0, 0))]
                + weight_specs)
    out_specs = pl.BlockSpec((None, 1, 2), lambda i: (i, 0, 0))

    scratch = [
        pltpu.VMEM((256, 32), jnp.float32),    # z1  : conv1 out (16x16)
        pltpu.VMEM((192, 32), jnp.bfloat16),   # pad2: 12x16 padded rows
        pltpu.VMEM((120, 64), jnp.float32),    # z2  : conv2 out (8x8, stride 16)
        pltpu.VMEM((64, 64), jnp.bfloat16),    # pad3: 8x8 padded rows
        pltpu.VMEM((28, 128), jnp.float32),    # z3  : conv3 out (4x4, stride 8)
        pltpu.VMEM((48, 128), jnp.bfloat16),   # pad4: 6x8 padded rows
        pltpu.VMEM((10, 256), jnp.float32),    # z4  : conv4 out (2x2, stride 8)
    ]

    out = pl.pallas_call(
        _fused_kernel,
        out_shape=jax.ShapeDtypeStruct((n, 1, 2), jnp.float32),
        grid=(n,),
        in_specs=in_specs,
        out_specs=out_specs,
        scratch_shapes=scratch,
        compiler_params=pltpu.CompilerParams(
            dimension_semantics=("parallel",),
            vmem_limit_bytes=32 * 1024 * 1024),
    )(col, *prepared)
    return out.reshape(n, 2)


# ------------------------------- parameter setup ------------------------------

def init_params(key):
    specs = [(3, 32), (32, 64), (64, 128), (128, 256)]
    layers = []
    for i, (cin, cout) in enumerate(specs):
        ks = jax.random.split(jax.random.fold_in(key, i), 6)
        layers.append({
            "w": 0.1 * jax.random.normal(ks[0], (5, 5, cin, cout), jnp.float32),
            "b": 0.1 * jax.random.normal(ks[1], (cout,), jnp.float32),
            "gamma": 1.0 + 0.1 * jax.random.normal(ks[2], (cout,), jnp.float32),
            "beta": 0.1 * jax.random.normal(ks[3], (cout,), jnp.float32),
            "mean": 0.1 * jax.random.normal(ks[4], (cout,), jnp.float32),
            "var": 1.0 + 0.5 * jnp.abs(jax.random.normal(ks[5], (cout,), jnp.float32)),
        })
    kc = jax.random.split(jax.random.fold_in(key, 100), 2)
    return {
        "layers": layers,
        "w_cls": 0.1 * jax.random.normal(kc[0], (256, 2), jnp.float32),
        "b_cls": 0.1 * jax.random.normal(kc[1], (2,), jnp.float32),
    }


# ------------------------------ pure-JAX reference -----------------------------

def reference_forward(x_nchw, params, eps=1e-5):
    y = jnp.transpose(x_nchw, (0, 2, 3, 1))
    for lp in params["layers"]:
        y = lax.conv_general_dilated(
            y, lp["w"], window_strides=(1, 1), padding=((2, 2), (2, 2)),
            dimension_numbers=("NHWC", "HWIO", "NHWC")) + lp["b"]
        y = lax.reduce_window(y, -jnp.inf, lax.max,
                              (1, 2, 2, 1), (1, 2, 2, 1), "VALID")
        y = (y - lp["mean"]) / jnp.sqrt(lp["var"] + eps) * lp["gamma"] + lp["beta"]
        y = jnp.maximum(y, 0.0)
    feat = jnp.mean(y, axis=(1, 2))
    return feat @ params["w_cls"] + params["b_cls"]


# ------------------------------------- main ------------------------------------

if __name__ == "__main__":
    key = jax.random.PRNGKey(0)
    k_x, k_p = jax.random.split(key)

    # PyTorch-style NCHW input: batch=2, channels=3, spatial 16 (16->8->4->2->1).
    x = jax.random.normal(k_x, (2, 3, 16, 16), jnp.float32)
    params = init_params(k_p)
    prepared = prepare_params(params)

    logits = jax.block_until_ready(network_multi_loss_forward(x, prepared))
    ref = jax.block_until_ready(reference_forward(x, params))

    np.testing.assert_allclose(np.asarray(logits), np.asarray(ref),
                               rtol=0.1, atol=0.1)
    assert logits.shape == (2, 2)
    print("KERNEL_OK")
</pallas_src>

<mosaic_0001>
module attributes {stable_mosaic.version = 11 : i64} {
  func.func @_fused_kernel(%arg0: i32, %arg1: memref<1x256x80xbf16, #tpu.memory_space<vmem>>, %arg2: memref<80x32xbf16, #tpu.memory_space<vmem>>, %arg3: memref<25x32x64xbf16, #tpu.memory_space<vmem>>, %arg4: memref<12x128x128xbf16, #tpu.memory_space<vmem>>, %arg5: memref<64x128xbf16, #tpu.memory_space<vmem>>, %arg6: memref<12x256x256xbf16, #tpu.memory_space<vmem>>, %arg7: memref<128x256xbf16, #tpu.memory_space<vmem>>, %arg8: memref<1x32xf32, #tpu.memory_space<vmem>>, %arg9: memref<1x32xf32, #tpu.memory_space<vmem>>, %arg10: memref<1x64xf32, #tpu.memory_space<vmem>>, %arg11: memref<1x64xf32, #tpu.memory_space<vmem>>, %arg12: memref<1x128xf32, #tpu.memory_space<vmem>>, %arg13: memref<1x128xf32, #tpu.memory_space<vmem>>, %arg14: memref<1x256xf32, #tpu.memory_space<vmem>>, %arg15: memref<1x256xf32, #tpu.memory_space<vmem>>, %arg16: memref<256x2xf32, #tpu.memory_space<vmem>>, %arg17: memref<1x2xf32, #tpu.memory_space<vmem>>, %arg18: memref<1x1x2xf32, #tpu.memory_space<vmem>>, %arg19: memref<256x32xf32, #tpu.memory_space<vmem>>, %arg20: memref<192x32xbf16, #tpu.memory_space<vmem>>, %arg21: memref<120x64xf32, #tpu.memory_space<vmem>>, %arg22: memref<64x64xbf16, #tpu.memory_space<vmem>>, %arg23: memref<28x128xf32, #tpu.memory_space<vmem>>, %arg24: memref<48x128xbf16, #tpu.memory_space<vmem>>, %arg25: memref<10x256xf32, #tpu.memory_space<vmem>>) attributes {dimension_semantics = [#tpu.dimension_semantics<parallel>], iteration_bounds = array<i64: 2>, scalar_prefetch = 0 : i64, scratch_operands = 7 : i64, tpu.core_type = #tpu.core_type<tc>, window_params = [{transform_indices = @transform_0, window_bounds = array<i64: 1, 256, 80>}, {pipeline_mode = #tpu.pipeline_mode<synchronous>, transform_indices = @transform_1, window_bounds = array<i64: 80, 32>}, {pipeline_mode = #tpu.pipeline_mode<synchronous>, transform_indices = @transform_2, window_bounds = array<i64: 25, 32, 64>}, {pipeline_mode = #tpu.pipeline_mode<synchronous>, transform_indices = @transform_3, window_bounds = array<i64: 12, 128, 128>}, {pipeline_mode = #tpu.pipeline_mode<synchronous>, transform_indices = @transform_4, window_bounds = array<i64: 64, 128>}, {pipeline_mode = #tpu.pipeline_mode<synchronous>, transform_indices = @transform_5, window_bounds = array<i64: 12, 256, 256>}, {pipeline_mode = #tpu.pipeline_mode<synchronous>, transform_indices = @transform_6, window_bounds = array<i64: 128, 256>}, {pipeline_mode = #tpu.pipeline_mode<synchronous>, transform_indices = @transform_7, window_bounds = array<i64: 1, 32>}, {pipeline_mode = #tpu.pipeline_mode<synchronous>, transform_indices = @transform_8, window_bounds = array<i64: 1, 32>}, {pipeline_mode = #tpu.pipeline_mode<synchronous>, transform_indices = @transform_9, window_bounds = array<i64: 1, 64>}, {pipeline_mode = #tpu.pipeline_mode<synchronous>, transform_indices = @transform_10, window_bounds = array<i64: 1, 64>}, {pipeline_mode = #tpu.pipeline_mode<synchronous>, transform_indices = @transform_11, window_bounds = array<i64: 1, 128>}, {pipeline_mode = #tpu.pipeline_mode<synchronous>, transform_indices = @transform_12, window_bounds = array<i64: 1, 128>}, {pipeline_mode = #tpu.pipeline_mode<synchronous>, transform_indices = @transform_13, window_bounds = array<i64: 1, 256>}, {pipeline_mode = #tpu.pipeline_mode<synchronous>, transform_indices = @transform_14, window_bounds = array<i64: 1, 256>}, {pipeline_mode = #tpu.pipeline_mode<synchronous>, transform_indices = @transform_15, window_bounds = array<i64: 256, 2>}, {pipeline_mode = #tpu.pipeline_mode<synchronous>, transform_indices = @transform_16, window_bounds = array<i64: 1, 2>}, {transform_indices = @transform_17, window_bounds = array<i64: 1, 1, 2>}]} {
    %cst = arith.constant 0.000000e+00 : bf16
    %0 = vector.broadcast %cst : bf16 to vector<192x32xbf16>
    %c0 = arith.constant 0 : index
    %c0_0 = arith.constant 0 : index
    %1 = vector.load %arg20[%c0, %c0_0] : memref<192x32xbf16, #tpu.memory_space<vmem>>, vector<192x32xbf16>
    tpu.vector_store %arg20[%c0, %c0_0], %0 {strides = array<i32>} : memref<192x32xbf16, #tpu.memory_space<vmem>>, vector<192x32xbf16>,
    %cst_1 = arith.constant 0.000000e+00 : bf16
    %2 = vector.broadcast %cst_1 : bf16 to vector<64x64xbf16>
    %c0_2 = arith.constant 0 : index
    %c0_3 = arith.constant 0 : index
    %3 = vector.load %arg22[%c0_2, %c0_3] : memref<64x64xbf16, #tpu.memory_space<vmem>>, vector<64x64xbf16>
    tpu.vector_store %arg22[%c0_2, %c0_3], %2 {strides = array<i32>} : memref<64x64xbf16, #tpu.memory_space<vmem>>, vector<64x64xbf16>,
    %cst_4 = arith.constant 0.000000e+00 : bf16
    %4 = vector.broadcast %cst_4 : bf16 to vector<48x128xbf16>
    %c0_5 = arith.constant 0 : index
    %c0_6 = arith.constant 0 : index
    %5 = vector.load %arg24[%c0_5, %c0_6] : memref<48x128xbf16, #tpu.memory_space<vmem>>, vector<48x128xbf16>
    tpu.vector_store %arg24[%c0_5, %c0_6], %4 {strides = array<i32>} : memref<48x128xbf16, #tpu.memory_space<vmem>>, vector<48x128xbf16>,
    %c0_7 = arith.constant 0 : index
    %c0_8 = arith.constant 0 : index
    %c0_9 = arith.constant 0 : index
    %6 = vector.load %arg1[%c0_7, %c0_8, %c0_9] : memref<1x256x80xbf16, #tpu.memory_space<vmem>>, vector<1x256x80xbf16>
    %7 = vector.shape_cast %6 : vector<1x256x80xbf16> to vector<256x80xbf16>
    %c0_10 = arith.constant 0 : index
    %c0_11 = arith.constant 0 : index
    %8 = vector.load %arg2[%c0_10, %c0_11] : memref<80x32xbf16, #tpu.memory_space<vmem>>, vector<80x32xbf16>
    %cst_12 = arith.constant dense<0.000000e+00> : vector<256x32xf32>
    %9 = tpu.matmul %7, %8, %cst_12 {dimension_numbers = #tpu.dot_dimension_numbers<[1], [0], [0], [1], [0, 0, 1, 1], [], []>} : vector<256x80xbf16>, vector<80x32xbf16>, vector<256x32xf32> -> vector<256x32xf32>
    %c0_13 = arith.constant 0 : index
    %c0_14 = arith.constant 0 : index
    %10 = vector.load %arg19[%c0_13, %c0_14] : memref<256x32xf32, #tpu.memory_space<vmem>>, vector<256x32xf32>
    tpu.vector_store %arg19[%c0_13, %c0_14], %9 {strides = array<i32>} : memref<256x32xf32, #tpu.memory_space<vmem>>, vector<256x32xf32>,
    %c0_15 = arith.constant 0 : index
    %c0_16 = arith.constant 0 : index
    %11 = vector.load %arg8[%c0_15, %c0_16] : memref<1x32xf32, #tpu.memory_space<vmem>>, vector<1x32xf32>
    %c0_17 = arith.constant 0 : index
    %c0_18 = arith.constant 0 : index
    %12 = vector.load %arg9[%c0_17, %c0_18] : memref<1x32xf32, #tpu.memory_space<vmem>>, vector<1x32xf32>
    %c0_19 = arith.constant 0 : index
    %c0_20 = arith.constant 0 : index
    %13 = tpu.strided_load %arg19[%c0_19, %c0_20] {strides = array<i32: 2, 1>} : memref<256x32xf32, #tpu.memory_space<vmem>>, vector<8x32xf32>
    %c1 = arith.constant 1 : index
    %c0_21 = arith.constant 0 : index
    %14 = tpu.strided_load %arg19[%c1, %c0_21] {strides = array<i32: 2, 1>} : memref<256x32xf32, #tpu.memory_space<vmem>>, vector<8x32xf32>
    %c16 = arith.constant 16 : index
    %c0_22 = arith.constant 0 : index
    %15 = tpu.strided_load %arg19[%c16, %c0_22] {strides = array<i32: 2, 1>} : memref<256x32xf32, #tpu.memory_space<vmem>>, vector<8x32xf32>
    %c17 = arith.constant 17 : index
    %c0_23 = arith.constant 0 : index
    %16 = tpu.strided_load %arg19[%c17, %c0_23] {strides = array<i32: 2, 1>} : memref<256x32xf32, #tpu.memory_space<vmem>>, vector<8x32xf32>
    %17 = arith.maximumf %13, %14 : vector<8x32xf32>
    %18 = arith.maximumf %15, %16 : vector<8x32xf32>
    %19 = arith.maximumf %17, %18 : vector<8x32xf32>
    %20 = vector.broadcast %11 : vector<1x32xf32> to vector<8x32xf32>
    %21 = arith.mulf %19, %20 : vector<8x32xf32>
    %22 = vector.broadcast %12 : vector<1x32xf32> to vector<8x32xf32>
    %23 = arith.addf %21, %22 : vector<8x32xf32>
    %cst_24 = arith.constant 0.000000e+00 : f32
    %24 = vector.broadcast %cst_24 : f32 to vector<8x32xf32>
    %25 = arith.maximumf %23, %24 : vector<8x32xf32>
    %26 = arith.truncf %25 : vector<8x32xf32> to vector<8x32xbf16>
    %c34 = arith.constant 34 : index
    %c0_25 = arith.constant 0 : index
    %27 = vector.load %arg20[%c34, %c0_25] : memref<192x32xbf16, #tpu.memory_space<vmem>>, vector<8x32xbf16>
    tpu.vector_store %arg20[%c34, %c0_25], %26 {strides = array<i32>} : memref<192x32xbf16, #tpu.memory_space<vmem>>, vector<8x32xbf16>,
    %c32 = arith.constant 32 : index
    %c0_26 = arith.constant 0 : index
    %28 = tpu.strided_load %arg19[%c32, %c0_26] {strides = array<i32: 2, 1>} : memref<256x32xf32, #tpu.memory_space<vmem>>, vector<8x32xf32>
    %c33 = arith.constant 33 : index
    %c0_27 = arith.constant 0 : index
    %29 = tpu.strided_load %arg19[%c33, %c0_27] {strides = array<i32: 2, 1>} : memref<256x32xf32, #tpu.memory_space<vmem>>, vector<8x32xf32>
    %c48 = arith.constant 48 : index
    %c0_28 = arith.constant 0 : index
    %30 = tpu.strided_load %arg19[%c48, %c0_28] {strides = array<i32: 2, 1>} : memref<256x32xf32, #tpu.memory_space<vmem>>, vector<8x32xf32>
    %c49 = arith.constant 49 : index
    %c0_29 = arith.constant 0 : index
    %31 = tpu.strided_load %arg19[%c49, %c0_29] {strides = array<i32: 2, 1>} : memref<256x32xf32, #tpu.memory_space<vmem>>, vector<8x32xf32>
    %32 = arith.maximumf %28, %29 : vector<8x32xf32>
    %33 = arith.maximumf %30, %31 : vector<8x32xf32>
    %34 = arith.maximumf %32, %33 : vector<8x32xf32>
    %35 = vector.broadcast %11 : vector<1x32xf32> to vector<8x32xf32>
    %36 = arith.mulf %34, %35 : vector<8x32xf32>
    %37 = vector.broadcast %12 : vector<1x32xf32> to vector<8x32xf32>
    %38 = arith.addf %36, %37 : vector<8x32xf32>
    %cst_30 = arith.constant 0.000000e+00 : f32
    %39 = vector.broadcast %cst_30 : f32 to vector<8x32xf32>
    %40 = arith.maximumf %38, %39 : vector<8x32xf32>
    %41 = arith.truncf %40 : vector<8x32xf32> to vector<8x32xbf16>
    %c50 = arith.constant 50 : index
    %c0_31 = arith.constant 0 : index
    %42 = vector.load %arg20[%c50, %c0_31] : memref<192x32xbf16, #tpu.memory_space<vmem>>, vector<8x32xbf16>
    tpu.vector_store %arg20[%c50, %c0_31], %41 {strides = array<i32>} : memref<192x32xbf16, #tpu.memory_space<vmem>>, vector<8x32xbf16>,
    %c64 = arith.constant 64 : index
    %c0_32 = arith.constant 0 : index
    %43 = tpu.strided_load %arg19[%c64, %c0_32] {strides = array<i32: 2, 1>} : memref<256x32xf32, #tpu.memory_space<vmem>>, vector<8x32xf32>
    %c65 = arith.constant 65 : index
    %c0_33 = arith.constant 0 : index
    %44 = tpu.strided_load %arg19[%c65, %c0_33] {strides = array<i32: 2, 1>} : memref<256x32xf32, #tpu.memory_space<vmem>>, vector<8x32xf32>
    %c80 = arith.constant 80 : index
    %c0_34 = arith.constant 0 : index
    %45 = tpu.strided_load %arg19[%c80, %c0_34] {strides = array<i32: 2, 1>} : memref<256x32xf32, #tpu.memory_space<vmem>>, vector<8x32xf32>
    %c81 = arith.constant 81 : index
    %c0_35 = arith.constant 0 : index
    %46 = tpu.strided_load %arg19[%c81, %c0_35] {strides = array<i32: 2, 1>} : memref<256x32xf32, #tpu.memory_space<vmem>>, vector<8x32xf32>
    %47 = arith.maximumf %43, %44 : vector<8x32xf32>
    %48 = arith.maximumf %45, %46 : vector<8x32xf32>
    %49 = arith.maximumf %47, %48 : vector<8x32xf32>
    %50 = vector.broadcast %11 : vector<1x32xf32> to vector<8x32xf32>
    %51 = arith.mulf %49, %50 : vector<8x32xf32>
    %52 = vector.broadcast %12 : vector<1x32xf32> to vector<8x32xf32>
    %53 = arith.addf %51, %52 : vector<8x32xf32>
    %cst_36 = arith.constant 0.000000e+00 : f32
    %54 = vector.broadcast %cst_36 : f32 to vector<8x32xf32>
    %55 = arith.maximumf %53, %54 : vector<8x32xf32>
    %56 = arith.truncf %55 : vector<8x32xf32> to vector<8x32xbf16>
    %c66 = arith.constant 66 : index
    %c0_37 = arith.constant 0 : index
    %57 = vector.load %arg20[%c66, %c0_37] : memref<192x32xbf16, #tpu.memory_space<vmem>>, vector<8x32xbf16>
    tpu.vector_store %arg20[%c66, %c0_37], %56 {strides = array<i32>} : memref<192x32xbf16, #tpu.memory_space<vmem>>, vector<8x32xbf16>,
    %c96 = arith.constant 96 : index
    %c0_38 = arith.constant 0 : index
    %58 = tpu.strided_load %arg19[%c96, %c0_38] {strides = array<i32: 2, 1>} : memref<256x32xf32, #tpu.memory_space<vmem>>, vector<8x32xf32>
    %c97 = arith.constant 97 : index
    %c0_39 = arith.constant 0 : index
    %59 = tpu.strided_load %arg19[%c97, %c0_39] {strides = array<i32: 2, 1>} : memref<256x32xf32, #tpu.memory_space<vmem>>, vector<8x32xf32>
    %c112 = arith.constant 112 : index
    %c0_40 = arith.constant 0 : index
    %60 = tpu.strided_load %arg19[%c112, %c0_40] {strides = array<i32: 2, 1>} : memref<256x32xf32, #tpu.memory_space<vmem>>, vector<8x32xf32>
    %c113 = arith.constant 113 : index
    %c0_41 = arith.constant 0 : index
    %61 = tpu.strided_load %arg19[%c113, %c0_41] {strides = array<i32: 2, 1>} : memref<256x32xf32, #tpu.memory_space<vmem>>, vector<8x32xf32>
    %62 = arith.maximumf %58, %59 : vector<8x32xf32>
    %63 = arith.maximumf %60, %61 : vector<8x32xf32>
    %64 = arith.maximumf %62, %63 : vector<8x32xf32>
    %65 = vector.broadcast %11 : vector<1x32xf32> to vector<8x32xf32>
    %66 = arith.mulf %64, %65 : vector<8x32xf32>
    %67 = vector.broadcast %12 : vector<1x32xf32> to vector<8x32xf32>
    %68 = arith.addf %66, %67 : vector<8x32xf32>
    %cst_42 = arith.constant 0.000000e+00 : f32
    %69 = vector.broadcast %cst_42 : f32 to vector<8x32xf32>
    %70 = arith.maximumf %68, %69 : vector<8x32xf32>
    %71 = arith.truncf %70 : vector<8x32xf32> to vector<8x32xbf16>
    %c82 = arith.constant 82 : index
    %c0_43 = arith.constant 0 : index
    %72 = vector.load %arg20[%c82, %c0_43] : memref<192x32xbf16, #tpu.memory_space<vmem>>, vector<8x32xbf16>
    tpu.vector_store %arg20[%c82, %c0_43], %71 {strides = array<i32>} : memref<192x32xbf16, #tpu.memory_space<vmem>>, vector<8x32xbf16>,
    %c128 = arith.constant 128 : index
    %c0_44 = arith.constant 0 : index
    %73 = tpu.strided_load %arg19[%c128, %c0_44] {strides = array<i32: 2, 1>} : memref<256x32xf32, #tpu.memory_space<vmem>>, vector<8x32xf32>
    %c129 = arith.constant 129 : index
    %c0_45 = arith.constant 0 : index
    %74 = tpu.strided_load %arg19[%c129, %c0_45] {strides = array<i32: 2, 1>} : memref<256x32xf32, #tpu.memory_space<vmem>>, vector<8x32xf32>
    %c144 = arith.constant 144 : index
    %c0_46 = arith.constant 0 : index
    %75 = tpu.strided_load %arg19[%c144, %c0_46] {strides = array<i32: 2, 1>} : memref<256x32xf32, #tpu.memory_space<vmem>>, vector<8x32xf32>
    %c145 = arith.constant 145 : index
    %c0_47 = arith.constant 0 : index
    %76 = tpu.strided_load %arg19[%c145, %c0_47] {strides = array<i32: 2, 1>} : memref<256x32xf32, #tpu.memory_space<vmem>>, vector<8x32xf32>
    %77 = arith.maximumf %73, %74 : vector<8x32xf32>
    %78 = arith.maximumf %75, %76 : vector<8x32xf32>
    %79 = arith.maximumf %77, %78 : vector<8x32xf32>
    %80 = vector.broadcast %11 : vector<1x32xf32> to vector<8x32xf32>
    %81 = arith.mulf %79, %80 : vector<8x32xf32>
    %82 = vector.broadcast %12 : vector<1x32xf32> to vector<8x32xf32>
    %83 = arith.addf %81, %82 : vector<8x32xf32>
    %cst_48 = arith.constant 0.000000e+00 : f32
    %84 = vector.broadcast %cst_48 : f32 to vector<8x32xf32>
    %85 = arith.maximumf %83, %84 : vector<8x32xf32>
    %86 = arith.truncf %85 : vector<8x32xf32> to vector<8x32xbf16>
    %c98 = arith.constant 98 : index
    %c0_49 = arith.constant 0 : index
    %87 = vector.load %arg20[%c98, %c0_49] : memref<192x32xbf16, #tpu.memory_space<vmem>>, vector<8x32xbf16>
    tpu.vector_store %arg20[%c98, %c0_49], %86 {strides = array<i32>} : memref<192x32xbf16, #tpu.memory_space<vmem>>, vector<8x32xbf16>,
    %c160 = arith.constant 160 : index
    %c0_50 = arith.constant 0 : index
    %88 = tpu.strided_load %arg19[%c160, %c0_50] {strides = array<i32: 2, 1>} : memref<256x32xf32, #tpu.memory_space<vmem>>, vector<8x32xf32>
    %c161 = arith.constant 161 : index
    %c0_51 = arith.constant 0 : index
    %89 = tpu.strided_load %arg19[%c161, %c0_51] {strides = array<i32: 2, 1>} : memref<256x32xf32, #tpu.memory_space<vmem>>, vector<8x32xf32>
    %c176 = arith.constant 176 : index
    %c0_52 = arith.constant 0 : index
    %90 = tpu.strided_load %arg19[%c176, %c0_52] {strides = array<i32: 2, 1>} : memref<256x32xf32, #tpu.memory_space<vmem>>, vector<8x32xf32>
    %c177 = arith.constant 177 : index
    %c0_53 = arith.constant 0 : index
    %91 = tpu.strided_load %arg19[%c177, %c0_53] {strides = array<i32: 2, 1>} : memref<256x32xf32, #tpu.memory_space<vmem>>, vector<8x32xf32>
    %92 = arith.maximumf %88, %89 : vector<8x32xf32>
    %93 = arith.maximumf %90, %91 : vector<8x32xf32>
    %94 = arith.maximumf %92, %93 : vector<8x32xf32>
    %95 = vector.broadcast %11 : vector<1x32xf32> to vector<8x32xf32>
    %96 = arith.mulf %94, %95 : vector<8x32xf32>
    %97 = vector.broadcast %12 : vector<1x32xf32> to vector<8x32xf32>
    %98 = arith.addf %96, %97 : vector<8x32xf32>
    %cst_54 = arith.constant 0.000000e+00 : f32
    %99 = vector.broadcast %cst_54 : f32 to vector<8x32xf32>
    %100 = arith.maximumf %98, %99 : vector<8x32xf32>
    %101 = arith.truncf %100 : vector<8x32xf32> to vector<8x32xbf16>
    %c114 = arith.constant 114 : index
    %c0_55 = arith.constant 0 : index
    %102 = vector.load %arg20[%c114, %c0_55] : memref<192x32xbf16, #tpu.memory_space<vmem>>, vector<8x32xbf16>
    tpu.vector_store %arg20[%c114, %c0_55], %101 {strides = array<i32>} : memref<192x32xbf16, #tpu.memory_space<vmem>>, vector<8x32xbf16>,
    %c192 = arith.constant 192 : index
    %c0_56 = arith.constant 0 : index
    %103 = tpu.strided_load %arg19[%c192, %c0_56] {strides = array<i32: 2, 1>} : memref<256x32xf32, #tpu.memory_space<vmem>>, vector<8x32xf32>
    %c193 = arith.constant 193 : index
    %c0_57 = arith.constant 0 : index
    %104 = tpu.strided_load %arg19[%c193, %c0_57] {strides = array<i32: 2, 1>} : memref<256x32xf32, #tpu.memory_space<vmem>>, vector<8x32xf32>
    %c208 = arith.constant 208 : index
    %c0_58 = arith.constant 0 : index
    %105 = tpu.strided_load %arg19[%c208, %c0_58] {strides = array<i32: 2, 1>} : memref<256x32xf32, #tpu.memory_space<vmem>>, vector<8x32xf32>
    %c209 = arith.constant 209 : index
    %c0_59 = arith.constant 0 : index
    %106 = tpu.strided_load %arg19[%c209, %c0_59] {strides = array<i32: 2, 1>} : memref<256x32xf32, #tpu.memory_space<vmem>>, vector<8x32xf32>
    %107 = arith.maximumf %103, %104 : vector<8x32xf32>
    %108 = arith.maximumf %105, %106 : vector<8x32xf32>
    %109 = arith.maximumf %107, %108 : vector<8x32xf32>
    %110 = vector.broadcast %11 : vector<1x32xf32> to vector<8x32xf32>
    %111 = arith.mulf %109, %110 : vector<8x32xf32>
    %112 = vector.broadcast %12 : vector<1x32xf32> to vector<8x32xf32>
    %113 = arith.addf %111, %112 : vector<8x32xf32>
    %cst_60 = arith.constant 0.000000e+00 : f32
    %114 = vector.broadcast %cst_60 : f32 to vector<8x32xf32>
    %115 = arith.maximumf %113, %114 : vector<8x32xf32>
    %116 = arith.truncf %115 : vector<8x32xf32> to vector<8x32xbf16>
    %c130 = arith.constant 130 : index
    %c0_61 = arith.constant 0 : index
    %117 = vector.load %arg20[%c130, %c0_61] : memref<192x32xbf16, #tpu.memory_space<vmem>>, vector<8x32xbf16>
    tpu.vector_store %arg20[%c130, %c0_61], %116 {strides = array<i32>} : memref<192x32xbf16, #tpu.memory_space<vmem>>, vector<8x32xbf16>,
    %c224 = arith.constant 224 : index
    %c0_62 = arith.constant 0 : index
    %118 = tpu.strided_load %arg19[%c224, %c0_62] {strides = array<i32: 2, 1>} : memref<256x32xf32, #tpu.memory_space<vmem>>, vector<8x32xf32>
    %c225 = arith.constant 225 : index
    %c0_63 = arith.constant 0 : index
    %119 = tpu.strided_load %arg19[%c225, %c0_63] {strides = array<i32: 2, 1>} : memref<256x32xf32, #tpu.memory_space<vmem>>, vector<8x32xf32>
    %c240 = arith.constant 240 : index
    %c0_64 = arith.constant 0 : index
    %120 = tpu.strided_load %arg19[%c240, %c0_64] {strides = array<i32: 2, 1>} : memref<256x32xf32, #tpu.memory_space<vmem>>, vector<8x32xf32>
    %c241 = arith.constant 241 : index
    %c0_65 = arith.constant 0 : index
    %121 = tpu.strided_load %arg19[%c241, %c0_65] {strides = array<i32: 2, 1>} : memref<256x32xf32, #tpu.memory_space<vmem>>, vector<8x32xf32>
    %122 = arith.maximumf %118, %119 : vector<8x32xf32>
    %123 = arith.maximumf %120, %121 : vector<8x32xf32>
    %124 = arith.maximumf %122, %123 : vector<8x32xf32>
    %125 = vector.broadcast %11 : vector<1x32xf32> to vector<8x32xf32>
    %126 = arith.mulf %124, %125 : vector<8x32xf32>
    %127 = vector.broadcast %12 : vector<1x32xf32> to vector<8x32xf32>
    %128 = arith.addf %126, %127 : vector<8x32xf32>
    %cst_66 = arith.constant 0.000000e+00 : f32
    %129 = vector.broadcast %cst_66 : f32 to vector<8x32xf32>
    %130 = arith.maximumf %128, %129 : vector<8x32xf32>
    %131 = arith.truncf %130 : vector<8x32xf32> to vector<8x32xbf16>
    %c146 = arith.constant 146 : index
    %c0_67 = arith.constant 0 : index
    %132 = vector.load %arg20[%c146, %c0_67] : memref<192x32xbf16, #tpu.memory_space<vmem>>, vector<8x32xbf16>
    tpu.vector_store %arg20[%c146, %c0_67], %131 {strides = array<i32>} : memref<192x32xbf16, #tpu.memory_space<vmem>>, vector<8x32xbf16>,
    %c0_68 = arith.constant 0 : index
    %c0_69 = arith.constant 0 : index
    %133 = vector.load %arg20[%c0_68, %c0_69] : memref<192x32xbf16, #tpu.memory_space<vmem>>, vector<120x32xbf16>
    %c0_70 = arith.constant 0 : index
    %c0_71 = arith.constant 0 : index
    %c0_72 = arith.constant 0 : index
    %134 = vector.load %arg3[%c0_70, %c0_71, %c0_72] : memref<25x32x64xbf16, #tpu.memory_space<vmem>>, vector<1x32x64xbf16>
    %135 = vector.shape_cast %134 : vector<1x32x64xbf16> to vector<32x64xbf16>
    %cst_73 = arith.constant dense<0.000000e+00> : vector<120x64xf32>
    %136 = tpu.matmul %133, %135, %cst_73 {dimension_numbers = #tpu.dot_dimension_numbers<[1], [0], [0], [1], [0, 0, 1, 1], [], []>} : vector<120x32xbf16>, vector<32x64xbf16>, vector<120x64xf32> -> vector<120x64xf32>
    %c1_74 = arith.constant 1 : index
    %c0_75 = arith.constant 0 : index
    %137 = vector.load %arg20[%c1_74, %c0_75] : memref<192x32xbf16, #tpu.memory_space<vmem>>, vector<120x32xbf16>
    %c1_76 = arith.constant 1 : index
    %c0_77 = arith.constant 0 : index
    %c0_78 = arith.constant 0 : index
    %138 = vector.load %arg3[%c1_76, %c0_77, %c0_78] : memref<25x32x64xbf16, #tpu.memory_space<vmem>>, vector<1x32x64xbf16>
    %139 = vector.shape_cast %138 : vector<1x32x64xbf16> to vector<32x64xbf16>
    %cst_79 = arith.constant dense<0.000000e+00> : vector<120x64xf32>
    %140 = tpu.matmul %137, %139, %cst_79 {dimension_numbers = #tpu.dot_dimension_numbers<[1], [0], [0], [1], [0, 0, 1, 1], [], []>} : vector<120x32xbf16>, vector<32x64xbf16>, vector<120x64xf32> -> vector<120x64xf32>
    %141 = arith.addf %136, %140 : vector<120x64xf32>
    %c2 = arith.constant 2 : index
    %c0_80 = arith.constant 0 : index
    %142 = vector.load %arg20[%c2, %c0_80] : memref<192x32xbf16, #tpu.memory_space<vmem>>, vector<120x32xbf16>
    %c2_81 = arith.constant 2 : index
    %c0_82 = arith.constant 0 : index
    %c0_83 = arith.constant 0 : index
    %143 = vector.load %arg3[%c2_81, %c0_82, %c0_83] : memref<25x32x64xbf16, #tpu.memory_space<vmem>>, vector<1x32x64xbf16>
    %144 = vector.shape_cast %143 : vector<1x32x64xbf16> to vector<32x64xbf16>
    %cst_84 = arith.constant dense<0.000000e+00> : vector<120x64xf32>
    %145 = tpu.matmul %142, %144, %cst_84 {dimension_numbers = #tpu.dot_dimension_numbers<[1], [0], [0], [1], [0, 0, 1, 1], [], []>} : vector<120x32xbf16>, vector<32x64xbf16>, vector<120x64xf32> -> vector<120x64xf32>
    %146 = arith.addf %141, %145 : vector<120x64xf32>
    %c3 = arith.constant 3 : index
    %c0_85 = arith.constant 0 : index
    %147 = vector.load %arg20[%c3, %c0_85] : memref<192x32xbf16, #tpu.memory_space<vmem>>, vector<120x32xbf16>
    %c3_86 = arith.constant 3 : index
    %c0_87 = arith.constant 0 : index
    %c0_88 = arith.constant 0 : index
    %148 = vector.load %arg3[%c3_86, %c0_87, %c0_88] : memref<25x32x64xbf16, #tpu.memory_space<vmem>>, vector<1x32x64xbf16>
    %149 = vector.shape_cast %148 : vector<1x32x64xbf16> to vector<32x64xbf16>
    %cst_89 = arith.constant dense<0.000000e+00> : vector<120x64xf32>
    %150 = tpu.matmul %147, %149, %cst_89 {dimension_numbers = #tpu.dot_dimension_numbers<[1], [0], [0], [1], [0, 0, 1, 1], [], []>} : vector<120x32xbf16>, vector<32x64xbf16>, vector<120x64xf32> -> vector<120x64xf32>
    %151 = arith.addf %146, %150 : vector<120x64xf32>
    %c4 = arith.constant 4 : index
    %c0_90 = arith.constant 0 : index
    %152 = vector.load %arg20[%c4, %c0_90] : memref<192x32xbf16, #tpu.memory_space<vmem>>, vector<120x32xbf16>
    %c4_91 = arith.constant 4 : index
    %c0_92 = arith.constant 0 : index
    %c0_93 = arith.constant 0 : index
    %153 = vector.load %arg3[%c4_91, %c0_92, %c0_93] : memref<25x32x64xbf16, #tpu.memory_space<vmem>>, vector<1x32x64xbf16>
    %154 = vector.shape_cast %153 : vector<1x32x64xbf16> to vector<32x64xbf16>
    %cst_94 = arith.constant dense<0.000000e+00> : vector<120x64xf32>
    %155 = tpu.matmul %152, %154, %cst_94 {dimension_numbers = #tpu.dot_dimension_numbers<[1], [0], [0], [1], [0, 0, 1, 1], [], []>} : vector<120x32xbf16>, vector<32x64xbf16>, vector<120x64xf32> -> vector<120x64xf32>
    %156 = arith.addf %151, %155 : vector<120x64xf32>
    %c16_95 = arith.constant 16 : index
    %c0_96 = arith.constant 0 : index
    %157 = vector.load %arg20[%c16_95, %c0_96] : memref<192x32xbf16, #tpu.memory_space<vmem>>, vector<120x32xbf16>
    %c5 = arith.constant 5 : index
    %c0_97 = arith.constant 0 : index
    %c0_98 = arith.constant 0 : index
    %158 = vector.load %arg3[%c5, %c0_97, %c0_98] : memref<25x32x64xbf16, #tpu.memory_space<vmem>>, vector<1x32x64xbf16>
    %159 = vector.shape_cast %158 : vector<1x32x64xbf16> to vector<32x64xbf16>
    %cst_99 = arith.constant dense<0.000000e+00> : vector<120x64xf32>
    %160 = tpu.matmul %157, %159, %cst_99 {dimension_numbers = #tpu.dot_dimension_numbers<[1], [0], [0], [1], [0, 0, 1, 1], [], []>} : vector<120x32xbf16>, vector<32x64xbf16>, vector<120x64xf32> -> vector<120x64xf32>
    %161 = arith.addf %156, %160 : vector<120x64xf32>
    %c17_100 = arith.constant 17 : index
    %c0_101 = arith.constant 0 : index
    %162 = vector.load %arg20[%c17_100, %c0_101] : memref<192x32xbf16, #tpu.memory_space<vmem>>, vector<120x32xbf16>
    %c6 = arith.constant 6 : index
    %c0_102 = arith.constant 0 : index
    %c0_103 = arith.constant 0 : index
    %163 = vector.load %arg3[%c6, %c0_102, %c0_103] : memref<25x32x64xbf16, #tpu.memory_space<vmem>>, vector<1x32x64xbf16>
    %164 = vector.shape_cast %163 : vector<1x32x64xbf16> to vector<32x64xbf16>
    %cst_104 = arith.constant dense<0.000000e+00> : vector<120x64xf32>
    %165 = tpu.matmul %162, %164, %cst_104 {dimension_numbers = #tpu.dot_dimension_numbers<[1], [0], [0], [1], [0, 0, 1, 1], [], []>} : vector<120x32xbf16>, vector<32x64xbf16>, vector<120x64xf32> -> vector<120x64xf32>
    %166 = arith.addf %161, %165 : vector<120x64xf32>
    %c18 = arith.constant 18 : index
    %c0_105 = arith.constant 0 : index
    %167 = vector.load %arg20[%c18, %c0_105] : memref<192x32xbf16, #tpu.memory_space<vmem>>, vector<120x32xbf16>
    %c7 = arith.constant 7 : index
    %c0_106 = arith.constant 0 : index
    %c0_107 = arith.constant 0 : index
    %168 = vector.load %arg3[%c7, %c0_106, %c0_107] : memref<25x32x64xbf16, #tpu.memory_space<vmem>>, vector<1x32x64xbf16>
    %169 = vector.shape_cast %168 : vector<1x32x64xbf16> to vector<32x64xbf16>
    %cst_108 = arith.constant dense<0.000000e+00> : vector<120x64xf32>
    %170 = tpu.matmul %167, %169, %cst_108 {dimension_numbers = #tpu.dot_dimension_numbers<[1], [0], [0], [1], [0, 0, 1, 1], [], []>} : vector<120x32xbf16>, vector<32x64xbf16>, vector<120x64xf32> -> vector<120x64xf32>
    %171 = arith.addf %166, %170 : vector<120x64xf32>
    %c19 = arith.constant 19 : index
    %c0_109 = arith.constant 0 : index
    %172 = vector.load %arg20[%c19, %c0_109] : memref<192x32xbf16, #tpu.memory_space<vmem>>, vector<120x32xbf16>
    %c8 = arith.constant 8 : index
    %c0_110 = arith.constant 0 : index
    %c0_111 = arith.constant 0 : index
    %173 = vector.load %arg3[%c8, %c0_110, %c0_111] : memref<25x32x64xbf16, #tpu.memory_space<vmem>>, vector<1x32x64xbf16>
    %174 = vector.shape_cast %173 : vector<1x32x64xbf16> to vector<32x64xbf16>
    %cst_112 = arith.constant dense<0.000000e+00> : vector<120x64xf32>
    %175 = tpu.matmul %172, %174, %cst_112 {dimension_numbers = #tpu.dot_dimension_numbers<[1], [0], [0], [1], [0, 0, 1, 1], [], []>} : vector<120x32xbf16>, vector<32x64xbf16>, vector<120x64xf32> -> vector<120x64xf32>
    %176 = arith.addf %171, %175 : vector<120x64xf32>
    %c20 = arith.constant 20 : index
    %c0_113 = arith.constant 0 : index
    %177 = vector.load %arg20[%c20, %c0_113] : memref<192x32xbf16, #tpu.memory_space<vmem>>, vector<120x32xbf16>
    %c9 = arith.constant 9 : index
    %c0_114 = arith.constant 0 : index
    %c0_115 = arith.constant 0 : index
    %178 = vector.load %arg3[%c9, %c0_114, %c0_115] : memref<25x32x64xbf16, #tpu.memory_space<vmem>>, vector<1x32x64xbf16>
    %179 = vector.shape_cast %178 : vector<1x32x64xbf16> to vector<32x64xbf16>
    %cst_116 = arith.constant dense<0.000000e+00> : vector<120x64xf32>
    %180 = tpu.matmul %177, %179, %cst_116 {dimension_numbers = #tpu.dot_dimension_numbers<[1], [0], [0], [1], [0, 0, 1, 1], [], []>} : vector<120x32xbf16>, vector<32x64xbf16>, vector<120x64xf32> -> vector<120x64xf32>
    %181 = arith.addf %176, %180 : vector<120x64xf32>
    %c32_117 = arith.constant 32 : index
    %c0_118 = arith.constant 0 : index
    %182 = vector.load %arg20[%c32_117, %c0_118] : memref<192x32xbf16, #tpu.memory_space<vmem>>, vector<120x32xbf16>
    %c10 = arith.constant 10 : index
    %c0_119 = arith.constant 0 : index
    %c0_120 = arith.constant 0 : index
    %183 = vector.load %arg3[%c10, %c0_119, %c0_120] : memref<25x32x64xbf16, #tpu.memory_space<vmem>>, vector<1x32x64xbf16>
    %184 = vector.shape_cast %183 : vector<1x32x64xbf16> to vector<32x64xbf16>
    %cst_121 = arith.constant dense<0.000000e+00> : vector<120x64xf32>
    %185 = tpu.matmul %182, %184, %cst_121 {dimension_numbers = #tpu.dot_dimension_numbers<[1], [0], [0], [1], [0, 0, 1, 1], [], []>} : vector<120x32xbf16>, vector<32x64xbf16>, vector<120x64xf32> -> vector<120x64xf32>
    %186 = arith.addf %181, %185 : vector<120x64xf32>
    %c33_122 = arith.constant 33 : index
    %c0_123 = arith.constant 0 : index
    %187 = vector.load %arg20[%c33_122, %c0_123] : memref<192x32xbf16, #tpu.memory_space<vmem>>, vector<120x32xbf16>
    %c11 = arith.constant 11 : index
    %c0_124 = arith.constant 0 : index
    %c0_125 = arith.constant 0 : index
    %188 = vector.load %arg3[%c11, %c0_124, %c0_125] : memref<25x32x64xbf16, #tpu.memory_space<vmem>>, vector<1x32x64xbf16>
    %189 = vector.shape_cast %188 : vector<1x32x64xbf16> to vector<32x64xbf16>
    %cst_126 = arith.constant dense<0.000000e+00> : vector<120x64xf32>
    %190 = tpu.matmul %187, %189, %cst_126 {dimension_numbers = #tpu.dot_dimension_numbers<[1], [0], [0], [1], [0, 0, 1, 1], [], []>} : vector<120x32xbf16>, vector<32x64xbf16>, vector<120x64xf32> -> vector<120x64xf32>
    %191 = arith.addf %186, %190 : vector<120x64xf32>
    %c34_127 = arith.constant 34 : index
    %c0_128 = arith.constant 0 : index
    %192 = vector.load %arg20[%c34_127, %c0_128] : memref<192x32xbf16, #tpu.memory_space<vmem>>, vector<120x32xbf16>
    %c12 = arith.constant 12 : index
    %c0_129 = arith.constant 0 : index
    %c0_130 = arith.constant 0 : index
    %193 = vector.load %arg3[%c12, %c0_129, %c0_130] : memref<25x32x64xbf16, #tpu.memory_space<vmem>>, vector<1x32x64xbf16>
    %194 = vector.shape_cast %193 : vector<1x32x64xbf16> to vector<32x64xbf16>
    %cst_131 = arith.constant dense<0.000000e+00> : vector<120x64xf32>
    %195 = tpu.matmul %192, %194, %cst_131 {dimension_numbers = #tpu.dot_dimension_numbers<[1], [0], [0], [1], [0, 0, 1, 1], [], []>} : vector<120x32xbf16>, vector<32x64xbf16>, vector<120x64xf32> -> vector<120x64xf32>
    %196 = arith.addf %191, %195 : vector<120x64xf32>
    %c35 = arith.constant 35 : index
    %c0_132 = arith.constant 0 : index
    %197 = vector.load %arg20[%c35, %c0_132] : memref<192x32xbf16, #tpu.memory_space<vmem>>, vector<120x32xbf16>
    %c13 = arith.constant 13 : index
    %c0_133 = arith.constant 0 : index
    %c0_134 = arith.constant 0 : index
    %198 = vector.load %arg3[%c13, %c0_133, %c0_134] : memref<25x32x64xbf16, #tpu.memory_space<vmem>>, vector<1x32x64xbf16>
    %199 = vector.shape_cast %198 : vector<1x32x64xbf16> to vector<32x64xbf16>
    %cst_135 = arith.constant dense<0.000000e+00> : vector<120x64xf32>
    %200 = tpu.matmul %197, %199, %cst_135 {dimension_numbers = #tpu.dot_dimension_numbers<[1], [0], [0], [1], [0, 0, 1, 1], [], []>} : vector<120x32xbf16>, vector<32x64xbf16>, vector<120x64xf32> -> vector<120x64xf32>
    %201 = arith.addf %196, %200 : vector<120x64xf32>
    %c36 = arith.constant 36 : index
    %c0_136 = arith.constant 0 : index
    %202 = vector.load %arg20[%c36, %c0_136] : memref<192x32xbf16, #tpu.memory_space<vmem>>, vector<120x32xbf16>
    %c14 = arith.constant 14 : index
    %c0_137 = arith.constant 0 : index
    %c0_138 = arith.constant 0 : index
    %203 = vector.load %arg3[%c14, %c0_137, %c0_138] : memref<25x32x64xbf16, #tpu.memory_space<vmem>>, vector<1x32x64xbf16>
    %204 = vector.shape_cast %203 : vector<1x32x64xbf16> to vector<32x64xbf16>
    %cst_139 = arith.constant dense<0.000000e+00> : vector<120x64xf32>
    %205 = tpu.matmul %202, %204, %cst_139 {dimension_numbers = #tpu.dot_dimension_numbers<[1], [0], [0], [1], [0, 0, 1, 1], [], []>} : vector<120x32xbf16>, vector<32x64xbf16>, vector<120x64xf32> -> vector<120x64xf32>
    %206 = arith.addf %201, %205 : vector<120x64xf32>
    %c48_140 = arith.constant 48 : index
    %c0_141 = arith.constant 0 : index
    %207 = vector.load %arg20[%c48_140, %c0_141] : memref<192x32xbf16, #tpu.memory_space<vmem>>, vector<120x32xbf16>
    %c15 = arith.constant 15 : index
    %c0_142 = arith.constant 0 : index
    %c0_143 = arith.constant 0 : index
    %208 = vector.load %arg3[%c15, %c0_142, %c0_143] : memref<25x32x64xbf16, #tpu.memory_space<vmem>>, vector<1x32x64xbf16>
    %209 = vector.shape_cast %208 : vector<1x32x64xbf16> to vector<32x64xbf16>
    %cst_144 = arith.constant dense<0.000000e+00> : vector<120x64xf32>
    %210 = tpu.matmul %207, %209, %cst_144 {dimension_numbers = #tpu.dot_dimension_numbers<[1], [0], [0], [1], [0, 0, 1, 1], [], []>} : vector<120x32xbf16>, vector<32x64xbf16>, vector<120x64xf32> -> vector<120x64xf32>
    %211 = arith.addf %206, %210 : vector<120x64xf32>
    %c49_145 = arith.constant 49 : index
    %c0_146 = arith.constant 0 : index
    %212 = vector.load %arg20[%c49_145, %c0_146] : memref<192x32xbf16, #tpu.memory_space<vmem>>, vector<120x32xbf16>
    %c16_147 = arith.constant 16 : index
    %c0_148 = arith.constant 0 : index
    %c0_149 = arith.constant 0 : index
    %213 = vector.load %arg3[%c16_147, %c0_148, %c0_149] : memref<25x32x64xbf16, #tpu.memory_space<vmem>>, vector<1x32x64xbf16>
    %214 = vector.shape_cast %213 : vector<1x32x64xbf16> to vector<32x64xbf16>
    %cst_150 = arith.constant dense<0.000000e+00> : vector<120x64xf32>
    %215 = tpu.matmul %212, %214, %cst_150 {dimension_numbers = #tpu.dot_dimension_numbers<[1], [0], [0], [1], [0, 0, 1, 1], [], []>} : vector<120x32xbf16>, vector<32x64xbf16>, vector<120x64xf32> -> vector<120x64xf32>
    %216 = arith.addf %211, %215 : vector<120x64xf32>
    %c50_151 = arith.constant 50 : index
    %c0_152 = arith.constant 0 : index
    %217 = vector.load %arg20[%c50_151, %c0_152] : memref<192x32xbf16, #tpu.memory_space<vmem>>, vector<120x32xbf16>
    %c17_153 = arith.constant 17 : index
    %c0_154 = arith.constant 0 : index
    %c0_155 = arith.constant 0 : index
    %218 = vector.load %arg3[%c17_153, %c0_154, %c0_155] : memref<25x32x64xbf16, #tpu.memory_space<vmem>>, vector<1x32x64xbf16>
    %219 = vector.shape_cast %218 : vector<1x32x64xbf16> to vector<32x64xbf16>
    %cst_156 = arith.constant dense<0.000000e+00> : vector<120x64xf32>
    %220 = tpu.matmul %217, %219, %cst_156 {dimension_numbers = #tpu.dot_dimension_numbers<[1], [0], [0], [1], [0, 0, 1, 1], [], []>} : vector<120x32xbf16>, vector<32x64xbf16>, vector<120x64xf32> -> vector<120x64xf32>
    %221 = arith.addf %216, %220 : vector<120x64xf32>
    %c51 = arith.constant 51 : index
    %c0_157 = arith.constant 0 : index
    %222 = vector.load %arg20[%c51, %c0_157] : memref<192x32xbf16, #tpu.memory_space<vmem>>, vector<120x32xbf16>
    %c18_158 = arith.constant 18 : index
    %c0_159 = arith.constant 0 : index
    %c0_160 = arith.constant 0 : index
    %223 = vector.load %arg3[%c18_158, %c0_159, %c0_160] : memref<25x32x64xbf16, #tpu.memory_space<vmem>>, vector<1x32x64xbf16>
    %224 = vector.shape_cast %223 : vector<1x32x64xbf16> to vector<32x64xbf16>
    %cst_161 = arith.constant dense<0.000000e+00> : vector<120x64xf32>
    %225 = tpu.matmul %222, %224, %cst_161 {dimension_numbers = #tpu.dot_dimension_numbers<[1], [0], [0], [1], [0, 0, 1, 1], [], []>} : vector<120x32xbf16>, vector<32x64xbf16>, vector<120x64xf32> -> vector<120x64xf32>
    %226 = arith.addf %221, %225 : vector<120x64xf32>
    %c52 = arith.constant 52 : index
    %c0_162 = arith.constant 0 : index
    %227 = vector.load %arg20[%c52, %c0_162] : memref<192x32xbf16, #tpu.memory_space<vmem>>, vector<120x32xbf16>
    %c19_163 = arith.constant 19 : index
    %c0_164 = arith.constant 0 : index
    %c0_165 = arith.constant 0 : index
    %228 = vector.load %arg3[%c19_163, %c0_164, %c0_165] : memref<25x32x64xbf16, #tpu.memory_space<vmem>>, vector<1x32x64xbf16>
    %229 = vector.shape_cast %228 : vector<1x32x64xbf16> to vector<32x64xbf16>
    %cst_166 = arith.constant dense<0.000000e+00> : vector<120x64xf32>
    %230 = tpu.matmul %227, %229, %cst_166 {dimension_numbers = #tpu.dot_dimension_numbers<[1], [0], [0], [1], [0, 0, 1, 1], [], []>} : vector<120x32xbf16>, vector<32x64xbf16>, vector<120x64xf32> -> vector<120x64xf32>
    %231 = arith.addf %226, %230 : vector<120x64xf32>
    %c64_167 = arith.constant 64 : index
    %c0_168 = arith.constant 0 : index
    %232 = vector.load %arg20[%c64_167, %c0_168] : memref<192x32xbf16, #tpu.memory_space<vmem>>, vector<120x32xbf16>
    %c20_169 = arith.constant 20 : index
    %c0_170 = arith.constant 0 : index
    %c0_171 = arith.constant 0 : index
    %233 = vector.load %arg3[%c20_169, %c0_170, %c0_171] : memref<25x32x64xbf16, #tpu.memory_space<vmem>>, vector<1x32x64xbf16>
    %234 = vector.shape_cast %233 : vector<1x32x64xbf16> to vector<32x64xbf16>
    %cst_172 = arith.constant dense<0.000000e+00> : vector<120x64xf32>
    %235 = tpu.matmul %232, %234, %cst_172 {dimension_numbers = #tpu.dot_dimension_numbers<[1], [0], [0], [1], [0, 0, 1, 1], [], []>} : vector<120x32xbf16>, vector<32x64xbf16>, vector<120x64xf32> -> vector<120x64xf32>
    %236 = arith.addf %231, %235 : vector<120x64xf32>
    %c65_173 = arith.constant 65 : index
    %c0_174 = arith.constant 0 : index
    %237 = vector.load %arg20[%c65_173, %c0_174] : memref<192x32xbf16, #tpu.memory_space<vmem>>, vector<120x32xbf16>
    %c21 = arith.constant 21 : index
    %c0_175 = arith.constant 0 : index
    %c0_176 = arith.constant 0 : index
    %238 = vector.load %arg3[%c21, %c0_175, %c0_176] : memref<25x32x64xbf16, #tpu.memory_space<vmem>>, vector<1x32x64xbf16>
    %239 = vector.shape_cast %238 : vector<1x32x64xbf16> to vector<32x64xbf16>
    %cst_177 = arith.constant dense<0.000000e+00> : vector<120x64xf32>
    %240 = tpu.matmul %237, %239, %cst_177 {dimension_numbers = #tpu.dot_dimension_numbers<[1], [0], [0], [1], [0, 0, 1, 1], [], []>} : vector<120x32xbf16>, vector<32x64xbf16>, vector<120x64xf32> -> vector<120x64xf32>
    %241 = arith.addf %236, %240 : vector<120x64xf32>
    %c66_178 = arith.constant 66 : index
    %c0_179 = arith.constant 0 : index
    %242 = vector.load %arg20[%c66_178, %c0_179] : memref<192x32xbf16, #tpu.memory_space<vmem>>, vector<120x32xbf16>
    %c22 = arith.constant 22 : index
    %c0_180 = arith.constant 0 : index
    %c0_181 = arith.constant 0 : index
    %243 = vector.load %arg3[%c22, %c0_180, %c0_181] : memref<25x32x64xbf16, #tpu.memory_space<vmem>>, vector<1x32x64xbf16>
    %244 = vector.shape_cast %243 : vector<1x32x64xbf16> to vector<32x64xbf16>
    %cst_182 = arith.constant dense<0.000000e+00> : vector<120x64xf32>
    %245 = tpu.matmul %242, %244, %cst_182 {dimension_numbers = #tpu.dot_dimension_numbers<[1], [0], [0], [1], [0, 0, 1, 1], [], []>} : vector<120x32xbf16>, vector<32x64xbf16>, vector<120x64xf32> -> vector<120x64xf32>
    %246 = arith.addf %241, %245 : vector<120x64xf32>
    %c67 = arith.constant 67 : index
    %c0_183 = arith.constant 0 : index
    %247 = vector.load %arg20[%c67, %c0_183] : memref<192x32xbf16, #tpu.memory_space<vmem>>, vector<120x32xbf16>
    %c23 = arith.constant 23 : index
    %c0_184 = arith.constant 0 : index
    %c0_185 = arith.constant 0 : index
    %248 = vector.load %arg3[%c23, %c0_184, %c0_185] : memref<25x32x64xbf16, #tpu.memory_space<vmem>>, vector<1x32x64xbf16>
    %249 = vector.shape_cast %248 : vector<1x32x64xbf16> to vector<32x64xbf16>
    %cst_186 = arith.constant dense<0.000000e+00> : vector<120x64xf32>
    %250 = tpu.matmul %247, %249, %cst_186 {dimension_numbers = #tpu.dot_dimension_numbers<[1], [0], [0], [1], [0, 0, 1, 1], [], []>} : vector<120x32xbf16>, vector<32x64xbf16>, vector<120x64xf32> -> vector<120x64xf32>
    %251 = arith.addf %246, %250 : vector<120x64xf32>
    %c68 = arith.constant 68 : index
    %c0_187 = arith.constant 0 : index
    %252 = vector.load %arg20[%c68, %c0_187] : memref<192x32xbf16, #tpu.memory_space<vmem>>, vector<120x32xbf16>
    %c24 = arith.constant 24 : index
    %c0_188 = arith.constant 0 : index
    %c0_189 = arith.constant 0 : index
    %253 = vector.load %arg3[%c24, %c0_188, %c0_189] : memref<25x32x64xbf16, #tpu.memory_space<vmem>>, vector<1x32x64xbf16>
    %254 = vector.shape_cast %253 : vector<1x32x64xbf16> to vector<32x64xbf16>
    %cst_190 = arith.constant dense<0.000000e+00> : vector<120x64xf32>
    %255 = tpu.matmul %252, %254, %cst_190 {dimension_numbers = #tpu.dot_dimension_numbers<[1], [0], [0], [1], [0, 0, 1, 1], [], []>} : vector<120x32xbf16>, vector<32x64xbf16>, vector<120x64xf32> -> vector<120x64xf32>
    %256 = arith.addf %251, %255 : vector<120x64xf32>
    %c0_191 = arith.constant 0 : index
    %c0_192 = arith.constant 0 : index
    %257 = vector.load %arg21[%c0_191, %c0_192] : memref<120x64xf32, #tpu.memory_space<vmem>>, vector<120x64xf32>
    tpu.vector_store %arg21[%c0_191, %c0_192], %256 {strides = array<i32>} : memref<120x64xf32, #tpu.memory_space<vmem>>, vector<120x64xf32>,
    %c0_193 = arith.constant 0 : index
    %c0_194 = arith.constant 0 : index
    %258 = vector.load %arg10[%c0_193, %c0_194] : memref<1x64xf32, #tpu.memory_space<vmem>>, vector<1x64xf32>
    %c0_195 = arith.constant 0 : index
    %c0_196 = arith.constant 0 : index
    %259 = vector.load %arg11[%c0_195, %c0_196] : memref<1x64xf32, #tpu.memory_space<vmem>>, vector<1x64xf32>
    %c0_197 = arith.constant 0 : index
    %c0_198 = arith.constant 0 : index
    %260 = tpu.strided_load %arg21[%c0_197, %c0_198] {strides = array<i32: 2, 1>} : memref<120x64xf32, #tpu.memory_space<vmem>>, vector<4x64xf32>
    %c1_199 = arith.constant 1 : index
    %c0_200 = arith.constant 0 : index
    %261 = tpu.strided_load %arg21[%c1_199, %c0_200] {strides = array<i32: 2, 1>} : memref<120x64xf32, #tpu.memory_space<vmem>>, vector<4x64xf32>
    %c16_201 = arith.constant 16 : index
    %c0_202 = arith.constant 0 : index
    %262 = tpu.strided_load %arg21[%c16_201, %c0_202] {strides = array<i32: 2, 1>} : memref<120x64xf32, #tpu.memory_space<vmem>>, vector<4x64xf32>
    %c17_203 = arith.constant 17 : index
    %c0_204 = arith.constant 0 : index
    %263 = tpu.strided_load %arg21[%c17_203, %c0_204] {strides = array<i32: 2, 1>} : memref<120x64xf32, #tpu.memory_space<vmem>>, vector<4x64xf32>
    %264 = arith.maximumf %260, %261 : vector<4x64xf32>
    %265 = arith.maximumf %262, %263 : vector<4x64xf32>
    %266 = arith.maximumf %264, %265 : vector<4x64xf32>
    %267 = vector.broadcast %258 : vector<1x64xf32> to vector<4x64xf32>
    %268 = arith.mulf %266, %267 : vector<4x64xf32>
    %269 = vector.broadcast %259 : vector<1x64xf32> to vector<4x64xf32>
    %270 = arith.addf %268, %269 : vector<4x64xf32>
    %cst_205 = arith.constant 0.000000e+00 : f32
    %271 = vector.broadcast %cst_205 : f32 to vector<4x64xf32>
    %272 = arith.maximumf %270, %271 : vector<4x64xf32>
    %273 = arith.truncf %272 : vector<4x64xf32> to vector<4x64xbf16>
    %c18_206 = arith.constant 18 : index
    %c0_207 = arith.constant 0 : index
    %274 = vector.load %arg22[%c18_206, %c0_207] : memref<64x64xbf16, #tpu.memory_space<vmem>>, vector<4x64xbf16>
    tpu.vector_store %arg22[%c18_206, %c0_207], %273 {strides = array<i32>} : memref<64x64xbf16, #tpu.memory_space<vmem>>, vector<4x64xbf16>,
    %c32_208 = arith.constant 32 : index
    %c0_209 = arith.constant 0 : index
    %275 = tpu.strided_load %arg21[%c32_208, %c0_209] {strides = array<i32: 2, 1>} : memref<120x64xf32, #tpu.memory_space<vmem>>, vector<4x64xf32>
    %c33_210 = arith.constant 33 : index
    %c0_211 = arith.constant 0 : index
    %276 = tpu.strided_load %arg21[%c33_210, %c0_211] {strides = array<i32: 2, 1>} : memref<120x64xf32, #tpu.memory_space<vmem>>, vector<4x64xf32>
    %c48_212 = arith.constant 48 : index
    %c0_213 = arith.constant 0 : index
    %277 = tpu.strided_load %arg21[%c48_212, %c0_213] {strides = array<i32: 2, 1>} : memref<120x64xf32, #tpu.memory_space<vmem>>, vector<4x64xf32>
    %c49_214 = arith.constant 49 : index
    %c0_215 = arith.constant 0 : index
    %278 = tpu.strided_load %arg21[%c49_214, %c0_215] {strides = array<i32: 2, 1>} : memref<120x64xf32, #tpu.memory_space<vmem>>, vector<4x64xf32>
    %279 = arith.maximumf %275, %276 : vector<4x64xf32>
    %280 = arith.maximumf %277, %278 : vector<4x64xf32>
    %281 = arith.maximumf %279, %280 : vector<4x64xf32>
    %282 = vector.broadcast %258 : vector<1x64xf32> to vector<4x64xf32>
    %283 = arith.mulf %281, %282 : vector<4x64xf32>
    %284 = vector.broadcast %259 : vector<1x64xf32> to vector<4x64xf32>
    %285 = arith.addf %283, %284 : vector<4x64xf32>
    %cst_216 = arith.constant 0.000000e+00 : f32
    %286 = vector.broadcast %cst_216 : f32 to vector<4x64xf32>
    %287 = arith.maximumf %285, %286 : vector<4x64xf32>
    %288 = arith.truncf %287 : vector<4x64xf32> to vector<4x64xbf16>
    %c26 = arith.constant 26 : index
    %c0_217 = arith.constant 0 : index
    %289 = vector.load %arg22[%c26, %c0_217] : memref<64x64xbf16, #tpu.memory_space<vmem>>, vector<4x64xbf16>
    tpu.vector_store %arg22[%c26, %c0_217], %288 {strides = array<i32>} : memref<64x64xbf16, #tpu.memory_space<vmem>>, vector<4x64xbf16>,
    %c64_218 = arith.constant 64 : index
    %c0_219 = arith.constant 0 : index
    %290 = tpu.strided_load %arg21[%c64_218, %c0_219] {strides = array<i32: 2, 1>} : memref<120x64xf32, #tpu.memory_space<vmem>>, vector<4x64xf32>
    %c65_220 = arith.constant 65 : index
    %c0_221 = arith.constant 0 : index
    %291 = tpu.strided_load %arg21[%c65_220, %c0_221] {strides = array<i32: 2, 1>} : memref<120x64xf32, #tpu.memory_space<vmem>>, vector<4x64xf32>
    %c80_222 = arith.constant 80 : index
    %c0_223 = arith.constant 0 : index
    %292 = tpu.strided_load %arg21[%c80_222, %c0_223] {strides = array<i32: 2, 1>} : memref<120x64xf32, #tpu.memory_space<vmem>>, vector<4x64xf32>
    %c81_224 = arith.constant 81 : index
    %c0_225 = arith.constant 0 : index
    %293 = tpu.strided_load %arg21[%c81_224, %c0_225] {strides = array<i32: 2, 1>} : memref<120x64xf32, #tpu.memory_space<vmem>>, vector<4x64xf32>
    %294 = arith.maximumf %290, %291 : vector<4x64xf32>
    %295 = arith.maximumf %292, %293 : vector<4x64xf32>
    %296 = arith.maximumf %294, %295 : vector<4x64xf32>
    %297 = vector.broadcast %258 : vector<1x64xf32> to vector<4x64xf32>
    %298 = arith.mulf %296, %297 : vector<4x64xf32>
    %299 = vector.broadcast %259 : vector<1x64xf32> to vector<4x64xf32>
    %300 = arith.addf %298, %299 : vector<4x64xf32>
    %cst_226 = arith.constant 0.000000e+00 : f32
    %301 = vector.broadcast %cst_226 : f32 to vector<4x64xf32>
    %302 = arith.maximumf %300, %301 : vector<4x64xf32>
    %303 = arith.truncf %302 : vector<4x64xf32> to vector<4x64xbf16>
    %c34_227 = arith.constant 34 : index
    %c0_228 = arith.constant 0 : index
    %304 = vector.load %arg22[%c34_227, %c0_228] : memref<64x64xbf16, #tpu.memory_space<vmem>>, vector<4x64xbf16>
    tpu.vector_store %arg22[%c34_227, %c0_228], %303 {strides = array<i32>} : memref<64x64xbf16, #tpu.memory_space<vmem>>, vector<4x64xbf16>,
    %c96_229 = arith.constant 96 : index
    %c0_230 = arith.constant 0 : index
    %305 = tpu.strided_load %arg21[%c96_229, %c0_230] {strides = array<i32: 2, 1>} : memref<120x64xf32, #tpu.memory_space<vmem>>, vector<4x64xf32>
    %c97_231 = arith.constant 97 : index
    %c0_232 = arith.constant 0 : index
    %306 = tpu.strided_load %arg21[%c97_231, %c0_232] {strides = array<i32: 2, 1>} : memref<120x64xf32, #tpu.memory_space<vmem>>, vector<4x64xf32>
    %c112_233 = arith.constant 112 : index
    %c0_234 = arith.constant 0 : index
    %307 = tpu.strided_load %arg21[%c112_233, %c0_234] {strides = array<i32: 2, 1>} : memref<120x64xf32, #tpu.memory_space<vmem>>, vector<4x64xf32>
    %c113_235 = arith.constant 113 : index
    %c0_236 = arith.constant 0 : index
    %308 = tpu.strided_load %arg21[%c113_235, %c0_236] {strides = array<i32: 2, 1>} : memref<120x64xf32, #tpu.memory_space<vmem>>, vector<4x64xf32>
    %309 = arith.maximumf %305, %306 : vector<4x64xf32>
    %310 = arith.maximumf %307, %308 : vector<4x64xf32>
    %311 = arith.maximumf %309, %310 : vector<4x64xf32>
    %312 = vector.broadcast %258 : vector<1x64xf32> to vector<4x64xf32>
    %313 = arith.mulf %311, %312 : vector<4x64xf32>
    %314 = vector.broadcast %259 : vector<1x64xf32> to vector<4x64xf32>
    %315 = arith.addf %313, %314 : vector<4x64xf32>
    %cst_237 = arith.constant 0.000000e+00 : f32
    %316 = vector.broadcast %cst_237 : f32 to vector<4x64xf32>
    %317 = arith.maximumf %315, %316 : vector<4x64xf32>
    %318 = arith.truncf %317 : vector<4x64xf32> to vector<4x64xbf16>
    %c42 = arith.constant 42 : index
    %c0_238 = arith.constant 0 : index
    %319 = vector.load %arg22[%c42, %c0_238] : memref<64x64xbf16, #tpu.memory_space<vmem>>, vector<4x64xbf16>
    tpu.vector_store %arg22[%c42, %c0_238], %318 {strides = array<i32>} : memref<64x64xbf16, #tpu.memory_space<vmem>>, vector<4x64xbf16>,
    %c0_239 = arith.constant 0 : index
    %c0_240 = arith.constant 0 : index
    %320 = vector.load %arg22[%c0_239, %c0_240] : memref<64x64xbf16, #tpu.memory_space<vmem>>, vector<28x64xbf16>
    %c1_241 = arith.constant 1 : index
    %c0_242 = arith.constant 0 : index
    %321 = vector.load %arg22[%c1_241, %c0_242] : memref<64x64xbf16, #tpu.memory_space<vmem>>, vector<28x64xbf16>
    %322 = tpu.concatenate %320, %321 in 1 : vector<28x64xbf16>, vector<28x64xbf16> -> vector<28x128xbf16>
    %c0_243 = arith.constant 0 : index
    %c0_244 = arith.constant 0 : index
    %c0_245 = arith.constant 0 : index
    %323 = vector.load %arg4[%c0_243, %c0_244, %c0_245] : memref<12x128x128xbf16, #tpu.memory_space<vmem>>, vector<1x128x128xbf16>
    %324 = vector.shape_cast %323 : vector<1x128x128xbf16> to vector<128x128xbf16>
    %cst_246 = arith.constant dense<0.000000e+00> : vector<28x128xf32>
    %325 = tpu.matmul %322, %324, %cst_246 {dimension_numbers = #tpu.dot_dimension_numbers<[1], [0], [0], [1], [0, 0, 1, 1], [], []>} : vector<28x128xbf16>, vector<128x128xbf16>, vector<28x128xf32> -> vector<28x128xf32>
    %c2_247 = arith.constant 2 : index
    %c0_248 = arith.constant 0 : index
    %326 = vector.load %arg22[%c2_247, %c0_248] : memref<64x64xbf16, #tpu.memory_space<vmem>>, vector<28x64xbf16>
    %c3_249 = arith.constant 3 : index
    %c0_250 = arith.constant 0 : index
    %327 = vector.load %arg22[%c3_249, %c0_250] : memref<64x64xbf16, #tpu.memory_space<vmem>>, vector<28x64xbf16>
    %328 = tpu.concatenate %326, %327 in 1 : vector<28x64xbf16>, vector<28x64xbf16> -> vector<28x128xbf16>
    %c1_251 = arith.constant 1 : index
    %c0_252 = arith.constant 0 : index
    %c0_253 = arith.constant 0 : index
    %329 = vector.load %arg4[%c1_251, %c0_252, %c0_253] : memref<12x128x128xbf16, #tpu.memory_space<vmem>>, vector<1x128x128xbf16>
    %330 = vector.shape_cast %329 : vector<1x128x128xbf16> to vector<128x128xbf16>
    %cst_254 = arith.constant dense<0.000000e+00> : vector<28x128xf32>
    %331 = tpu.matmul %328, %330, %cst_254 {dimension_numbers = #tpu.dot_dimension_numbers<[1], [0], [0], [1], [0, 0, 1, 1], [], []>} : vector<28x128xbf16>, vector<128x128xbf16>, vector<28x128xf32> -> vector<28x128xf32>
    %332 = arith.addf %325, %331 : vector<28x128xf32>
    %c4_255 = arith.constant 4 : index
    %c0_256 = arith.constant 0 : index
    %333 = vector.load %arg22[%c4_255, %c0_256] : memref<64x64xbf16, #tpu.memory_space<vmem>>, vector<28x64xbf16>
    %c8_257 = arith.constant 8 : index
    %c0_258 = arith.constant 0 : index
    %334 = vector.load %arg22[%c8_257, %c0_258] : memref<64x64xbf16, #tpu.memory_space<vmem>>, vector<28x64xbf16>
    %335 = tpu.concatenate %333, %334 in 1 : vector<28x64xbf16>, vector<28x64xbf16> -> vector<28x128xbf16>
    %c2_259 = arith.constant 2 : index
    %c0_260 = arith.constant 0 : index
    %c0_261 = arith.constant 0 : index
    %336 = vector.load %arg4[%c2_259, %c0_260, %c0_261] : memref<12x128x128xbf16, #tpu.memory_space<vmem>>, vector<1x128x128xbf16>
    %337 = vector.shape_cast %336 : vector<1x128x128xbf16> to vector<128x128xbf16>
    %cst_262 = arith.constant dense<0.000000e+00> : vector<28x128xf32>
    %338 = tpu.matmul %335, %337, %cst_262 {dimension_numbers = #tpu.dot_dimension_numbers<[1], [0], [0], [1], [0, 0, 1, 1], [], []>} : vector<28x128xbf16>, vector<128x128xbf16>, vector<28x128xf32> -> vector<28x128xf32>
    %339 = arith.addf %332, %338 : vector<28x128xf32>
    %c9_263 = arith.constant 9 : index
    %c0_264 = arith.constant 0 : index
    %340 = vector.load %arg22[%c9_263, %c0_264] : memref<64x64xbf16, #tpu.memory_space<vmem>>, vector<28x64xbf16>
    %c10_265 = arith.constant 10 : index
    %c0_266 = arith.constant 0 : index
    %341 = vector.load %arg22[%c10_265, %c0_266] : memref<64x64xbf16, #tpu.memory_space<vmem>>, vector<28x64xbf16>
    %342 = tpu.concatenate %340, %341 in 1 : vector<28x64xbf16>, vector<28x64xbf16> -> vector<28x128xbf16>
    %c3_267 = arith.constant 3 : index
    %c0_268 = arith.constant 0 : index
    %c0_269 = arith.constant 0 : index
    %343 = vector.load %arg4[%c3_267, %c0_268, %c0_269] : memref<12x128x128xbf16, #tpu.memory_space<vmem>>, vector<1x128x128xbf16>
    %344 = vector.shape_cast %343 : vector<1x128x128xbf16> to vector<128x128xbf16>
    %cst_270 = arith.constant dense<0.000000e+00> : vector<28x128xf32>
    %345 = tpu.matmul %342, %344, %cst_270 {dimension_numbers = #tpu.dot_dimension_numbers<[1], [0], [0], [1], [0, 0, 1, 1], [], []>} : vector<28x128xbf16>, vector<128x128xbf16>, vector<28x128xf32> -> vector<28x128xf32>
    %346 = arith.addf %339, %345 : vector<28x128xf32>
    %c11_271 = arith.constant 11 : index
    %c0_272 = arith.constant 0 : index
    %347 = vector.load %arg22[%c11_271, %c0_272] : memref<64x64xbf16, #tpu.memory_space<vmem>>, vector<28x64xbf16>
    %c12_273 = arith.constant 12 : index
    %c0_274 = arith.constant 0 : index
    %348 = vector.load %arg22[%c12_273, %c0_274] : memref<64x64xbf16, #tpu.memory_space<vmem>>, vector<28x64xbf16>
    %349 = tpu.concatenate %347, %348 in 1 : vector<28x64xbf16>, vector<28x64xbf16> -> vector<28x128xbf16>
    %c4_275 = arith.constant 4 : index
    %c0_276 = arith.constant 0 : index
    %c0_277 = arith.constant 0 : index
    %350 = vector.load %arg4[%c4_275, %c0_276, %c0_277] : memref<12x128x128xbf16, #tpu.memory_space<vmem>>, vector<1x128x128xbf16>
    %351 = vector.shape_cast %350 : vector<1x128x128xbf16> to vector<128x128xbf16>
    %cst_278 = arith.constant dense<0.000000e+00> : vector<28x128xf32>
    %352 = tpu.matmul %349, %351, %cst_278 {dimension_numbers = #tpu.dot_dimension_numbers<[1], [0], [0], [1], [0, 0, 1, 1], [], []>} : vector<28x128xbf16>, vector<128x128xbf16>, vector<28x128xf32> -> vector<28x128xf32>
    %353 = arith.addf %346, %352 : vector<28x128xf32>
    %c16_279 = arith.constant 16 : index
    %c0_280 = arith.constant 0 : index
    %354 = vector.load %arg22[%c16_279, %c0_280] : memref<64x64xbf16, #tpu.memory_space<vmem>>, vector<28x64xbf16>
    %c17_281 = arith.constant 17 : index
    %c0_282 = arith.constant 0 : index
    %355 = vector.load %arg22[%c17_281, %c0_282] : memref<64x64xbf16, #tpu.memory_space<vmem>>, vector<28x64xbf16>
    %356 = tpu.concatenate %354, %355 in 1 : vector<28x64xbf16>, vector<28x64xbf16> -> vector<28x128xbf16>
    %c5_283 = arith.constant 5 : index
    %c0_284 = arith.constant 0 : index
    %c0_285 = arith.constant 0 : index
    %357 = vector.load %arg4[%c5_283, %c0_284, %c0_285] : memref<12x128x128xbf16, #tpu.memory_space<vmem>>, vector<1x128x128xbf16>
    %358 = vector.shape_cast %357 : vector<1x128x128xbf16> to vector<128x128xbf16>
    %cst_286 = arith.constant dense<0.000000e+00> : vector<28x128xf32>
    %359 = tpu.matmul %356, %358, %cst_286 {dimension_numbers = #tpu.dot_dimension_numbers<[1], [0], [0], [1], [0, 0, 1, 1], [], []>} : vector<28x128xbf16>, vector<128x128xbf16>, vector<28x128xf32> -> vector<28x128xf32>
    %360 = arith.addf %353, %359 : vector<28x128xf32>
    %c18_287 = arith.constant 18 : index
    %c0_288 = arith.constant 0 : index
    %361 = vector.load %arg22[%c18_287, %c0_288] : memref<64x64xbf16, #tpu.memory_space<vmem>>, vector<28x64xbf16>
    %c19_289 = arith.constant 19 : index
    %c0_290 = arith.constant 0 : index
    %362 = vector.load %arg22[%c19_289, %c0_290] : memref<64x64xbf16, #tpu.memory_space<vmem>>, vector<28x64xbf16>
    %363 = tpu.concatenate %361, %362 in 1 : vector<28x64xbf16>, vector<28x64xbf16> -> vector<28x128xbf16>
    %c6_291 = arith.constant 6 : index
    %c0_292 = arith.constant 0 : index
    %c0_293 = arith.constant 0 : index
    %364 = vector.load %arg4[%c6_291, %c0_292, %c0_293] : memref<12x128x128xbf16, #tpu.memory_space<vmem>>, vector<1x128x128xbf16>
    %365 = vector.shape_cast %364 : vector<1x128x128xbf16> to vector<128x128xbf16>
    %cst_294 = arith.constant dense<0.000000e+00> : vector<28x128xf32>
    %366 = tpu.matmul %363, %365, %cst_294 {dimension_numbers = #tpu.dot_dimension_numbers<[1], [0], [0], [1], [0, 0, 1, 1], [], []>} : vector<28x128xbf16>, vector<128x128xbf16>, vector<28x128xf32> -> vector<28x128xf32>
    %367 = arith.addf %360, %366 : vector<28x128xf32>
    %c20_295 = arith.constant 20 : index
    %c0_296 = arith.constant 0 : index
    %368 = vector.load %arg22[%c20_295, %c0_296] : memref<64x64xbf16, #tpu.memory_space<vmem>>, vector<28x64xbf16>
    %c24_297 = arith.constant 24 : index
    %c0_298 = arith.constant 0 : index
    %369 = vector.load %arg22[%c24_297, %c0_298] : memref<64x64xbf16, #tpu.memory_space<vmem>>, vector<28x64xbf16>
    %370 = tpu.concatenate %368, %369 in 1 : vector<28x64xbf16>, vector<28x64xbf16> -> vector<28x128xbf16>
    %c7_299 = arith.constant 7 : index
    %c0_300 = arith.constant 0 : index
    %c0_301 = arith.constant 0 : index
    %371 = vector.load %arg4[%c7_299, %c0_300, %c0_301] : memref<12x128x128xbf16, #tpu.memory_space<vmem>>, vector<1x128x128xbf16>
    %372 = vector.shape_cast %371 : vector<1x128x128xbf16> to vector<128x128xbf16>
    %cst_302 = arith.constant dense<0.000000e+00> : vector<28x128xf32>
    %373 = tpu.matmul %370, %372, %cst_302 {dimension_numbers = #tpu.dot_dimension_numbers<[1], [0], [0], [1], [0, 0, 1, 1], [], []>} : vector<28x128xbf16>, vector<128x128xbf16>, vector<28x128xf32> -> vector<28x128xf32>
    %374 = arith.addf %367, %373 : vector<28x128xf32>
    %c25 = arith.constant 25 : index
    %c0_303 = arith.constant 0 : index
    %375 = vector.load %arg22[%c25, %c0_303] : memref<64x64xbf16, #tpu.memory_space<vmem>>, vector<28x64xbf16>
    %c26_304 = arith.constant 26 : index
    %c0_305 = arith.constant 0 : index
    %376 = vector.load %arg22[%c26_304, %c0_305] : memref<64x64xbf16, #tpu.memory_space<vmem>>, vector<28x64xbf16>
    %377 = tpu.concatenate %375, %376 in 1 : vector<28x64xbf16>, vector<28x64xbf16> -> vector<28x128xbf16>
    %c8_306 = arith.constant 8 : index
    %c0_307 = arith.constant 0 : index
    %c0_308 = arith.constant 0 : index
    %378 = vector.load %arg4[%c8_306, %c0_307, %c0_308] : memref<12x128x128xbf16, #tpu.memory_space<vmem>>, vector<1x128x128xbf16>
    %379 = vector.shape_cast %378 : vector<1x128x128xbf16> to vector<128x128xbf16>
    %cst_309 = arith.constant dense<0.000000e+00> : vector<28x128xf32>
    %380 = tpu.matmul %377, %379, %cst_309 {dimension_numbers = #tpu.dot_dimension_numbers<[1], [0], [0], [1], [0, 0, 1, 1], [], []>} : vector<28x128xbf16>, vector<128x128xbf16>, vector<28x128xf32> -> vector<28x128xf32>
    %381 = arith.addf %374, %380 : vector<28x128xf32>
    %c27 = arith.constant 27 : index
    %c0_310 = arith.constant 0 : index
    %382 = vector.load %arg22[%c27, %c0_310] : memref<64x64xbf16, #tpu.memory_space<vmem>>, vector<28x64xbf16>
    %c28 = arith.constant 28 : index
    %c0_311 = arith.constant 0 : index
    %383 = vector.load %arg22[%c28, %c0_311] : memref<64x64xbf16, #tpu.memory_space<vmem>>, vector<28x64xbf16>
    %384 = tpu.concatenate %382, %383 in 1 : vector<28x64xbf16>, vector<28x64xbf16> -> vector<28x128xbf16>
    %c9_312 = arith.constant 9 : index
    %c0_313 = arith.constant 0 : index
    %c0_314 = arith.constant 0 : index
    %385 = vector.load %arg4[%c9_312, %c0_313, %c0_314] : memref<12x128x128xbf16, #tpu.memory_space<vmem>>, vector<1x128x128xbf16>
    %386 = vector.shape_cast %385 : vector<1x128x128xbf16> to vector<128x128xbf16>
    %cst_315 = arith.constant dense<0.000000e+00> : vector<28x128xf32>
    %387 = tpu.matmul %384, %386, %cst_315 {dimension_numbers = #tpu.dot_dimension_numbers<[1], [0], [0], [1], [0, 0, 1, 1], [], []>} : vector<28x128xbf16>, vector<128x128xbf16>, vector<28x128xf32> -> vector<28x128xf32>
    %388 = arith.addf %381, %387 : vector<28x128xf32>
    %c32_316 = arith.constant 32 : index
    %c0_317 = arith.constant 0 : index
    %389 = vector.load %arg22[%c32_316, %c0_317] : memref<64x64xbf16, #tpu.memory_space<vmem>>, vector<28x64xbf16>
    %c33_318 = arith.constant 33 : index
    %c0_319 = arith.constant 0 : index
    %390 = vector.load %arg22[%c33_318, %c0_319] : memref<64x64xbf16, #tpu.memory_space<vmem>>, vector<28x64xbf16>
    %391 = tpu.concatenate %389, %390 in 1 : vector<28x64xbf16>, vector<28x64xbf16> -> vector<28x128xbf16>
    %c10_320 = arith.constant 10 : index
    %c0_321 = arith.constant 0 : index
    %c0_322 = arith.constant 0 : index
    %392 = vector.load %arg4[%c10_320, %c0_321, %c0_322] : memref<12x128x128xbf16, #tpu.memory_space<vmem>>, vector<1x128x128xbf16>
    %393 = vector.shape_cast %392 : vector<1x128x128xbf16> to vector<128x128xbf16>
    %cst_323 = arith.constant dense<0.000000e+00> : vector<28x128xf32>
    %394 = tpu.matmul %391, %393, %cst_323 {dimension_numbers = #tpu.dot_dimension_numbers<[1], [0], [0], [1], [0, 0, 1, 1], [], []>} : vector<28x128xbf16>, vector<128x128xbf16>, vector<28x128xf32> -> vector<28x128xf32>
    %395 = arith.addf %388, %394 : vector<28x128xf32>
    %c34_324 = arith.constant 34 : index
    %c0_325 = arith.constant 0 : index
    %396 = vector.load %arg22[%c34_324, %c0_325] : memref<64x64xbf16, #tpu.memory_space<vmem>>, vector<28x64xbf16>
    %c35_326 = arith.constant 35 : index
    %c0_327 = arith.constant 0 : index
    %397 = vector.load %arg22[%c35_326, %c0_327] : memref<64x64xbf16, #tpu.memory_space<vmem>>, vector<28x64xbf16>
    %398 = tpu.concatenate %396, %397 in 1 : vector<28x64xbf16>, vector<28x64xbf16> -> vector<28x128xbf16>
    %c11_328 = arith.constant 11 : index
    %c0_329 = arith.constant 0 : index
    %c0_330 = arith.constant 0 : index
    %399 = vector.load %arg4[%c11_328, %c0_329, %c0_330] : memref<12x128x128xbf16, #tpu.memory_space<vmem>>, vector<1x128x128xbf16>
    %400 = vector.shape_cast %399 : vector<1x128x128xbf16> to vector<128x128xbf16>
    %cst_331 = arith.constant dense<0.000000e+00> : vector<28x128xf32>
    %401 = tpu.matmul %398, %400, %cst_331 {dimension_numbers = #tpu.dot_dimension_numbers<[1], [0], [0], [1], [0, 0, 1, 1], [], []>} : vector<28x128xbf16>, vector<128x128xbf16>, vector<28x128xf32> -> vector<28x128xf32>
    %402 = arith.addf %395, %401 : vector<28x128xf32>
    %c36_332 = arith.constant 36 : index
    %c0_333 = arith.constant 0 : index
    %403 = vector.load %arg22[%c36_332, %c0_333] : memref<64x64xbf16, #tpu.memory_space<vmem>>, vector<28x64xbf16>
    %c0_334 = arith.constant 0 : index
    %c0_335 = arith.constant 0 : index
    %404 = vector.load %arg5[%c0_334, %c0_335] : memref<64x128xbf16, #tpu.memory_space<vmem>>, vector<64x128xbf16>
    %cst_336 = arith.constant dense<0.000000e+00> : vector<28x128xf32>
    %405 = tpu.matmul %403, %404, %cst_336 {dimension_numbers = #tpu.dot_dimension_numbers<[1], [0], [0], [1], [0, 0, 1, 1], [], []>} : vector<28x64xbf16>, vector<64x128xbf16>, vector<28x128xf32> -> vector<28x128xf32>
    %406 = arith.addf %402, %405 : vector<28x128xf32>
    %c0_337 = arith.constant 0 : index
    %c0_338 = arith.constant 0 : index
    %407 = vector.load %arg23[%c0_337, %c0_338] : memref<28x128xf32, #tpu.memory_space<vmem>>, vector<28x128xf32>
    tpu.vector_store %arg23[%c0_337, %c0_338], %406 {strides = array<i32>} : memref<28x128xf32, #tpu.memory_space<vmem>>, vector<28x128xf32>,
    %c0_339 = arith.constant 0 : index
    %c0_340 = arith.constant 0 : index
    %408 = vector.load %arg12[%c0_339, %c0_340] : memref<1x128xf32, #tpu.memory_space<vmem>>, vector<1x128xf32>
    %c0_341 = arith.constant 0 : index
    %c0_342 = arith.constant 0 : index
    %409 = vector.load %arg13[%c0_341, %c0_342] : memref<1x128xf32, #tpu.memory_space<vmem>>, vector<1x128xf32>
    %c0_343 = arith.constant 0 : index
    %c0_344 = arith.constant 0 : index
    %410 = tpu.strided_load %arg23[%c0_343, %c0_344] {strides = array<i32: 2, 1>} : memref<28x128xf32, #tpu.memory_space<vmem>>, vector<2x128xf32>
    %c1_345 = arith.constant 1 : index
    %c0_346 = arith.constant 0 : index
    %411 = tpu.strided_load %arg23[%c1_345, %c0_346] {strides = array<i32: 2, 1>} : memref<28x128xf32, #tpu.memory_space<vmem>>, vector<2x128xf32>
    %c8_347 = arith.constant 8 : index
    %c0_348 = arith.constant 0 : index
    %412 = tpu.strided_load %arg23[%c8_347, %c0_348] {strides = array<i32: 2, 1>} : memref<28x128xf32, #tpu.memory_space<vmem>>, vector<2x128xf32>
    %c9_349 = arith.constant 9 : index
    %c0_350 = arith.constant 0 : index
    %413 = tpu.strided_load %arg23[%c9_349, %c0_350] {strides = array<i32: 2, 1>} : memref<28x128xf32, #tpu.memory_space<vmem>>, vector<2x128xf32>
    %414 = arith.maximumf %410, %411 : vector<2x128xf32>
    %415 = arith.maximumf %412, %413 : vector<2x128xf32>
    %416 = arith.maximumf %414, %415 : vector<2x128xf32>
    %417 = vector.broadcast %408 : vector<1x128xf32> to vector<2x128xf32>
    %418 = arith.mulf %416, %417 : vector<2x128xf32>
    %419 = vector.broadcast %409 : vector<1x128xf32> to vector<2x128xf32>
    %420 = arith.addf %418, %419 : vector<2x128xf32>
    %cst_351 = arith.constant 0.000000e+00 : f32
    %421 = vector.broadcast %cst_351 : f32 to vector<2x128xf32>
    %422 = arith.maximumf %420, %421 : vector<2x128xf32>
    %423 = arith.truncf %422 : vector<2x128xf32> to vector<2x128xbf16>
    %c18_352 = arith.constant 18 : index
    %c0_353 = arith.constant 0 : index
    %424 = vector.load %arg24[%c18_352, %c0_353] : memref<48x128xbf16, #tpu.memory_space<vmem>>, vector<2x128xbf16>
    tpu.vector_store %arg24[%c18_352, %c0_353], %423 {strides = array<i32>} : memref<48x128xbf16, #tpu.memory_space<vmem>>, vector<2x128xbf16>,
    %c16_354 = arith.constant 16 : index
    %c0_355 = arith.constant 0 : index
    %425 = tpu.strided_load %arg23[%c16_354, %c0_355] {strides = array<i32: 2, 1>} : memref<28x128xf32, #tpu.memory_space<vmem>>, vector<2x128xf32>
    %c17_356 = arith.constant 17 : index
    %c0_357 = arith.constant 0 : index
    %426 = tpu.strided_load %arg23[%c17_356, %c0_357] {strides = array<i32: 2, 1>} : memref<28x128xf32, #tpu.memory_space<vmem>>, vector<2x128xf32>
    %c24_358 = arith.constant 24 : index
    %c0_359 = arith.constant 0 : index
    %427 = tpu.strided_load %arg23[%c24_358, %c0_359] {strides = array<i32: 2, 1>} : memref<28x128xf32, #tpu.memory_space<vmem>>, vector<2x128xf32>
    %c25_360 = arith.constant 25 : index
    %c0_361 = arith.constant 0 : index
    %428 = tpu.strided_load %arg23[%c25_360, %c0_361] {strides = array<i32: 2, 1>} : memref<28x128xf32, #tpu.memory_space<vmem>>, vector<2x128xf32>
    %429 = arith.maximumf %425, %426 : vector<2x128xf32>
    %430 = arith.maximumf %427, %428 : vector<2x128xf32>
    %431 = arith.maximumf %429, %430 : vector<2x128xf32>
    %432 = vector.broadcast %408 : vector<1x128xf32> to vector<2x128xf32>
    %433 = arith.mulf %431, %432 : vector<2x128xf32>
    %434 = vector.broadcast %409 : vector<1x128xf32> to vector<2x128xf32>
    %435 = arith.addf %433, %434 : vector<2x128xf32>
    %cst_362 = arith.constant 0.000000e+00 : f32
    %436 = vector.broadcast %cst_362 : f32 to vector<2x128xf32>
    %437 = arith.maximumf %435, %436 : vector<2x128xf32>
    %438 = arith.truncf %437 : vector<2x128xf32> to vector<2x128xbf16>
    %c26_363 = arith.constant 26 : index
    %c0_364 = arith.constant 0 : index
    %439 = vector.load %arg24[%c26_363, %c0_364] : memref<48x128xbf16, #tpu.memory_space<vmem>>, vector<2x128xbf16>
    tpu.vector_store %arg24[%c26_363, %c0_364], %438 {strides = array<i32>} : memref<48x128xbf16, #tpu.memory_space<vmem>>, vector<2x128xbf16>,
    %c0_365 = arith.constant 0 : index
    %c0_366 = arith.constant 0 : index
    %440 = vector.load %arg24[%c0_365, %c0_366] : memref<48x128xbf16, #tpu.memory_space<vmem>>, vector<10x128xbf16>
    %c1_367 = arith.constant 1 : index
    %c0_368 = arith.constant 0 : index
    %441 = vector.load %arg24[%c1_367, %c0_368] : memref<48x128xbf16, #tpu.memory_space<vmem>>, vector<10x128xbf16>
    %442 = tpu.concatenate %440, %441 in 1 : vector<10x128xbf16>, vector<10x128xbf16> -> vector<10x256xbf16>
    %c0_369 = arith.constant 0 : index
    %c0_370 = arith.constant 0 : index
    %c0_371 = arith.constant 0 : index
    %443 = vector.load %arg6[%c0_369, %c0_370, %c0_371] : memref<12x256x256xbf16, #tpu.memory_space<vmem>>, vector<1x256x256xbf16>
    %444 = vector.shape_cast %443 : vector<1x256x256xbf16> to vector<256x256xbf16>
    %cst_372 = arith.constant dense<0.000000e+00> : vector<10x256xf32>
    %445 = tpu.matmul %442, %444, %cst_372 {dimension_numbers = #tpu.dot_dimension_numbers<[1], [0], [0], [1], [0, 0, 1, 1], [], []>} : vector<10x256xbf16>, vector<256x256xbf16>, vector<10x256xf32> -> vector<10x256xf32>
    %c2_373 = arith.constant 2 : index
    %c0_374 = arith.constant 0 : index
    %446 = vector.load %arg24[%c2_373, %c0_374] : memref<48x128xbf16, #tpu.memory_space<vmem>>, vector<10x128xbf16>
    %c3_375 = arith.constant 3 : index
    %c0_376 = arith.constant 0 : index
    %447 = vector.load %arg24[%c3_375, %c0_376] : memref<48x128xbf16, #tpu.memory_space<vmem>>, vector<10x128xbf16>
    %448 = tpu.concatenate %446, %447 in 1 : vector<10x128xbf16>, vector<10x128xbf16> -> vector<10x256xbf16>
    %c1_377 = arith.constant 1 : index
    %c0_378 = arith.constant 0 : index
    %c0_379 = arith.constant 0 : index
    %449 = vector.load %arg6[%c1_377, %c0_378, %c0_379] : memref<12x256x256xbf16, #tpu.memory_space<vmem>>, vector<1x256x256xbf16>
    %450 = vector.shape_cast %449 : vector<1x256x256xbf16> to vector<256x256xbf16>
    %cst_380 = arith.constant dense<0.000000e+00> : vector<10x256xf32>
    %451 = tpu.matmul %448, %450, %cst_380 {dimension_numbers = #tpu.dot_dimension_numbers<[1], [0], [0], [1], [0, 0, 1, 1], [], []>} : vector<10x256xbf16>, vector<256x256xbf16>, vector<10x256xf32> -> vector<10x256xf32>
    %452 = arith.addf %445, %451 : vector<10x256xf32>
    %c4_381 = arith.constant 4 : index
    %c0_382 = arith.constant 0 : index
    %453 = vector.load %arg24[%c4_381, %c0_382] : memref<48x128xbf16, #tpu.memory_space<vmem>>, vector<10x128xbf16>
    %c8_383 = arith.constant 8 : index
    %c0_384 = arith.constant 0 : index
    %454 = vector.load %arg24[%c8_383, %c0_384] : memref<48x128xbf16, #tpu.memory_space<vmem>>, vector<10x128xbf16>
    %455 = tpu.concatenate %453, %454 in 1 : vector<10x128xbf16>, vector<10x128xbf16> -> vector<10x256xbf16>
    %c2_385 = arith.constant 2 : index
    %c0_386 = arith.constant 0 : index
    %c0_387 = arith.constant 0 : index
    %456 = vector.load %arg6[%c2_385, %c0_386, %c0_387] : memref<12x256x256xbf16, #tpu.memory_space<vmem>>, vector<1x256x256xbf16>
    %457 = vector.shape_cast %456 : vector<1x256x256xbf16> to vector<256x256xbf16>
    %cst_388 = arith.constant dense<0.000000e+00> : vector<10x256xf32>
    %458 = tpu.matmul %455, %457, %cst_388 {dimension_numbers = #tpu.dot_dimension_numbers<[1], [0], [0], [1], [0, 0, 1, 1], [], []>} : vector<10x256xbf16>, vector<256x256xbf16>, vector<10x256xf32> -> vector<10x256xf32>
    %459 = arith.addf %452, %458 : vector<10x256xf32>
    %c9_389 = arith.constant 9 : index
    %c0_390 = arith.constant 0 : index
    %460 = vector.load %arg24[%c9_389, %c0_390] : memref<48x128xbf16, #tpu.memory_space<vmem>>, vector<10x128xbf16>
    %c10_391 = arith.constant 10 : index
    %c0_392 = arith.constant 0 : index
    %461 = vector.load %arg24[%c10_391, %c0_392] : memref<48x128xbf16, #tpu.memory_space<vmem>>, vector<10x128xbf16>
    %462 = tpu.concatenate %460, %461 in 1 : vector<10x128xbf16>, vector<10x128xbf16> -> vector<10x256xbf16>
    %c3_393 = arith.constant 3 : index
    %c0_394 = arith.constant 0 : index
    %c0_395 = arith.constant 0 : index
    %463 = vector.load %arg6[%c3_393, %c0_394, %c0_395] : memref<12x256x256xbf16, #tpu.memory_space<vmem>>, vector<1x256x256xbf16>
    %464 = vector.shape_cast %463 : vector<1x256x256xbf16> to vector<256x256xbf16>
    %cst_396 = arith.constant dense<0.000000e+00> : vector<10x256xf32>
    %465 = tpu.matmul %462, %464, %cst_396 {dimension_numbers = #tpu.dot_dimension_numbers<[1], [0], [0], [1], [0, 0, 1, 1], [], []>} : vector<10x256xbf16>, vector<256x256xbf16>, vector<10x256xf32> -> vector<10x256xf32>
    %466 = arith.addf %459, %465 : vector<10x256xf32>
    %c11_397 = arith.constant 11 : index
    %c0_398 = arith.constant 0 : index
    %467 = vector.load %arg24[%c11_397, %c0_398] : memref<48x128xbf16, #tpu.memory_space<vmem>>, vector<10x128xbf16>
    %c12_399 = arith.constant 12 : index
    %c0_400 = arith.constant 0 : index
    %468 = vector.load %arg24[%c12_399, %c0_400] : memref<48x128xbf16, #tpu.memory_space<vmem>>, vector<10x128xbf16>
    %469 = tpu.concatenate %467, %468 in 1 : vector<10x128xbf16>, vector<10x128xbf16> -> vector<10x256xbf16>
    %c4_401 = arith.constant 4 : index
    %c0_402 = arith.constant 0 : index
    %c0_403 = arith.constant 0 : index
    %470 = vector.load %arg6[%c4_401, %c0_402, %c0_403] : memref<12x256x256xbf16, #tpu.memory_space<vmem>>, vector<1x256x256xbf16>
    %471 = vector.shape_cast %470 : vector<1x256x256xbf16> to vector<256x256xbf16>
    %cst_404 = arith.constant dense<0.000000e+00> : vector<10x256xf32>
    %472 = tpu.matmul %469, %471, %cst_404 {dimension_numbers = #tpu.dot_dimension_numbers<[1], [0], [0], [1], [0, 0, 1, 1], [], []>} : vector<10x256xbf16>, vector<256x256xbf16>, vector<10x256xf32> -> vector<10x256xf32>
    %473 = arith.addf %466, %472 : vector<10x256xf32>
    %c16_405 = arith.constant 16 : index
    %c0_406 = arith.constant 0 : index
    %474 = vector.load %arg24[%c16_405, %c0_406] : memref<48x128xbf16, #tpu.memory_space<vmem>>, vector<10x128xbf16>
    %c17_407 = arith.constant 17 : index
    %c0_408 = arith.constant 0 : index
    %475 = vector.load %arg24[%c17_407, %c0_408] : memref<48x128xbf16, #tpu.memory_space<vmem>>, vector<10x128xbf16>
    %476 = tpu.concatenate %474, %475 in 1 : vector<10x128xbf16>, vector<10x128xbf16> -> vector<10x256xbf16>
    %c5_409 = arith.constant 5 : index
    %c0_410 = arith.constant 0 : index
    %c0_411 = arith.constant 0 : index
    %477 = vector.load %arg6[%c5_409, %c0_410, %c0_411] : memref<12x256x256xbf16, #tpu.memory_space<vmem>>, vector<1x256x256xbf16>
    %478 = vector.shape_cast %477 : vector<1x256x256xbf16> to vector<256x256xbf16>
    %cst_412 = arith.constant dense<0.000000e+00> : vector<10x256xf32>
    %479 = tpu.matmul %476, %478, %cst_412 {dimension_numbers = #tpu.dot_dimension_numbers<[1], [0], [0], [1], [0, 0, 1, 1], [], []>} : vector<10x256xbf16>, vector<256x256xbf16>, vector<10x256xf32> -> vector<10x256xf32>
    %480 = arith.addf %473, %479 : vector<10x256xf32>
    %c18_413 = arith.constant 18 : index
    %c0_414 = arith.constant 0 : index
    %481 = vector.load %arg24[%c18_413, %c0_414] : memref<48x128xbf16, #tpu.memory_space<vmem>>, vector<10x128xbf16>
    %c19_415 = arith.constant 19 : index
    %c0_416 = arith.constant 0 : index
    %482 = vector.load %arg24[%c19_415, %c0_416] : memref<48x128xbf16, #tpu.memory_space<vmem>>, vector<10x128xbf16>
    %483 = tpu.concatenate %481, %482 in 1 : vector<10x128xbf16>, vector<10x128xbf16> -> vector<10x256xbf16>
    %c6_417 = arith.constant 6 : index
    %c0_418 = arith.constant 0 : index
    %c0_419 = arith.constant 0 : index
    %484 = vector.load %arg6[%c6_417, %c0_418, %c0_419] : memref<12x256x256xbf16, #tpu.memory_space<vmem>>, vector<1x256x256xbf16>
    %485 = vector.shape_cast %484 : vector<1x256x256xbf16> to vector<256x256xbf16>
    %cst_420 = arith.constant dense<0.000000e+00> : vector<10x256xf32>
    %486 = tpu.matmul %483, %485, %cst_420 {dimension_numbers = #tpu.dot_dimension_numbers<[1], [0], [0], [1], [0, 0, 1, 1], [], []>} : vector<10x256xbf16>, vector<256x256xbf16>, vector<10x256xf32> -> vector<10x256xf32>
    %487 = arith.addf %480, %486 : vector<10x256xf32>
    %c20_421 = arith.constant 20 : index
    %c0_422 = arith.constant 0 : index
    %488 = vector.load %arg24[%c20_421, %c0_422] : memref<48x128xbf16, #tpu.memory_space<vmem>>, vector<10x128xbf16>
    %c24_423 = arith.constant 24 : index
    %c0_424 = arith.constant 0 : index
    %489 = vector.load %arg24[%c24_423, %c0_424] : memref<48x128xbf16, #tpu.memory_space<vmem>>, vector<10x128xbf16>
    %490 = tpu.concatenate %488, %489 in 1 : vector<10x128xbf16>, vector<10x128xbf16> -> vector<10x256xbf16>
    %c7_425 = arith.constant 7 : index
    %c0_426 = arith.constant 0 : index
    %c0_427 = arith.constant 0 : index
    %491 = vector.load %arg6[%c7_425, %c0_426, %c0_427] : memref<12x256x256xbf16, #tpu.memory_space<vmem>>, vector<1x256x256xbf16>
    %492 = vector.shape_cast %491 : vector<1x256x256xbf16> to vector<256x256xbf16>
    %cst_428 = arith.constant dense<0.000000e+00> : vector<10x256xf32>
    %493 = tpu.matmul %490, %492, %cst_428 {dimension_numbers = #tpu.dot_dimension_numbers<[1], [0], [0], [1], [0, 0, 1, 1], [], []>} : vector<10x256xbf16>, vector<256x256xbf16>, vector<10x256xf32> -> vector<10x256xf32>
    %494 = arith.addf %487, %493 : vector<10x256xf32>
    %c25_429 = arith.constant 25 : index
    %c0_430 = arith.constant 0 : index
    %495 = vector.load %arg24[%c25_429, %c0_430] : memref<48x128xbf16, #tpu.memory_space<vmem>>, vector<10x128xbf16>
    %c26_431 = arith.constant 26 : index
    %c0_432 = arith.constant 0 : index
    %496 = vector.load %arg24[%c26_431, %c0_432] : memref<48x128xbf16, #tpu.memory_space<vmem>>, vector<10x128xbf16>
    %497 = tpu.concatenate %495, %496 in 1 : vector<10x128xbf16>, vector<10x128xbf16> -> vector<10x256xbf16>
    %c8_433 = arith.constant 8 : index
    %c0_434 = arith.constant 0 : index
    %c0_435 = arith.constant 0 : index
    %498 = vector.load %arg6[%c8_433, %c0_434, %c0_435] : memref<12x256x256xbf16, #tpu.memory_space<vmem>>, vector<1x256x256xbf16>
    %499 = vector.shape_cast %498 : vector<1x256x256xbf16> to vector<256x256xbf16>
    %cst_436 = arith.constant dense<0.000000e+00> : vector<10x256xf32>
    %500 = tpu.matmul %497, %499, %cst_436 {dimension_numbers = #tpu.dot_dimension_numbers<[1], [0], [0], [1], [0, 0, 1, 1], [], []>} : vector<10x256xbf16>, vector<256x256xbf16>, vector<10x256xf32> -> vector<10x256xf32>
    %501 = arith.addf %494, %500 : vector<10x256xf32>
    %c27_437 = arith.constant 27 : index
    %c0_438 = arith.constant 0 : index
    %502 = vector.load %arg24[%c27_437, %c0_438] : memref<48x128xbf16, #tpu.memory_space<vmem>>, vector<10x128xbf16>
    %c28_439 = arith.constant 28 : index
    %c0_440 = arith.constant 0 : index
    %503 = vector.load %arg24[%c28_439, %c0_440] : memref<48x128xbf16, #tpu.memory_space<vmem>>, vector<10x128xbf16>
    %504 = tpu.concatenate %502, %503 in 1 : vector<10x128xbf16>, vector<10x128xbf16> -> vector<10x256xbf16>
    %c9_441 = arith.constant 9 : index
    %c0_442 = arith.constant 0 : index
    %c0_443 = arith.constant 0 : index
    %505 = vector.load %arg6[%c9_441, %c0_442, %c0_443] : memref<12x256x256xbf16, #tpu.memory_space<vmem>>, vector<1x256x256xbf16>
    %506 = vector.shape_cast %505 : vector<1x256x256xbf16> to vector<256x256xbf16>
    %cst_444 = arith.constant dense<0.000000e+00> : vector<10x256xf32>
    %507 = tpu.matmul %504, %506, %cst_444 {dimension_numbers = #tpu.dot_dimension_numbers<[1], [0], [0], [1], [0, 0, 1, 1], [], []>} : vector<10x256xbf16>, vector<256x256xbf16>, vector<10x256xf32> -> vector<10x256xf32>
    %508 = arith.addf %501, %507 : vector<10x256xf32>
    %c32_445 = arith.constant 32 : index
    %c0_446 = arith.constant 0 : index
    %509 = vector.load %arg24[%c32_445, %c0_446] : memref<48x128xbf16, #tpu.memory_space<vmem>>, vector<10x128xbf16>
    %c33_447 = arith.constant 33 : index
    %c0_448 = arith.constant 0 : index
    %510 = vector.load %arg24[%c33_447, %c0_448] : memref<48x128xbf16, #tpu.memory_space<vmem>>, vector<10x128xbf16>
    %511 = tpu.concatenate %509, %510 in 1 : vector<10x128xbf16>, vector<10x128xbf16> -> vector<10x256xbf16>
    %c10_449 = arith.constant 10 : index
    %c0_450 = arith.constant 0 : index
    %c0_451 = arith.constant 0 : index
    %512 = vector.load %arg6[%c10_449, %c0_450, %c0_451] : memref<12x256x256xbf16, #tpu.memory_space<vmem>>, vector<1x256x256xbf16>
    %513 = vector.shape_cast %512 : vector<1x256x256xbf16> to vector<256x256xbf16>
    %cst_452 = arith.constant dense<0.000000e+00> : vector<10x256xf32>
    %514 = tpu.matmul %511, %513, %cst_452 {dimension_numbers = #tpu.dot_dimension_numbers<[1], [0], [0], [1], [0, 0, 1, 1], [], []>} : vector<10x256xbf16>, vector<256x256xbf16>, vector<10x256xf32> -> vector<10x256xf32>
    %515 = arith.addf %508, %514 : vector<10x256xf32>
    %c34_453 = arith.constant 34 : index
    %c0_454 = arith.constant 0 : index
    %516 = vector.load %arg24[%c34_453, %c0_454] : memref<48x128xbf16, #tpu.memory_space<vmem>>, vector<10x128xbf16>
    %c35_455 = arith.constant 35 : index
    %c0_456 = arith.constant 0 : index
    %517 = vector.load %arg24[%c35_455, %c0_456] : memref<48x128xbf16, #tpu.memory_space<vmem>>, vector<10x128xbf16>
    %518 = tpu.concatenate %516, %517 in 1 : vector<10x128xbf16>, vector<10x128xbf16> -> vector<10x256xbf16>
    %c11_457 = arith.constant 11 : index
    %c0_458 = arith.constant 0 : index
    %c0_459 = arith.constant 0 : index
    %519 = vector.load %arg6[%c11_457, %c0_458, %c0_459] : memref<12x256x256xbf16, #tpu.memory_space<vmem>>, vector<1x256x256xbf16>
    %520 = vector.shape_cast %519 : vector<1x256x256xbf16> to vector<256x256xbf16>
    %cst_460 = arith.constant dense<0.000000e+00> : vector<10x256xf32>
    %521 = tpu.matmul %518, %520, %cst_460 {dimension_numbers = #tpu.dot_dimension_numbers<[1], [0], [0], [1], [0, 0, 1, 1], [], []>} : vector<10x256xbf16>, vector<256x256xbf16>, vector<10x256xf32> -> vector<10x256xf32>
    %522 = arith.addf %515, %521 : vector<10x256xf32>
    %c36_461 = arith.constant 36 : index
    %c0_462 = arith.constant 0 : index
    %523 = vector.load %arg24[%c36_461, %c0_462] : memref<48x128xbf16, #tpu.memory_space<vmem>>, vector<10x128xbf16>
    %c0_463 = arith.constant 0 : index
    %c0_464 = arith.constant 0 : index
    %524 = vector.load %arg7[%c0_463, %c0_464] : memref<128x256xbf16, #tpu.memory_space<vmem>>, vector<128x256xbf16>
    %cst_465 = arith.constant dense<0.000000e+00> : vector<10x256xf32>
    %525 = tpu.matmul %523, %524, %cst_465 {dimension_numbers = #tpu.dot_dimension_numbers<[1], [0], [0], [1], [0, 0, 1, 1], [], []>} : vector<10x128xbf16>, vector<128x256xbf16>, vector<10x256xf32> -> vector<10x256xf32>
    %526 = arith.addf %522, %525 : vector<10x256xf32>
    %c0_466 = arith.constant 0 : index
    %c0_467 = arith.constant 0 : index
    %527 = vector.load %arg25[%c0_466, %c0_467] : memref<10x256xf32, #tpu.memory_space<vmem>>, vector<10x256xf32>
    tpu.vector_store %arg25[%c0_466, %c0_467], %526 {strides = array<i32>} : memref<10x256xf32, #tpu.memory_space<vmem>>, vector<10x256xf32>,
    %c0_468 = arith.constant 0 : index
    %c0_469 = arith.constant 0 : index
    %528 = vector.load %arg25[%c0_468, %c0_469] : memref<10x256xf32, #tpu.memory_space<vmem>>, vector<1x256xf32>
    %c1_470 = arith.constant 1 : index
    %c0_471 = arith.constant 0 : index
    %529 = vector.load %arg25[%c1_470, %c0_471] : memref<10x256xf32, #tpu.memory_space<vmem>>, vector<1x256xf32>
    %530 = arith.maximumf %528, %529 : vector<1x256xf32>
    %c8_472 = arith.constant 8 : index
    %c0_473 = arith.constant 0 : index
    %531 = vector.load %arg25[%c8_472, %c0_473] : memref<10x256xf32, #tpu.memory_space<vmem>>, vector<1x256xf32>
    %c9_474 = arith.constant 9 : index
    %c0_475 = arith.constant 0 : index
    %532 = vector.load %arg25[%c9_474, %c0_475] : memref<10x256xf32, #tpu.memory_space<vmem>>, vector<1x256xf32>
    %533 = arith.maximumf %531, %532 : vector<1x256xf32>
    %534 = arith.maximumf %530, %533 : vector<1x256xf32>
    %c0_476 = arith.constant 0 : index
    %c0_477 = arith.constant 0 : index
    %535 = vector.load %arg14[%c0_476, %c0_477] : memref<1x256xf32, #tpu.memory_space<vmem>>, vector<1x256xf32>
    %536 = arith.mulf %534, %535 : vector<1x256xf32>
    %c0_478 = arith.constant 0 : index
    %c0_479 = arith.constant 0 : index
    %537 = vector.load %arg15[%c0_478, %c0_479] : memref<1x256xf32, #tpu.memory_space<vmem>>, vector<1x256xf32>
    %538 = arith.addf %536, %537 : vector<1x256xf32>
    %cst_480 = arith.constant 0.000000e+00 : f32
    %539 = vector.broadcast %cst_480 : f32 to vector<1x256xf32>
    %540 = arith.maximumf %538, %539 : vector<1x256xf32>
    %c0_481 = arith.constant 0 : index
    %c0_482 = arith.constant 0 : index
    %541 = vector.load %arg16[%c0_481, %c0_482] : memref<256x2xf32, #tpu.memory_space<vmem>>, vector<256x2xf32>
    %cst_483 = arith.constant dense<0.000000e+00> : vector<1x2xf32>
    %542 = tpu.matmul %540, %541, %cst_483 {dimension_numbers = #tpu.dot_dimension_numbers<[1], [0], [0], [1], [0, 0, 1, 1], [], []>} : vector<1x256xf32>, vector<256x2xf32>, vector<1x2xf32> -> vector<1x2xf32>
    %c0_484 = arith.constant 0 : index
    %c0_485 = arith.constant 0 : index
    %543 = vector.load %arg17[%c0_484, %c0_485] : memref<1x2xf32, #tpu.memory_space<vmem>>, vector<1x2xf32>
    %544 = arith.addf %542, %543 : vector<1x2xf32>
    %c0_486 = arith.constant 0 : index
    %c0_487 = arith.constant 0 : index
    %c0_488 = arith.constant 0 : index
    %545 = vector.load %arg18[%c0_486, %c0_487, %c0_488] : memref<1x1x2xf32, #tpu.memory_space<vmem>>, vector<1x1x2xf32>
    %546 = vector.shape_cast %545 : vector<1x1x2xf32> to vector<1x2xf32>
    %547 = vector.shape_cast %544 : vector<1x2xf32> to vector<1x1x2xf32>
    tpu.vector_store %arg18[%c0_486, %c0_487, %c0_488], %547 {strides = array<i32>} : memref<1x1x2xf32, #tpu.memory_space<vmem>>, vector<1x1x2xf32>,
    return
  }
  func.func @transform_0(%arg0: i32) -> (i32, i32, i32) {
    %c0_i32 = arith.constant 0 : i32
    %c0_i32_0 = arith.constant 0 : i32
    %c0_i32_1 = arith.constant 0 : i32
    return %arg0, %c0_i32, %c0_i32_0 : i32, i32, i32
  }
  func.func @transform_1(%arg0: i32) -> (i32, i32) {
    %c0_i32 = arith.constant 0 : i32
    %c0_i32_0 = arith.constant 0 : i32
    %c0_i32_1 = arith.constant 0 : i32
    return %c0_i32, %c0_i32_0 : i32, i32
  }
  func.func @transform_2(%arg0: i32) -> (i32, i32, i32) {
    %c0_i32 = arith.constant 0 : i32
    %c0_i32_0 = arith.constant 0 : i32
    %c0_i32_1 = arith.constant 0 : i32
    %c0_i32_2 = arith.constant 0 : i32
    return %c0_i32, %c0_i32_0, %c0_i32_1 : i32, i32, i32
  }
  func.func @transform_3(%arg0: i32) -> (i32, i32, i32) {
    %c0_i32 = arith.constant 0 : i32
    %c0_i32_0 = arith.constant 0 : i32
    %c0_i32_1 = arith.constant 0 : i32
    %c0_i32_2 = arith.constant 0 : i32
    return %c0_i32, %c0_i32_0, %c0_i32_1 : i32, i32, i32
  }
  func.func @transform_4(%arg0: i32) -> (i32, i32) {
    %c0_i32 = arith.constant 0 : i32
    %c0_i32_0 = arith.constant 0 : i32
    %c0_i32_1 = arith.constant 0 : i32
    return %c0_i32, %c0_i32_0 : i32, i32
  }
  func.func @transform_5(%arg0: i32) -> (i32, i32, i32) {
    %c0_i32 = arith.constant 0 : i32
    %c0_i32_0 = arith.constant 0 : i32
    %c0_i32_1 = arith.constant 0 : i32
    %c0_i32_2 = arith.constant 0 : i32
    return %c0_i32, %c0_i32_0, %c0_i32_1 : i32, i32, i32
  }
  func.func @transform_6(%arg0: i32) -> (i32, i32) {
    %c0_i32 = arith.constant 0 : i32
    %c0_i32_0 = arith.constant 0 : i32
    %c0_i32_1 = arith.constant 0 : i32
    return %c0_i32, %c0_i32_0 : i32, i32
  }
  func.func @transform_7(%arg0: i32) -> (i32, i32) {
    %c0_i32 = arith.constant 0 : i32
    %c0_i32_0 = arith.constant 0 : i32
    %c0_i32_1 = arith.constant 0 : i32
    return %c0_i32, %c0_i32_0 : i32, i32
  }
  func.func @transform_8(%arg0: i32) -> (i32, i32) {
    %c0_i32 = arith.constant 0 : i32
    %c0_i32_0 = arith.constant 0 : i32
    %c0_i32_1 = arith.constant 0 : i32
    return %c0_i32, %c0_i32_0 : i32, i32
  }
  func.func @transform_9(%arg0: i32) -> (i32, i32) {
    %c0_i32 = arith.constant 0 : i32
    %c0_i32_0 = arith.constant 0 : i32
    %c0_i32_1 = arith.constant 0 : i32
    return %c0_i32, %c0_i32_0 : i32, i32
  }
  func.func @transform_10(%arg0: i32) -> (i32, i32) {
    %c0_i32 = arith.constant 0 : i32
    %c0_i32_0 = arith.constant 0 : i32
    %c0_i32_1 = arith.constant 0 : i32
    return %c0_i32, %c0_i32_0 : i32, i32
  }
  func.func @transform_11(%arg0: i32) -> (i32, i32) {
    %c0_i32 = arith.constant 0 : i32
    %c0_i32_0 = arith.constant 0 : i32
    %c0_i32_1 = arith.constant 0 : i32
    return %c0_i32, %c0_i32_0 : i32, i32
  }
  func.func @transform_12(%arg0: i32) -> (i32, i32) {
    %c0_i32 = arith.constant 0 : i32
    %c0_i32_0 = arith.constant 0 : i32
    %c0_i32_1 = arith.constant 0 : i32
    return %c0_i32, %c0_i32_0 : i32, i32
  }
  func.func @transform_13(%arg0: i32) -> (i32, i32) {
    %c0_i32 = arith.constant 0 : i32
    %c0_i32_0 = arith.constant 0 : i32
    %c0_i32_1 = arith.constant 0 : i32
    return %c0_i32, %c0_i32_0 : i32, i32
  }
  func.func @transform_14(%arg0: i32) -> (i32, i32) {
    %c0_i32 = arith.constant 0 : i32
    %c0_i32_0 = arith.constant 0 : i32
    %c0_i32_1 = arith.constant 0 : i32
    return %c0_i32, %c0_i32_0 : i32, i32
  }
  func.func @transform_15(%arg0: i32) -> (i32, i32) {
    %c0_i32 = arith.constant 0 : i32
    %c0_i32_0 = arith.constant 0 : i32
    %c0_i32_1 = arith.constant 0 : i32
    return %c0_i32, %c0_i32_0 : i32, i32
  }
  func.func @transform_16(%arg0: i32) -> (i32, i32) {
    %c0_i32 = arith.constant 0 : i32
    %c0_i32_0 = arith.constant 0 : i32
    %c0_i32_1 = arith.constant 0 : i32
    return %c0_i32, %c0_i32_0 : i32, i32
  }
  func.func @transform_17(%arg0: i32) -> (i32, i32, i32) {
    %c0_i32 = arith.constant 0 : i32
    %c0_i32_0 = arith.constant 0 : i32
    %c0_i32_1 = arith.constant 0 : i32
    return %arg0, %c0_i32, %c0_i32_0 : i32, i32, i32
  }
}

</mosaic_0001>

<bundles_post_ra>
// kernel: network_multi_loss_forward.1
= control target key start
LH: loop header
LB: loop body
LE: loop exit
PB: predicated region body
PF: predicated region fallthrough
CT: control target
= control target key end

     0   :  { %s18621_s0 = inlined_call_operand.vmem [shape: bf16[2,256,80], index: 0, kind: input, shape index: {}]   ;;  %s18622_s1 = inlined_call_operand.vmem [shape: bf16[80,32], index: 1, kind: input, shape index: {}]   ;;  %s18623_s2 = inlined_call_operand.vmem [shape: bf16[25,32,64], index: 2, kind: input, shape index: {}]   ;;  %s18624_s3 = inlined_call_operand.vmem [shape: bf16[12,128,128], index: 3, kind: input, shape index: {}]   ;;  %s18625_s4 = inlined_call_operand.vmem [shape: bf16[64,128], index: 4, kind: input, shape index: {}]   ;;  %s18626_s5 = inlined_call_operand.vmem [shape: bf16[12,256,256], index: 5, kind: input, shape index: {}]   ;;  %s18627_s6 = inlined_call_operand.vmem [shape: bf16[128,256], index: 6, kind: input, shape index: {}]   ;;  %s18628_s7 = inlined_call_operand.vmem [shape: f32[1,32], index: 7, kind: input, shape index: {}]   ;;  %s18629_s8 = inlined_call_operand.vmem [shape: f32[1,32], index: 8, kind: input, shape index: {}]   ;;  %s18630_s9 = inlined_call_operand.vmem [shape: f32[1,64], index: 9, kind: input, shape index: {}]   ;;  %s18631_s10 = inlined_call_operand.vmem [shape: f32[1,64], index: 10, kind: input, shape index: {}]   ;;  %s18632_s11 = inlined_call_operand.vmem [shape: f32[1,128], index: 11, kind: input, shape index: {}]   ;;  %s18633_s12 = inlined_call_operand.vmem [shape: f32[1,128], index: 12, kind: input, shape index: {}]   ;;  %s18634_s13 = inlined_call_operand.vmem [shape: f32[1,256], index: 13, kind: input, shape index: {}]   ;;  %s18635_s14 = inlined_call_operand.vmem [shape: f32[1,256], index: 14, kind: input, shape index: {}]   ;;  %s18636_s15 = inlined_call_operand.vmem [shape: f32[256,2], index: 15, kind: input, shape index: {}]   ;;  %s18637_s16 = inlined_call_operand.vmem [shape: f32[1,2], index: 16, kind: input, shape index: {}]   ;;  %s18638_s17 = inlined_call_operand.hbm [shape: f32[2,1,2], index: 17, kind: output, shape index: {}]  }
   0x1   :  { %18645 = sst [smem:[#allocation17_spill]] %s18621_s0 }
   0x2   :  { %18646 = sst [smem:[#allocation18_spill]] %s18622_s1 }
   0x3   :  { %18647 = sst [smem:[#allocation19_spill]] %s18623_s2 }
   0x4   :  { %22 = vsyncpa [#allocation10], 0 }
   0x5   :  { %24 = vsyncpa [#allocation10 + $0x1], 0  ;;  %s15414_s24 = smov 0   ;;  %s15416_s25 = smov 0  }
   0x6   :  { %s15418_s26 = smov 0   ;;  %s15420_s27 = smov 0  }
   0x7 LB: > { %18648 = sst [smem:[#allocation12_spill]] %s15307_s24  ;;  %s15435_s28 = sadd.s32 4294967295, %s15319_s27   ;;  %s15319_s27 = sphi %s15420_s27, %s18660_s27   ;;  %s15315_s26 = sphi %s15418_s26, %s18662_s26   ;;  %s15311_s25 = sphi %s15416_s25, %s18664_s25   ;;  %s15307_s24 = sphi %s15414_s24, %s18663_s24  }
   0x8   : > { %18649 = sst [smem:[#allocation13_spill]] %s15315_s26  ;;  %s11273_s29 = sadd.s32 4294967294, %s15319_s27  }
   0x9   : > { %s15439_s0 = sadd.s32 1, %s15319_s27   ;;  %s399_s30 = sadd.s32 1, %s15315_s26 }
   0xa   : > { %18650 = sst [smem:[#allocation14_spill]] %s15439_s0  ;;  %s396_s18 = ssub.s32 %s15319_s27, %s15439_s0 }
   0xb   : > { %p409_p0 = scmp.ne.s32.totalorder %s15315_s26, %s15311_s25  ;;  %p397_p1 = scmp.eq.s32.totalorder %s396_s18, 0 }
   0xc   : > { %p410_p2 = scmp.eq.s32.totalorder %s15435_s28, 1  ;;  %p415_p3 = scmp.ne.s32.totalorder %s15311_s25, %s15307_s24 }
   0xd   : > { %p416_p4 = scmp.eq.s32.totalorder %s11273_s29, 1  ;;  %p11276_p7 = scmp.ge.s32.totalorder %s15319_s27, 1 }
   0xe   : > { %s15450_s19 = scalar_select %p397_p1, %s15315_s26, %s399_s30  }
   0xf   : > { %p15452_p5 = por %p410_p2, %p409_p0  ;;  %p15456_p6 = por %p416_p4, %p415_p3 }
  0x10   : > { %18651 = sst [smem:[#allocation15_spill]] %s15450_s19  ;;  %p490_p8 = scmp.lt.s32.totalorder %s15319_s27, 3 }
  0x11   : > { %s18653_s20 = scalar_select %p15456_p6, 1, 0 }
  0x12   : > { %p491_p9 = pnand %p11276_p7, %p490_p8 }
  0x13   : > { %18654 = sst [smem:[#allocation16_spill]] %s18653_s20  ;;  %s18655_s23 = sld [smem:[#allocation18_spill]] (!%p491_p9)  ;;  %vm720_vm0 = vcmask (!%p491_p9), 654336   ;;  %vm547_vm1 = vcmask (!%p491_p9), 261120   ;;  %v15321_v21 = vmov (!%p491_p9), 0   ;;  %vm993_vm3 = vcmask (!%p491_p9), 258049  }
  0x14   : > { %494 = sbr.rel (%p491_p9) target bundleno = 3072 (0xc00), region = 88  ;;  %p541_p10 = scmp.lt.s32.totalorder (!%p491_p9), %s15435_s28, 1  ;;  %550 = vst.msk [vmem:[#allocation3 + $0x10] sm:$0xff] (!%p491_p9), %vm547_vm1, %v15321_v21  ;;  %548 = vst.msk [vmem:[#allocation3] sm:$0xff] (!%p491_p9), %vm547_vm1, %v15321_v21  ;;  %vm1146_vm2 = vsmask.f32 (!%p491_p9), 7424 }
  0x15   : > { %s18656_s22 = sld [smem:[#allocation17_spill]] (!%p491_p9)  ;;  %549 = vst.msk [vmem:[#allocation3 + $0x8] sm:$0xff] (!%p491_p9), %vm547_vm1, %v15321_v21  ;;  %551 = vst.msk [vmem:[#allocation3 + $0x18] sm:$0xff] (!%p491_p9), %vm547_vm1, %v15321_v21  ;;  %s18657_s2 = sld [smem:[#allocation19_spill]] (!%p491_p9)  ;;  %v15555_v49 = vld [vmem:[%s18628_s7] ss:$0 sm:$0xff] (!%p491_p9) }
  0x16   : > { %552 = vst.msk [vmem:[#allocation3 + $0x20] sm:$0xff] (!%p491_p9), %vm547_vm1, %v15321_v21  ;;  %553 = vst.msk [vmem:[#allocation3 + $0x28] sm:$0xff] (!%p491_p9), %vm547_vm1, %v15321_v21  ;;  %v15562_v54 = vld [vmem:[%s18629_s8] ss:$0 sm:$0xff] (!%p491_p9)  ;;  %vm1650_vm4 = vsmask.f32 (!%p491_p9), 6400 }
  0x17   : > { %554 = vst.msk [vmem:[#allocation3 + $0x30] sm:$0xff] (!%p491_p9), %vm547_vm1, %v15321_v21  ;;  %555 = vst.msk [vmem:[#allocation3 + $0x38] sm:$0xff] (!%p491_p9), %vm547_vm1, %v15321_v21  ;;  %vm1481_vm5 = vcmask (!%p491_p9), 1046528   ;;  %vm1847_vm6 = vcmask (!%p491_p9), 1045504   ;;  %vm560_vm7 = vcmask (!%p491_p9), 523264   ;;  %vm5692_vm8 = vcmask (!%p491_p9), 518145  }
  0x18   : > { %556 = vst.msk [vmem:[#allocation3 + $0x40] sm:$0xff] (!%p491_p9), %vm547_vm1, %v15321_v21  ;;  %557 = vst.msk [vmem:[#allocation3 + $0x48] sm:$0xff] (!%p491_p9), %vm547_vm1, %v15321_v21  ;;  %vm5712_vm9 = vcmask (!%p491_p9), 522245   ;;  %s15322_s29 = smov (!%p491_p9), 64   ;;  %vm6241_vm10 = vsmask.f32 (!%p491_p9), 3328 }
  0x19   : > { %v14481_v0 = vld [vmem:[%s18655_s23] sm:$0xff] (!%p491_p9)   ;;  %v14482_v1 = vld [vmem:[%s18655_s23 + $0x8] sm:$0xff] (!%p491_p9)   ;;  %v14483_v2 = vld [vmem:[%s18655_s23 + $0x10] sm:$0xff] (!%p491_p9)   ;;  %558 = vst.msk [vmem:[#allocation3 + $0x50] sm:$0xff] (!%p491_p9), %vm547_vm1, %v15321_v21  ;;  %vm6415_vm11 = vsmask.f32 (!%p491_p9), 2304 }
  0x1a   : > { %13134 = vmatprep.subr.bf16.mxu0 (!%p491_p9), %v14481_v0  ;;  %v14484_v4 = vld [vmem:[%s18655_s23 + $0x18] sm:$0xff] (!%p491_p9)   ;;  %v14485_v5 = vld [vmem:[%s18655_s23 + $0x20] sm:$0xff] (!%p491_p9)   ;;  %559 = vst.msk [vmem:[#allocation3 + $0x58] sm:$0xff] (!%p491_p9), %vm547_vm1, %v15321_v21  ;;  %565 = vst [vmem:[#allocation7] sm:$0xff] (!%p491_p9), %v15321_v21  ;;  %s12698_s30 = sshll.u32 (!%p491_p9), %s15435_s28, 4  ;;  %vm11203_vm12 = vcmask (!%p491_p9), 8192  }
  0x1b   : > { %s542_s18 = scalar_select %p541_p10, %s15435_s28, 1  ;;  %13135 = vmatpush3.bf16.msra.mxu0 %v14481_v0  ;;  %566 = vst [vmem:[#allocation7 + $0x8] sm:$0xff] %v15321_v21  ;;  %567 = vst [vmem:[#allocation7 + $0x10] sm:$0xff] %v15321_v21  ;;  %v14502_v22 = vld [vmem:[%s18657_s2 + $0x10] sm:$0xff]   ;;  %v1128_v23 = vld [vmem:[#allocation3] sm:$0xff] }
  0x1c   : > { %13136 = vmatprep.subr.bf16.mxu0 %v14482_v1  ;;  %13176 = vmatprep.subr.bf16.mxu1 %v14502_v22  ;;  %v1129_v24 = vld [vmem:[#allocation3 + $0x8] sm:$0xff]  ;;  %v1150_v25 = vshll.u32 %v1128_v23, 16  ;;  %v14503_v27 = vld [vmem:[%s18657_s2 + $0x18] sm:$0xff]   ;;  %v1148_v28 = vshrl.u32 %v1128_v23, 16  ;;  %v15543_v38 = vld [vmem:[%s18657_s2] sm:$0xff]   ;;  %s18579_s20 = scalar_lea.hbm %s18638_s17, %s12698_s30  ;;  %s15323_s28 = smov [#allocation9]  }
  0x1d   : > { %s12701_s0 = sshll.u32 %s542_s18, 7  ;;  %13177 = vmatpush3.bf16.msra.mxu1 %v14502_v22  ;;  %v1155_v26 = vshll.u32 %v1129_v24, 16  ;;  %v1159_v32 = vshrl.u32 %v1129_v24, 16 }
  0x1e   : > { %s15476_s24 = scalar_lea.vmem %s18656_s22, %s12701_s0  ;;  %v1152_v29 = vrot.slane %v1150_v25, 1  ;;  %13178 = vmatprep.subr.bf16.mxu1 %v14503_v27  ;;  %s539_s22 = sand.u32 1, %s15311_s25  }
  0x1f   : > { %v14486_v3 = vld [vmem:[%s15476_s24] sm:$0xff]   ;;  %13137 = vmatpush3.bf16.msra.mxu0 %v14482_v1  ;;  %v14487_v6 = vld [vmem:[%s15476_s24 + $0x8] sm:$0xff]   ;;  %v14488_v7 = vld [vmem:[%s15476_s24 + $0x10] sm:$0xff]   ;;  %v1157_v30 = vrot.slane %v1155_v26, 1  ;;  %v1660_v34 = vrot.slane %v1155_v26, 2  ;;  %v1659_v35 = vrot.slane %v1159_v32, 1 }
  0x20   : > { %13138 = vmatprep.subr.bf16.mxu0 %v14483_v2  ;;  %13144 = vmatprep.mubr.msk.bf16.mxu0 %vm720_vm0, %v14486_v3  ;;  %v14489_v8 = vld [vmem:[%s15476_s24 + $0x18] sm:$0xff]   ;;  %v14490_v9 = vld [vmem:[%s15476_s24 + $0x20] sm:$0xff]   ;;  %v14491_v10 = vld [vmem:[%s15476_s24 + $0x28] sm:$0xff]   ;;  %v1153_v31 = vor.u32 %v1152_v29, %v1148_v28  ;;  %s540_s26 = scalar_lea.vmem [#allocation9], %s539_s22  ;;  %s11206_s18 = scalar_lea.sflag [#allocation10], %s539_s22 }
  0x21   : > { %v14492_v11 = vld [vmem:[%s15476_s24 + $0x30] sm:$0xff]   ;;  %v14493_v12 = vld [vmem:[%s15476_s24 + $0x38] sm:$0xff]   ;;  %v14494_v13 = vld [vmem:[%s15476_s24 + $0x40] sm:$0xff]   ;;  %13179 = vmatpush3.bf16.msra.mxu1 %v14503_v27  ;;  %v15536_v36 = vor.u32 %v1159_v32, %v1157_v30  ;;  %v15538_v37 = vor.u32 %v1660_v34, %v1659_v35  ;;  %s11218_s0 = sshll.u32 %s540_s26, 4  ;;  %s18581_s0 = int_to_ptr.vmem [resolvable:$true] %s11218_s0 }
  0x22   : > { %v14495_v14 = vld [vmem:[%s15476_s24 + $0x48] sm:$0xff]   ;;  %v14496_v15 = vld [vmem:[%s15476_s24 + $0x50] sm:$0xff]   ;;  %v14497_v16 = vld [vmem:[%s15476_s24 + $0x58] sm:$0xff]   ;;  %v1158_v33 = vsel %vm1146_vm2, %v1153_v31, %v1157_v30  ;;  %13196 = vmatprep.subr.bf16.mxu1 %v15543_v38  ;;  %s15257_s21 = scalar_lea.vmem %s18581_s0, 16 }
  0x23   : > { %13139 = vmatpush3.bf16.msra.mxu0 %v14483_v2  ;;  %v14498_v17 = vld [vmem:[%s15476_s24 + $0x60] sm:$0xff]   ;;  %v14499_v18 = vld [vmem:[%s15476_s24 + $0x68] sm:$0xff]   ;;  %v14500_v19 = vld [vmem:[%s15476_s24 + $0x70] sm:$0xff]   ;;  %13180 = vmatprep.mubr.msk.bf16.mxu1 %vm547_vm1, %v1158_v33  ;;  %p15258_p11 = scmp.ne.s32.totalorder %s18581_s0, %s15257_s21 }
  0x24   : > { %13140 = vmatprep.subr.bf16.mxu0 %v14484_v4  ;;  %v14501_v20 = vld [vmem:[%s15476_s24 + $0x78] sm:$0xff]  }
  0x25   : > { %p15259_p12 = pnand %p15258_p11, %p15452_p5 }
  0x27   : > { %13141 = vmatpush3.bf16.msra.mxu0 %v14484_v4  ;;  %p15260_p13 = pneg %p15259_p12 }
  0x28   : > { %13142 = vmatprep.subr.bf16.mxu0 %v14485_v5 }
  0x2b   : > { %13143 = vmatpush3.bf16.msra.mxu0 %v14485_v5 }
  0x2e   : > { %13145 = vmatmul.mubr.msk.bf16.vlgmr.msra.gmra.mrb[0].mxu0 %vm720_vm0, %v14487_v6 }
  0x2f   : > { %13148 = vmatprep.mubr.msk.bf16.mxu0 %vm720_vm0, %v14488_v7 }
  0x36   : > { %13149 = vmatmul.mubr.msk.bf16.gmra.mrb[4].mxu0 %vm720_vm0, %v14489_v8 }
  0x37   : > { %13152 = vmatprep.mubr.msk.bf16.mxu0 %vm720_vm0, %v14490_v9 }
  0x3e   : > { %13153 = vmatmul.mubr.msk.bf16.gmra.mrb[8].mxu0 %vm720_vm0, %v14491_v10 }
  0x3f   : > { %13156 = vmatprep.mubr.msk.bf16.mxu0 %vm720_vm0, %v14492_v11 }
  0x46   : > { %13157 = vmatmul.mubr.msk.bf16.gmra.mrb[12].mxu0 %vm720_vm0, %v14493_v12 }
  0x47   : > { %13160 = vmatprep.mubr.msk.bf16.mxu0 %vm720_vm0, %v14494_v13 }
  0x4e   : > { %13161 = vmatmul.mubr.msk.bf16.gmra.mrb[16].mxu0 %vm720_vm0, %v14495_v14 }
  0x4f   : > { %13164 = vmatprep.mubr.msk.bf16.mxu0 %vm720_vm0, %v14496_v15 }
  0x56   : > { %13165 = vmatmul.mubr.msk.bf16.gmra.mrb[20].mxu0 %vm720_vm0, %v14497_v16 }
  0x57   : > { %13168 = vmatprep.mubr.msk.bf16.mxu0 %vm720_vm0, %v14498_v17 }
  0x5e   : > { %13169 = vmatmul.mubr.msk.bf16.gmra.mrb[24].mxu0 %vm720_vm0, %v14499_v18 }
  0x5f   : > { %13172 = vmatprep.mubr.msk.bf16.mxu0 %vm720_vm0, %v14500_v19 }
  0x66   : > { %13173 = vmatmul.mubr.msk.bf16.gmra.mrb[28].mxu0 %vm720_vm0, %v14501_v20 }
 0x101   : > { %v13146_v39 = vpop.f32.mrb[0].mxu0 }
 0x102   : > { %932 = vst.msk [vmem:[#allocation2 + $0x10] sm:$0xff] %vm547_vm1, %v13146_v39  ;;  %v803_v40 = vpop.f32.mrb[1].mxu0 }
 0x103   : > { %930 = vst.msk [vmem:[#allocation2] sm:$0xff] %vm547_vm1, %v803_v40  ;;  %v13147_v41 = vpop.f32.mrb[2].mxu0 }
 0x104   : > { %933 = vst.msk [vmem:[#allocation2 + $0x18] sm:$0xff] %vm547_vm1, %v13147_v41  ;;  %v806_v42 = vpop.f32.mrb[3].mxu0 }
 0x105   : > { %931 = vst.msk [vmem:[#allocation2 + $0x8] sm:$0xff] %vm547_vm1, %v806_v42 }
 0x109   : > { %v13150_v43 = vpop.f32.mrb[4].mxu0 }
 0x10a   : > { %936 = vst.msk [vmem:[#allocation2 + $0x30] sm:$0xff] %vm547_vm1, %v13150_v43  ;;  %v819_v44 = vpop.f32.mrb[5].mxu0 }
 0x10b   : > { %v968_v45 = vld [vmem:[#allocation2 + $0x10] ss:$2 sm:$0xff]  ;;  %v970_v46 = vld [vmem:[#allocation2 + $0x11] ss:$2 sm:$0xff]  ;;  %934 = vst.msk [vmem:[#allocation2 + $0x20] sm:$0xff] %vm547_vm1, %v819_v44  ;;  %v13151_v47 = vpop.f32.mrb[6].mxu0 }
 0x10c   : > { %v972_v48 = vmax.f32 %v968_v45, %v970_v46  ;;  %v964_v50 = vld [vmem:[#allocation2] ss:$2 sm:$0xff]  ;;  %v966_v51 = vld [vmem:[#allocation2 + $0x1] ss:$2 sm:$0xff]  ;;  %937 = vst.msk [vmem:[#allocation2 + $0x38] sm:$0xff] %vm547_vm1, %v13151_v47  ;;  %v822_v52 = vpop.f32.mrb[7].mxu0 }
 0x10d   : > { %v971_v53 = vmax.f32 %v964_v50, %v966_v51  ;;  %935 = vst.msk [vmem:[#allocation2 + $0x28] sm:$0xff] %vm547_vm1, %v822_v52  ;;  %v14505_v46 = vld [vmem:[%s18657_s2 + $0x8] sm:$0xff]  }
 0x10f   : > { %v973_v55 = vmax.f32 %v971_v53, %v972_v48 }
 0x111   : > { %v980_v56 = vmul.f32 %v15555_v49, %v973_v55  ;;  %v13154_v57 = vpop.f32.mrb[8].mxu0 }
 0x112   : > { %940 = vst.msk [vmem:[#allocation2 + $0x50] sm:$0xff] %vm547_vm1, %v13154_v57  ;;  %v835_v58 = vpop.f32.mrb[9].mxu0 }
 0x113   : > { %v987_v59 = vadd.f32 %v15562_v54, %v980_v56  ;;  %v1000_v60 = vld [vmem:[#allocation2 + $0x30] ss:$2 sm:$0xff]  ;;  %v1002_v61 = vld [vmem:[#allocation2 + $0x31] ss:$2 sm:$0xff]  ;;  %938 = vst.msk [vmem:[#allocation2 + $0x40] sm:$0xff] %vm547_vm1, %v835_v58  ;;  %v13155_v62 = vpop.f32.mrb[10].mxu0 }
 0x114   : > { %v1004_v63 = vmax.f32 %v1000_v60, %v1002_v61  ;;  %v996_v0 = vld [vmem:[#allocation2 + $0x20] ss:$2 sm:$0xff]  ;;  %v998_v1 = vld [vmem:[#allocation2 + $0x21] ss:$2 sm:$0xff]  ;;  %941 = vst.msk [vmem:[#allocation2 + $0x58] sm:$0xff] %vm547_vm1, %v13155_v62  ;;  %v838_v2 = vpop.f32.mrb[11].mxu0 }
 0x115   : > { %v988_v3 = vmax.f32 %v987_v59, 0.0  ;;  %v1003_v4 = vmax.f32 %v996_v0, %v998_v1  ;;  %939 = vst.msk [vmem:[#allocation2 + $0x48] sm:$0xff] %vm547_vm1, %v838_v2 }
 0x117   : > { %v989_v5 = vpack.c.bf16 %v988_v3, %v988_v3  ;;  %v1005_v6 = vmax.f32 %v1003_v4, %v1004_v63 }
 0x119   : > { %v991_v7 = vrot.slane %v989_v5, 7  ;;  %v1006_v8 = vmul.f32 %v15555_v49, %v1005_v6  ;;  %v13158_v9 = vpop.f32.mrb[12].mxu0 }
 0x11a   : > { %944 = vst.msk [vmem:[#allocation2 + $0x70] sm:$0xff] %vm547_vm1, %v13158_v9  ;;  %v851_v10 = vpop.f32.mrb[13].mxu0 }
 0x11b   : > { %994 = vst.msk [vmem:[#allocation3 + $0x10] sm:$0x1e] %vm993_vm3, %v991_v7  ;;  %v1007_v11 = vadd.f32 %v15562_v54, %v1006_v8  ;;  %v1019_v12 = vld [vmem:[#allocation2 + $0x50] ss:$2 sm:$0xff]  ;;  %v1021_v13 = vld [vmem:[#allocation2 + $0x51] ss:$2 sm:$0xff] }
 0x11c   : > { %942 = vst.msk [vmem:[#allocation2 + $0x60] sm:$0xff] %vm547_vm1, %v851_v10  ;;  %v13159_v14 = vpop.f32.mrb[14].mxu0  ;;  %v1023_v15 = vmax.f32 %v1019_v12, %v1021_v13  ;;  %v1015_v16 = vld [vmem:[#allocation2 + $0x40] ss:$2 sm:$0xff]  ;;  %v1017_v17 = vld [vmem:[#allocation2 + $0x41] ss:$2 sm:$0xff] }
 0x11d   : > { %945 = vst.msk [vmem:[#allocation2 + $0x78] sm:$0xff] %vm547_vm1, %v13159_v14  ;;  %v854_v18 = vpop.f32.mrb[15].mxu0  ;;  %v1008_v19 = vmax.f32 %v1007_v11, 0.0  ;;  %v1022_v20 = vmax.f32 %v1015_v16, %v1017_v17 }
 0x11e   : > { %943 = vst.msk [vmem:[#allocation2 + $0x68] sm:$0xff] %vm547_vm1, %v854_v18 }
 0x11f   : > { %v1009_v21 = vpack.c.bf16 %v1008_v19, %v1008_v19  ;;  %v1024_v22 = vmax.f32 %v1022_v20, %v1023_v15 }
 0x121   : > { %v1011_v23 = vrot.slane %v1009_v21, 7  ;;  %v1025_v24 = vmul.f32 %v15555_v49, %v1024_v22  ;;  %v13162_v25 = vpop.f32.mrb[16].mxu0 }
 0x122   : > { %948 = vst.msk [vmem:[#allocation2 + $0x90] sm:$0xff] %vm547_vm1, %v13162_v25  ;;  %v867_v26 = vpop.f32.mrb[17].mxu0  ;;  %v15579_v27 = vld [vmem:[#allocation3 + $0x10] sm:$0xff] }
 0x123   : > { %1013 = vst.msk [vmem:[#allocation3 + $0x18] sm:$0x1e] %vm993_vm3, %v1011_v23  ;;  %v1026_v28 = vadd.f32 %v15562_v54, %v1025_v24  ;;  %v13163_v31 = vpop.f32.mrb[18].mxu0  ;;  %v1163_v32 = vshll.u32 %v15579_v27, 16  ;;  %v1167_v40 = vshrl.u32 %v15579_v27, 16 }
 0x124   : > { %v1038_v29 = vld [vmem:[#allocation2 + $0x70] ss:$2 sm:$0xff]  ;;  %v1040_v30 = vld [vmem:[#allocation2 + $0x71] ss:$2 sm:$0xff]  ;;  %946 = vst.msk [vmem:[#allocation2 + $0x80] sm:$0xff] %vm547_vm1, %v867_v26  ;;  %949 = vst.msk [vmem:[#allocation2 + $0x98] sm:$0xff] %vm547_vm1, %v13163_v31 }
 0x125   : > { %v1042_v33 = vmax.f32 %v1038_v29, %v1040_v30  ;;  %v1034_v34 = vld [vmem:[#allocation2 + $0x60] ss:$2 sm:$0xff]  ;;  %v1036_v35 = vld [vmem:[#allocation2 + $0x61] ss:$2 sm:$0xff]  ;;  %v870_v39 = vpop.f32.mrb[19].mxu0  ;;  %v1027_v41 = vmax.f32 %v1026_v28, 0.0 }
 0x126   : > { %v1041_v42 = vmax.f32 %v1034_v34, %v1036_v35  ;;  %947 = vst.msk [vmem:[#allocation2 + $0x88] sm:$0xff] %vm547_vm1, %v870_v39  ;;  %v1165_v43 = vrot.slane %v1163_v32, 1  ;;  %v1664_v44 = vrot.slane %v1163_v32, 2  ;;  %v1663_v45 = vrot.slane %v1167_v40, 1 }
 0x127   : > { %v1028_v47 = vpack.c.bf16 %v1027_v41, %v1027_v41 }
 0x128   : > { %v1043_v48 = vmax.f32 %v1041_v42, %v1042_v33  ;;  %v15593_v50 = vsel %vm1146_vm2, %v15536_v36, %v1165_v43  ;;  %v15597_v51 = vor.u32 %v1664_v44, %v1663_v45  ;;  %v15607_v36 = vld [vmem:[%s18657_s2 + $0x20] sm:$0xff]   ;;  %v3090_v59 = vor.u32 %v1167_v40, %v1165_v43 }
 0x129   : > { %13181 = vmatmul.mubr.msk.bf16.vlgmr.msra.gmra.mrb[0].mxu1 %vm547_vm1, %v15593_v50  ;;  %v1030_v52 = vrot.slane %v1028_v47, 7  ;;  %v13166_v55 = vpop.f32.mrb[20].mxu0 }
 0x12a   : > { %v1044_v53 = vmul.f32 %v15555_v49, %v1043_v48  ;;  %13197 = vmatpush3.bf16.msra.mxu1 %v15543_v38  ;;  %952 = vst.msk [vmem:[#allocation2 + $0xb0] sm:$0xff] %vm547_vm1, %v13166_v55  ;;  %v883_v56 = vpop.f32.mrb[21].mxu0  ;;  %v15602_v57 = vld [vmem:[#allocation3 + $0x18] sm:$0xff]  ;;  %v15612_v58 = vsel %vm1650_vm4, %v15538_v37, %v15597_v51 }
 0x12b   : > { %13198 = vmatprep.subr.bf16.mxu1 %v14505_v46  ;;  %1032 = vst.msk [vmem:[#allocation3 + $0x20] sm:$0x1e] %vm993_vm3, %v1030_v52  ;;  %v1057_v60 = vld [vmem:[#allocation2 + $0x90] ss:$2 sm:$0xff]  ;;  %v1059_v61 = vld [vmem:[#allocation2 + $0x91] ss:$2 sm:$0xff] }
 0x12c   : > { %v1045_v38 = vadd.f32 %v15562_v54, %v1044_v53  ;;  %950 = vst.msk [vmem:[#allocation2 + $0xa0] sm:$0xff] %vm547_vm1, %v883_v56  ;;  %v13167_v62 = vpop.f32.mrb[22].mxu0  ;;  %v1171_v63 = vshll.u32 %v15602_v57, 16  ;;  %v1061_v0 = vmax.f32 %v1057_v60, %v1059_v61  ;;  %v1175_v4 = vshrl.u32 %v15602_v57, 16 }
 0x12d   : > { %v1053_v1 = vld [vmem:[#allocation2 + $0x80] ss:$2 sm:$0xff]  ;;  %v1055_v2 = vld [vmem:[#allocation2 + $0x81] ss:$2 sm:$0xff]  ;;  %953 = vst.msk [vmem:[#allocation2 + $0xb8] sm:$0xff] %vm547_vm1, %v13167_v62  ;;  %v886_v3 = vpop.f32.mrb[23].mxu0 }
 0x12e   : > { %v1046_v5 = vmax.f32 %v1045_v38, 0.0  ;;  %v1060_v6 = vmax.f32 %v1053_v1, %v1055_v2  ;;  %951 = vst.msk [vmem:[#allocation2 + $0xa8] sm:$0xff] %vm547_vm1, %v886_v3  ;;  %v1173_v7 = vrot.slane %v1171_v63, 1  ;;  %13199 = vmatpush3.bf16.msra.mxu1 %v14505_v46  ;;  %v1667_v8 = vrot.slane %v1175_v4, 1 }
 0x12f   : > { %13216 = vmatprep.subr.bf16.mxu1 %v15607_v36  ;;  %v1668_v9 = vrot.slane %v1171_v63, 2 }
 0x130   : > { %v1047_v10 = vpack.c.bf16 %v1046_v5, %v1046_v5  ;;  %v1062_v11 = vmax.f32 %v1060_v6, %v1061_v0  ;;  %v15623_v12 = vsel %vm1146_vm2, %v3090_v59, %v1173_v7  ;;  %v1177_v33 = vor.u32 %v1175_v4, %v1173_v7 }
 0x131   : > { %13184 = vmatprep.mubr.msk.bf16.mxu1 %vm547_vm1, %v15623_v12  ;;  %v15627_v13 = vor.u32 %v1668_v9, %v1667_v8  ;;  %v13170_v16 = vpop.f32.mrb[24].mxu0 }
 0x132   : > { %v1049_v14 = vrot.slane %v1047_v10, 7  ;;  %v1063_v15 = vmul.f32 %v15555_v49, %v1062_v11  ;;  %956 = vst.msk [vmem:[#allocation2 + $0xd0] sm:$0xff] %vm547_vm1, %v13170_v16  ;;  %v899_v17 = vpop.f32.mrb[25].mxu0  ;;  %v15631_v18 = vld [vmem:[#allocation3 + $0x20] sm:$0xff] }
 0x133   : > { %v15636_v19 = vsel %vm1650_vm4, %v15597_v51, %v15627_v13  ;;  %954 = vst.msk [vmem:[#allocation2 + $0xc0] sm:$0xff] %vm547_vm1, %v899_v17  ;;  %v13171_v23 = vpop.f32.mrb[26].mxu0  ;;  %v1179_v24 = vshll.u32 %v15631_v18, 16  ;;  %v1183_v30 = vshrl.u32 %v15631_v18, 16 }
 0x134   : > { %1051 = vst.msk [vmem:[#allocation3 + $0x28] sm:$0x1e] %vm993_vm3, %v1049_v14  ;;  %v1064_v20 = vadd.f32 %v15562_v54, %v1063_v15  ;;  %v1076_v21 = vld [vmem:[#allocation2 + $0xb0] ss:$2 sm:$0xff]  ;;  %v1078_v22 = vld [vmem:[#allocation2 + $0xb1] ss:$2 sm:$0xff] }
 0x135   : > { %v1080_v25 = vmax.f32 %v1076_v21, %v1078_v22  ;;  %v1072_v26 = vld [vmem:[#allocation2 + $0xa0] ss:$2 sm:$0xff]  ;;  %v1074_v28 = vld [vmem:[#allocation2 + $0xa1] ss:$2 sm:$0xff]  ;;  %957 = vst.msk [vmem:[#allocation2 + $0xd8] sm:$0xff] %vm547_vm1, %v13171_v23  ;;  %v902_v29 = vpop.f32.mrb[27].mxu0 }
 0x136   : > { %v1065_v31 = vmax.f32 %v1064_v20, 0.0  ;;  %v1079_v32 = vmax.f32 %v1072_v26, %v1074_v28  ;;  %955 = vst.msk [vmem:[#allocation2 + $0xc8] sm:$0xff] %vm547_vm1, %v902_v29  ;;  %v1181_v34 = vrot.slane %v1179_v24, 1  ;;  %v1671_v35 = vrot.slane %v1183_v30, 1 }
 0x137   : > { %v1672_v39 = vrot.slane %v1179_v24, 2 }
 0x138   : > { %v1066_v40 = vpack.c.bf16 %v1065_v31, %v1065_v31  ;;  %v1081_v41 = vmax.f32 %v1079_v32, %v1080_v25  ;;  %v15646_v42 = vsel %vm1146_vm2, %v1177_v33, %v1181_v34  ;;  %v1185_v61 = vor.u32 %v1183_v30, %v1181_v34 }
 0x139   : > { %13185 = vmatmul.mubr.msk.bf16.gmra.mrb[4].mxu1 %vm547_vm1, %v15646_v42  ;;  %v1673_v43 = vor.u32 %v1672_v39, %v1671_v35  ;;  %v13174_v31 = vpop.f32.mrb[28].mxu0 }
 0x13a   : > { %v1068_v44 = vrot.slane %v1066_v40, 7  ;;  %v1082_v45 = vmul.f32 %v15555_v49, %v1081_v41  ;;  %960 = vst.msk [vmem:[#allocation2 + $0xf0] sm:$0xff] %vm547_vm1, %v13174_v31  ;;  %v915_v33 = vpop.f32.mrb[29].mxu0 }
 0x13b   : > { %v15651_v46 = vld [vmem:[#allocation3 + $0x28] sm:$0xff]  ;;  %v15655_v47 = vsel %vm1650_vm4, %v15627_v13, %v1673_v43  ;;  %958 = vst.msk [vmem:[#allocation2 + $0xe0] sm:$0xff] %vm547_vm1, %v915_v33 }
 0x13c   : > { %1070 = vst.msk [vmem:[#allocation3 + $0x30] sm:$0x1e] %vm993_vm3, %v1068_v44  ;;  %v1083_v48 = vadd.f32 %v15562_v54, %v1082_v45  ;;  %v1095_v52 = vld [vmem:[#allocation2 + $0xd0] ss:$2 sm:$0xff]  ;;  %v1097_v53 = vld [vmem:[#allocation2 + $0xd1] ss:$2 sm:$0xff] }
 0x13d   : > { %v1187_v55 = vshll.u32 %v15651_v46, 16  ;;  %v1191_v56 = vshrl.u32 %v15651_v46, 16  ;;  %v1099_v59 = vmax.f32 %v1095_v52, %v1097_v53  ;;  %v1091_v38 = vld [vmem:[#allocation2 + $0xc0] ss:$2 sm:$0xff]  ;;  %v1093_v60 = vld [vmem:[#allocation2 + $0xc1] ss:$2 sm:$0xff] }
 0x13e   : > { %v1084_v62 = vmax.f32 %v1083_v48, 0.0  ;;  %v1098_v63 = vmax.f32 %v1091_v38, %v1093_v60 }
 0x13f   : > { %v1189_v0 = vrot.slane %v1187_v55, 1  ;;  %v1675_v1 = vrot.slane %v1191_v56, 1  ;;  %v1676_v2 = vrot.slane %v1187_v55, 2 }
 0x140   : > { %v1085_v3 = vpack.c.bf16 %v1084_v62, %v1084_v62  ;;  %v1100_v4 = vmax.f32 %v1098_v63, %v1099_v59  ;;  %v15713_v59 = vld [vmem:[#allocation3 + $0x20] sm:$0xff]  ;;  %v15720_v62 = vld [vmem:[#allocation3 + $0x28] sm:$0xff] }
 0x141   : > { %v15662_v5 = vsel %vm1146_vm2, %v1185_v61, %v1189_v0  ;;  %v1677_v6 = vor.u32 %v1676_v2, %v1675_v1  ;;  %v1193_v17 = vor.u32 %v1191_v56, %v1189_v0  ;;  %v15252_v56 = vld [vmem:[#allocation3] sm:$0xff]  ;;  %v4000_v63 = vshll.u32 %v15713_v59, 16 }
 0x142   : > { %13188 = vmatprep.mubr.msk.bf16.mxu1 %vm547_vm1, %v15662_v5  ;;  %v1087_v7 = vrot.slane %v1085_v3, 7  ;;  %v1101_v8 = vmul.f32 %v15555_v49, %v1100_v4  ;;  %v14507_v3 = vld [vmem:[%s18657_s2 + $0x28] sm:$0xff]  }
 0x143   : > { %v15667_v9 = vld [vmem:[#allocation3 + $0x30] sm:$0xff]  ;;  %v15670_v10 = vsel %vm1650_vm4, %v1673_v43, %v1677_v6  ;;  %v13175_v43 = vpop.f32.mrb[30].mxu0 }
 0x144   : > { %1089 = vst.msk [vmem:[#allocation3 + $0x38] sm:$0x1e] %vm993_vm3, %v1087_v7  ;;  %v1102_v11 = vadd.f32 %v15562_v54, %v1101_v8  ;;  %v1195_v14 = vshll.u32 %v15667_v9, 16  ;;  %v1199_v15 = vshrl.u32 %v15667_v9, 16  ;;  %v918_v44 = vpop.f32.mrb[31].mxu0  ;;  %v15727_v7 = vld [vmem:[#allocation3 + $0x8] sm:$0xff] }
 0x145   : > { %961 = vst.msk [vmem:[#allocation2 + $0xf8] sm:$0xff] %vm547_vm1, %v13175_v43  ;;  %959 = vst.msk [vmem:[#allocation2 + $0xe8] sm:$0xff] %vm547_vm1, %v918_v44  ;;  %v14509_v43 = vld [vmem:[%s18657_s2 + $0x38] sm:$0xff]  }
 0x146   : > { %v1103_v16 = vmax.f32 %v1102_v11, 0.0  ;;  %v1197_v20 = vrot.slane %v1195_v14, 1  ;;  %v1679_v21 = vrot.slane %v1199_v15, 1  ;;  %v1680_v22 = vrot.slane %v1195_v14, 2  ;;  %v14508_v14 = vld [vmem:[%s18657_s2 + $0x30] sm:$0xff]  }
 0x147   : > { %v15733_v11 = vrot.slane %v4000_v63, 1 }
 0x148   : > { %v15677_v23 = vsel %vm1146_vm2, %v1193_v17, %v1197_v20  ;;  %v1104_v24 = vpack.c.bf16 %v1103_v16, %v1103_v16  ;;  %v15681_v25 = vor.u32 %v1680_v22, %v1679_v21  ;;  %v15696_v39 = vor.u32 %v1199_v15, %v1197_v20 }
 0x149   : > { %13189 = vmatmul.mubr.msk.bf16.gmra.mrb[8].mxu1 %vm547_vm1, %v15677_v23  ;;  %v4004_v16 = vshrl.u32 %v15713_v59, 16 }
 0x14a   : > { %v1106_v26 = vrot.slane %v1104_v24, 7  ;;  %v15687_v29 = vsel %vm1650_vm4, %v1677_v6, %v15681_v25  ;;  %v4007_v6 = vshll.u32 %v15720_v62, 16  ;;  %v1467_v24 = vld [vmem:[#allocation3] sm:$0xfe] }
 0x14b   : > { %v15683_v28 = vld [vmem:[#allocation3 + $0x38] sm:$0x1f] }
 0x14c   : > { %v1203_v30 = vshll.u32 %v15683_v28, 16  ;;  %v15690_v32 = vld [vmem:[#allocation3 + $0x38] sm:$0xff]  ;;  %1108 = vst.msk [vmem:[#allocation3 + $0x40] sm:$0x1e] %vm993_vm3, %v1106_v26  ;;  %v1207_v41 = vshrl.u32 %v15683_v28, 16  ;;  %v15745_v17 = vrot.slane %v4007_v6, 1 }
 0x14d   : > { %v2217_v34 = vshll.u32 %v15690_v32, 16  ;;  %v2221_v35 = vshrl.u32 %v15690_v32, 16  ;;  %v1114_v60 = vld [vmem:[#allocation2 + $0xf0] ss:$2 sm:$0xff]  ;;  %v1116_v61 = vld [vmem:[#allocation2 + $0xf1] ss:$2 sm:$0xff] }
 0x14e   : > { %v1205_v40 = vrot.slane %v1203_v30, 1  ;;  %v1118_v0 = vmax.f32 %v1114_v60, %v1116_v61  ;;  %v1110_v1 = vld [vmem:[#allocation2 + $0xe0] ss:$2 sm:$0xff]  ;;  %v1112_v2 = vld [vmem:[#allocation2 + $0xe1] ss:$2 sm:$0xff]  ;;  %v1483_v30 = vrot.slane %v15727_v7, 1 }
 0x14f   : > { %v2589_v45 = vrot.slane %v2221_v35, 1  ;;  %v2590_v53 = vrot.slane %v2217_v34, 2  ;;  %v1117_v4 = vmax.f32 %v1110_v1, %v1112_v2  ;;  %v1135_v33 = vld [vmem:[#allocation3 + $0x38] sm:$0xf]  ;;  %v1652_v61 = vshrl.u32 %v1467_v24, 16 }
 0x150   : > { %v1206_v48 = vsel %vm1146_vm2, %v15696_v39, %v1205_v40  ;;  %v1209_v52 = vor.u32 %v1207_v41, %v1205_v40  ;;  %v15769_v40 = vrot.slane %v15579_v27, 1  ;;  %v15772_v41 = vrot.slane %v15602_v57, 1 }
 0x151   : > { %13192 = vmatprep.mubr.msk.bf16.mxu1 %vm547_vm1, %v1206_v48  ;;  %v15710_v55 = vor.u32 %v2590_v53, %v2589_v45  ;;  %v1119_v8 = vmax.f32 %v1117_v4, %v1118_v0  ;;  %v14510_v48 = vld [vmem:[%s18657_s2 + $0x40] sm:$0xff]   ;;  %v1491_v53 = vrot.slane %v15651_v46, 1  ;;  %v1655_v0 = vshll.u32 %v1467_v24, 16 }
 0x152   : > { %13193 = vmatmul.mubr.msk.bf16.gmra.mrb[12].mxu1 %vm547_vm1, %v1209_v52  ;;  %v1486_v44 = vsel %vm1481_vm5, %v1483_v30, %v15769_v40  ;;  %v15783_v45 = vsel %vm1481_vm5, %v15769_v40, %v15772_v41  ;;  %v1489_v52 = vrot.slane %v15631_v18, 1  ;;  %v15804_v1 = vrot.slane %v15667_v9, 1 }
 0x153   : > { %13200 = vmatprep.mubr.msk.bf16.mxu1 %vm547_vm1, %v15252_v56  ;;  %v15718_v38 = vsel %vm1650_vm4, %v15681_v25, %v15710_v55  ;;  %v1120_v15 = vmul.f32 %v15555_v49, %v1119_v8  ;;  %v1495_v2 = vrot.slane %v15683_v28, 1  ;;  %v1657_v4 = vrot.slane %v1655_v0, 2  ;;  %v14511_v28 = vld [vmem:[%s18657_s2 + $0x48] sm:$0xff]  }
 0x154   : > { %v15794_v56 = vsel %vm1481_vm5, %v15772_v41, %v1489_v52  ;;  %v15799_v60 = vsel %vm1481_vm5, %v1489_v52, %v1491_v53  ;;  %v15809_v8 = vsel %vm1481_vm5, %v1491_v53, %v15804_v1  ;;  %v1855_v0 = vrot.slane %v15631_v18, 2 }
 0x155   : > { %v1121_v20 = vadd.f32 %v15562_v54, %v1120_v15  ;;  %v1482_v54 = vrot.slane %v1467_v24, 1 }
 0x157   : > { %v1122_v49 = vmax.f32 %v1121_v20, 0.0  ;;  %v1484_v31 = vsel %vm1481_vm5, %v1482_v54, %v1483_v30  ;;  %v1644_v20 = vld [vmem:[#allocation3 + $0x38] sm:$0x3f]  ;;  %v1839_v54 = vld [vmem:[#allocation3] sm:$0xfc] }
 0x159   : > { %v1123_v22 = vpack.c.bf16 %v1122_v49, %v1122_v49  ;;  %v1684_v49 = vshrl.u32 %v1644_v20, 16 }
 0x15a   : > { %13201 = vmatmul.mubr.msk.bf16.vlgmr.msra.gmra.mrb[0].mxu1 %vm547_vm1, %v15727_v7 }
 0x15b   : > { %13217 = vmatpush3.bf16.msra.mxu1 %v15607_v36  ;;  %13204 = vmatprep.mubr.msk.bf16.mxu1 %vm547_vm1, %v15579_v27  ;;  %v4908_v36 = vor.u32 %v4004_v16, %v15733_v11  ;;  %v1125_v26 = vrot.slane %v1123_v22, 7  ;;  %v1687_v22 = vshll.u32 %v1644_v20, 16  ;;  %v1686_v24 = vrot.slane %v1684_v49, 1  ;;  %v14517_v49 = vld [vmem:[%s18657_s2 + $0x78] sm:$0xff]  }
 0x15c   : > { %13218 = vmatprep.subr.bf16.mxu1 %v14507_v3 }
 0x15d   : > { %v15753_v21 = vsel %vm1146_vm2, %v4908_v36, %v15745_v17  ;;  %1127 = vst.msk [vmem:[#allocation3 + $0x48] sm:$0x1e] %vm993_vm3, %v1125_v26  ;;  %v1689_v26 = vrot.slane %v1687_v22, 2  ;;  %v14518_v22 = vld [vmem:[%s18657_s2 + $0x80] sm:$0xff]  }
 0x15f   : > { %13219 = vmatpush3.bf16.msra.mxu1 %v14507_v3  ;;  %v1654_v3 = vrot.slane %v1652_v61, 1  ;;  %v14514_v61 = vld [vmem:[%s18657_s2 + $0x60] sm:$0xff]  }
 0x160   : > { %13236 = vmatprep.subr.bf16.mxu1 %v14508_v14 }
 0x161   : > { %v1658_v15 = vor.u32 %v1657_v4, %v1654_v3 }
 0x162   : > { %13205 = vmatmul.mubr.msk.bf16.gmra.mrb[4].mxu1 %vm547_vm1, %v15602_v57 }
 0x163   : > { %13208 = vmatprep.mubr.msk.bf16.mxu1 %vm547_vm1, %v15631_v18  ;;  %v1662_v36 = vsel %vm1650_vm4, %v1658_v15, %v15538_v37  ;;  %v14512_v37 = vld [vmem:[%s18657_s2 + $0x50] sm:$0xff]   ;;  %v1861_v15 = vrot.slane %v1644_v20, 2  ;;  %v14515_v20 = vld [vmem:[%s18657_s2 + $0x68] sm:$0xff]  }
 0x16a   : > { %13209 = vmatmul.mubr.msk.bf16.gmra.mrb[8].mxu1 %vm547_vm1, %v15651_v46 }
 0x16b   : > { %13212 = vmatprep.mubr.msk.bf16.mxu1 %vm547_vm1, %v15667_v9 }
 0x172   : > { %13213 = vmatmul.mubr.msk.bf16.gmra.mrb[12].mxu1 %vm547_vm1, %v1135_v33  ;;  %v1849_v33 = vrot.slane %v15727_v7, 2 }
 0x173   : > { %13220 = vmatprep.mubr.msk.bf16.mxu1 %vm547_vm1, %v1484_v31  ;;  %v1848_v31 = vrot.slane %v1839_v54, 2 }
 0x17a   : > { %13221 = vmatmul.mubr.msk.bf16.vlgmr.msra.gmra.mrb[0].mxu1 %vm547_vm1, %v1486_v44  ;;  %v15844_v44 = vrot.slane %v15579_v27, 2 }
 0x17b   : > { %13237 = vmatpush3.bf16.msra.mxu1 %v14508_v14  ;;  %13224 = vmatprep.mubr.msk.bf16.mxu1 %vm547_vm1, %v15783_v45  ;;  %v1496_v14 = vsel %vm1481_vm5, %v15804_v1, %v1495_v2 }
 0x17c   : > { %13238 = vmatprep.subr.bf16.mxu1 %v14509_v43  ;;  %v1852_v52 = vsel %vm1847_vm6, %v1849_v33, %v15844_v44 }
 0x17f   : > { %13239 = vmatpush3.bf16.msra.mxu1 %v14509_v43  ;;  %v1850_v43 = vsel %vm1847_vm6, %v1848_v31, %v1849_v33 }
 0x180   : > { %13256 = vmatprep.subr.bf16.mxu1 %v14510_v48 }
 0x182   : > { %13225 = vmatmul.mubr.msk.bf16.gmra.mrb[4].mxu1 %vm547_vm1, %v15794_v56 }
 0x183   : > { %13228 = vmatprep.mubr.msk.bf16.mxu1 %vm547_vm1, %v15799_v60 }
 0x18a   : > { %13229 = vmatmul.mubr.msk.bf16.gmra.mrb[8].mxu1 %vm547_vm1, %v15809_v8 }
 0x18b   : > { %13232 = vmatprep.mubr.msk.bf16.mxu1 %vm547_vm1, %v1496_v14  ;;  %v15879_v14 = vrot.slane %v15667_v9, 2 }
 0x192   : > { %13233 = vmatmul.mubr.msk.bf16.gmra.mrb[12].mxu1 %vm547_vm1, %v1495_v2  ;;  %v1857_v2 = vrot.slane %v15651_v46, 2 }
 0x193   : > { %13240 = vmatprep.mubr.msk.bf16.mxu1 %vm547_vm1, %v1662_v36 }
 0x194   : > { %v15874_v4 = vsel %vm1847_vm6, %v1855_v0, %v1857_v2  ;;  %v15883_v36 = vsel %vm1847_vm6, %v1857_v2, %v15879_v14 }
 0x19a   : > { %13241 = vmatmul.mubr.msk.bf16.vlgmr.msra.gmra.mrb[0].mxu1 %vm547_vm1, %v15612_v58  ;;  %v1690_v58 = vor.u32 %v1689_v26, %v1686_v24  ;;  %v2170_v24 = vld [vmem:[#allocation3 + $0x40] sm:$0x1f]  ;;  %v15930_v26 = vrot.slane %v2217_v34, 1  ;;  %v2379_v34 = vld [vmem:[#allocation3 + $0x8] sm:$0xfe] }
 0x19b   : > { %13257 = vmatpush3.bf16.msra.mxu1 %v14510_v48  ;;  %13244 = vmatprep.mubr.msk.bf16.mxu1 %vm547_vm1, %v15636_v19  ;;  %v15847_v48 = vrot.slane %v15602_v57, 2  ;;  %v2229_v33 = vshrl.u32 %v2170_v24, 16 }
 0x19c   : > { %13258 = vmatprep.subr.bf16.mxu1 %v14511_v28  ;;  %v1691_v30 = vsel %vm1650_vm4, %v15681_v25, %v1690_v58  ;;  %v14513_v25 = vld [vmem:[%s18657_s2 + $0x58] sm:$0xff]   ;;  %v15935_v54 = vor.u32 %v2221_v35, %v15930_v26 }
 0x19d   : > { %v15858_v53 = vsel %vm1847_vm6, %v15844_v44, %v15847_v48  ;;  %v15869_v3 = vsel %vm1847_vm6, %v15847_v48, %v1855_v0  ;;  %v2565_v0 = vshll.u32 %v2379_v34, 16 }
 0x19f   : > { %13259 = vmatpush3.bf16.msra.mxu1 %v14511_v28  ;;  %v1862_v28 = vsel %vm1847_vm6, %v15879_v14, %v1861_v15 }
 0x1a0   : > { %13276 = vmatprep.subr.bf16.mxu1 %v14512_v37 }
 0x1a2   : > { %13245 = vmatmul.mubr.msk.bf16.gmra.mrb[4].mxu1 %vm547_vm1, %v15655_v47 }
 0x1a3   : > { %13248 = vmatprep.mubr.msk.bf16.mxu1 %vm547_vm1, %v15670_v10 }
 0x1aa   : > { %13249 = vmatmul.mubr.msk.bf16.gmra.mrb[8].mxu1 %vm547_vm1, %v15687_v29 }
 0x1ab   : > { %13252 = vmatprep.mubr.msk.bf16.mxu1 %vm547_vm1, %v1691_v30  ;;  %v15940_v30 = vsel %vm1146_vm2, %v15696_v39, %v15930_v26  ;;  %v14519_v39 = vld [vmem:[%s18657_s2 + $0x88] sm:$0xff]  }
 0x1b2   : > { %13253 = vmatmul.mubr.msk.bf16.gmra.mrb[12].mxu1 %vm547_vm1, %v1690_v58 }
 0x1b3   : > { %13260 = vmatprep.mubr.msk.bf16.mxu1 %vm547_vm1, %v1850_v43  ;;  %v2393_v43 = vrot.slane %v2379_v34, 1 }
 0x1b5   : > { %v2395_v35 = vsel %vm1481_vm5, %v2393_v43, %v15769_v40  ;;  %v15966_v40 = vrot.slane %v15690_v32, 1 }
 0x1b7   : > { %v15971_v2 = vsel %vm1481_vm5, %v15804_v1, %v15966_v40  ;;  %v14521_v1 = vld [vmem:[%s18657_s2 + $0x98] sm:$0xff]  }
 0x1ba   : > { %13261 = vmatmul.mubr.msk.bf16.vlgmr.msra.gmra.mrb[0].mxu1 %vm547_vm1, %v1852_v52  ;;  %v14520_v52 = vld [vmem:[%s18657_s2 + $0x90] sm:$0xff]  }
 0x1bb   : > { %13277 = vmatpush3.bf16.msra.mxu1 %v14512_v37  ;;  %13264 = vmatprep.mubr.msk.bf16.mxu1 %vm547_vm1, %v15858_v53  ;;  %v14516_v37 = vld [vmem:[%s18657_s2 + $0x70] sm:$0xff]  }
 0x1bc   : > { %13278 = vmatprep.subr.bf16.mxu1 %v14513_v25 }
 0x1bf   : > { %13279 = vmatpush3.bf16.msra.mxu1 %v14513_v25 }
 0x1c0   : > { %13296 = vmatprep.subr.bf16.mxu1 %v14514_v61 }
 0x1c2   : > { %13265 = vmatmul.mubr.msk.bf16.gmra.mrb[4].mxu1 %vm547_vm1, %v15869_v3 }
 0x1c3   : > { %13268 = vmatprep.mubr.msk.bf16.mxu1 %vm547_vm1, %v15874_v4 }
 0x1ca   : > { %13269 = vmatmul.mubr.msk.bf16.gmra.mrb[8].mxu1 %vm547_vm1, %v15883_v36 }
 0x1cb   : > { %13272 = vmatprep.mubr.msk.bf16.mxu1 %vm547_vm1, %v1862_v28 }
 0x1d2   : > { %13273 = vmatmul.mubr.msk.bf16.gmra.mrb[12].mxu1 %vm547_vm1, %v1861_v15 }
 0x1d3   : > { %13280 = vmatprep.mubr.msk.bf16.mxu1 %vm547_vm1, %v15727_v7  ;;  %v2017_v7 = vld [vmem:[#allocation3 + $0x40] sm:$0xf] }
 0x1da   : > { %13281 = vmatmul.mubr.msk.bf16.vlgmr.msra.gmra.mrb[0].mxu1 %vm547_vm1, %v15579_v27 }
 0x1db   : > { %13297 = vmatpush3.bf16.msra.mxu1 %v14514_v61  ;;  %13284 = vmatprep.mubr.msk.bf16.mxu1 %vm547_vm1, %v15602_v57  ;;  %v2562_v61 = vshrl.u32 %v2379_v34, 16  ;;  %v2749_v34 = vld [vmem:[#allocation3 + $0x8] sm:$0xfc] }
 0x1dc   : > { %13298 = vmatprep.subr.bf16.mxu1 %v14515_v20 }
 0x1dd   : > { %v2564_v28 = vrot.slane %v2562_v61, 1 }
 0x1df   : > { %13299 = vmatpush3.bf16.msra.mxu1 %v14515_v20  ;;  %v2567_v20 = vrot.slane %v2565_v0, 2 }
 0x1e0   : > { %13316 = vmatprep.subr.bf16.mxu1 %v14516_v37 }
 0x1e2   : > { %13285 = vmatmul.mubr.msk.bf16.gmra.mrb[4].mxu1 %vm547_vm1, %v15631_v18 }
 0x1e3   : > { %13288 = vmatprep.mubr.msk.bf16.mxu1 %vm547_vm1, %v15651_v46 }
 0x1ea   : > { %13289 = vmatmul.mubr.msk.bf16.gmra.mrb[8].mxu1 %vm547_vm1, %v15667_v9 }
 0x1eb   : > { %13292 = vmatprep.mubr.msk.bf16.mxu1 %vm547_vm1, %v15690_v32 }
 0x1f2   : > { %13293 = vmatmul.mubr.msk.bf16.gmra.mrb[12].mxu1 %vm547_vm1, %v2017_v7 }
 0x1f3   : > { %13300 = vmatprep.mubr.msk.bf16.mxu1 %vm547_vm1, %v15593_v50  ;;  %v2225_v50 = vshll.u32 %v2170_v24, 16 }
 0x1f5   : > { %v2227_v58 = vrot.slane %v2225_v50, 1 }
 0x1f7   : > { %v2228_v31 = vsel %vm1146_vm2, %v15935_v54, %v2227_v58  ;;  %v2231_v25 = vor.u32 %v2229_v33, %v2227_v58  ;;  %v2757_v33 = vrot.slane %v2749_v34, 2  ;;  %v14532_v34 = vld [vmem:[%s18657_s2 + $0xf0] sm:$0xff]  }
 0x1f9   : > { %v2759_v43 = vsel %vm1847_vm6, %v2757_v33, %v15844_v44  ;;  %v16020_v44 = vrot.slane %v15690_v32, 2 }
 0x1fa   : > { %13301 = vmatmul.mubr.msk.bf16.vlgmr.msra.gmra.mrb[0].mxu1 %vm547_vm1, %v15623_v12 }
 0x1fb   : > { %13317 = vmatpush3.bf16.msra.mxu1 %v14516_v37  ;;  %13304 = vmatprep.mubr.msk.bf16.mxu1 %vm547_vm1, %v15646_v42  ;;  %v2568_v37 = vor.u32 %v2567_v20, %v2564_v28  ;;  %v3288_v20 = vld [vmem:[#allocation3 + $0x10] sm:$0xfe] }
 0x1fc   : > { %13318 = vmatprep.subr.bf16.mxu1 %v14517_v49 }
 0x1fd   : > { %v2572_v7 = vsel %vm1650_vm4, %v2568_v37, %v15597_v51 }
 0x1ff   : > { %13319 = vmatpush3.bf16.msra.mxu1 %v14517_v49  ;;  %v2555_v49 = vld [vmem:[#allocation3 + $0x40] sm:$0x3f] }
 0x200   : > { %13336 = vmatprep.subr.bf16.mxu1 %v14518_v22  ;;  %v2594_v51 = vshrl.u32 %v2555_v49, 16 }
 0x202   : > { %13305 = vmatmul.mubr.msk.bf16.gmra.mrb[4].mxu1 %vm547_vm1, %v15662_v5  ;;  %v2596_v50 = vrot.slane %v2594_v51, 1  ;;  %v3474_v51 = vshll.u32 %v3288_v20, 16 }
 0x203   : > { %13308 = vmatprep.mubr.msk.bf16.mxu1 %vm547_vm1, %v15677_v23 }
 0x20a   : > { %13309 = vmatmul.mubr.msk.bf16.gmra.mrb[8].mxu1 %vm547_vm1, %v15940_v30 }
 0x20b   : > { %13312 = vmatprep.mubr.msk.bf16.mxu1 %vm547_vm1, %v2228_v31 }
 0x212   : > { %13313 = vmatmul.mubr.msk.bf16.gmra.mrb[12].mxu1 %vm547_vm1, %v2231_v25  ;;  %v14523_v25 = vld [vmem:[%s18657_s2 + $0xa8] sm:$0xff]  }
 0x213   : > { %13320 = vmatprep.mubr.msk.bf16.mxu1 %vm547_vm1, %v2395_v35  ;;  %v14524_v35 = vld [vmem:[%s18657_s2 + $0xb0] sm:$0xff]  }
 0x21a   : > { %13321 = vmatmul.mubr.msk.bf16.vlgmr.msra.gmra.mrb[0].mxu1 %vm547_vm1, %v15783_v45  ;;  %v2406_v45 = vrot.slane %v2170_v24, 1  ;;  %v2597_v24 = vshll.u32 %v2555_v49, 16 }
 0x21b   : > { %13337 = vmatpush3.bf16.msra.mxu1 %v14518_v22  ;;  %13324 = vmatprep.mubr.msk.bf16.mxu1 %vm547_vm1, %v15794_v56  ;;  %v14522_v22 = vld [vmem:[%s18657_s2 + $0xa0] sm:$0xff]  }
 0x21c   : > { %13338 = vmatprep.subr.bf16.mxu1 %v14519_v39  ;;  %v2407_v15 = vsel %vm1481_vm5, %v15966_v40, %v2406_v45  ;;  %v2599_v58 = vrot.slane %v2597_v24, 2  ;;  %v3476_v24 = vrot.slane %v3474_v51, 2  ;;  %v3988_v51 = vld [vmem:[#allocation3 + $0x50] sm:$0x1f] }
 0x21f   : > { %13339 = vmatpush3.bf16.msra.mxu1 %v14519_v39  ;;  %v16025_v39 = vsel %vm1847_vm6, %v15879_v14, %v16020_v44  ;;  %v14526_v14 = vld [vmem:[%s18657_s2 + $0xc0] sm:$0xff]  }
 0x220   : > { %13356 = vmatprep.subr.bf16.mxu1 %v14520_v52 }
 0x222   : > { %13325 = vmatmul.mubr.msk.bf16.gmra.mrb[4].mxu1 %vm547_vm1, %v15799_v60 }
 0x223   : > { %13328 = vmatprep.mubr.msk.bf16.mxu1 %vm547_vm1, %v15809_v8 }
 0x22a   : > { %13329 = vmatmul.mubr.msk.bf16.gmra.mrb[8].mxu1 %vm547_vm1, %v15971_v2 }
 0x22b   : > { %13332 = vmatprep.mubr.msk.bf16.mxu1 %vm547_vm1, %v2407_v15 }
 0x232   : > { %13333 = vmatmul.mubr.msk.bf16.gmra.mrb[12].mxu1 %vm547_vm1, %v2406_v45  ;;  %v14525_v45 = vld [vmem:[%s18657_s2 + $0xb8] sm:$0xff]  }
 0x233   : > { %13340 = vmatprep.mubr.msk.bf16.mxu1 %vm547_vm1, %v2572_v7  ;;  %v3302_v7 = vrot.slane %v3288_v20, 1 }
 0x23a   : > { %13341 = vmatmul.mubr.msk.bf16.vlgmr.msra.gmra.mrb[0].mxu1 %vm547_vm1, %v15636_v19  ;;  %v2600_v19 = vor.u32 %v2599_v58, %v2596_v50 }
 0x23b   : > { %13357 = vmatpush3.bf16.msra.mxu1 %v14520_v52  ;;  %13344 = vmatprep.mubr.msk.bf16.mxu1 %vm547_vm1, %v15655_v47 }
 0x23c   : > { %13358 = vmatprep.subr.bf16.mxu1 %v14521_v1  ;;  %v2601_v31 = vsel %vm1650_vm4, %v15710_v55, %v2600_v19 }
 0x23f   : > { %13359 = vmatpush3.bf16.msra.mxu1 %v14521_v1  ;;  %v3304_v1 = vsel %vm1481_vm5, %v3302_v7, %v15772_v41  ;;  %v4011_v7 = vshrl.u32 %v15720_v62, 16 }
 0x240   : > { %13376 = vmatprep.subr.bf16.mxu1 %v14522_v22 }
 0x242   : > { %13345 = vmatmul.mubr.msk.bf16.gmra.mrb[4].mxu1 %vm547_vm1, %v15670_v10 }
 0x243   : > { %13348 = vmatprep.mubr.msk.bf16.mxu1 %vm547_vm1, %v15687_v29 }
 0x24a   : > { %13349 = vmatmul.mubr.msk.bf16.gmra.mrb[8].mxu1 %vm547_vm1, %v15718_v38 }
 0x24b   : > { %13352 = vmatprep.mubr.msk.bf16.mxu1 %vm547_vm1, %v2601_v31  ;;  %v3464_v31 = vld [vmem:[#allocation3 + $0x48] sm:$0x3f] }
 0x24c   : > { %v3506_v33 = vshll.u32 %v3464_v31, 16 }
 0x252   : > { %13353 = vmatmul.mubr.msk.bf16.gmra.mrb[12].mxu1 %vm547_vm1, %v2600_v19  ;;  %v14531_v19 = vld [vmem:[%s18657_s2 + $0xe8] sm:$0xff]  }
 0x253   : > { %13360 = vmatprep.mubr.msk.bf16.mxu1 %vm547_vm1, %v2759_v43 }
 0x25a   : > { %13361 = vmatmul.mubr.msk.bf16.vlgmr.msra.gmra.mrb[0].mxu1 %vm547_vm1, %v15858_v53  ;;  %v2770_v53 = vrot.slane %v2555_v49, 2  ;;  %v14530_v49 = vld [vmem:[%s18657_s2 + $0xe0] sm:$0xff]  }
 0x25b   : > { %13377 = vmatpush3.bf16.msra.mxu1 %v14522_v22  ;;  %13364 = vmatprep.mubr.msk.bf16.mxu1 %vm547_vm1, %v15869_v3  ;;  %v3471_v22 = vshrl.u32 %v3288_v20, 16 }
 0x25c   : > { %13378 = vmatprep.subr.bf16.mxu1 %v14523_v25  ;;  %v2771_v52 = vsel %vm1847_vm6, %v16020_v44, %v2770_v53 }
 0x25f   : > { %13379 = vmatpush3.bf16.msra.mxu1 %v14523_v25 }
 0x260   : > { %13396 = vmatprep.subr.bf16.mxu1 %v14524_v35 }
 0x262   : > { %13365 = vmatmul.mubr.msk.bf16.gmra.mrb[4].mxu1 %vm547_vm1, %v15874_v4 }
 0x263   : > { %13368 = vmatprep.mubr.msk.bf16.mxu1 %vm547_vm1, %v15883_v36 }
 0x26a   : > { %13369 = vmatmul.mubr.msk.bf16.gmra.mrb[8].mxu1 %vm547_vm1, %v16025_v39 }
 0x26b   : > { %13372 = vmatprep.mubr.msk.bf16.mxu1 %vm547_vm1, %v2771_v52 }
 0x272   : > { %13373 = vmatmul.mubr.msk.bf16.gmra.mrb[12].mxu1 %vm547_vm1, %v2770_v53 }
 0x273   : > { %13380 = vmatprep.mubr.msk.bf16.mxu1 %vm547_vm1, %v15579_v27  ;;  %v16051_v27 = vld [vmem:[#allocation3 + $0x40] sm:$0xff] }
 0x274   : > { %v16108_v41 = vrot.slane %v16051_v27, 1 }
 0x27a   : > { %13381 = vmatmul.mubr.msk.bf16.vlgmr.msra.gmra.mrb[0].mxu1 %vm547_vm1, %v15602_v57  ;;  %v2926_v57 = vld [vmem:[#allocation3 + $0x48] sm:$0xf] }
 0x27b   : > { %13397 = vmatpush3.bf16.msra.mxu1 %v14524_v35  ;;  %13384 = vmatprep.mubr.msk.bf16.mxu1 %vm547_vm1, %v15631_v18  ;;  %v14527_v18 = vld [vmem:[%s18657_s2 + $0xc8] sm:$0xff]   ;;  %v3508_v35 = vrot.slane %v3506_v33, 2 }
 0x27c   : > { %13398 = vmatprep.subr.bf16.mxu1 %v14525_v45 }
 0x27f   : > { %13399 = vmatpush3.bf16.msra.mxu1 %v14525_v45 }
 0x280   : > { %13416 = vmatprep.subr.bf16.mxu1 %v14526_v14 }
 0x282   : > { %13385 = vmatmul.mubr.msk.bf16.gmra.mrb[4].mxu1 %vm547_vm1, %v15651_v46  ;;  %v14528_v46 = vld [vmem:[%s18657_s2 + $0xd0] sm:$0xff]  }
 0x283   : > { %13388 = vmatprep.mubr.msk.bf16.mxu1 %vm547_vm1, %v15667_v9  ;;  %v3079_v9 = vld [vmem:[#allocation3 + $0x48] sm:$0x1f] }
 0x284   : > { %v3134_v61 = vshll.u32 %v3079_v9, 16 }
 0x286   : > { %v3136_v15 = vrot.slane %v3134_v61, 1 }
 0x28a   : > { %13389 = vmatmul.mubr.msk.bf16.gmra.mrb[8].mxu1 %vm547_vm1, %v15690_v32 }
 0x28b   : > { %13392 = vmatprep.mubr.msk.bf16.mxu1 %vm547_vm1, %v16051_v27 }
 0x292   : > { %13393 = vmatmul.mubr.msk.bf16.gmra.mrb[12].mxu1 %vm547_vm1, %v2926_v57  ;;  %v14533_v57 = vld [vmem:[%s18657_s2 + $0xf8] sm:$0xff]  }
 0x293   : > { %13400 = vmatprep.mubr.msk.bf16.mxu1 %vm547_vm1, %v15623_v12  ;;  %v3126_v12 = vshll.u32 %v16051_v27, 16 }
 0x295   : > { %v3499_v25 = vrot.slane %v3126_v12, 2 }
 0x29a   : > { %13401 = vmatmul.mubr.msk.bf16.vlgmr.msra.gmra.mrb[0].mxu1 %vm547_vm1, %v15646_v42  ;;  %v16073_v42 = vrot.slane %v3126_v12, 1  ;;  %v16193_v12 = vld [vmem:[#allocation3 + $0x30] sm:$0xff] }
 0x29b   : > { %13417 = vmatpush3.bf16.msra.mxu1 %v14526_v14  ;;  %13404 = vmatprep.mubr.msk.bf16.mxu1 %vm547_vm1, %v15662_v5  ;;  %v3130_v5 = vshrl.u32 %v16051_v27, 16 }
 0x29c   : > { %13418 = vmatprep.subr.bf16.mxu1 %v14527_v18  ;;  %v16082_v28 = vsel %vm1146_vm2, %v15935_v54, %v16073_v42  ;;  %v14529_v54 = vld [vmem:[%s18657_s2 + $0xd8] sm:$0xff]  }
 0x29d   : > { %v16077_v0 = vor.u32 %v3130_v5, %v16073_v42  ;;  %v3498_v43 = vrot.slane %v3130_v5, 1  ;;  %v16201_v5 = vld [vmem:[#allocation3 + $0x48] sm:$0xff] }
 0x29f   : > { %13419 = vmatpush3.bf16.msra.mxu1 %v14527_v18  ;;  %v14534_v18 = vld [vmem:[%s18657_s2 + $0x100] sm:$0xff]  }
 0x2a0   : > { %13436 = vmatprep.subr.bf16.mxu1 %v14528_v46 }
 0x2a2   : > { %13405 = vmatmul.mubr.msk.bf16.gmra.mrb[4].mxu1 %vm547_vm1, %v15677_v23  ;;  %v3137_v23 = vsel %vm1146_vm2, %v16077_v0, %v3136_v15 }
 0x2a3   : > { %13408 = vmatprep.mubr.msk.bf16.mxu1 %vm547_vm1, %v15940_v30  ;;  %v3138_v30 = vshrl.u32 %v3079_v9, 16 }
 0x2a5   : > { %v3140_v37 = vor.u32 %v3138_v30, %v3136_v15  ;;  %v3835_v30 = vld [vmem:[#allocation3 + $0x50] sm:$0xf] }
 0x2aa   : > { %13409 = vmatmul.mubr.msk.bf16.gmra.mrb[8].mxu1 %vm547_vm1, %v16082_v28 }
 0x2ab   : > { %13412 = vmatprep.mubr.msk.bf16.mxu1 %vm547_vm1, %v3137_v23 }
 0x2b2   : > { %13413 = vmatmul.mubr.msk.bf16.gmra.mrb[12].mxu1 %vm547_vm1, %v3140_v37 }
 0x2b3   : > { %13420 = vmatprep.mubr.msk.bf16.mxu1 %vm547_vm1, %v3304_v1 }
 0x2ba   : > { %13421 = vmatmul.mubr.msk.bf16.vlgmr.msra.gmra.mrb[0].mxu1 %vm547_vm1, %v15794_v56  ;;  %v3315_v56 = vrot.slane %v3079_v9, 1  ;;  %v14536_v9 = vld [vmem:[%s18657_s2 + $0x110] sm:$0xff]  }
 0x2bb   : > { %13437 = vmatpush3.bf16.msra.mxu1 %v14528_v46  ;;  %13424 = vmatprep.mubr.msk.bf16.mxu1 %vm547_vm1, %v15799_v60  ;;  %v16113_v60 = vsel %vm1481_vm5, %v15966_v40, %v16108_v41 }
 0x2bc   : > { %13438 = vmatprep.subr.bf16.mxu1 %v14529_v54 }
 0x2bf   : > { %13439 = vmatpush3.bf16.msra.mxu1 %v14529_v54  ;;  %v4013_v54 = vor.u32 %v4011_v7, %v15745_v17  ;;  %v4018_v17 = vshrl.u32 %v16193_v12, 16 }
 0x2c0   : > { %13456 = vmatprep.subr.bf16.mxu1 %v14530_v49 }
 0x2c2   : > { %13425 = vmatmul.mubr.msk.bf16.gmra.mrb[4].mxu1 %vm547_vm1, %v15809_v8  ;;  %v3316_v8 = vsel %vm1481_vm5, %v16108_v41, %v3315_v56 }
 0x2c3   : > { %13428 = vmatprep.mubr.msk.bf16.mxu1 %vm547_vm1, %v15971_v2  ;;  %v3473_v2 = vrot.slane %v3471_v22, 1 }
 0x2c5   : > { %v3477_v50 = vor.u32 %v3476_v24, %v3473_v2  ;;  %v4043_v24 = vshll.u32 %v3988_v51, 16 }
 0x2c7   : > { %v3481_v58 = vsel %vm1650_vm4, %v3477_v50, %v15627_v13  ;;  %v3503_v13 = vshrl.u32 %v3464_v31, 16 }
 0x2ca   : > { %13429 = vmatmul.mubr.msk.bf16.gmra.mrb[8].mxu1 %vm547_vm1, %v16113_v60 }
 0x2cb   : > { %13432 = vmatprep.mubr.msk.bf16.mxu1 %vm547_vm1, %v3316_v8  ;;  %v4035_v8 = vshll.u32 %v16201_v5, 16 }
 0x2cd   : > { %v4037_v50 = vrot.slane %v4035_v8, 1 }
 0x2d2   : > { %13433 = vmatmul.mubr.msk.bf16.gmra.mrb[12].mxu1 %vm547_vm1, %v3315_v56  ;;  %v14538_v56 = vld [vmem:[%s18657_s2 + $0x120] sm:$0xff]  }
 0x2d3   : > { %13440 = vmatprep.mubr.msk.bf16.mxu1 %vm547_vm1, %v3481_v58  ;;  %v4039_v58 = vshrl.u32 %v16201_v5, 16 }
 0x2da   : > { %13441 = vmatmul.mubr.msk.bf16.vlgmr.msra.gmra.mrb[0].mxu1 %vm547_vm1, %v15655_v47  ;;  %v3505_v47 = vrot.slane %v3503_v13, 1  ;;  %v4197_v13 = vld [vmem:[#allocation3 + $0x18] sm:$0xfe] }
 0x2db   : > { %13457 = vmatpush3.bf16.msra.mxu1 %v14530_v49  ;;  %13444 = vmatprep.mubr.msk.bf16.mxu1 %vm547_vm1, %v15670_v10  ;;  %v16138_v10 = vor.u32 %v3499_v25, %v3498_v43  ;;  %v14537_v49 = vld [vmem:[%s18657_s2 + $0x118] sm:$0xff]   ;;  %v4212_v43 = vrot.slane %v15713_v59, 1  ;;  %v4211_v25 = vrot.slane %v4197_v13, 1 }
 0x2dc   : > { %13458 = vmatprep.subr.bf16.mxu1 %v14531_v19  ;;  %v3509_v53 = vor.u32 %v3508_v35, %v3505_v47  ;;  %v16263_v35 = vrot.slane %v16193_v12, 1 }
 0x2dd   : > { %v16143_v52 = vsel %vm1650_vm4, %v15710_v55, %v16138_v10  ;;  %v4213_v47 = vsel %vm1481_vm5, %v4211_v25, %v4212_v43  ;;  %v16360_v25 = vrot.slane %v15720_v62, 2 }
 0x2de   : > { %v3510_v45 = vsel %vm1650_vm4, %v16138_v10, %v3509_v53 }
 0x2df   : > { %13459 = vmatpush3.bf16.msra.mxu1 %v14531_v19  ;;  %v16244_v19 = vor.u32 %v4039_v58, %v4037_v50 }
 0x2e0   : > { %13476 = vmatprep.subr.bf16.mxu1 %v14532_v34 }
 0x2e2   : > { %13445 = vmatmul.mubr.msk.bf16.gmra.mrb[4].mxu1 %vm547_vm1, %v15687_v29  ;;  %v3658_v29 = vld [vmem:[#allocation3 + $0x10] sm:$0xfc] }
 0x2e3   : > { %13448 = vmatprep.mubr.msk.bf16.mxu1 %vm547_vm1, %v15718_v38  ;;  %v3666_v14 = vrot.slane %v3658_v29, 2 }
 0x2e5   : > { %v3668_v38 = vsel %vm1847_vm6, %v3666_v14, %v15847_v48  ;;  %v16169_v48 = vrot.slane %v16051_v27, 2  ;;  %v14540_v14 = vld [vmem:[%s18657_s2 + $0x130] sm:$0xff]  }
 0x2ea   : > { %13449 = vmatmul.mubr.msk.bf16.gmra.mrb[8].mxu1 %vm547_vm1, %v16143_v52 }
 0x2eb   : > { %13452 = vmatprep.mubr.msk.bf16.mxu1 %vm547_vm1, %v3510_v45 }
 0x2f2   : > { %13453 = vmatmul.mubr.msk.bf16.gmra.mrb[12].mxu1 %vm547_vm1, %v3509_v53  ;;  %v14539_v53 = vld [vmem:[%s18657_s2 + $0x128] sm:$0xff]  }
 0x2f3   : > { %13460 = vmatprep.mubr.msk.bf16.mxu1 %vm547_vm1, %v3668_v38  ;;  %v4219_v38 = vsel %vm1481_vm5, %v16263_v35, %v15966_v40 }
 0x2fa   : > { %13461 = vmatmul.mubr.msk.bf16.vlgmr.msra.gmra.mrb[0].mxu1 %vm547_vm1, %v15869_v3  ;;  %v3679_v3 = vrot.slane %v3464_v31, 2  ;;  %v4045_v31 = vrot.slane %v4043_v24, 1  ;;  %v4407_v24 = vrot.slane %v4039_v58, 1  ;;  %v4567_v58 = vld [vmem:[#allocation3 + $0x18] sm:$0xfc] }
 0x2fb   : > { %13477 = vmatpush3.bf16.msra.mxu1 %v14532_v34  ;;  %13464 = vmatprep.mubr.msk.bf16.mxu1 %vm547_vm1, %v15874_v4  ;;  %v16174_v4 = vsel %vm1847_vm6, %v16020_v44, %v16169_v48  ;;  %v16248_v34 = vsel %vm1146_vm2, %v16077_v0, %v4037_v50  ;;  %v16260_v0 = vrot.slane %v15720_v62, 1  ;;  %v4408_v50 = vrot.slane %v4035_v8, 2 }
 0x2fc   : > { %13478 = vmatprep.subr.bf16.mxu1 %v14533_v57  ;;  %v3680_v46 = vsel %vm1847_vm6, %v16169_v48, %v3679_v3 }
 0x2fd   : > { %v4215_v45 = vsel %vm1481_vm5, %v4212_v43, %v16260_v0  ;;  %v16274_v29 = vsel %vm1481_vm5, %v16260_v0, %v16263_v35 }
 0x2ff   : > { %13479 = vmatpush3.bf16.msra.mxu1 %v14533_v57  ;;  %v16288_v57 = vrot.slane %v16201_v5, 1 }
 0x300   : > { %13496 = vmatprep.subr.bf16.mxu1 %v14534_v18 }
 0x302   : > { %13465 = vmatmul.mubr.msk.bf16.gmra.mrb[4].mxu1 %vm547_vm1, %v15883_v36  ;;  %v3828_v36 = vld [vmem:[#allocation3 + $0x18] sm:$0xff] }
 0x303   : > { %13468 = vmatprep.mubr.msk.bf16.mxu1 %vm547_vm1, %v16025_v39  ;;  %v14535_v39 = vld [vmem:[%s18657_s2 + $0x108] sm:$0xff]   ;;  %v3996_v61 = vshll.u32 %v3828_v36, 16  ;;  %v3994_v23 = vshrl.u32 %v3828_v36, 16 }
 0x305   : > { %v3998_v15 = vrot.slane %v3996_v61, 1 }
 0x307   : > { %v3999_v20 = vor.u32 %v3998_v15, %v3994_v23 }
 0x309   : > { %v4003_v37 = vsel %vm1146_vm2, %v3999_v20, %v15733_v11  ;;  %v4391_v20 = vrot.slane %v4011_v7, 1 }
 0x30a   : > { %13469 = vmatmul.mubr.msk.bf16.gmra.mrb[8].mxu1 %vm547_vm1, %v16174_v4 }
 0x30b   : > { %13472 = vmatprep.mubr.msk.bf16.mxu1 %vm547_vm1, %v3680_v46  ;;  %v4383_v46 = vshll.u32 %v4197_v13, 16 }
 0x30d   : > { %v4385_v61 = vrot.slane %v4383_v46, 2 }
 0x312   : > { %13473 = vmatmul.mubr.msk.bf16.gmra.mrb[12].mxu1 %vm547_vm1, %v3679_v3  ;;  %v4380_v3 = vshrl.u32 %v4197_v13, 16 }
 0x313   : > { %13480 = vmatprep.mubr.msk.bf16.mxu1 %vm547_vm1, %v3828_v36  ;;  %v16293_v36 = vsel %vm1481_vm5, %v16108_v41, %v16288_v57 }
 0x31a   : > { %13481 = vmatmul.mubr.msk.bf16.vlgmr.msra.gmra.mrb[0].mxu1 %vm547_vm1, %v15713_v59 }
 0x31b   : > { %13497 = vmatpush3.bf16.msra.mxu1 %v14534_v18  ;;  %13484 = vmatprep.mubr.msk.bf16.mxu1 %vm547_vm1, %v15720_v62  ;;  %v4224_v18 = vrot.slane %v3988_v51, 1 }
 0x31c   : > { %13498 = vmatprep.subr.bf16.mxu1 %v14535_v39 }
 0x31d   : > { %v4225_v40 = vsel %vm1481_vm5, %v16288_v57, %v4224_v18 }
 0x31f   : > { %13499 = vmatpush3.bf16.msra.mxu1 %v14535_v39  ;;  %v4388_v39 = vrot.slane %v4000_v63, 2 }
 0x320   : > { %13516 = vmatprep.subr.bf16.mxu1 %v14536_v9 }
 0x322   : > { %13485 = vmatmul.mubr.msk.bf16.gmra.mrb[4].mxu1 %vm547_vm1, %v16193_v12 }
 0x323   : > { %13488 = vmatprep.mubr.msk.bf16.mxu1 %vm547_vm1, %v15690_v32  ;;  %v4014_v32 = vshll.u32 %v16193_v12, 16 }
 0x325   : > { %v4016_v1 = vrot.slane %v4014_v32, 1  ;;  %v4396_v63 = vrot.slane %v4014_v32, 2  ;;  %v4373_v32 = vld [vmem:[#allocation3 + $0x50] sm:$0x3f] }
 0x326   : > { %v4588_v46 = vrot.slane %v4373_v32, 2 }
 0x327   : > { %v16222_v11 = vsel %vm1146_vm2, %v4013_v54, %v4016_v1  ;;  %v16230_v22 = vor.u32 %v4018_v17, %v4016_v1 }
 0x329   : > { %v4024_v2 = vsel %vm1146_vm2, %v16230_v22, %v15930_v26  ;;  %v4046_v26 = vsel %vm1146_vm2, %v16244_v19, %v4045_v31 }
 0x32a   : > { %13489 = vmatmul.mubr.msk.bf16.gmra.mrb[8].mxu1 %vm547_vm1, %v16051_v27 }
 0x32b   : > { %13492 = vmatprep.mubr.msk.bf16.mxu1 %vm547_vm1, %v16201_v5 }
 0x332   : > { %13493 = vmatmul.mubr.msk.bf16.gmra.mrb[12].mxu1 %vm547_vm1, %v3835_v30  ;;  %v4392_v30 = vrot.slane %v4007_v6, 2  ;;  %v14541_v6 = vld [vmem:[%s18657_s2 + $0x138] sm:$0xff]  }
 0x333   : > { %13500 = vmatprep.mubr.msk.bf16.mxu1 %vm547_vm1, %v4003_v37 }
 0x334   : > { %v16313_v1 = vor.u32 %v4392_v30, %v4391_v20 }
 0x33a   : > { %13501 = vmatmul.mubr.msk.bf16.vlgmr.msra.gmra.mrb[0].mxu1 %vm547_vm1, %v15753_v21 }
 0x33b   : > { %13517 = vmatpush3.bf16.msra.mxu1 %v14536_v9  ;;  %13504 = vmatprep.mubr.msk.bf16.mxu1 %vm547_vm1, %v16222_v11  ;;  %v4382_v9 = vrot.slane %v4380_v3, 1  ;;  %v16388_v3 = vrot.slane %v16201_v5, 2 }
 0x33c   : > { %13518 = vmatprep.subr.bf16.mxu1 %v14537_v49 }
 0x33d   : > { %v4386_v23 = vor.u32 %v4385_v61, %v4382_v9  ;;  %v15254_v9 = vld [vmem:[#allocation7] sm:$0xff]  ;;  %v14548_v61 = vld [vmem:[%s18657_s2 + $0x170] sm:$0xff]  }
 0x33e   : > { %561 = vst.msk [vmem:[#allocation5] sm:$0xff] %vm560_vm7, %v15254_v9  ;;  %562 = vst.msk [vmem:[#allocation5 + $0x8] sm:$0xff] %vm560_vm7, %v15254_v9 }
 0x33f   : > { %13519 = vmatpush3.bf16.msra.mxu1 %v14537_v49  ;;  %563 = vst.msk [vmem:[#allocation5 + $0x10] sm:$0xff] %vm560_vm7, %v15254_v9  ;;  %564 = vst.msk [vmem:[#allocation5 + $0x18] sm:$0xff] %vm560_vm7, %v15254_v9 }
 0x340   : > { %13536 = vmatprep.subr.bf16.mxu1 %v14538_v56 }
 0x342   : > { %13505 = vmatmul.mubr.msk.bf16.gmra.mrb[4].mxu1 %vm547_vm1, %v4024_v2 }
 0x343   : > { %13508 = vmatprep.mubr.msk.bf16.mxu1 %vm547_vm1, %v16082_v28  ;;  %v4047_v28 = vshrl.u32 %v3988_v51, 16  ;;  %v4415_v51 = vshll.u32 %v4373_v32, 16 }
 0x345   : > { %v4049_v33 = vor.u32 %v4047_v28, %v4045_v31  ;;  %v16343_v28 = vor.u32 %v4408_v50, %v4407_v24 }
 0x34a   : > { %13509 = vmatmul.mubr.msk.bf16.gmra.mrb[8].mxu1 %vm547_vm1, %v16248_v34 }
 0x34b   : > { %13512 = vmatprep.mubr.msk.bf16.mxu1 %vm547_vm1, %v4046_v26  ;;  %v4417_v26 = vrot.slane %v4415_v51, 2 }
 0x352   : > { %13513 = vmatmul.mubr.msk.bf16.gmra.mrb[12].mxu1 %vm547_vm1, %v4049_v33  ;;  %v4576_v33 = vrot.slane %v15713_v59, 2 }
 0x353   : > { %13520 = vmatprep.mubr.msk.bf16.mxu1 %vm547_vm1, %v4213_v47  ;;  %v16363_v47 = vrot.slane %v16193_v12, 2 }
 0x35a   : > { %13521 = vmatmul.mubr.msk.bf16.vlgmr.msra.gmra.mrb[0].mxu1 %vm547_vm1, %v4215_v45  ;;  %v4579_v45 = vsel %vm1847_vm6, %v4576_v33, %v16360_v25 }
 0x35b   : > { %13537 = vmatpush3.bf16.msra.mxu1 %v14538_v56  ;;  %13524 = vmatprep.mubr.msk.bf16.mxu1 %vm547_vm1, %v16274_v29  ;;  %v14542_v56 = vld [vmem:[%s18657_s2 + $0x140] sm:$0xff]  }
 0x35c   : > { %13538 = vmatprep.subr.bf16.mxu1 %v14539_v53 }
 0x35f   : > { %13539 = vmatpush3.bf16.msra.mxu1 %v14539_v53  ;;  %v14543_v53 = vld [vmem:[%s18657_s2 + $0x148] sm:$0xff]  }
 0x360   : > { %13556 = vmatprep.subr.bf16.mxu1 %v14540_v14 }
 0x362   : > { %13525 = vmatmul.mubr.msk.bf16.gmra.mrb[4].mxu1 %vm547_vm1, %v4219_v38  ;;  %v14544_v38 = vld [vmem:[%s18657_s2 + $0x150] sm:$0xff]  }
 0x363   : > { %13528 = vmatprep.mubr.msk.bf16.mxu1 %vm547_vm1, %v16113_v60  ;;  %v4387_v60 = vrot.slane %v4004_v16, 1  ;;  %v4395_v16 = vrot.slane %v4018_v17, 1  ;;  %v4412_v17 = vshrl.u32 %v4373_v32, 16 }
 0x365   : > { %v4389_v15 = vor.u32 %v4388_v39, %v4387_v60  ;;  %v16315_v54 = vor.u32 %v4396_v63, %v4395_v16  ;;  %v4414_v31 = vrot.slane %v4412_v17, 1  ;;  %v14546_v60 = vld [vmem:[%s18657_s2 + $0x160] sm:$0xff]   ;;  %v16413_v39 = vld [vmem:[#allocation3 + $0x38] sm:$0xff] }
 0x367   : > { %v4390_v37 = vsel %vm1650_vm4, %v4386_v23, %v4389_v15  ;;  %v4394_v7 = vsel %vm1650_vm4, %v4389_v15, %v16313_v1  ;;  %v16326_v49 = vsel %vm1650_vm4, %v16313_v1, %v16315_v54  ;;  %v4402_v2 = vsel %vm1650_vm4, %v16315_v54, %v15710_v55  ;;  %v4897_v23 = vld [vmem:[#allocation3 + $0x58] sm:$0x1f] }
 0x368   : > { %v4418_v13 = vor.u32 %v4417_v26, %v4414_v31  ;;  %v16348_v55 = vsel %vm1650_vm4, %v16138_v10, %v16343_v28  ;;  %v4927_v15 = vshrl.u32 %v16413_v39, 16 }
 0x36a   : > { %13529 = vmatmul.mubr.msk.bf16.gmra.mrb[8].mxu1 %vm547_vm1, %v16293_v36  ;;  %v4419_v8 = vsel %vm1650_vm4, %v16343_v28, %v4418_v13 }
 0x36b   : > { %13532 = vmatprep.mubr.msk.bf16.mxu1 %vm547_vm1, %v4225_v40  ;;  %v16393_v40 = vsel %vm1847_vm6, %v16169_v48, %v16388_v3 }
 0x372   : > { %13533 = vmatmul.mubr.msk.bf16.gmra.mrb[12].mxu1 %vm547_vm1, %v4224_v18  ;;  %v4583_v18 = vsel %vm1847_vm6, %v16363_v47, %v16020_v44  ;;  %v4589_v44 = vsel %vm1847_vm6, %v16388_v3, %v4588_v46 }
 0x373   : > { %13540 = vmatprep.mubr.msk.bf16.mxu1 %vm547_vm1, %v4390_v37  ;;  %v4952_v37 = vshll.u32 %v4897_v23, 16 }
 0x37a   : > { %13541 = vmatmul.mubr.msk.bf16.vlgmr.msra.gmra.mrb[0].mxu1 %vm547_vm1, %v4394_v7 }
 0x37b   : > { %13557 = vmatpush3.bf16.msra.mxu1 %v14540_v14  ;;  %13544 = vmatprep.mubr.msk.bf16.mxu1 %vm547_vm1, %v16326_v49  ;;  %v16374_v14 = vsel %vm1847_vm6, %v16360_v25, %v16363_v47 }
 0x37c   : > { %13558 = vmatprep.subr.bf16.mxu1 %v14541_v6 }
 0x37f   : > { %13559 = vmatpush3.bf16.msra.mxu1 %v14541_v6  ;;  %v4954_v6 = vrot.slane %v4952_v37, 1 }
 0x380   : > { %13576 = vmatprep.subr.bf16.mxu1 %v14542_v56 }
 0x382   : > { %13545 = vmatmul.mubr.msk.bf16.gmra.mrb[4].mxu1 %vm547_vm1, %v4402_v2  ;;  %v5125_v2 = vrot.slane %v16413_v39, 1 }
 0x383   : > { %13548 = vmatprep.mubr.msk.bf16.mxu1 %vm547_vm1, %v16143_v52  ;;  %v4575_v52 = vrot.slane %v4567_v58, 2 }
 0x384   : > { %v5126_v24 = vsel %vm1481_vm5, %v16263_v35, %v5125_v2  ;;  %v5128_v50 = vsel %vm1481_vm5, %v5125_v2, %v16108_v41 }
 0x385   : > { %v4577_v43 = vsel %vm1847_vm6, %v4575_v52, %v4576_v33  ;;  %v5304_v52 = vrot.slane %v4927_v15, 1 }
 0x38a   : > { %13549 = vmatmul.mubr.msk.bf16.gmra.mrb[8].mxu1 %vm547_vm1, %v16348_v55 }
 0x38b   : > { %13552 = vmatprep.mubr.msk.bf16.mxu1 %vm547_vm1, %v4419_v8 }
 0x392   : > { %13553 = vmatmul.mubr.msk.bf16.gmra.mrb[12].mxu1 %vm547_vm1, %v4418_v13 }
 0x393   : > { %13560 = vmatprep.mubr.msk.bf16.mxu1 %vm547_vm1, %v4577_v43 }
 0x39a   : > { %13561 = vmatmul.mubr.msk.bf16.vlgmr.msra.gmra.mrb[0].mxu1 %vm547_vm1, %v4579_v45  ;;  %v5282_v45 = vld [vmem:[#allocation3 + $0x58] sm:$0x3f] }
 0x39b   : > { %13577 = vmatpush3.bf16.msra.mxu1 %v14542_v56  ;;  %13564 = vmatprep.mubr.msk.bf16.mxu1 %vm547_vm1, %v16374_v14  ;;  %v5106_v56 = vld [vmem:[#allocation3 + $0x20] sm:$0xfe] }
 0x39c   : > { %13578 = vmatprep.subr.bf16.mxu1 %v14543_v53  ;;  %v5120_v51 = vrot.slane %v5106_v56, 1  ;;  %v5289_v26 = vshrl.u32 %v5106_v56, 16  ;;  %v5292_v13 = vshll.u32 %v5106_v56, 16 }
 0x39e   : > { %v5291_v41 = vrot.slane %v5289_v26, 1  ;;  %v5294_v58 = vrot.slane %v5292_v13, 2 }
 0x39f   : > { %13579 = vmatpush3.bf16.msra.mxu1 %v14543_v53 }
 0x3a0   : > { %13596 = vmatprep.subr.bf16.mxu1 %v14544_v38  ;;  %v5295_v33 = vor.u32 %v5294_v58, %v5291_v41 }
 0x3a2   : > { %13565 = vmatmul.mubr.msk.bf16.gmra.mrb[4].mxu1 %vm547_vm1, %v4583_v18  ;;  %v5324_v18 = vshll.u32 %v5282_v45, 16 }
 0x3a3   : > { %13568 = vmatprep.mubr.msk.bf16.mxu1 %vm547_vm1, %v16174_v4  ;;  %v14545_v4 = vld [vmem:[%s18657_s2 + $0x158] sm:$0xff]  }
 0x3aa   : > { %13569 = vmatmul.mubr.msk.bf16.gmra.mrb[8].mxu1 %vm547_vm1, %v16393_v40 }
 0x3ab   : > { %13572 = vmatprep.mubr.msk.bf16.mxu1 %vm547_vm1, %v4589_v44  ;;  %v5326_v44 = vrot.slane %v5324_v18, 2 }
 0x3b2   : > { %13573 = vmatmul.mubr.msk.bf16.gmra.mrb[12].mxu1 %vm547_vm1, %v4588_v46 }
 0x3b3   : > { %13580 = vmatprep.mubr.msk.bf16.mxu1 %vm547_vm1, %v15713_v59  ;;  %v16421_v59 = vld [vmem:[#allocation3 + $0x50] sm:$0xff] }
 0x3b4   : > { %v4944_v30 = vshll.u32 %v16421_v59, 16  ;;  %v4948_v16 = vshrl.u32 %v16421_v59, 16  ;;  %v5131_v35 = vrot.slane %v16421_v59, 1 }
 0x3b6   : > { %v5132_v8 = vsel %vm1481_vm5, %v16288_v57, %v5131_v35  ;;  %v14551_v57 = vld [vmem:[%s18657_s2 + $0x188] sm:$0xff]  }
 0x3ba   : > { %13581 = vmatmul.mubr.msk.bf16.vlgmr.msra.gmra.mrb[0].mxu1 %vm547_vm1, %v15720_v62  ;;  %v4744_v62 = vld [vmem:[#allocation3 + $0x58] sm:$0xf] }
 0x3bb   : > { %13597 = vmatpush3.bf16.msra.mxu1 %v14544_v38  ;;  %13584 = vmatprep.mubr.msk.bf16.mxu1 %vm547_vm1, %v16193_v12  ;;  %v4923_v12 = vshll.u32 %v16413_v39, 16 }
 0x3bc   : > { %13598 = vmatprep.subr.bf16.mxu1 %v14545_v4 }
 0x3bd   : > { %v5305_v43 = vrot.slane %v4923_v12, 2 }
 0x3bf   : > { %13599 = vmatpush3.bf16.msra.mxu1 %v14545_v4  ;;  %v5306_v53 = vor.u32 %v5305_v43, %v5304_v52 }
 0x3c0   : > { %13616 = vmatprep.subr.bf16.mxu1 %v14546_v60 }
 0x3c1   : > { %v5307_v38 = vsel %vm1650_vm4, %v16315_v54, %v5306_v53  ;;  %v5311_v4 = vsel %vm1650_vm4, %v5306_v53, %v16138_v10  ;;  %v5476_v10 = vld [vmem:[#allocation3 + $0x20] sm:$0xfc] }
 0x3c2   : > { %13585 = vmatmul.mubr.msk.bf16.gmra.mrb[4].mxu1 %vm547_vm1, %v16413_v39 }
 0x3c3   : > { %13588 = vmatprep.mubr.msk.bf16.mxu1 %vm547_vm1, %v16051_v27  ;;  %v4925_v27 = vrot.slane %v4923_v12, 1 }
 0x3c5   : > { %v4929_v20 = vor.u32 %v4927_v15, %v4925_v27  ;;  %v14557_v15 = vld [vmem:[%s18624_s3 + $0x28] sm:$0xff]  }
 0x3ca   : > { %13589 = vmatmul.mubr.msk.bf16.gmra.mrb[8].mxu1 %vm547_vm1, %v16201_v5  ;;  %v14547_v5 = vld [vmem:[%s18657_s2 + $0x168] sm:$0xff]  }
 0x3cb   : > { %13592 = vmatprep.mubr.msk.bf16.mxu1 %vm547_vm1, %v16421_v59 }
 0x3d2   : > { %13593 = vmatmul.mubr.msk.bf16.gmra.mrb[12].mxu1 %vm547_vm1, %v4744_v62  ;;  %v5317_v62 = vrot.slane %v4944_v30, 2 }
 0x3d3   : > { %13600 = vmatprep.mubr.msk.bf16.mxu1 %vm547_vm1, %v15753_v21  ;;  %v4926_v21 = vsel %vm1146_vm2, %v16230_v22, %v4925_v27  ;;  %v4946_v22 = vrot.slane %v4944_v30, 1  ;;  %v5484_v27 = vrot.slane %v5476_v10, 2  ;;  %v14559_v30 = vld [vmem:[%s18624_s3 + $0x38] sm:$0xff]  }
 0x3d5   : > { %v4950_v63 = vor.u32 %v4948_v16, %v4946_v22  ;;  %v4947_v32 = vsel %vm1146_vm2, %v16244_v19, %v4946_v22  ;;  %v14549_v19 = vld [vmem:[%s18657_s2 + $0x178] sm:$0xff]  }
 0x3d7   : > { %v4955_v7 = vsel %vm1146_vm2, %v4950_v63, %v4954_v6 }
 0x3da   : > { %13601 = vmatmul.mubr.msk.bf16.vlgmr.msra.gmra.mrb[0].mxu1 %vm547_vm1, %v16222_v11  ;;  %v4933_v11 = vsel %vm1146_vm2, %v4929_v20, %v16073_v42  ;;  %v4956_v42 = vshrl.u32 %v4897_v23, 16 }
 0x3db   : > { %13617 = vmatpush3.bf16.msra.mxu1 %v14546_v60  ;;  %13604 = vmatprep.mubr.msk.bf16.mxu1 %vm547_vm1, %v4926_v21  ;;  %v5316_v60 = vrot.slane %v4948_v16, 1 }
 0x3dc   : > { %13618 = vmatprep.subr.bf16.mxu1 %v14547_v5  ;;  %v4958_v17 = vor.u32 %v4956_v42, %v4954_v6 }
 0x3df   : > { %13619 = vmatpush3.bf16.msra.mxu1 %v14547_v5  ;;  %v5486_v5 = vsel %vm1847_vm6, %v5484_v27, %v16360_v25  ;;  %v5497_v25 = vrot.slane %v5282_v45, 2 }
 0x3e0   : > { %13636 = vmatprep.subr.bf16.mxu1 %v14548_v61 }
 0x3e2   : > { %13605 = vmatmul.mubr.msk.bf16.gmra.mrb[4].mxu1 %vm547_vm1, %v4933_v11 }
 0x3e3   : > { %13608 = vmatprep.mubr.msk.bf16.mxu1 %vm547_vm1, %v16248_v34  ;;  %v5122_v34 = vsel %vm1481_vm5, %v5120_v51, %v16260_v0  ;;  %v14550_v0 = vld [vmem:[%s18657_s2 + $0x180] sm:$0xff]  }
 0x3ea   : > { %13609 = vmatmul.mubr.msk.bf16.gmra.mrb[8].mxu1 %vm547_vm1, %v4947_v32 }
 0x3eb   : > { %13612 = vmatprep.mubr.msk.bf16.mxu1 %vm547_vm1, %v4955_v7 }
 0x3f2   : > { %13613 = vmatmul.mubr.msk.bf16.gmra.mrb[12].mxu1 %vm547_vm1, %v4958_v17  ;;  %v16565_v17 = vld [vmem:[%s18630_s9] ss:$0 sm:$0xff] }
 0x3f3   : > { %13620 = vmatprep.mubr.msk.bf16.mxu1 %vm547_vm1, %v5122_v34 }
 0x3fa   : > { %13621 = vmatmul.mubr.msk.bf16.vlgmr.msra.gmra.mrb[0].mxu1 %vm547_vm1, %v16274_v29  ;;  %v5133_v29 = vrot.slane %v4897_v23, 1  ;;  %v14558_v23 = vld [vmem:[%s18624_s3 + $0x30] sm:$0xff]  }
 0x3fb   : > { %13637 = vmatpush3.bf16.msra.mxu1 %v14548_v61  ;;  %13624 = vmatprep.mubr.msk.bf16.mxu1 %vm547_vm1, %v5126_v24  ;;  %v5495_v61 = vrot.slane %v16421_v59, 2  ;;  %v14556_v59 = vld [vmem:[%s18624_s3 + $0x20] sm:$0xff]  }
 0x3fc   : > { %13638 = vmatprep.subr.bf16.mxu1 %v14549_v19  ;;  %v5134_v31 = vsel %vm1481_vm5, %v5131_v35, %v5133_v29 }
 0x3ff   : > { %13639 = vmatpush3.bf16.msra.mxu1 %v14549_v19  ;;  %v16572_v19 = vld [vmem:[%s18631_s10] ss:$0 sm:$0xff] }
 0x400   : > { %13656 = vmatprep.subr.bf16.mxu1 %v14550_v0 }
 0x402   : > { %13625 = vmatmul.mubr.msk.bf16.gmra.mrb[4].mxu1 %vm547_vm1, %v5128_v50 }
 0x403   : > { %13628 = vmatprep.mubr.msk.bf16.mxu1 %vm547_vm1, %v16293_v36  ;;  %v5299_v36 = vsel %vm1650_vm4, %v5295_v33, %v16313_v1  ;;  %v5321_v1 = vshrl.u32 %v5282_v45, 16 }
 0x405   : > { %v5323_v46 = vrot.slane %v5321_v1, 1 }
 0x407   : > { %v5327_v54 = vor.u32 %v5326_v44, %v5323_v46 }
 0x40a   : > { %13629 = vmatmul.mubr.msk.bf16.gmra.mrb[8].mxu1 %vm547_vm1, %v5132_v8 }
 0x40b   : > { %13632 = vmatprep.mubr.msk.bf16.mxu1 %vm547_vm1, %v5134_v31 }
 0x412   : > { %13633 = vmatmul.mubr.msk.bf16.gmra.mrb[12].mxu1 %vm547_vm1, %v5133_v29 }
 0x413   : > { %13640 = vmatprep.mubr.msk.bf16.mxu1 %vm547_vm1, %v5299_v36 }
 0x41a   : > { %13641 = vmatmul.mubr.msk.bf16.vlgmr.msra.gmra.mrb[0].mxu1 %vm547_vm1, %v16326_v49  ;;  %v5318_v49 = vor.u32 %v5317_v62, %v5316_v60 }
 0x41b   : > { %13657 = vmatpush3.bf16.msra.mxu1 %v14550_v0  ;;  %13644 = vmatprep.mubr.msk.bf16.mxu1 %vm547_vm1, %v5307_v38 }
 0x41c   : > { %13658 = vmatprep.subr.bf16.mxu1 %v14551_v57  ;;  %v5328_v12 = vsel %vm1650_vm4, %v5318_v49, %v5327_v54  ;;  %v5319_v9 = vsel %vm1650_vm4, %v16343_v28, %v5318_v49 }
 0x41f   : > { %13659 = vmatpush3.bf16.msra.mxu1 %v14551_v57 }
 0x422   : > { %13645 = vmatmul.mubr.msk.bf16.gmra.mrb[4].mxu1 %vm547_vm1, %v5311_v4 }
 0x423   : > { %13648 = vmatprep.mubr.msk.bf16.mxu1 %vm547_vm1, %v16348_v55  ;;  %v5489_v55 = vrot.slane %v16413_v39, 2  ;;  %v5498_v39 = vsel %vm1847_vm6, %v5495_v61, %v5497_v25 }
 0x425   : > { %v5490_v28 = vsel %vm1847_vm6, %v16363_v47, %v5489_v55  ;;  %v5492_v21 = vsel %vm1847_vm6, %v5489_v55, %v16169_v48  ;;  %v14552_v48 = vld [vmem:[%s18624_s3] sm:$0xff]   ;;  %v14553_v47 = vld [vmem:[%s18624_s3 + $0x8] sm:$0xff]   ;;  %v16584_v55 = vld [vmem:[#allocation5] sm:$0xff] }
 0x426   : > { %13696 = vmatprep.subr.bf16.mxu0 %v14552_v48 }
 0x427   : > { %13697 = vmatpush3.bf16.msra.mxu0 %v14552_v48 }
 0x428   : > { %13698 = vmatprep.subr.bf16.mxu0 %v14553_v47 }
 0x42a   : > { %13649 = vmatmul.mubr.msk.bf16.gmra.mrb[8].mxu1 %vm547_vm1, %v5319_v9 }
 0x42b   : > { %13652 = vmatprep.mubr.msk.bf16.mxu1 %vm547_vm1, %v5328_v12  ;;  %13699 = vmatpush3.bf16.msra.mxu0 %v14553_v47 }
 0x432   : > { %13653 = vmatmul.mubr.msk.bf16.gmra.mrb[12].mxu1 %vm547_vm1, %v5327_v54 }
 0x433   : > { %13660 = vmatprep.mubr.msk.bf16.mxu1 %vm547_vm1, %v5486_v5 }
 0x43a   : > { %13661 = vmatmul.mubr.msk.bf16.vlgmr.msra.gmra.mrb[0].mxu1 %vm547_vm1, %v16374_v14  ;;  %v5496_v14 = vsel %vm1847_vm6, %v16388_v3, %v5495_v61  ;;  %v14554_v3 = vld [vmem:[%s18624_s3 + $0x10] sm:$0xff]  }
 0x43b   : > { %13664 = vmatprep.mubr.msk.bf16.mxu1 %vm547_vm1, %v5490_v28  ;;  %13700 = vmatprep.subr.bf16.mxu0 %v14554_v3 }
 0x43c   : > { %13701 = vmatpush3.bf16.msra.mxu0 %v14554_v3 }
 0x442   : > { %13665 = vmatmul.mubr.msk.bf16.gmra.mrb[4].mxu1 %vm547_vm1, %v5492_v21 }
 0x443   : > { %13668 = vmatprep.mubr.msk.bf16.mxu1 %vm547_vm1, %v16393_v40  ;;  %v14555_v40 = vld [vmem:[%s18624_s3 + $0x18] sm:$0xff]  }
 0x444   : > { %13702 = vmatprep.subr.bf16.mxu0 %v14555_v40 }
 0x445   : > { %13703 = vmatpush3.bf16.msra.mxu0 %v14555_v40 }
 0x446   : > { %13704 = vmatprep.subr.bf16.mxu0 %v14556_v59 }
 0x449   : > { %13705 = vmatpush3.bf16.msra.mxu0 %v14556_v59 }
 0x44a   : > { %13669 = vmatmul.mubr.msk.bf16.gmra.mrb[8].mxu1 %vm547_vm1, %v5496_v14  ;;  %13706 = vmatprep.subr.bf16.mxu0 %v14557_v15 }
 0x44b   : > { %13672 = vmatprep.mubr.msk.bf16.mxu1 %vm547_vm1, %v5498_v39  ;;  %v5758_v39 = vshll.u32 %v16584_v55, 16 }
 0x44d   : > { %13707 = vmatpush3.bf16.msra.mxu0 %v14557_v15 }
 0x44e   : > { %13708 = vmatprep.subr.bf16.mxu0 %v14558_v23 }
 0x451   : > { %13709 = vmatpush3.bf16.msra.mxu0 %v14558_v23  ;;  %v16589_v23 = vld [vmem:[#allocation5] sm:$0xf0] }
 0x452   : > { %13673 = vmatmul.mubr.msk.bf16.gmra.mrb[12].mxu1 %vm547_vm1, %v5497_v25  ;;  %13710 = vmatprep.subr.bf16.mxu0 %v14559_v30 }
 0x455   : > { %13711 = vmatpush3.bf16.msra.mxu0 %v14559_v30 }
 0x50d   : > { %v13662_v20 = vpop.f32.mrb[0].mxu1 }
 0x50e   : > { %5648 = vst.msk [vmem:[#allocation4 + $0x10] sm:$0xff] %vm560_vm7, %v13662_v20  ;;  %v5569_v37 = vpop.f32.mrb[1].mxu1  ;;  %v5756_v20 = vshrl.u32 %v16584_v55, 16 }
 0x50f   : > { %5646 = vst.msk [vmem:[#allocation4] sm:$0xff] %vm560_vm7, %v5569_v37  ;;  %v13663_v11 = vpop.f32.mrb[2].mxu1  ;;  %v5760_v37 = vrot.slane %v5758_v39, 1 }
 0x510   : > { %v5572_v22 = vpop.f32.mrb[3].mxu1  ;;  %v16592_v11 = vld [vmem:[#allocation5] sm:$0xe0] }
 0x511   : > { %v16597_v22 = vld [vmem:[%s18624_s3 + $0x80] sm:$0xff]  }
 0x512   : > { %13716 = vmatprep.subr.bf16.mxu0 %v16597_v22 }
 0x515   : > { %v5667_v16 = vld [vmem:[#allocation4 + $0x10] ss:$2 sm:$0xf]  ;;  %v5669_v63 = vld [vmem:[#allocation4 + $0x11] ss:$2 sm:$0xf] }
 0x516   : > { %v5671_v6 = vmax.f32 %v5667_v16, %v5669_v63  ;;  %v5663_v7 = vld [vmem:[#allocation4] ss:$2 sm:$0xf]  ;;  %v5665_v32 = vld [vmem:[#allocation4 + $0x1] ss:$2 sm:$0xf] }
 0x517   : > { %v5670_v42 = vmax.f32 %v5663_v7, %v5665_v32  ;;  %v13666_v56 = vpop.f32.mrb[4].mxu1  ;;  %v6047_v63 = vrot.slane %v16589_v23, 2  ;;  %v6191_v32 = vshll.u32 %v16592_v11, 16 }
 0x518   : > { %5652 = vst.msk [vmem:[#allocation4 + $0x30] sm:$0xff] %vm560_vm7, %v13666_v56  ;;  %v5585_v51 = vpop.f32.mrb[5].mxu1 }
 0x519   : > { %v5672_v34 = vmax.f32 %v5670_v42, %v5671_v6  ;;  %5650 = vst.msk [vmem:[#allocation4 + $0x20] sm:$0xff] %vm560_vm7, %v5585_v51  ;;  %v13667_v2 = vpop.f32.mrb[6].mxu1  ;;  %v6369_v42 = vld [vmem:[#allocation5] sm:$0xc0] }
 0x51a   : > { %v5588_v24 = vpop.f32.mrb[7].mxu1 }
 0x51b   : > { %v5679_v0 = vmul.f32 %v16565_v17, %v5672_v34  ;;  %v5761_v34 = vor.u32 %v5760_v37, %v5756_v20  ;;  %v14568_v20 = vld [vmem:[%s18624_s3 + $0x48] sm:$0xff]  }
 0x51d   : > { %v5686_v50 = vadd.f32 %v16572_v19, %v5679_v0  ;;  %v13670_v29 = vpop.f32.mrb[8].mxu1 }
 0x51e   : > { %5656 = vst.msk [vmem:[#allocation4 + $0x50] sm:$0xff] %vm560_vm7, %v13670_v29  ;;  %v5601_v35 = vpop.f32.mrb[9].mxu1  ;;  %v6373_v29 = vshll.u32 %v6369_v42, 16 }
 0x51f   : > { %v5687_v31 = vmax.f32 %v5686_v50, 0.0  ;;  %v5699_v26 = vld [vmem:[#allocation4 + $0x30] ss:$2 sm:$0xf]  ;;  %5654 = vst.msk [vmem:[#allocation4 + $0x40] sm:$0xff] %vm560_vm7, %v5601_v35  ;;  %v13671_v13 = vpop.f32.mrb[10].mxu1 }
 0x520   : > { %v5701_v8 = vld [vmem:[#allocation4 + $0x31] ss:$2 sm:$0xf]  ;;  %v5695_v41 = vld [vmem:[#allocation4 + $0x20] ss:$2 sm:$0xf] }
 0x521   : > { %v5688_v58 = vpack.c.bf16 %v5687_v31, %v5687_v31  ;;  %v5703_v33 = vmax.f32 %v5699_v26, %v5701_v8  ;;  %v5697_v36 = vld [vmem:[#allocation4 + $0x21] ss:$2 sm:$0xf]  ;;  %v5604_v52 = vpop.f32.mrb[11].mxu1  ;;  %v6193_v13 = vrot.slane %v6191_v32, 1 }
 0x522   : > { %v5702_v43 = vmax.f32 %v5695_v41, %v5697_v36 }
 0x523   : > { %v5690_v53 = vrot.slane %v5688_v58, 7 }
 0x524   : > { %v5704_v57 = vmax.f32 %v5702_v43, %v5703_v33  ;;  %v6371_v43 = vshrl.u32 %v6369_v42, 16  ;;  %v6834_v42 = vld [vmem:[#allocation5 + $0x18] sm:$0x3] }
 0x525   : > { %5693 = vst.msk [vmem:[#allocation5 + $0x8] sm:$0x6] %vm5692_vm8, %v5690_v53  ;;  %v5719_v45 = vld [vmem:[#allocation4 + $0x50] ss:$2 sm:$0xf]  ;;  %v13674_v60 = vpop.f32.mrb[12].mxu1 }
 0x526   : > { %v5721_v38 = vld [vmem:[#allocation4 + $0x51] ss:$2 sm:$0xf]  ;;  %v5705_v1 = vmul.f32 %v16565_v17, %v5704_v57  ;;  %v5715_v46 = vld [vmem:[#allocation4 + $0x40] ss:$2 sm:$0xf] }
 0x527   : > { %v5723_v18 = vmax.f32 %v5719_v45, %v5721_v38  ;;  %v5717_v44 = vld [vmem:[#allocation4 + $0x41] ss:$2 sm:$0xf]  ;;  %5660 = vst.msk [vmem:[#allocation4 + $0x70] sm:$0xff] %vm560_vm7, %v13674_v60  ;;  %v5617_v54 = vpop.f32.mrb[13].mxu1  ;;  %v6375_v53 = vrot.slane %v6373_v29, 1 }
 0x528   : > { %v5722_v4 = vmax.f32 %v5715_v46, %v5717_v44  ;;  %v5706_v62 = vadd.f32 %v16572_v19, %v5705_v1  ;;  %5658 = vst.msk [vmem:[#allocation4 + $0x60] sm:$0xff] %vm560_vm7, %v5617_v54  ;;  %v13675_v12 = vpop.f32.mrb[14].mxu1 }
 0x529   : > { %v5620_v10 = vpop.f32.mrb[15].mxu1 }
 0x52a   : > { %v5724_v49 = vmax.f32 %v5722_v4, %v5723_v18  ;;  %v5707_v9 = vmax.f32 %v5706_v62, 0.0  ;;  %v6376_v62 = vor.u32 %v6375_v53, %v6371_v43 }
 0x52c   : > { %v5725_v27 = vmul.f32 %v16565_v17, %v5724_v49  ;;  %v5708_v5 = vpack.c.bf16 %v5707_v9, %v5707_v9 }
 0x52e   : > { %v5726_v28 = vadd.f32 %v16572_v19, %v5725_v27  ;;  %v5710_v21 = vrot.slane %v5708_v5, 3  ;;  %v5738_v61 = vld [vmem:[#allocation4 + $0x70] ss:$2 sm:$0xf] }
 0x52f   : > { %v5740_v14 = vld [vmem:[#allocation4 + $0x71] ss:$2 sm:$0xf]  ;;  %v5734_v48 = vld [vmem:[#allocation4 + $0x60] ss:$2 sm:$0xf] }
 0x530   : > { %v5727_v25 = vmax.f32 %v5726_v28, 0.0  ;;  %5713 = vst.msk [vmem:[#allocation5 + $0x8] sm:$0x60] %vm5712_vm9, %v5710_v21  ;;  %v5742_v3 = vmax.f32 %v5738_v61, %v5740_v14  ;;  %v5736_v40 = vld [vmem:[#allocation4 + $0x61] ss:$2 sm:$0xf] }
 0x531   : > { %v5741_v59 = vmax.f32 %v5734_v48, %v5736_v40 }
 0x532   : > { %v5728_v47 = vpack.c.bf16 %v5727_v25, %v5727_v25 }
 0x533   : > { %v5743_v30 = vmax.f32 %v5741_v59, %v5742_v3 }
 0x534   : > { %v5730_v15 = vrot.slane %v5728_v47, 7  ;;  %v14566_v47 = vld [vmem:[%s18624_s3 + $0x40] sm:$0xff]  }
 0x535   : > { %v5744_v16 = vmul.f32 %v16565_v17, %v5743_v30  ;;  %13676 = vmatprep.subr.bf16.mxu1 %v14566_v47 }
 0x536   : > { %5732 = vst.msk [vmem:[#allocation5 + $0x10] sm:$0x6] %vm5692_vm8, %v5730_v15  ;;  %13677 = vmatpush3.bf16.msra.mxu1 %v14566_v47 }
 0x537   : > { %v16603_v6 = vld [vmem:[#allocation5 + $0x8] sm:$0xff]  ;;  %v5745_v56 = vadd.f32 %v16572_v19, %v5744_v16  ;;  %v6189_v19 = vshrl.u32 %v16592_v11, 16  ;;  %13678 = vmatprep.subr.bf16.mxu1 %v14568_v20 }
 0x538   : > { %v16605_v7 = vld [vmem:[#allocation5 + $0x8] sm:$0x7f]  ;;  %v6048_v51 = vrot.slane %v16603_v6, 2  ;;  %v6196_v17 = vshll.u32 %v16603_v6, 16  ;;  %v6200_v38 = vshrl.u32 %v16603_v6, 16 }
 0x539   : > { %v5763_v2 = vshll.u32 %v16605_v7, 16  ;;  %v5746_v24 = vmax.f32 %v5745_v56, 0.0  ;;  %v5767_v41 = vshrl.u32 %v16605_v7, 16  ;;  %v6194_v46 = vor.u32 %v6193_v13, %v6189_v19  ;;  %v16645_v5 = vld [vmem:[#allocation5 + $0x8] sm:$0xfe] }
 0x53a   : > { %v6049_v0 = vsel %vm1847_vm6, %v6047_v63, %v6048_v51  ;;  %v16620_v33 = vrot.slane %v6196_v17, 1  ;;  %v6686_v14 = vshll.u32 %v16645_v5, 16  ;;  %v16666_v37 = vld [vmem:[#allocation5 + $0x8] sm:$0xe0]  ;;  %v6684_v63 = vshrl.u32 %v16645_v5, 16  ;;  %13679 = vmatpush3.bf16.msra.mxu1 %v14568_v20 }
 0x53b   : > { %v5765_v50 = vrot.slane %v5763_v2, 1  ;;  %6052 = vrot.lane.b32.xlu1 %v6049_v0, %s15322_s29  ;;  %v5747_v35 = vpack.c.bf16 %v5746_v24, %v5746_v24  ;;  %v16673_v56 = vld [vmem:[#allocation5 + $0x18] sm:$0x7]  ;;  %v6982_v2 = vshll.u32 %v16666_v37, 16  ;;  %v7159_v17 = vld [vmem:[#allocation5 + $0x8] sm:$0xc0] }
 0x53c   : > { %v16631_v44 = vor.u32 %v6200_v38, %v16620_v33  ;;  %v6199_v54 = vsel %vm1146_vm2, %v6194_v46, %v16620_v33  ;;  %v6377_v10 = vsel %vm1146_vm2, %v6376_v62, %v16620_v33  ;;  %v6688_v15 = vrot.slane %v6686_v14, 1  ;;  %v16679_v24 = vld [vmem:[#allocation5 + $0x8] sm:$0xf0] }
 0x53d   : > { %v5766_v31 = vsel %vm1146_vm2, %v5761_v34, %v5765_v50  ;;  %v6043_v26 = vld [vmem:[#allocation5 + $0x10] sm:$0x3]  ;;  %v5749_v52 = vrot.slane %v5747_v35, 3  ;;  %v5769_v57 = vor.u32 %v5767_v41, %v5765_v50  ;;  %v6841_v50 = vrot.slane %v6834_v42, 2 }
 0x53e   : > { %v16616_v8 = vld [vmem:[#allocation5 + $0x10] sm:$0x7]  ;;  %5770 = vrot.lane.b32.xlu0 %v5766_v31, %s15322_s29  ;;  %v6050_v58 = vrot.slane %v6043_v26, 2  ;;  %v6995_v29 = vshll.u32 %v16673_v56, 16  ;;  %v7163_v31 = vshll.u32 %v7159_v17, 16  ;;  %v14570_v26 = vld [vmem:[%s18624_s3 + $0x50] sm:$0xff]  }
 0x53f   : > { %v6204_v36 = vshll.u32 %v16616_v8, 16  ;;  %v16625_v18 = vld [vmem:[#allocation5 + $0x10] sm:$0xf]  ;;  %5751 = vst.msk [vmem:[#allocation5 + $0x10] sm:$0x60] %vm5712_vm9, %v5749_v52  ;;  %v6208_v49 = vshrl.u32 %v16616_v8, 16  ;;  %13680 = vmatprep.subr.bf16.mxu1 %v14570_v26 }
 0x540   : > { %v6051_v45 = vsel %vm1847_vm6, %v6048_v51, %v6050_v58  ;;  %v6379_v4 = vshll.u32 %v16625_v18, 16  ;;  %v6383_v21 = vshrl.u32 %v16625_v18, 16  ;;  %v6689_v51 = vor.u32 %v6688_v15, %v6684_v63  ;;  %13681 = vmatpush3.bf16.msra.mxu1 %v14570_v26 }
 0x541   : > { %v6206_v1 = vrot.slane %v6204_v36, 1  ;;  %6054 = vrot.lane.b32.xlu1 %v6051_v45, %s15322_s29  ;;  %v6838_v19 = vrot.slane %v16679_v24, 2  ;;  %v6984_v13 = vrot.slane %v6982_v2, 1  ;;  %v6997_v58 = vrot.slane %v6995_v29, 1  ;;  %v16692_v36 = vld [vmem:[#allocation5 + $0x18] sm:$0xf] }
 0x542   : > { %5772 = vrot.lane.b32.xlu0 %v5769_v57, %s15322_s29  ;;  %v6381_v12 = vrot.slane %v6379_v4, 1  ;;  %v6980_v43 = vshrl.u32 %v16666_v37, 16  ;;  %v6999_v53 = vshrl.u32 %v16673_v56, 16  ;;  %v7165_v57 = vrot.slane %v7163_v31, 1  ;;  %v14572_v45 = vld [vmem:[%s18624_s3 + $0x58] sm:$0xff]  }
 0x543   : > { %v6207_v60 = vsel %vm1146_vm2, %v16631_v44, %v6206_v1  ;;  %v6210_v9 = vor.u32 %v6208_v49, %v6206_v1  ;;  %v7169_v1 = vshll.u32 %v16692_v36, 16  ;;  %v7161_v4 = vshrl.u32 %v7159_v17, 16  ;;  %13682 = vmatprep.subr.bf16.mxu1 %v14572_v45  ;;  %v14580_v17 = vld [vmem:[%s18624_s3 + $0x78] sm:$0xff]  }
 0x544   : > { %v6385_v61 = vor.u32 %v6383_v21, %v6381_v12  ;;  %v6382_v3 = vsel %vm1146_vm2, %v16631_v44, %v6381_v12  ;;  %v6985_v38 = vor.u32 %v6984_v13, %v6980_v43  ;;  %13683 = vmatpush3.bf16.msra.mxu1 %v14572_v45  ;;  %v7001_v49 = vor.u32 %v6999_v53, %v6997_v58  ;;  %v6040_v13 = vld [vmem:[#allocation5] sm:$0xfc]  ;;  %v5753_v45 = vld [vmem:[#allocation5 + $0x8] sm:$0x3f] }
 0x545   : > { %6213 = vrot.lane.b32.xlu1 %v6207_v60, %s15322_s29  ;;  %v16705_v60 = vld [vmem:[#allocation5 + $0x18] sm:$0x7f]  ;;  %v7166_v12 = vor.u32 %v7165_v57, %v7161_v4  ;;  %v7171_v21 = vrot.slane %v7169_v1, 1 }
 0x546   : > { %6211 = vrot.lane.b32.xlu0 %v6199_v54, %s15322_s29  ;;  %v16643_v27 = vld [vmem:[#allocation5 + $0x10] sm:$0x7f]  ;;  %v7173_v54 = vshrl.u32 %v16692_v36, 16 }
 0x547   : > { %v16647_v28 = vld [vmem:[#allocation5 + $0x10] sm:$0xff]  ;;  %v6545_v25 = vshll.u32 %v16643_v27, 16  ;;  %v6549_v40 = vshrl.u32 %v16643_v27, 16 }
 0x548   : > { %v6691_v48 = vshll.u32 %v16647_v28, 16  ;;  %v6695_v32 = vshrl.u32 %v16647_v28, 16  ;;  %v6839_v0 = vrot.slane %v16647_v28, 2  ;;  %v7175_v14 = vor.u32 %v7173_v54, %v7171_v21  ;;  %v14562_v54 = vld [vmem:[%s18624_s3 + $0x90] sm:$0xff]  }
 0x549   : > { %6386 = vrot.lane.b32.xlu1 %v6377_v10, %s15322_s29  ;;  %v6547_v39 = vrot.slane %v6545_v25, 1  ;;  %v14574_v10 = vld [vmem:[%s18624_s3 + $0x60] sm:$0xff]   ;;  %v7334_v25 = vshll.u32 %v16705_v60, 16 }
 0x54a   : > { %6215 = vrot.lane.b32.xlu0 %v6210_v9, %s15322_s29  ;;  %v6693_v30 = vrot.slane %v6691_v48, 1  ;;  %v6842_v41 = vsel %vm1847_vm6, %v6839_v0, %v6841_v50  ;;  %v6840_v52 = vsel %vm1847_vm6, %v6838_v19, %v6839_v0  ;;  %v16711_v9 = vld [vmem:[#allocation5 + $0x10] sm:$0xfe]  ;;  %13684 = vmatprep.subr.bf16.mxu1 %v14574_v10  ;;  %v7338_v48 = vshrl.u32 %v16705_v60, 16 }
 0x54b   : > { %v6551_v59 = vor.u32 %v6549_v40, %v6547_v39  ;;  %v6548_v16 = vsel %vm1146_vm2, %v16631_v44, %v6547_v39  ;;  %v7475_v47 = vshll.u32 %v16711_v9, 16  ;;  %13685 = vmatpush3.bf16.msra.mxu1 %v14574_v10  ;;  %v16727_v40 = vld [vmem:[#allocation5 + $0x18] sm:$0xff] }
 0x54c   : > { %v16676_v34 = vor.u32 %v6695_v32, %v6693_v30  ;;  %v6694_v35 = vsel %vm1146_vm2, %v6689_v51, %v6693_v30  ;;  %v6990_v62 = vsel %vm1146_vm2, %v6985_v38, %v6693_v30  ;;  %v7167_v39 = vsel %vm1146_vm2, %v7166_v12, %v6693_v30  ;;  %v14578_v30 = vld [vmem:[%s18624_s3 + $0x70] sm:$0xff]  }
 0x54d   : > { %6390 = vrot.lane.b32.xlu1 %v6385_v61, %s15322_s29  ;;  %v14576_v61 = vld [vmem:[%s18624_s3 + $0x68] sm:$0xff]   ;;  %v7480_v15 = vshll.u32 %v16727_v40, 16  ;;  %v7477_v32 = vrot.slane %v7475_v47, 1  ;;  %v7484_v42 = vshrl.u32 %v16727_v40, 16  ;;  %v7473_v51 = vshrl.u32 %v16711_v9, 16 }
 0x54e   : > { %6388 = vrot.lane.b32.xlu0 %v6382_v3, %s15322_s29  ;;  %v6998_v46 = vsel %vm1146_vm2, %v16676_v34, %v6997_v58  ;;  %v16724_v3 = vld [vmem:[#allocation5] sm:$0xfe]  ;;  %13686 = vmatprep.subr.bf16.mxu1 %v14576_v61 }
 0x54f   : > { %v5802_v20 = vshll.u32 %v16724_v3, 16  ;;  %13687 = vmatpush3.bf16.msra.mxu1 %v14576_v61  ;;  %v7482_v2 = vrot.slane %v7480_v15, 1  ;;  %v5800_v0 = vshrl.u32 %v16724_v3, 16  ;;  %v7478_v29 = vor.u32 %v7477_v32, %v7473_v51 }
 0x550   : > { %13688 = vmatprep.subr.bf16.mxu1 %v14578_v30 }
 0x551   : > { %6554 = vrot.lane.b32.xlu1 %v6551_v59, %s15322_s29  ;;  %v7336_v59 = vrot.slane %v7334_v25, 1  ;;  %v5804_v31 = vrot.slane %v5802_v20, 1  ;;  %v7483_v26 = vsel %vm1146_vm2, %v7478_v29, %v7482_v2  ;;  %v14564_v25 = vld [vmem:[%s18624_s3 + $0xa0] sm:$0xff]   ;;  %v14567_v20 = vld [vmem:[%s18624_s3 + $0xb0] sm:$0xff]   ;;  %v14569_v29 = vld [vmem:[%s18624_s3 + $0xb8] sm:$0xff]  }
 0x552   : > { %6552 = vrot.lane.b32.xlu0 %v6548_v16, %s15322_s29  ;;  %v7172_v16 = vsel %vm1146_vm2, %v16676_v34, %v7171_v21 }
 0x553   : > { %v7340_v63 = vor.u32 %v7338_v48, %v7336_v59  ;;  %v7337_v50 = vsel %vm1146_vm2, %v16676_v34, %v7336_v59  ;;  %13689 = vmatpush3.bf16.msra.mxu1 %v14578_v30  ;;  %v5805_v19 = vor.u32 %v5804_v31, %v5800_v0  ;;  %v6831_v0 = vld [vmem:[#allocation5 + $0x8] sm:$0xfc] }
 0x554   : > { %13690 = vmatprep.subr.bf16.mxu1 %v14580_v17 }
 0x555   : > { %6700 = vrot.lane.b32.xlu1 %v16676_v34, %s15322_s29  ;;  %v5810_v34 = vsel %vm1146_vm2, %v5805_v19, %v16620_v33 }
 0x556   : > { %6698 = vrot.lane.b32.xlu0 %v6694_v35, %s15322_s29  ;;  %v7486_v35 = vor.u32 %v7484_v42, %v7482_v2 }
 0x557   : > { %13691 = vmatpush3.bf16.msra.mxu1 %v14580_v17 }
 0x559   : > { %6845 = vrot.lane.b32.xlu1 %v6842_v41, %s15322_s29 }
 0x55a   : > { %6843 = vrot.lane.b32.xlu0 %v6840_v52, %s15322_s29 }
 0x55d   : > { %7004 = vrot.lane.b32.xlu1 %v6998_v46, %s15322_s29 }
 0x55e   : > { %7002 = vrot.lane.b32.xlu0 %v6990_v62, %s15322_s29 }
 0x561   : > { %7176 = vrot.lane.b32.xlu1 %v7167_v39, %s15322_s29 }
 0x562   : > { %7006 = vrot.lane.b32.xlu0 %v7001_v49, %s15322_s29 }
 0x565   : > { %7180 = vrot.lane.b32.xlu1 %v7175_v14, %s15322_s29  ;;  %v14565_v14 = vld [vmem:[%s18624_s3 + $0xa8] sm:$0xff]  }
 0x566   : > { %7178 = vrot.lane.b32.xlu0 %v7172_v16, %s15322_s29 }
 0x569   : > { %7343 = vrot.lane.b32.xlu1 %v7340_v63, %s15322_s29 }
 0x56a   : > { %7341 = vrot.lane.b32.xlu0 %v7337_v50, %s15322_s29 }
 0x56d   : > { %7489 = vrot.lane.b32.xlu1 %v7486_v35, %s15322_s29 }
 0x56e   : > { %7487 = vrot.lane.b32.xlu0 %v7483_v26, %s15322_s29 }
 0x571   : > { %5816 = vrot.lane.b32.xlu1 %v16631_v44, %s15322_s29  ;;  %v14561_v44 = vld [vmem:[%s18624_s3 + $0x88] sm:$0xff]  }
 0x572   : > { %5814 = vrot.lane.b32.xlu0 %v5810_v34, %s15322_s29  ;;  %s15261_s29 = sshll.u32 %s15323_s28, 4  ;;  %s15262_s29 = int_to_ptr.vmem [resolvable:$false] %s15261_s29 }
 0x573   : > { %s15263_s2 = scalar_lea.vmem %s15262_s29, 32  ;;  %p15264_p0 = scmp.lt.s32.totalorder %s18581_s0, %s15262_s29 }
 0x574   : > { %p15265_p1 = scmp.lt.s32.totalorder %s15263_s2, %s15257_s21 }
 0x576   : > { %p15266_p2 = por %p15265_p1, %p15264_p0 }
 0x578   : > { %p15267_p3 = pnand %p15266_p2, %p15260_p13 }
 0x5ad   : > { %v6053_v41 = vpop.permute.xlu1 %6052 }
 0x5ae   : > { %v6058_v43 = vsel %vm560_vm7, %v6040_v13, %v6053_v41 }
 0x5af   : > { %v6080_v38 = vrot.slane %v6058_v43, 2 }
 0x5b0   : > { %v5771_v58 = vpop.permute.xlu0 %5770 }
 0x5b1   : > { %v5775_v52 = vsel %vm560_vm7, %v16584_v55, %v5771_v58 }
 0x5b2   : > { %13712 = vmatprep.mubr.bf16.mxu0 %v5775_v52 }
 0x5b3   : > { %v6055_v53 = vpop.permute.xlu1 %6054 }
 0x5b4   : > { %v5773_v57 = vpop.permute.xlu0 %5772  ;;  %v16761_v33 = vsel %vm560_vm7, %v16603_v6, %v6055_v53  ;;  %v14571_v53 = vld [vmem:[%s18624_s3 + $0xc0] sm:$0xff]  }
 0x5b5   : > { %v5779_v1 = vsel %vm560_vm7, %v5753_v45, %v5773_v57  ;;  %v6081_v46 = vrot.slane %v16761_v33, 2 }
 0x5b6   : > { %13713 = vmatmul.mubr.bf16.vlgmr.msra.gmra.mrb[32].mxu0 %v5779_v1 }
 0x5b7   : > { %13717 = vmatpush3.bf16.msra.mxu0 %v16597_v22  ;;  %v6214_v55 = vpop.permute.xlu1 %6213  ;;  %v6082_v4 = vsel %vm1847_vm6, %v6080_v38, %v6081_v46  ;;  %v14563_v22 = vld [vmem:[%s18624_s3 + $0x98] sm:$0xff]  }
 0x5b8   : > { %v6212_v62 = vpop.permute.xlu0 %6211  ;;  %13718 = vmatprep.subr.bf16.mxu0 %v14561_v44  ;;  %13732 = vmatprep.mubr.bf16.mxu0 %v6082_v4  ;;  %v6221_v48 = vsel %vm560_vm7, %v16603_v6, %v6214_v55 }
 0x5b9   : > { %v6219_v59 = vsel %vm560_vm7, %v16589_v23, %v6212_v62  ;;  %v6249_v16 = vshrl.u32 %v6221_v48, 16  ;;  %v6252_v63 = vshll.u32 %v6221_v48, 16 }
 0x5ba   : > { %v6242_v2 = vshrl.u32 %v6219_v59, 16  ;;  %v6245_v23 = vshll.u32 %v6219_v59, 16 }
 0x5bb   : > { %13719 = vmatpush3.bf16.msra.mxu0 %v14561_v44  ;;  %v16775_v49 = vpop.permute.xlu1 %6386  ;;  %v6251_v35 = vrot.slane %v6249_v16, 4  ;;  %v6254_v31 = vrot.slane %v6252_v63, 5 }
 0x5bc   : > { %v16777_v12 = vpop.permute.xlu0 %6215  ;;  %13720 = vmatprep.subr.bf16.mxu0 %v14562_v54  ;;  %v6244_v13 = vrot.slane %v6242_v2, 4  ;;  %v6247_v41 = vrot.slane %v6245_v23, 5 }
 0x5bd   : > { %v16834_v45 = vor.u32 %v6254_v31, %v6251_v35 }
 0x5be   : > { %v6248_v62 = vor.u32 %v6247_v41, %v6244_v13 }
 0x5bf   : > { %13721 = vmatpush3.bf16.msra.mxu0 %v14562_v54  ;;  %v16782_v10 = vpop.permute.xlu1 %6390 }
 0x5c0   : > { %v16784_v21 = vpop.permute.xlu0 %6388  ;;  %13722 = vmatprep.subr.bf16.mxu0 %v14563_v22  ;;  %v6256_v16 = vsel %vm6241_vm10, %v6248_v62, %v16834_v45 }
 0x5c3   : > { %13723 = vmatpush3.bf16.msra.mxu0 %v14563_v22  ;;  %v16789_v61 = vpop.permute.xlu1 %6554 }
 0x5c4   : > { %v16791_v39 = vpop.permute.xlu0 %6552  ;;  %13724 = vmatprep.subr.bf16.mxu0 %v14564_v25 }
 0x5c7   : > { %13725 = vmatpush3.bf16.msra.mxu0 %v14564_v25  ;;  %v6701_v47 = vpop.permute.xlu1 %6700 }
 0x5c8   : > { %v6699_v15 = vpop.permute.xlu0 %6698  ;;  %13726 = vmatprep.subr.bf16.mxu0 %v14565_v14  ;;  %v16802_v30 = vsel %vm560_vm7, %v16643_v27, %v6701_v47 }
 0x5c9   : > { %v6703_v32 = vsel %vm560_vm7, %v16645_v5, %v6699_v15  ;;  %v6726_v42 = vrot.slane %v16802_v30, 1  ;;  %v14612_v30 = vld [vmem:[%s18624_s3 + $0x1e0] sm:$0xff]  }
 0x5ca   : > { %v6725_v51 = vrot.slane %v6703_v32, 1 }
 0x5cb   : > { %13727 = vmatpush3.bf16.msra.mxu0 %v14565_v14  ;;  %v6846_v17 = vpop.permute.xlu1 %6845 }
 0x5cc   : > { %v6844_v50 = vpop.permute.xlu0 %6843  ;;  %13728 = vmatprep.subr.bf16.mxu0 %v14567_v20  ;;  %v16812_v27 = vsel %vm560_vm7, %v16647_v28, %v6846_v17  ;;  %v16820_v5 = vsel %vm1481_vm5, %v6725_v51, %v6726_v42 }
 0x5cd   : > { %v6849_v26 = vsel %vm560_vm7, %v6831_v0, %v6844_v50  ;;  %v6872_v19 = vrot.slane %v16812_v27, 2  ;;  %v14620_v27 = vld [vmem:[%s18624_s3 + $0x220] sm:$0xff]  }
 0x5ce   : > { %v6871_v34 = vrot.slane %v6849_v26, 2 }
 0x5cf   : > { %13729 = vmatpush3.bf16.msra.mxu0 %v14567_v20  ;;  %v7005_v58 = vpop.permute.xlu1 %7004 }
 0x5d0   : > { %v7003_v52 = vpop.permute.xlu0 %7002  ;;  %13730 = vmatprep.subr.bf16.mxu0 %v14569_v29  ;;  %v7012_v43 = vsel %vm560_vm7, %v16647_v28, %v7005_v58  ;;  %v16832_v57 = vsel %vm1847_vm6, %v6871_v34, %v6872_v19 }
 0x5d1   : > { %v7010_v44 = vsel %vm560_vm7, %v16679_v24, %v7003_v52  ;;  %v7039_v38 = vshrl.u32 %v7012_v43, 16  ;;  %v7042_v1 = vshll.u32 %v7012_v43, 16  ;;  %v14573_v24 = vld [vmem:[%s18624_s3 + $0xc8] sm:$0xff]  }
 0x5d2   : > { %v7032_v55 = vshrl.u32 %v7010_v44, 16  ;;  %v7035_v4 = vshll.u32 %v7010_v44, 16 }
 0x5d3   : > { %13731 = vmatpush3.bf16.msra.mxu0 %v14569_v29  ;;  %v7041_v54 = vrot.slane %v7039_v38, 4  ;;  %v7044_v22 = vrot.slane %v7042_v1, 5  ;;  %v7177_v25 = vpop.permute.xlu1 %7176  ;;  %v14575_v29 = vld [vmem:[%s18624_s3 + $0xd0] sm:$0xff]   ;;  %v14577_v1 = vld [vmem:[%s18624_s3 + $0xd8] sm:$0xff]  }
 0x5d4   : > { %v7034_v14 = vrot.slane %v7032_v55, 4  ;;  %v7037_v48 = vrot.slane %v7035_v4, 5  ;;  %v7007_v47 = vpop.permute.xlu0 %7006  ;;  %13736 = vmatprep.subr.bf16.mxu0 %v14571_v53  ;;  %v7183_v59 = vsel %vm560_vm7, %v16666_v37, %v7177_v25 }
 0x5d5   : > { %v7045_v15 = vor.u32 %v7044_v22, %v7041_v54  ;;  %v7014_v20 = vsel %vm560_vm7, %v16673_v56, %v7007_v47  ;;  %v7205_v63 = vshrl.u32 %v7183_v59, 16  ;;  %v7208_v23 = vshll.u32 %v7183_v59, 16 }
 0x5d6   : > { %v7038_v32 = vor.u32 %v7037_v48, %v7034_v14  ;;  %v7047_v51 = vshrl.u32 %v7014_v20, 16  ;;  %v7050_v2 = vshll.u32 %v7014_v20, 16  ;;  %13733 = vmatmul.mubr.bf16.vlgmr.msra.gmra.mrb[32].mxu0 %v6081_v46  ;;  %v14579_v48 = vld [vmem:[%s18624_s3 + $0xe0] sm:$0xff]  }
 0x5d7   : > { %13737 = vmatpush3.bf16.msra.mxu0 %v14571_v53  ;;  %13752 = vmatprep.mubr.bf16.mxu0 %v6256_v16  ;;  %v7181_v37 = vpop.permute.xlu1 %7180  ;;  %v7207_v33 = vrot.slane %v7205_v63, 5  ;;  %v7210_v13 = vrot.slane %v7208_v23, 6  ;;  %v6223_v23 = vsel %vm560_vm7, %v16616_v8, %v16777_v12 }
 0x5d8   : > { %v7049_v17 = vrot.slane %v7047_v51, 4  ;;  %v7052_v0 = vrot.slane %v7050_v2, 5  ;;  %v7179_v50 = vpop.permute.xlu0 %7178  ;;  %13738 = vmatprep.subr.bf16.mxu0 %v14573_v24  ;;  %v7187_v56 = vsel %vm560_vm7, %v16692_v36, %v7181_v37  ;;  %v16855_v35 = vsel %vm6241_vm10, %v7038_v32, %v7045_v15  ;;  %v14581_v32 = vld [vmem:[%s18624_s3 + $0xe8] sm:$0xff]  }
 0x5d9   : > { %v7185_v46 = vsel %vm560_vm7, %v16647_v28, %v7179_v50  ;;  %v7220_v31 = vshrl.u32 %v7187_v56, 16  ;;  %v7223_v26 = vshll.u32 %v7187_v56, 16  ;;  %v7211_v62 = vor.u32 %v7210_v13, %v7207_v33  ;;  %v14583_v33 = vld [vmem:[%s18624_s3 + $0xf8] sm:$0xff]  }
 0x5da   : > { %v7053_v34 = vor.u32 %v7052_v0, %v7049_v17  ;;  %v7212_v41 = vshrl.u32 %v7185_v46, 16  ;;  %v7215_v58 = vshll.u32 %v7185_v46, 16  ;;  %v14582_v0 = vld [vmem:[%s18624_s3 + $0xf0] sm:$0xff]   ;;  %v6257_v50 = vshrl.u32 %v6223_v23, 16 }
 0x5db   : > { %13739 = vmatpush3.bf16.msra.mxu0 %v14573_v24  ;;  %v7222_v52 = vrot.slane %v7220_v31, 5  ;;  %v7225_v36 = vrot.slane %v7223_v26, 6  ;;  %v16859_v43 = vpop.permute.xlu1 %7343  ;;  %v6393_v56 = vsel %vm560_vm7, %v16592_v11, %v16775_v49  ;;  %v14584_v11 = vld [vmem:[%s18624_s3 + $0x100] sm:$0xff]  }
 0x5dc   : > { %v7214_v53 = vrot.slane %v7212_v41, 5  ;;  %v7217_v44 = vrot.slane %v7215_v58, 6  ;;  %v16861_v38 = vpop.permute.xlu0 %7341  ;;  %13740 = vmatprep.subr.bf16.mxu0 %v14575_v29  ;;  %v16867_v55 = vsel %vm6241_vm10, %v7045_v15, %v7053_v34  ;;  %v6259_v46 = vrot.slane %v6257_v50, 4 }
 0x5dd   : > { %v7226_v4 = vor.u32 %v7225_v36, %v7222_v52  ;;  %v14585_v36 = vld [vmem:[%s18624_s3 + $0x108] sm:$0xff]  }
 0x5de   : > { %v7218_v54 = vor.u32 %v7217_v44, %v7214_v53 }
 0x5df   : > { %13741 = vmatpush3.bf16.msra.mxu0 %v14575_v29  ;;  %v7490_v22 = vpop.permute.xlu1 %7489  ;;  %v6419_v29 = vshll.u32 %v6393_v56, 16 }
 0x5e0   : > { %v7488_v25 = vpop.permute.xlu0 %7487  ;;  %13742 = vmatprep.subr.bf16.mxu0 %v14577_v1  ;;  %v16871_v14 = vsel %vm560_vm7, %v16705_v60, %v7490_v22  ;;  %v16877_v47 = vsel %vm6415_vm11, %v7211_v62, %v7218_v54  ;;  %v16880_v59 = vsel %vm6415_vm11, %v7218_v54, %v7226_v4  ;;  %v14587_v4 = vld [vmem:[%s18624_s3 + $0x118] sm:$0xff]   ;;  %v14589_v62 = vld [vmem:[%s18624_s3 + $0x128] sm:$0xff]   ;;  %v6397_v54 = vsel %vm560_vm7, %v16625_v18, %v16782_v10  ;;  %v14590_v22 = vld [vmem:[%s18624_s3 + $0x130] sm:$0xff]  }
 0x5e1   : > { %v7492_v24 = vsel %vm560_vm7, %v16711_v9, %v7488_v25  ;;  %v7515_v15 = vrot.slane %v16871_v14, 1  ;;  %v6421_v41 = vrot.slane %v6419_v29, 6  ;;  %v6431_v25 = vshrl.u32 %v6397_v54, 16  ;;  %v14592_v18 = vld [vmem:[%s18624_s3 + $0x140] sm:$0xff]   ;;  %v14609_v29 = vld [vmem:[%s18624_s3 + $0x1c8] sm:$0xff]  }
 0x5e2   : > { %v7514_v20 = vrot.slane %v7492_v24, 1  ;;  %v14591_v24 = vld [vmem:[%s18624_s3 + $0x138] sm:$0xff]   ;;  %v14654_v14 = vld [vmem:[%s18626_s5 + $0x304] ss:$8 sps:$4 sm:$0xff]  }
 0x5e3   : > { %13743 = vmatpush3.bf16.msra.mxu0 %v14577_v1  ;;  %v5817_v16 = vpop.permute.xlu1 %5816  ;;  %v14586_v1 = vld [vmem:[%s18624_s3 + $0x110] sm:$0xff]  }
 0x5e4   : > { %v5815_v60 = vpop.permute.xlu0 %5814  ;;  %13744 = vmatprep.subr.bf16.mxu0 %v14579_v48  ;;  %v5821_v63 = vsel %vm560_vm7, %v16605_v7, %v5817_v16  ;;  %v16893_v51 = vsel %vm1481_vm5, %v7514_v20, %v7515_v15  ;;  %v6395_v7 = vsel %vm560_vm7, %v16603_v6, %v16784_v21  ;;  %v6416_v21 = vshrl.u32 %v6393_v56, 16  ;;  %v14603_v56 = vld [vmem:[%s18624_s3 + $0x198] sm:$0xff]  }
 0x5e5   : > { %v5819_v9 = vsel %vm560_vm7, %v16724_v3, %v5815_v60  ;;  %v5842_v2 = vrot.slane %v5821_v63, 1  ;;  %v6260_v3 = vshll.u32 %v6223_v23, 16  ;;  %v6423_v8 = vshrl.u32 %v6395_v7, 16  ;;  %v14593_v60 = vld [vmem:[%s18624_s3 + $0x148] sm:$0xff]   ;;  %v14596_v23 = vld [vmem:[%s18624_s3 + $0x160] sm:$0xff]  }
 0x5e6   : > { %v5841_v37 = vrot.slane %v5819_v9, 1  ;;  %v6426_v12 = vshll.u32 %v6395_v7, 16  ;;  %v6418_v13 = vrot.slane %v6416_v21, 5  ;;  %v6433_v20 = vrot.slane %v6431_v25, 5  ;;  %v14594_v9 = vld [vmem:[%s18624_s3 + $0x150] sm:$0xff]   ;;  %v14600_v7 = vld [vmem:[%s18624_s3 + $0x180] sm:$0xff]  }
 0x5e7   : > { %13745 = vmatpush3.bf16.msra.mxu0 %v14579_v48  ;;  %v6262_v31 = vrot.slane %v6260_v3, 5  ;;  %v6425_v26 = vrot.slane %v6423_v8, 5  ;;  %v6434_v48 = vshll.u32 %v6397_v54, 16  ;;  %v14602_v3 = vld [vmem:[%s18624_s3 + $0x190] sm:$0xff]   ;;  %v14608_v21 = vld [vmem:[%s18624_s3 + $0x1c0] sm:$0xff]   ;;  %v14635_v54 = vld [vmem:[%s18624_s3 + $0x298] sm:$0xff]  }
 0x5e8   : > { %13746 = vmatprep.subr.bf16.mxu0 %v14581_v32  ;;  %v5843_v17 = vsel %vm1481_vm5, %v5841_v37, %v5842_v2  ;;  %v6428_v34 = vrot.slane %v6426_v12, 6  ;;  %v6422_v52 = vor.u32 %v6421_v41, %v6418_v13  ;;  %v14599_v37 = vld [vmem:[%s18624_s3 + $0x178] sm:$0xff]   ;;  %v14606_v8 = vld [vmem:[%s18624_s3 + $0x1b0] sm:$0xff]  }
 0x5e9   : > { %13692 = vmatprep.mubr.bf16.mxu1 %v5843_v17  ;;  %v6263_v49 = vor.u32 %v6262_v31, %v6259_v46  ;;  %v6436_v16 = vrot.slane %v6434_v48, 6  ;;  %v6542_v17 = vld [vmem:[#allocation5 + $0x10] sm:$0x3f]  ;;  %v14607_v12 = vld [vmem:[%s18624_s3 + $0x1b8] sm:$0xff]   ;;  %v14618_v13 = vld [vmem:[%s18624_s3 + $0x210] sm:$0xff]  }
 0x5ea   : > { %13693 = vmatmul.mubr.bf16.vlgmr.msra.gmra.mrb[16].mxu1 %v5842_v2  ;;  %v6429_v58 = vor.u32 %v6428_v34, %v6425_v26  ;;  %v14595_v2 = vld [vmem:[%s18624_s3 + $0x158] sm:$0xff]   ;;  %v6561_v50 = vsel %vm560_vm7, %v6542_v17, %v16789_v61  ;;  %v14604_v61 = vld [vmem:[%s18624_s3 + $0x1a0] sm:$0xff]   ;;  %v14617_v34 = vld [vmem:[%s18624_s3 + $0x208] sm:$0xff]  }
 0x5eb   : > { %13747 = vmatpush3.bf16.msra.mxu0 %v14581_v32  ;;  %v6264_v53 = vsel %vm6241_vm10, %v16834_v45, %v6263_v49  ;;  %v14588_v45 = vld [vmem:[%s18624_s3 + $0x120] sm:$0xff]   ;;  %v6437_v10 = vor.u32 %v6436_v16, %v6433_v20  ;;  %v6557_v32 = vsel %vm560_vm7, %v16603_v6, %v16791_v39  ;;  %v14597_v6 = vld [vmem:[%s18624_s3 + $0x168] sm:$0xff]   ;;  %v14598_v39 = vld [vmem:[%s18624_s3 + $0x170] sm:$0xff]  }
 0x5ec   : > { %13748 = vmatprep.subr.bf16.mxu0 %v14582_v0  ;;  %v6430_v44 = vsel %vm6415_vm11, %v6422_v52, %v6429_v58  ;;  %v14611_v46 = vld [vmem:[%s18624_s3 + $0x1d8] sm:$0xff]   ;;  %v14616_v26 = vld [vmem:[%s18624_s3 + $0x200] sm:$0xff]   ;;  %v14626_v52 = vld [vmem:[%s18624_s3 + $0x250] sm:$0xff]  }
 0x5ed   : > { %v6438_v63 = vsel %vm6415_vm11, %v6429_v58, %v6437_v10  ;;  %v14615_v31 = vld [vmem:[%s18624_s3 + $0x1f8] sm:$0xff]   ;;  %v14624_v49 = vld [vmem:[%s18624_s3 + $0x240] sm:$0xff]   ;;  %v14625_v58 = vld [vmem:[%s18624_s3 + $0x248] sm:$0xff]  }
 0x5ee   : > { %v14619_v41 = vld [vmem:[%s18624_s3 + $0x218] sm:$0xff]   ;;  %v14637_v48 = vld [vmem:[%s18624_s3 + $0x2a8] sm:$0xff]   ;;  %v7331_v16 = vld [vmem:[#allocation5 + $0x18] sm:$0x3f] }
 0x5ef   : > { %13749 = vmatpush3.bf16.msra.mxu0 %v14582_v0  ;;  %v14601_v0 = vld [vmem:[%s18624_s3 + $0x188] sm:$0xff]   ;;  %v14639_v20 = vld [vmem:[%s18624_s3 + $0x2b8] sm:$0xff]   ;;  %v7350_v10 = vsel %vm560_vm7, %v7331_v16, %v16859_v43 }
 0x5f0   : > { %13750 = vmatprep.subr.bf16.mxu0 %v14583_v33  ;;  %v14643_v43 = vld [vmem:[%s18624_s3 + $0x2d8] sm:$0xff]  }
 0x5f3   : > { %13751 = vmatpush3.bf16.msra.mxu0 %v14583_v33  ;;  %v14610_v33 = vld [vmem:[%s18624_s3 + $0x1d0] sm:$0xff]  }
 0x5f4   : > { %13756 = vmatprep.subr.bf16.mxu0 %v14584_v11 }
 0x5f6   : > { %13753 = vmatmul.mubr.bf16.vlgmr.msra.gmra.mrb[32].mxu0 %v6264_v53  ;;  %v14630_v53 = vld [vmem:[%s18624_s3 + $0x270] sm:$0xff]  }
 0x5f7   : > { %13757 = vmatpush3.bf16.msra.mxu0 %v14584_v11  ;;  %13772 = vmatprep.mubr.bf16.mxu0 %v6430_v44  ;;  %v14623_v11 = vld [vmem:[%s18624_s3 + $0x238] sm:$0xff]  }
 0x5f8   : > { %13758 = vmatprep.subr.bf16.mxu0 %v14585_v36  ;;  %v14631_v44 = vld [vmem:[%s18624_s3 + $0x278] sm:$0xff]  }
 0x5fb   : > { %13759 = vmatpush3.bf16.msra.mxu0 %v14585_v36  ;;  %v14627_v36 = vld [vmem:[%s18624_s3 + $0x258] sm:$0xff]  }
 0x5fc   : > { %13760 = vmatprep.subr.bf16.mxu0 %v14586_v1 }
 0x5ff   : > { %13761 = vmatpush3.bf16.msra.mxu0 %v14586_v1  ;;  %v14632_v1 = vld [vmem:[%s18624_s3 + $0x280] sm:$0xff]  }
 0x600   : > { %13762 = vmatprep.subr.bf16.mxu0 %v14587_v4 }
 0x603   : > { %13763 = vmatpush3.bf16.msra.mxu0 %v14587_v4  ;;  %v14633_v4 = vld [vmem:[%s18624_s3 + $0x288] sm:$0xff]  }
 0x604   : > { %13764 = vmatprep.subr.bf16.mxu0 %v14588_v45 }
 0x607   : > { %13765 = vmatpush3.bf16.msra.mxu0 %v14588_v45  ;;  %v7346_v45 = vsel %vm560_vm7, %v16647_v28, %v16861_v38  ;;  %v14636_v38 = vld [vmem:[%s18624_s3 + $0x2a0] sm:$0xff]  }
 0x608   : > { %13766 = vmatprep.subr.bf16.mxu0 %v14589_v62 }
 0x60b   : > { %13767 = vmatpush3.bf16.msra.mxu0 %v14589_v62  ;;  %v14634_v62 = vld [vmem:[%s18624_s3 + $0x290] sm:$0xff]  }
 0x60c   : > { %13768 = vmatprep.subr.bf16.mxu0 %v14590_v22 }
 0x60f   : > { %13769 = vmatpush3.bf16.msra.mxu0 %v14590_v22 }
 0x610   : > { %13770 = vmatprep.subr.bf16.mxu0 %v14591_v24 }
 0x613   : > { %13771 = vmatpush3.bf16.msra.mxu0 %v14591_v24  ;;  %v14638_v24 = vld [vmem:[%s18624_s3 + $0x2b0] sm:$0xff]  }
 0x614   : > { %13776 = vmatprep.subr.bf16.mxu0 %v14592_v18 }
 0x616   : > { %13773 = vmatmul.mubr.bf16.vlgmr.msra.gmra.mrb[32].mxu0 %v6438_v63  ;;  %v14642_v63 = vld [vmem:[%s18624_s3 + $0x2d0] sm:$0xff]  }
 0x617   : > { %13777 = vmatpush3.bf16.msra.mxu0 %v14592_v18  ;;  %13792 = vmatprep.mubr.bf16.mxu0 %v6557_v32  ;;  %v14640_v18 = vld [vmem:[%s18624_s3 + $0x2c0] sm:$0xff]  }
 0x618   : > { %13778 = vmatprep.subr.bf16.mxu0 %v14593_v60  ;;  %v14644_v32 = vld [vmem:[%s18624_s3 + $0x2e0] sm:$0xff]  }
 0x61b   : > { %13779 = vmatpush3.bf16.msra.mxu0 %v14593_v60  ;;  %v14641_v60 = vld [vmem:[%s18624_s3 + $0x2c8] sm:$0xff]  }
 0x61c   : > { %13780 = vmatprep.subr.bf16.mxu0 %v14594_v9 }
 0x61f   : > { %13781 = vmatpush3.bf16.msra.mxu0 %v14594_v9  ;;  %v14646_v9 = vld [vmem:[%s18624_s3 + $0x2f0] sm:$0xff]  }
 0x620   : > { %13782 = vmatprep.subr.bf16.mxu0 %v14595_v2 }
 0x623   : > { %13783 = vmatpush3.bf16.msra.mxu0 %v14595_v2  ;;  %v14647_v2 = vld [vmem:[%s18624_s3 + $0x2f8] sm:$0xff]  }
 0x624   : > { %13784 = vmatprep.subr.bf16.mxu0 %v14596_v23 }
 0x627   : > { %13785 = vmatpush3.bf16.msra.mxu0 %v14596_v23  ;;  %v7620_v23 = vld [vmem:[#allocation5 + $0x10] sm:$0xfc] }
 0x628   : > { %13786 = vmatprep.subr.bf16.mxu0 %v14597_v6 }
 0x62b   : > { %13787 = vmatpush3.bf16.msra.mxu0 %v14597_v6  ;;  %v14648_v6 = vld [vmem:[%s18625_s4] sm:$0xff]  }
 0x62c   : > { %13788 = vmatprep.subr.bf16.mxu0 %v14598_v39 }
 0x62f   : > { %13789 = vmatpush3.bf16.msra.mxu0 %v14598_v39  ;;  %v7631_v39 = vrot.slane %v7620_v23, 2 }
 0x630   : > { %13790 = vmatprep.subr.bf16.mxu0 %v14599_v37 }
 0x633   : > { %13791 = vmatpush3.bf16.msra.mxu0 %v14599_v37  ;;  %v7632_v37 = vrot.slane %v16727_v40, 2  ;;  %v14651_v40 = vld [vmem:[%s18625_s4 + $0x18] sm:$0xff]  }
 0x634   : > { %13796 = vmatprep.subr.bf16.mxu0 %v14600_v7 }
 0x635   : > { %v7633_v17 = vsel %vm1847_vm6, %v7631_v39, %v7632_v37 }
 0x636   : > { %13793 = vmatmul.mubr.bf16.vlgmr.msra.gmra.mrb[32].mxu0 %v6561_v50  ;;  %v14657_v50 = vld [vmem:[%s18626_s5 + $0x314] ss:$8 sps:$4 sm:$0xff]  }
 0x637   : > { %13797 = vmatpush3.bf16.msra.mxu0 %v14600_v7  ;;  %13812 = vmatprep.mubr.bf16.mxu0 %v16820_v5  ;;  %v14605_v5 = vld [vmem:[%s18624_s3 + $0x1a8] sm:$0xff]  }
 0x638   : > { %13798 = vmatprep.subr.bf16.mxu0 %v14601_v0  ;;  %v14649_v7 = vld [vmem:[%s18625_s4 + $0x8] sm:$0xff]  }
 0x63b   : > { %13799 = vmatpush3.bf16.msra.mxu0 %v14601_v0  ;;  %v14650_v0 = vld [vmem:[%s18625_s4 + $0x10] sm:$0xff]  }
 0x63c   : > { %13800 = vmatprep.subr.bf16.mxu0 %v14602_v3 }
 0x63f   : > { %13801 = vmatpush3.bf16.msra.mxu0 %v14602_v3  ;;  %v14655_v3 = vld [vmem:[%s18626_s5 + $0x310] ss:$8 sps:$4 sm:$0xff]  }
 0x640   : > { %13802 = vmatprep.subr.bf16.mxu0 %v14603_v56 }
 0x643   : > { %13803 = vmatpush3.bf16.msra.mxu0 %v14603_v56  ;;  %v14660_v56 = vld [vmem:[%s18626_s5 + $0x324] ss:$8 sps:$4 sm:$0xff]  }
 0x644   : > { %13804 = vmatprep.subr.bf16.mxu0 %v14604_v61 }
 0x647   : > { %13805 = vmatpush3.bf16.msra.mxu0 %v14604_v61  ;;  %v14658_v61 = vld [vmem:[%s18626_s5 + $0x320] ss:$8 sps:$4 sm:$0xff]  }
 0x648   : > { %13806 = vmatprep.subr.bf16.mxu0 %v14605_v5 }
 0x64b   : > { %13807 = vmatpush3.bf16.msra.mxu0 %v14605_v5  ;;  %v14663_v5 = vld [vmem:[%s18626_s5 + $0x334] ss:$8 sps:$4 sm:$0xff]  }
 0x64c   : > { %13808 = vmatprep.subr.bf16.mxu0 %v14606_v8 }
 0x64f   : > { %13809 = vmatpush3.bf16.msra.mxu0 %v14606_v8  ;;  %v14661_v8 = vld [vmem:[%s18626_s5 + $0x330] ss:$8 sps:$4 sm:$0xff]  }
 0x650   : > { %13810 = vmatprep.subr.bf16.mxu0 %v14607_v12 }
 0x653   : > { %13811 = vmatpush3.bf16.msra.mxu0 %v14607_v12  ;;  %v14664_v12 = vld [vmem:[%s18626_s5 + $0x340] ss:$8 sps:$4 sm:$0xff]  }
 0x654   : > { %13816 = vmatprep.subr.bf16.mxu0 %v14608_v21 }
 0x656   : > { %13813 = vmatmul.mubr.bf16.vlgmr.msra.gmra.mrb[32].mxu0 %v6726_v42  ;;  %v14613_v42 = vld [vmem:[%s18624_s3 + $0x1e8] sm:$0xff]  }
 0x657   : > { %13817 = vmatpush3.bf16.msra.mxu0 %v14608_v21  ;;  %13832 = vmatprep.mubr.bf16.mxu0 %v16832_v57  ;;  %v14614_v57 = vld [vmem:[%s18624_s3 + $0x1f0] sm:$0xff]   ;;  %v14666_v21 = vld [vmem:[%s18626_s5 + $0x344] ss:$8 sps:$4 sm:$0xff]  }
 0x658   : > { %13818 = vmatprep.subr.bf16.mxu0 %v14609_v29 }
 0x65b   : > { %13819 = vmatpush3.bf16.msra.mxu0 %v14609_v29  ;;  %v14667_v29 = vld [vmem:[%s18626_s5 + $0x350] ss:$8 sps:$4 sm:$0xff]  }
 0x65c   : > { %13820 = vmatprep.subr.bf16.mxu0 %v14610_v33 }
 0x65f   : > { %13821 = vmatpush3.bf16.msra.mxu0 %v14610_v33  ;;  %v14669_v33 = vld [vmem:[%s18626_s5 + $0x354] ss:$8 sps:$4 sm:$0xff]  }
 0x660   : > { %13822 = vmatprep.subr.bf16.mxu0 %v14611_v46 }
 0x663   : > { %13823 = vmatpush3.bf16.msra.mxu0 %v14611_v46  ;;  %v14672_v46 = vld [vmem:[%s18626_s5 + $0x364] ss:$8 sps:$4 sm:$0xff]  }
 0x664   : > { %13824 = vmatprep.subr.bf16.mxu0 %v14612_v30 }
 0x667   : > { %13825 = vmatpush3.bf16.msra.mxu0 %v14612_v30  ;;  %v14670_v30 = vld [vmem:[%s18626_s5 + $0x360] ss:$8 sps:$4 sm:$0xff]  }
 0x668   : > { %13826 = vmatprep.subr.bf16.mxu0 %v14613_v42 }
 0x66b   : > { %13827 = vmatpush3.bf16.msra.mxu0 %v14613_v42  ;;  %v14675_v42 = vld [vmem:[%s18626_s5 + $0x374] ss:$8 sps:$4 sm:$0xff]  }
 0x66c   : > { %13828 = vmatprep.subr.bf16.mxu0 %v14614_v57 }
 0x66f   : > { %13829 = vmatpush3.bf16.msra.mxu0 %v14614_v57  ;;  %v14673_v57 = vld [vmem:[%s18626_s5 + $0x370] ss:$8 sps:$4 sm:$0xff]  }
 0x670   : > { %13830 = vmatprep.subr.bf16.mxu0 %v14615_v31 }
 0x673   : > { %13831 = vmatpush3.bf16.msra.mxu0 %v14615_v31  ;;  %v14678_v31 = vld [vmem:[%s18626_s5 + $0x384] ss:$8 sps:$4 sm:$0xff]  }
 0x674   : > { %13836 = vmatprep.subr.bf16.mxu0 %v14616_v26 }
 0x676   : > { %13833 = vmatmul.mubr.bf16.vlgmr.msra.gmra.mrb[32].mxu0 %v6872_v19  ;;  %v14621_v19 = vld [vmem:[%s18624_s3 + $0x228] sm:$0xff]  }
 0x677   : > { %13837 = vmatpush3.bf16.msra.mxu0 %v14616_v26  ;;  %13852 = vmatprep.mubr.bf16.mxu0 %v16855_v35  ;;  %v14622_v35 = vld [vmem:[%s18624_s3 + $0x230] sm:$0xff]   ;;  %v14676_v26 = vld [vmem:[%s18626_s5 + $0x380] ss:$8 sps:$4 sm:$0xff]  }
 0x678   : > { %13838 = vmatprep.subr.bf16.mxu0 %v14617_v34 }
 0x67b   : > { %13839 = vmatpush3.bf16.msra.mxu0 %v14617_v34  ;;  %v14681_v34 = vld [vmem:[%s18626_s5 + $0x394] ss:$8 sps:$4 sm:$0xff]  }
 0x67c   : > { %13840 = vmatprep.subr.bf16.mxu0 %v14618_v13 }
 0x67f   : > { %13841 = vmatpush3.bf16.msra.mxu0 %v14618_v13  ;;  %v14679_v13 = vld [vmem:[%s18626_s5 + $0x390] ss:$8 sps:$4 sm:$0xff]  }
 0x680   : > { %13842 = vmatprep.subr.bf16.mxu0 %v14619_v41 }
 0x683   : > { %13843 = vmatpush3.bf16.msra.mxu0 %v14619_v41  ;;  %v14684_v41 = vld [vmem:[%s18626_s5 + $0x3a4] ss:$8 sps:$4 sm:$0xff]  }
 0x684   : > { %13844 = vmatprep.subr.bf16.mxu0 %v14620_v27 }
 0x687   : > { %13845 = vmatpush3.bf16.msra.mxu0 %v14620_v27  ;;  %v14682_v27 = vld [vmem:[%s18626_s5 + $0x3a0] ss:$8 sps:$4 sm:$0xff]  }
 0x688   : > { %13846 = vmatprep.subr.bf16.mxu0 %v14621_v19 }
 0x68b   : > { %13847 = vmatpush3.bf16.msra.mxu0 %v14621_v19  ;;  %v14687_v19 = vld [vmem:[%s18626_s5 + $0x3b4] ss:$8 sps:$4 sm:$0xff]  }
 0x68c   : > { %13848 = vmatprep.subr.bf16.mxu0 %v14622_v35 }
 0x68f   : > { %13849 = vmatpush3.bf16.msra.mxu0 %v14622_v35  ;;  %v14685_v35 = vld [vmem:[%s18626_s5 + $0x3b0] ss:$8 sps:$4 sm:$0xff]  }
 0x690   : > { %13850 = vmatprep.subr.bf16.mxu0 %v14623_v11 }
 0x693   : > { %13851 = vmatpush3.bf16.msra.mxu0 %v14623_v11  ;;  %v14690_v11 = vld [vmem:[%s18626_s5 + $0x3c4] ss:$8 sps:$4 sm:$0xff]  }
 0x694   : > { %13856 = vmatprep.subr.bf16.mxu0 %v14624_v49 }
 0x696   : > { %13853 = vmatmul.mubr.bf16.vlgmr.msra.gmra.mrb[32].mxu0 %v16867_v55  ;;  %v14628_v55 = vld [vmem:[%s18624_s3 + $0x260] sm:$0xff]  }
 0x697   : > { %13857 = vmatpush3.bf16.msra.mxu0 %v14624_v49  ;;  %13872 = vmatprep.mubr.bf16.mxu0 %v16877_v47  ;;  %v14629_v47 = vld [vmem:[%s18624_s3 + $0x268] sm:$0xff]  }
 0x698   : > { %13858 = vmatprep.subr.bf16.mxu0 %v14625_v58  ;;  %v14688_v49 = vld [vmem:[%s18626_s5 + $0x3c0] ss:$8 sps:$4 sm:$0xff]  }
 0x69b   : > { %13859 = vmatpush3.bf16.msra.mxu0 %v14625_v58  ;;  %v14693_v58 = vld [vmem:[%s18626_s5 + $0x3d4] ss:$8 sps:$4 sm:$0xff]  }
 0x69c   : > { %13860 = vmatprep.subr.bf16.mxu0 %v14626_v52 }
 0x69f   : > { %13861 = vmatpush3.bf16.msra.mxu0 %v14626_v52  ;;  %v14691_v52 = vld [vmem:[%s18626_s5 + $0x3d0] ss:$8 sps:$4 sm:$0xff]  }
 0x6a0   : > { %13862 = vmatprep.subr.bf16.mxu0 %v14627_v36 }
 0x6a3   : > { %13863 = vmatpush3.bf16.msra.mxu0 %v14627_v36  ;;  %v14696_v36 = vld [vmem:[%s18626_s5 + $0x3e4] ss:$8 sps:$4 sm:$0xff]  }
 0x6a4   : > { %13864 = vmatprep.subr.bf16.mxu0 %v14628_v55 }
 0x6a7   : > { %13865 = vmatpush3.bf16.msra.mxu0 %v14628_v55  ;;  %v14694_v55 = vld [vmem:[%s18626_s5 + $0x3e0] ss:$8 sps:$4 sm:$0xff]  }
 0x6a8   : > { %13866 = vmatprep.subr.bf16.mxu0 %v14629_v47 }
 0x6ab   : > { %13867 = vmatpush3.bf16.msra.mxu0 %v14629_v47  ;;  %v14699_v47 = vld [vmem:[%s18626_s5 + $0x3f4] ss:$8 sps:$4 sm:$0xff]  }
 0x6ac   : > { %13868 = vmatprep.subr.bf16.mxu0 %v14630_v53 }
 0x6af   : > { %13869 = vmatpush3.bf16.msra.mxu0 %v14630_v53  ;;  %v14697_v53 = vld [vmem:[%s18626_s5 + $0x3f0] ss:$8 sps:$4 sm:$0xff]  }
 0x6b0   : > { %13870 = vmatprep.subr.bf16.mxu0 %v14631_v44 }
 0x6b3   : > { %13871 = vmatpush3.bf16.msra.mxu0 %v14631_v44  ;;  %v14702_v44 = vld [vmem:[%s18626_s5 + $0x404] ss:$8 sps:$4 sm:$0xff]  }
 0x6b4   : > { %13876 = vmatprep.subr.bf16.mxu0 %v14632_v1 }
 0x6b6   : > { %13873 = vmatmul.mubr.bf16.vlgmr.msra.gmra.mrb[32].mxu0 %v16880_v59 }
 0x6b7   : > { %13877 = vmatpush3.bf16.msra.mxu0 %v14632_v1  ;;  %13892 = vmatprep.mubr.bf16.mxu0 %v7346_v45  ;;  %v8521_v1 = vld [vmem:[#allocation7] sm:$0xe0]  ;;  %v17258_v45 = vld [vmem:[#allocation7 + $0x10] sm:$0x3] }
 0x6b8   : > { %13878 = vmatprep.subr.bf16.mxu0 %v14633_v4 }
 0x6bb   : > { %13879 = vmatpush3.bf16.msra.mxu0 %v14633_v4  ;;  %v8523_v4 = vshrl.u32 %v8521_v1, 16 }
 0x6bc   : > { %13880 = vmatprep.subr.bf16.mxu0 %v14634_v62 }
 0x6bd   : > { %v17094_v22 = vpop.f32.mrb[16].mxu1 }
 0x6be   : > { %v17096_v59 = vpop.f32.mrb[17].mxu1 }
 0x6bf   : > { %13881 = vmatpush3.bf16.msra.mxu0 %v14634_v62  ;;  %v17098_v25 = vpop.f32.mrb[18].mxu1  ;;  %v8525_v62 = vshll.u32 %v8521_v1, 16 }
 0x6c0   : > { %13882 = vmatprep.subr.bf16.mxu0 %v14635_v54  ;;  %v17100_v28 = vpop.f32.mrb[19].mxu1 }
 0x6c3   : > { %13883 = vmatpush3.bf16.msra.mxu0 %v14635_v54  ;;  %v9858_v54 = vshll.u32 %v17258_v45, 16 }
 0x6c4   : > { %13884 = vmatprep.subr.bf16.mxu0 %v14636_v38 }
 0x6c5   : > { %v17272_v16 = vrot.slane %v9858_v54, 5 }
 0x6c7   : > { %13885 = vmatpush3.bf16.msra.mxu0 %v14636_v38  ;;  %v9862_v38 = vshrl.u32 %v17258_v45, 16  ;;  %v14909_v45 = vld [vmem:[%s18626_s5 + $0x7e4] ss:$8 sps:$4 sm:$0xff]  }
 0x6c8   : > { %13886 = vmatprep.subr.bf16.mxu0 %v14637_v48 }
 0x6cb   : > { %13887 = vmatpush3.bf16.msra.mxu0 %v14637_v48  ;;  %v17262_v48 = vrot.slane %v8523_v4, 5 }
 0x6cc   : > { %13888 = vmatprep.subr.bf16.mxu0 %v14638_v24 }
 0x6cf   : > { %13889 = vmatpush3.bf16.msra.mxu0 %v14638_v24  ;;  %v17264_v24 = vrot.slane %v8525_v62, 6 }
 0x6d0   : > { %13890 = vmatprep.subr.bf16.mxu0 %v14639_v20 }
 0x6d3   : > { %13891 = vmatpush3.bf16.msra.mxu0 %v14639_v20  ;;  %v17268_v20 = vrot.slane %v9862_v38, 4 }
 0x6d4   : > { %13896 = vmatprep.subr.bf16.mxu0 %v14640_v18 }
 0x6d6   : > { %13893 = vmatmul.mubr.bf16.vlgmr.msra.gmra.mrb[32].mxu0 %v7350_v10  ;;  %v9908_v10 = vor.u32 %v17272_v16, %v17268_v20  ;;  %v14717_v20 = vld [vmem:[%s18626_s5 + $0x454] ss:$8 sps:$4 sm:$0xff]   ;;  %v14715_v16 = vld [vmem:[%s18626_s5 + $0x450] ss:$8 sps:$4 sm:$0xff]  }
 0x6d7   : > { %13897 = vmatpush3.bf16.msra.mxu0 %v14640_v18  ;;  %13912 = vmatprep.mubr.bf16.mxu0 %v16893_v51  ;;  %v14645_v51 = vld [vmem:[%s18624_s3 + $0x2e8] sm:$0xff]   ;;  %v8860_v18 = vor.u32 %v17264_v24, %v17262_v48 }
 0x6d8   : > { %13898 = vmatprep.subr.bf16.mxu0 %v14641_v60 }
 0x6db   : > { %13899 = vmatpush3.bf16.msra.mxu0 %v14641_v60 }
 0x6dc   : > { %13900 = vmatprep.subr.bf16.mxu0 %v14642_v63 }
 0x6df   : > { %13901 = vmatpush3.bf16.msra.mxu0 %v14642_v63 }
 0x6e0   : > { %13902 = vmatprep.subr.bf16.mxu0 %v14643_v43 }
 0x6e3   : > { %13903 = vmatpush3.bf16.msra.mxu0 %v14643_v43 }
 0x6e4   : > { %13904 = vmatprep.subr.bf16.mxu0 %v14644_v32 }
 0x6e7   : > { %13905 = vmatpush3.bf16.msra.mxu0 %v14644_v32 }
 0x6e8   : > { %13906 = vmatprep.subr.bf16.mxu0 %v14645_v51 }
 0x6eb   : > { %13907 = vmatpush3.bf16.msra.mxu0 %v14645_v51 }
 0x6ec   : > { %13908 = vmatprep.subr.bf16.mxu0 %v14646_v9 }
 0x6ef   : > { %13909 = vmatpush3.bf16.msra.mxu0 %v14646_v9 }
 0x6f0   : > { %13910 = vmatprep.subr.bf16.mxu0 %v14647_v2 }
 0x6f3   : > { %13911 = vmatpush3.bf16.msra.mxu0 %v14647_v2 }
 0x6f4   : > { %13916 = vmatprep.subr.bf16.mxu0 %v14648_v6 }
 0x6f6   : > { %13913 = vmatmul.mubr.bf16.vlgmr.msra.gmra.mrb[32].mxu0 %v7515_v15  ;;  %v14652_v15 = vld [vmem:[%s18626_s5 + $0x300] ss:$8 sps:$4 sm:$0xff]  }
 0x6f7   : > { %13917 = vmatpush3.bf16.msra.mxu0 %v14648_v6  ;;  %13924 = vmatprep.mubr.msk.bf16.mxu0 %vm560_vm7, %v7633_v17 }
 0x6f8   : > { %13918 = vmatprep.subr.bf16.mxu0 %v14649_v7 }
 0x6fb   : > { %13919 = vmatpush3.bf16.msra.mxu0 %v14649_v7 }
 0x6fc   : > { %13920 = vmatprep.subr.bf16.mxu0 %v14650_v0 }
 0x6ff   : > { %13921 = vmatpush3.bf16.msra.mxu0 %v14650_v0 }
 0x700   : > { %13922 = vmatprep.subr.bf16.mxu0 %v14651_v40 }
 0x703   : > { %13923 = vmatpush3.bf16.msra.mxu0 %v14651_v40 }
 0x704   : > { %8761 = vmatprep.subr.bf16.mxu0 %v14654_v14 }
 0x706   : > { %13925 = vmatmul.mubr.msk.bf16.vlgmr.msra.gmra.mrb[32].mxu0 %vm560_vm7, %v7632_v37 }
 0x707   : > { %8762 = vmatpush1.bf16.msra.mxu0 %v14652_v15 }
 0x708   : > { %8763 = vmatprep.subr.bf16.mxu0 %v14657_v50 }
 0x70b   : > { %8764 = vmatpush1.bf16.msra.mxu0 %v14655_v3 }
 0x70c   : > { %8765 = vmatprep.subr.bf16.mxu0 %v14660_v56 }
 0x70f   : > { %8766 = vmatpush1.bf16.msra.mxu0 %v14658_v61 }
 0x710   : > { %8767 = vmatprep.subr.bf16.mxu0 %v14663_v5 }
 0x713   : > { %8768 = vmatpush1.bf16.msra.mxu0 %v14661_v8 }
 0x714   : > { %8769 = vmatprep.subr.bf16.mxu0 %v14666_v21 }
 0x717   : > { %8770 = vmatpush1.bf16.msra.mxu0 %v14664_v12 }
 0x718   : > { %8771 = vmatprep.subr.bf16.mxu0 %v14669_v33 }
 0x71b   : > { %8772 = vmatpush1.bf16.msra.mxu0 %v14667_v29 }
 0x71c   : > { %8773 = vmatprep.subr.bf16.mxu0 %v14672_v46 }
 0x71f   : > { %8774 = vmatpush1.bf16.msra.mxu0 %v14670_v30  ;;  %v8809_v30 = vld [vmem:[#allocation7] sm:$0xc0] }
 0x720   : > { %8775 = vmatprep.subr.bf16.mxu0 %v14675_v42 }
 0x723   : > { %8776 = vmatpush1.bf16.msra.mxu0 %v14673_v57 }
 0x724   : > { %8777 = vmatprep.subr.bf16.mxu0 %v14678_v31  ;;  %v8813_v31 = vshll.u32 %v8809_v30, 16 }
 0x727   : > { %8778 = vmatpush1.bf16.msra.mxu0 %v14676_v26  ;;  %v8527_v26 = vrot.slane %v8525_v62, 1 }
 0x728   : > { %8779 = vmatprep.subr.bf16.mxu0 %v14681_v34  ;;  %v8268_v34 = vld [vmem:[#allocation7] sm:$0xf0] }
 0x72b   : > { %8780 = vmatpush1.bf16.msra.mxu0 %v14679_v13  ;;  %v8811_v13 = vshrl.u32 %v8809_v30, 16 }
 0x72c   : > { %8781 = vmatprep.subr.bf16.mxu0 %v14684_v41  ;;  %v8815_v41 = vrot.slane %v8813_v31, 1  ;;  %v14705_v31 = vld [vmem:[%s18626_s5 + $0x414] ss:$8 sps:$4 sm:$0xff]  }
 0x72f   : > { %8782 = vmatpush1.bf16.msra.mxu0 %v14682_v27  ;;  %v8571_v27 = vshrl.u32 %v8268_v34, 16 }
 0x730   : > { %8783 = vmatprep.subr.bf16.mxu0 %v14687_v19  ;;  %v8574_v19 = vshll.u32 %v8268_v34, 16 }
 0x732   : > { %v8576_v1 = vrot.slane %v8574_v19, 5 }
 0x733   : > { %8784 = vmatpush1.bf16.msra.mxu0 %v14685_v35 }
 0x734   : > { %8785 = vmatprep.subr.bf16.mxu0 %v14690_v11  ;;  %v8528_v11 = vor.u32 %v8527_v26, %v8523_v4 }
 0x737   : > { %8786 = vmatpush1.bf16.msra.mxu0 %v14688_v49 }
 0x738   : > { %8787 = vmatprep.subr.bf16.mxu0 %v14693_v58  ;;  %v8816_v58 = vor.u32 %v8815_v41, %v8811_v13 }
 0x73b   : > { %8788 = vmatpush1.bf16.msra.mxu0 %v14691_v52 }
 0x73c   : > { %8789 = vmatprep.subr.bf16.mxu0 %v14696_v36 }
 0x73f   : > { %8790 = vmatpush1.bf16.msra.mxu0 %v14694_v55 }
 0x740   : > { %8791 = vmatprep.subr.bf16.mxu0 %v14699_v47 }
 0x743   : > { %8792 = vmatpush1.bf16.msra.mxu0 %v14697_v53 }
 0x744   : > { %9044 = vmatprep.subr.bf16.mxu0 %v14702_v44  ;;  %v8573_v44 = vrot.slane %v8571_v27, 4  ;;  %v14703_v27 = vld [vmem:[%s18626_s5 + $0x410] ss:$8 sps:$4 sm:$0xff]  }
 0x7d9   : > { %v13926_v60 = vpop.f32.mrb[32].mxu0 }
 0x7da   : > { %v13960_v63 = vadd.f32 %v13926_v60, %v17094_v22  ;;  %v7698_v43 = vpop.f32.mrb[33].mxu0 }
 0x7db   : > { %v13961_v32 = vadd.f32 %v7698_v43, %v17096_v59  ;;  %v13927_v51 = vpop.f32.mrb[34].mxu0 }
 0x7dc   : > { %7719 = vst [vmem:[#allocation6 + $0x10] sm:$0xff] %v13960_v63  ;;  %v13962_v9 = vadd.f32 %v13927_v51, %v17098_v25  ;;  %v7701_v2 = vpop.f32.mrb[35].mxu0  ;;  %v11944_v25 = vld [vmem:[%s18632_s11] ss:$0 sm:$0xff] }
 0x7dd   : > { %7717 = vst [vmem:[#allocation6] sm:$0xff] %v13961_v32  ;;  %v13963_v23 = vadd.f32 %v7701_v2, %v17100_v28  ;;  %v11945_v28 = vld [vmem:[%s18633_s12] ss:$0 sm:$0xff] }
 0x7de   : > { %7720 = vst [vmem:[#allocation6 + $0x18] sm:$0xf] %v13962_v9 }
 0x7df   : > { %7718 = vst [vmem:[#allocation6 + $0x8] sm:$0xff] %v13963_v23 }
 0x7e3   : > { %v7754_v6 = vld [vmem:[#allocation6 + $0x10] ss:$2 sm:$0x3]  ;;  %v7756_v39 = vld [vmem:[#allocation6 + $0x11] ss:$2 sm:$0x3] }
 0x7e4   : > { %v7723_v37 = vld [vmem:[#allocation6] ss:$2 sm:$0x3]  ;;  %v7725_v7 = vld [vmem:[#allocation6 + $0x1] ss:$2 sm:$0x3]  ;;  %v7761_v22 = vmax.f32 %v7754_v6, %v7756_v39 }
 0x7e5   : > { %v7758_v17 = vld [vmem:[#allocation6 + $0x18] ss:$2 sm:$0x3]  ;;  %v7760_v0 = vld [vmem:[#allocation6 + $0x19] ss:$2 sm:$0x3]  ;;  %v7730_v15 = vmax.f32 %v7723_v37, %v7725_v7 }
 0x7e6   : > { %v7762_v40 = vmax.f32 %v7758_v17, %v7760_v0  ;;  %v7727_v14 = vld [vmem:[#allocation6 + $0x8] ss:$2 sm:$0x3]  ;;  %v7729_v59 = vld [vmem:[#allocation6 + $0x9] ss:$2 sm:$0x3]  ;;  %v8577_v17 = vor.u32 %v8576_v1, %v8573_v44 }
 0x7e7   : > { %v7731_v50 = vmax.f32 %v7727_v14, %v7729_v59  ;;  %v14714_v44 = vld [vmem:[%s18626_s5 + $0x444] ss:$8 sps:$4 sm:$0xff]   ;;  %v14712_v1 = vld [vmem:[%s18626_s5 + $0x440] ss:$8 sps:$4 sm:$0xff]  }
 0x7e8   : > { %v7763_v3 = vmax.f32 %v7761_v22, %v7762_v40 }
 0x7e9   : > { %v7732_v56 = vmax.f32 %v7730_v15, %v7731_v50 }
 0x7ea   : > { %v7764_v61 = vmul.f32 %v11944_v25, %v7763_v3 }
 0x7eb   : > { %v7739_v5 = vmul.f32 %v11944_v25, %v7732_v56 }
 0x7ec   : > { %v7765_v8 = vadd.f32 %v11945_v28, %v7764_v61 }
 0x7ed   : > { %v7746_v12 = vadd.f32 %v11945_v28, %v7739_v5 }
 0x7ee   : > { %v7766_v21 = vmax.f32 %v7765_v8, 0.0 }
 0x7ef   : > { %v7747_v29 = vmax.f32 %v7746_v12, 0.0 }
 0x7f0   : > { %v7767_v33 = vpack.c.bf16 %v7766_v21, %v7766_v21 }
 0x7f1   : > { %v7748_v46 = vpack.c.bf16 %v7747_v29, %v7747_v29 }
 0x7f2   : > { %v7769_v42 = vrot.slane %v7767_v33, 3 }
 0x7f3   : > { %v7750_v57 = vrot.slane %v7748_v46, 7  ;;  %v14700_v46 = vld [vmem:[%s18626_s5 + $0x400] ss:$8 sps:$4 sm:$0xff]  }
 0x7f4   : > { %7771 = vst [vmem:[#allocation7 + $0x8] sm:$0x20] %v7769_v42 }
 0x7f5   : > { %7752 = vst [vmem:[#allocation7 + $0x8] sm:$0x2] %v7750_v57 }
 0x7fb   : > { %v17290_v8 = vld [vmem:[#allocation7 + $0x8] sm:$0xe0] }
 0x7fc   : > { %v8520_v35 = vld [vmem:[#allocation7 + $0x8] sm:$0x3]  ;;  %v17292_v33 = vld [vmem:[#allocation7 + $0x8] sm:$0xf0]  ;;  %v9851_v26 = vshrl.u32 %v17290_v8, 16  ;;  %v9853_v13 = vshll.u32 %v17290_v8, 16 }
 0x7fd   : > { %v8808_v49 = vld [vmem:[#allocation7 + $0x8] sm:$0x7]  ;;  %v8530_v52 = vshll.u32 %v8520_v35, 16  ;;  %v8534_v36 = vshrl.u32 %v8520_v35, 16  ;;  %v9899_v41 = vshrl.u32 %v17292_v33, 16  ;;  %v9902_v48 = vshll.u32 %v17292_v33, 16 }
 0x7fe   : > { %v8818_v55 = vshll.u32 %v8808_v49, 16  ;;  %v8822_v47 = vshrl.u32 %v8808_v49, 16  ;;  %v14708_v35 = vld [vmem:[%s18626_s5 + $0x424] ss:$8 sps:$4 sm:$0xff]   ;;  %v17325_v49 = vrot.slane %v9853_v13, 6 }
 0x7ff   : > { %v8532_v53 = vrot.slane %v8530_v52, 1  ;;  %v8578_v63 = vrot.slane %v8534_v36, 4  ;;  %v8579_v43 = vrot.slane %v8530_v52, 5  ;;  %v9901_v19 = vrot.slane %v9899_v41, 4  ;;  %v14766_v41 = vld [vmem:[%s18626_s5 + $0x560] ss:$8 sps:$4 sm:$0xff]  }
 0x800   : > { %v8820_v60 = vrot.slane %v8818_v55, 1  ;;  %v8861_v62 = vrot.slane %v8822_v47, 5  ;;  %v8862_v2 = vrot.slane %v8818_v55, 6  ;;  %v14711_v55 = vld [vmem:[%s18626_s5 + $0x434] ss:$8 sps:$4 sm:$0xff]  }
 0x801   : > { %v8533_v32 = vsel %vm1146_vm2, %v8528_v11, %v8532_v53  ;;  %v8536_v51 = vor.u32 %v8534_v36, %v8532_v53  ;;  %v8580_v56 = vor.u32 %v8579_v43, %v8578_v63  ;;  %v9904_v11 = vrot.slane %v9902_v48, 5  ;;  %v14706_v36 = vld [vmem:[%s18626_s5 + $0x420] ss:$8 sps:$4 sm:$0xff]   ;;  %v14709_v53 = vld [vmem:[%s18626_s5 + $0x430] ss:$8 sps:$4 sm:$0xff]  }
 0x802   : > { %v8821_v9 = vsel %vm1146_vm2, %v8816_v58, %v8820_v60  ;;  %v8583_v4 = vshrl.u32 %v8533_v32, 16  ;;  %v8586_v23 = vshll.u32 %v8533_v32, 16  ;;  %v8824_v6 = vor.u32 %v8822_v47, %v8820_v60  ;;  %v14718_v60 = vld [vmem:[%s18626_s5 + $0x460] ss:$8 sps:$4 sm:$0xff]   ;;  %v14723_v63 = vld [vmem:[%s18626_s5 + $0x474] ss:$8 sps:$4 sm:$0xff]  }
 0x803   : > { %v8866_v39 = vshrl.u32 %v8821_v9, 16  ;;  %v8591_v37 = vshrl.u32 %v8536_v51, 16  ;;  %v8594_v7 = vshll.u32 %v8536_v51, 16  ;;  %v8869_v0 = vshll.u32 %v8821_v9, 16  ;;  %v14721_v43 = vld [vmem:[%s18626_s5 + $0x470] ss:$8 sps:$4 sm:$0xff]  }
 0x804   : > { %v8585_v22 = vrot.slane %v8583_v4, 4  ;;  %v8588_v40 = vrot.slane %v8586_v23, 5  ;;  %v8874_v59 = vshrl.u32 %v8824_v6, 16  ;;  %v8877_v3 = vshll.u32 %v8824_v6, 16  ;;  %v14724_v32 = vld [vmem:[%s18626_s5 + $0x480] ss:$8 sps:$4 sm:$0xff]  }
 0x805   : > { %v8868_v14 = vrot.slane %v8866_v39, 5  ;;  %v8593_v15 = vrot.slane %v8591_v37, 4  ;;  %v8596_v25 = vrot.slane %v8594_v7, 5  ;;  %v8871_v50 = vrot.slane %v8869_v0, 6  ;;  %v14729_v51 = vld [vmem:[%s18626_s5 + $0x494] ss:$8 sps:$4 sm:$0xff]  }
 0x806   : > { %v8589_v28 = vor.u32 %v8588_v40, %v8585_v22  ;;  %v8876_v61 = vrot.slane %v8874_v59, 5  ;;  %v8863_v5 = vor.u32 %v8862_v2, %v8861_v62  ;;  %v8879_v29 = vrot.slane %v8877_v3, 6  ;;  %v14726_v62 = vld [vmem:[%s18626_s5 + $0x484] ss:$8 sps:$4 sm:$0xff]   ;;  %v14727_v9 = vld [vmem:[%s18626_s5 + $0x490] ss:$8 sps:$4 sm:$0xff]  }
 0x807   : > { %v8597_v12 = vor.u32 %v8596_v25, %v8593_v15  ;;  %v8872_v21 = vor.u32 %v8871_v50, %v8868_v14  ;;  %v8581_v34 = vsel %vm6241_vm10, %v8577_v17, %v8580_v56  ;;  %v9905_v58 = vor.u32 %v9904_v11, %v9901_v19  ;;  %v14732_v2 = vld [vmem:[%s18626_s5 + $0x4a4] ss:$8 sps:$4 sm:$0xff]   ;;  %v14730_v4 = vld [vmem:[%s18626_s5 + $0x4a0] ss:$8 sps:$4 sm:$0xff]   ;;  %v14735_v23 = vld [vmem:[%s18626_s5 + $0x4b4] ss:$8 sps:$4 sm:$0xff]  }
 0x808   : > { %v17301_v30 = vsel %vm6415_vm11, %v8860_v18, %v8863_v5  ;;  %v8880_v57 = vor.u32 %v8879_v29, %v8876_v61  ;;  %v17315_v18 = vrot.slane %v9851_v26, 5  ;;  %v14733_v6 = vld [vmem:[%s18626_s5 + $0x4b0] ss:$8 sps:$4 sm:$0xff]   ;;  %v14738_v39 = vld [vmem:[%s18626_s5 + $0x4c4] ss:$8 sps:$4 sm:$0xff]  }
 0x809   : > { %v8598_v42 = vsel %vm6241_vm10, %v8589_v28, %v8597_v12  ;;  %v17339_v47 = vsel %vm6241_vm10, %v9905_v58, %v9908_v10  ;;  %v14720_v10 = vld [vmem:[%s18626_s5 + $0x464] ss:$8 sps:$4 sm:$0xff]   ;;  %v14736_v37 = vld [vmem:[%s18626_s5 + $0x4c0] ss:$8 sps:$4 sm:$0xff]   ;;  %v14741_v7 = vld [vmem:[%s18626_s5 + $0x4d4] ss:$8 sps:$4 sm:$0xff]  }
 0x80a   : > { %8793 = vmatprep.mubr.bf16.mxu0 %v8598_v42  ;;  %v8881_v24 = vsel %vm6415_vm11, %v8872_v21, %v8880_v57  ;;  %v10188_v52 = vor.u32 %v17325_v49, %v17315_v18  ;;  %v14739_v17 = vld [vmem:[%s18626_s5 + $0x4d0] ss:$8 sps:$4 sm:$0xff]   ;;  %v14744_v0 = vld [vmem:[%s18626_s5 + $0x4e4] ss:$8 sps:$4 sm:$0xff]   ;;  %v14742_v40 = vld [vmem:[%s18626_s5 + $0x4e0] ss:$8 sps:$4 sm:$0xff]  }
 0x80b   : > { %8794 = vmatmul.mubr.bf16.vlgmr.msra.gmra.mrb[36].mxu0 %v8581_v34  ;;  %v9092_v22 = vld [vmem:[#allocation7 + $0x8] sm:$0x3f]  ;;  %v14747_v14 = vld [vmem:[%s18626_s5 + $0x4f4] ss:$8 sps:$4 sm:$0xff]   ;;  %v14745_v15 = vld [vmem:[%s18626_s5 + $0x4f0] ss:$8 sps:$4 sm:$0xff]  }
 0x80c   : > { %9045 = vmatpush1.bf16.msra.mxu0 %v14700_v46  ;;  %9076 = vmatprep.mubr.bf16.mxu0 %v8881_v24  ;;  %v9096_v59 = vshll.u32 %v9092_v22, 16  ;;  %v14750_v25 = vld [vmem:[%s18626_s5 + $0x504] ss:$8 sps:$4 sm:$0xff]   ;;  %v14748_v3 = vld [vmem:[%s18626_s5 + $0x500] ss:$8 sps:$4 sm:$0xff]   ;;  %v9094_v28 = vshrl.u32 %v9092_v22, 16 }
 0x80d   : > { %9046 = vmatprep.subr.bf16.mxu0 %v14705_v31  ;;  %v14753_v56 = vld [vmem:[%s18626_s5 + $0x514] ss:$8 sps:$4 sm:$0xff]   ;;  %v14751_v5 = vld [vmem:[%s18626_s5 + $0x510] ss:$8 sps:$4 sm:$0xff]   ;;  %v14756_v12 = vld [vmem:[%s18626_s5 + $0x524] ss:$8 sps:$4 sm:$0xff]  }
 0x80e   : > { %v9098_v50 = vrot.slane %v9096_v59, 1  ;;  %v14754_v21 = vld [vmem:[%s18626_s5 + $0x520] ss:$8 sps:$4 sm:$0xff]   ;;  %v14759_v29 = vld [vmem:[%s18626_s5 + $0x534] ss:$8 sps:$4 sm:$0xff]  }
 0x80f   : > { %v14757_v46 = vld [vmem:[%s18626_s5 + $0x530] ss:$8 sps:$4 sm:$0xff]   ;;  %v14760_v42 = vld [vmem:[%s18626_s5 + $0x540] ss:$8 sps:$4 sm:$0xff]   ;;  %v14765_v57 = vld [vmem:[%s18626_s5 + $0x554] ss:$8 sps:$4 sm:$0xff]  }
 0x810   : > { %9047 = vmatpush1.bf16.msra.mxu0 %v14703_v27  ;;  %v9099_v61 = vor.u32 %v9098_v50, %v9094_v28  ;;  %v14763_v31 = vld [vmem:[%s18626_s5 + $0x550] ss:$8 sps:$4 sm:$0xff]   ;;  %v14768_v34 = vld [vmem:[%s18626_s5 + $0x564] ss:$8 sps:$4 sm:$0xff]   ;;  %v14771_v48 = vld [vmem:[%s18626_s5 + $0x574] ss:$8 sps:$4 sm:$0xff]  }
 0x811   : > { %9048 = vmatprep.subr.bf16.mxu0 %v14708_v35  ;;  %v14769_v24 = vld [vmem:[%s18626_s5 + $0x570] ss:$8 sps:$4 sm:$0xff]   ;;  %v14774_v27 = vld [vmem:[%s18626_s5 + $0x584] ss:$8 sps:$4 sm:$0xff]   ;;  %v14772_v19 = vld [vmem:[%s18626_s5 + $0x580] ss:$8 sps:$4 sm:$0xff]  }
 0x812   : > { %v14868_v35 = vld [vmem:[%s18626_s5 + $0x100] ss:$8 sps:$4 sm:$0xff]   ;;  %v14870_v11 = vld [vmem:[%s18626_s5 + $0x104] ss:$8 sps:$4 sm:$0xff]   ;;  %v14777_v58 = vld [vmem:[%s18626_s5 + $0x594] ss:$8 sps:$4 sm:$0xff]  }
 0x813   : > { %8021 = vmatprep.subr.bf16.mxu1 %v14870_v11  ;;  %v14906_v22 = vld [vmem:[%s18626_s5 + $0x164] ss:$8 sps:$4 sm:$0xff]   ;;  %v14912_v50 = vld [vmem:[%s18626_s5 + $0x174] ss:$8 sps:$4 sm:$0xff]   ;;  %v14808_v11 = vld [vmem:[%s18626_s5 + $0x640] ss:$8 sps:$4 sm:$0xff]  }
 0x814   : > { %9049 = vmatpush1.bf16.msra.mxu0 %v14706_v36  ;;  %8022 = vmatpush1.bf16.msra.mxu1 %v14868_v35  ;;  %v14775_v36 = vld [vmem:[%s18626_s5 + $0x590] ss:$8 sps:$4 sm:$0xff]   ;;  %v14810_v35 = vld [vmem:[%s18626_s5 + $0x644] ss:$8 sps:$4 sm:$0xff]   ;;  %v15131_v18 = vld [vmem:[%s18626_s5 + $0xa34] ss:$8 sps:$4 sm:$0xff]  }
 0x815   : > { %9050 = vmatprep.subr.bf16.mxu0 %v14711_v55  ;;  %v14874_v55 = vld [vmem:[%s18626_s5 + $0x110] ss:$8 sps:$4 sm:$0xff]  }
 0x816   : > { %v14901_v8 = vld [vmem:[%s18626_s5 + $0x7d0] ss:$8 sps:$4 sm:$0xff]  }
 0x817   : > { %v15129_v49 = vld [vmem:[%s18626_s5 + $0xa30] ss:$8 sps:$4 sm:$0xff]  }
 0x818   : > { %9051 = vmatpush1.bf16.msra.mxu0 %v14709_v53  ;;  %v14876_v53 = vld [vmem:[%s18626_s5 + $0x114] ss:$8 sps:$4 sm:$0xff]  }
 0x819   : > { %9052 = vmatprep.subr.bf16.mxu0 %v14714_v44  ;;  %v14780_v44 = vld [vmem:[%s18626_s5 + $0x5a4] ss:$8 sps:$4 sm:$0xff]   ;;  %8023 = vmatprep.subr.bf16.mxu1 %v14876_v53  ;;  %v14811_v53 = vld [vmem:[%s18626_s5 + $0x650] ss:$8 sps:$4 sm:$0xff]  }
 0x81a   : > { %8024 = vmatpush1.bf16.msra.mxu1 %v14874_v55  ;;  %v14813_v55 = vld [vmem:[%s18626_s5 + $0x654] ss:$8 sps:$4 sm:$0xff]  }
 0x81c   : > { %9053 = vmatpush1.bf16.msra.mxu0 %v14712_v1  ;;  %v14778_v1 = vld [vmem:[%s18626_s5 + $0x5a0] ss:$8 sps:$4 sm:$0xff]  }
 0x81d   : > { %9054 = vmatprep.subr.bf16.mxu0 %v14717_v20  ;;  %v14880_v20 = vld [vmem:[%s18626_s5 + $0x120] ss:$8 sps:$4 sm:$0xff]  }
 0x820   : > { %9055 = vmatpush1.bf16.msra.mxu0 %v14715_v16  ;;  %v14882_v16 = vld [vmem:[%s18626_s5 + $0x124] ss:$8 sps:$4 sm:$0xff]  }
 0x821   : > { %9056 = vmatprep.subr.bf16.mxu0 %v14720_v10  ;;  %v14783_v10 = vld [vmem:[%s18626_s5 + $0x5b4] ss:$8 sps:$4 sm:$0xff]   ;;  %8025 = vmatprep.subr.bf16.mxu1 %v14882_v16  ;;  %v14814_v16 = vld [vmem:[%s18626_s5 + $0x660] ss:$8 sps:$4 sm:$0xff]  }
 0x822   : > { %8026 = vmatpush1.bf16.msra.mxu1 %v14880_v20  ;;  %v14816_v20 = vld [vmem:[%s18626_s5 + $0x664] ss:$8 sps:$4 sm:$0xff]  }
 0x824   : > { %9057 = vmatpush1.bf16.msra.mxu0 %v14718_v60  ;;  %v14781_v60 = vld [vmem:[%s18626_s5 + $0x5b0] ss:$8 sps:$4 sm:$0xff]  }
 0x825   : > { %9058 = vmatprep.subr.bf16.mxu0 %v14723_v63  ;;  %v14886_v63 = vld [vmem:[%s18626_s5 + $0x130] ss:$8 sps:$4 sm:$0xff]  }
 0x828   : > { %9059 = vmatpush1.bf16.msra.mxu0 %v14721_v43  ;;  %v14888_v43 = vld [vmem:[%s18626_s5 + $0x134] ss:$8 sps:$4 sm:$0xff]  }
 0x829   : > { %9060 = vmatprep.subr.bf16.mxu0 %v14726_v62  ;;  %v14786_v62 = vld [vmem:[%s18626_s5 + $0x5c4] ss:$8 sps:$4 sm:$0xff]   ;;  %8027 = vmatprep.subr.bf16.mxu1 %v14888_v43  ;;  %v14817_v43 = vld [vmem:[%s18626_s5 + $0x670] ss:$8 sps:$4 sm:$0xff]  }
 0x82a   : > { %8028 = vmatpush1.bf16.msra.mxu1 %v14886_v63  ;;  %v14819_v63 = vld [vmem:[%s18626_s5 + $0x674] ss:$8 sps:$4 sm:$0xff]  }
 0x82c   : > { %9061 = vmatpush1.bf16.msra.mxu0 %v14724_v32  ;;  %v14784_v32 = vld [vmem:[%s18626_s5 + $0x5c0] ss:$8 sps:$4 sm:$0xff]  }
 0x82d   : > { %9062 = vmatprep.subr.bf16.mxu0 %v14729_v51  ;;  %v14892_v51 = vld [vmem:[%s18626_s5 + $0x140] ss:$8 sps:$4 sm:$0xff]  }
 0x830   : > { %9063 = vmatpush1.bf16.msra.mxu0 %v14727_v9  ;;  %v14894_v9 = vld [vmem:[%s18626_s5 + $0x144] ss:$8 sps:$4 sm:$0xff]  }
 0x831   : > { %9064 = vmatprep.subr.bf16.mxu0 %v14732_v2  ;;  %v14789_v2 = vld [vmem:[%s18626_s5 + $0x5d4] ss:$8 sps:$4 sm:$0xff]   ;;  %8029 = vmatprep.subr.bf16.mxu1 %v14894_v9  ;;  %v14820_v9 = vld [vmem:[%s18626_s5 + $0x680] ss:$8 sps:$4 sm:$0xff]  }
 0x832   : > { %8030 = vmatpush1.bf16.msra.mxu1 %v14892_v51  ;;  %v14822_v51 = vld [vmem:[%s18626_s5 + $0x684] ss:$8 sps:$4 sm:$0xff]  }
 0x834   : > { %9065 = vmatpush1.bf16.msra.mxu0 %v14730_v4  ;;  %v9342_v4 = vld [vmem:[#allocation7 + $0x8] sm:$0x7e] }
 0x835   : > { %9066 = vmatprep.subr.bf16.mxu0 %v14735_v23  ;;  %v14787_v23 = vld [vmem:[%s18626_s5 + $0x5d0] ss:$8 sps:$4 sm:$0xff]   ;;  %v9344_v59 = vshrl.u32 %v9342_v4, 16 }
 0x838   : > { %9067 = vmatpush1.bf16.msra.mxu0 %v14733_v6  ;;  %v14898_v6 = vld [vmem:[%s18626_s5 + $0x150] ss:$8 sps:$4 sm:$0xff]  }
 0x839   : > { %9068 = vmatprep.subr.bf16.mxu0 %v14738_v39  ;;  %v14900_v39 = vld [vmem:[%s18626_s5 + $0x154] ss:$8 sps:$4 sm:$0xff]  }
 0x83a   : > { %8031 = vmatprep.subr.bf16.mxu1 %v14900_v39 }
 0x83b   : > { %8032 = vmatpush1.bf16.msra.mxu1 %v14898_v6 }
 0x83c   : > { %9069 = vmatpush1.bf16.msra.mxu0 %v14736_v37  ;;  %v14792_v37 = vld [vmem:[%s18626_s5 + $0x5e4] ss:$8 sps:$4 sm:$0xff]   ;;  %8033 = vmatprep.subr.bf16.mxu1 %v14906_v22 }
 0x83d   : > { %9070 = vmatprep.subr.bf16.mxu0 %v14741_v7  ;;  %v9346_v7 = vshll.u32 %v9342_v4, 16  ;;  %v14966_v4 = vld [vmem:[%s18626_s5 + $0x4] ss:$8 sps:$4 sm:$0xff]  }
 0x840   : > { %9071 = vmatpush1.bf16.msra.mxu0 %v14739_v17  ;;  %v14790_v17 = vld [vmem:[%s18626_s5 + $0x5e0] ss:$8 sps:$4 sm:$0xff]  }
 0x841   : > { %9072 = vmatprep.subr.bf16.mxu0 %v14744_v0  ;;  %v14904_v0 = vld [vmem:[%s18626_s5 + $0x160] ss:$8 sps:$4 sm:$0xff]  }
 0x842   : > { %8034 = vmatpush1.bf16.msra.mxu1 %v14904_v0  ;;  %v14828_v0 = vld [vmem:[%s18626_s5 + $0x6a4] ss:$8 sps:$4 sm:$0xff]  }
 0x843   : > { %8035 = vmatprep.subr.bf16.mxu1 %v14912_v50  ;;  %v14831_v50 = vld [vmem:[%s18626_s5 + $0x6b4] ss:$8 sps:$4 sm:$0xff]  }
 0x844   : > { %9073 = vmatpush1.bf16.msra.mxu0 %v14742_v40  ;;  %v14795_v40 = vld [vmem:[%s18626_s5 + $0x5f4] ss:$8 sps:$4 sm:$0xff]  }
 0x845   : > { %9074 = vmatprep.subr.bf16.mxu0 %v14747_v14  ;;  %v9348_v14 = vrot.slane %v9346_v7, 1  ;;  %v7814_v7 = vld [vmem:[#allocation7] sm:$0x3e] }
 0x847   : > { %v9349_v28 = vor.u32 %v9348_v14, %v9344_v59  ;;  %v14964_v59 = vld [vmem:[%s18626_s5] ss:$8 sps:$4 sm:$0xff]  }
 0x848   : > { %9075 = vmatpush1.bf16.msra.mxu0 %v14745_v15  ;;  %v14793_v15 = vld [vmem:[%s18626_s5 + $0x5f0] ss:$8 sps:$4 sm:$0xff]  }
 0x849   : > { %9294 = vmatprep.subr.bf16.mxu0 %v14750_v25  ;;  %v14910_v25 = vld [vmem:[%s18626_s5 + $0x170] ss:$8 sps:$4 sm:$0xff]  }
 0x84a   : > { %8036 = vmatpush1.bf16.msra.mxu1 %v14910_v25  ;;  %v14972_v25 = vld [vmem:[%s18626_s5 + $0x14] ss:$8 sps:$4 sm:$0xff]  }
 0x84b   : > { %9077 = vmatmul.mubr.bf16.vlgmr.msra.gmra.mrb[36].mxu0 %v17301_v30  ;;  %v14762_v30 = vld [vmem:[%s18626_s5 + $0x544] ss:$8 sps:$4 sm:$0xff]  }
 0x84c   : > { %9295 = vmatpush1.bf16.msra.mxu0 %v14748_v3  ;;  %9326 = vmatprep.mubr.bf16.mxu0 %v9099_v61  ;;  %v14798_v3 = vld [vmem:[%s18626_s5 + $0x604] ss:$8 sps:$4 sm:$0xff]   ;;  %v14916_v61 = vld [vmem:[%s18626_s5 + $0x180] ss:$8 sps:$4 sm:$0xff]  }
 0x84d   : > { %9296 = vmatprep.subr.bf16.mxu0 %v14753_v56  ;;  %v14796_v56 = vld [vmem:[%s18626_s5 + $0x600] ss:$8 sps:$4 sm:$0xff]  }
 0x850   : > { %9297 = vmatpush1.bf16.msra.mxu0 %v14751_v5  ;;  %v14918_v5 = vld [vmem:[%s18626_s5 + $0x184] ss:$8 sps:$4 sm:$0xff]  }
 0x851   : > { %9298 = vmatprep.subr.bf16.mxu0 %v14756_v12  ;;  %v14801_v12 = vld [vmem:[%s18626_s5 + $0x614] ss:$8 sps:$4 sm:$0xff]   ;;  %8037 = vmatprep.subr.bf16.mxu1 %v14918_v5  ;;  %v14976_v5 = vld [vmem:[%s18626_s5 + $0x20] ss:$8 sps:$4 sm:$0xff]  }
 0x852   : > { %8038 = vmatpush1.bf16.msra.mxu1 %v14916_v61  ;;  %v14834_v61 = vld [vmem:[%s18626_s5 + $0x6c4] ss:$8 sps:$4 sm:$0xff]  }
 0x854   : > { %9299 = vmatpush1.bf16.msra.mxu0 %v14754_v21  ;;  %v9091_v21 = vld [vmem:[#allocation7 + $0x8] sm:$0x1f] }
 0x855   : > { %9300 = vmatprep.subr.bf16.mxu0 %v14759_v29  ;;  %v9385_v29 = vrot.slane %v9349_v28, 1  ;;  %v14829_v28 = vld [vmem:[%s18626_s5 + $0x6b0] ss:$8 sps:$4 sm:$0xff]  }
 0x858   : > { %9301 = vmatpush1.bf16.msra.mxu0 %v14757_v46  ;;  %v14799_v46 = vld [vmem:[%s18626_s5 + $0x610] ss:$8 sps:$4 sm:$0xff]  }
 0x859   : > { %9302 = vmatprep.subr.bf16.mxu0 %v14762_v30  ;;  %v14922_v30 = vld [vmem:[%s18626_s5 + $0x190] ss:$8 sps:$4 sm:$0xff]  }
 0x85c   : > { %9303 = vmatpush1.bf16.msra.mxu0 %v14760_v42  ;;  %v14924_v42 = vld [vmem:[%s18626_s5 + $0x194] ss:$8 sps:$4 sm:$0xff]  }
 0x85d   : > { %9304 = vmatprep.subr.bf16.mxu0 %v14765_v57  ;;  %v14804_v57 = vld [vmem:[%s18626_s5 + $0x624] ss:$8 sps:$4 sm:$0xff]   ;;  %8039 = vmatprep.subr.bf16.mxu1 %v14924_v42 }
 0x85e   : > { %8040 = vmatpush1.bf16.msra.mxu1 %v14922_v30  ;;  %v14835_v30 = vld [vmem:[%s18626_s5 + $0x6d0] ss:$8 sps:$4 sm:$0xff]   ;;  %v14990_v42 = vld [vmem:[%s18626_s5 + $0x44] ss:$8 sps:$4 sm:$0xff]  }
 0x860   : > { %9305 = vmatpush1.bf16.msra.mxu0 %v14763_v31  ;;  %v14802_v31 = vld [vmem:[%s18626_s5 + $0x620] ss:$8 sps:$4 sm:$0xff]  }
 0x861   : > { %9306 = vmatprep.subr.bf16.mxu0 %v14768_v34  ;;  %v14928_v34 = vld [vmem:[%s18626_s5 + $0x1a0] ss:$8 sps:$4 sm:$0xff]  }
 0x864   : > { %9307 = vmatpush1.bf16.msra.mxu0 %v14766_v41  ;;  %v14930_v41 = vld [vmem:[%s18626_s5 + $0x1a4] ss:$8 sps:$4 sm:$0xff]  }
 0x865   : > { %9308 = vmatprep.subr.bf16.mxu0 %v14771_v48  ;;  %v14807_v48 = vld [vmem:[%s18626_s5 + $0x634] ss:$8 sps:$4 sm:$0xff]   ;;  %8041 = vmatprep.subr.bf16.mxu1 %v14930_v41  ;;  %v9597_v41 = vld [vmem:[#allocation7 + $0x10] sm:$0x1] }
 0x866   : > { %8042 = vmatpush1.bf16.msra.mxu1 %v14928_v34  ;;  %v14838_v34 = vld [vmem:[%s18626_s5 + $0x6e0] ss:$8 sps:$4 sm:$0xff]  }
 0x868   : > { %9309 = vmatpush1.bf16.msra.mxu0 %v14769_v24  ;;  %v14805_v24 = vld [vmem:[%s18626_s5 + $0x630] ss:$8 sps:$4 sm:$0xff]  }
 0x869   : > { %9310 = vmatprep.subr.bf16.mxu0 %v14774_v27  ;;  %v14934_v27 = vld [vmem:[%s18626_s5 + $0x1b0] ss:$8 sps:$4 sm:$0xff]  }
 0x86c   : > { %9311 = vmatpush1.bf16.msra.mxu0 %v14772_v19  ;;  %v14936_v19 = vld [vmem:[%s18626_s5 + $0x1b4] ss:$8 sps:$4 sm:$0xff]  }
 0x86d   : > { %9312 = vmatprep.subr.bf16.mxu0 %v14777_v58  ;;  %8043 = vmatprep.subr.bf16.mxu1 %v14936_v19  ;;  %v14940_v58 = vld [vmem:[%s18626_s5 + $0x1c0] ss:$8 sps:$4 sm:$0xff]   ;;  %v9601_v19 = vrot.slane %v9597_v41, 2  ;;  %v14877_v41 = vld [vmem:[%s18626_s5 + $0x790] ss:$8 sps:$4 sm:$0xff]  }
 0x86e   : > { %8044 = vmatpush1.bf16.msra.mxu1 %v14934_v27  ;;  %v9600_v27 = vrot.slane %v17292_v33, 2  ;;  %v14846_v33 = vld [vmem:[%s18626_s5 + $0x704] ss:$8 sps:$4 sm:$0xff]  }
 0x870   : > { %9313 = vmatpush1.bf16.msra.mxu0 %v14775_v36  ;;  %v14942_v36 = vld [vmem:[%s18626_s5 + $0x1c4] ss:$8 sps:$4 sm:$0xff]  }
 0x871   : > { %9314 = vmatprep.subr.bf16.mxu0 %v14780_v44  ;;  %8045 = vmatprep.subr.bf16.mxu1 %v14942_v36  ;;  %v14946_v44 = vld [vmem:[%s18626_s5 + $0x1d0] ss:$8 sps:$4 sm:$0xff]   ;;  %v9341_v36 = vld [vmem:[#allocation7 + $0x8] sm:$0x3e] }
 0x872   : > { %8046 = vmatpush1.bf16.msra.mxu1 %v14940_v58  ;;  %v15002_v58 = vld [vmem:[%s18626_s5 + $0x64] ss:$8 sps:$4 sm:$0xff]  }
 0x874   : > { %9315 = vmatpush1.bf16.msra.mxu0 %v14778_v1  ;;  %v14948_v1 = vld [vmem:[%s18626_s5 + $0x1d4] ss:$8 sps:$4 sm:$0xff]  }
 0x875   : > { %9316 = vmatprep.subr.bf16.mxu0 %v14783_v10  ;;  %8047 = vmatprep.subr.bf16.mxu1 %v14948_v1  ;;  %v14952_v10 = vld [vmem:[%s18626_s5 + $0x1e0] ss:$8 sps:$4 sm:$0xff]   ;;  %v9384_v1 = vrot.slane %v9341_v36, 1  ;;  %v15066_v36 = vld [vmem:[%s18626_s5 + $0x210] ss:$8 sps:$4 sm:$0xff]  }
 0x876   : > { %8048 = vmatpush1.bf16.msra.mxu1 %v14946_v44  ;;  %v14844_v44 = vld [vmem:[%s18626_s5 + $0x700] ss:$8 sps:$4 sm:$0xff]  }
 0x878   : > { %9317 = vmatpush1.bf16.msra.mxu0 %v14781_v60  ;;  %v14954_v60 = vld [vmem:[%s18626_s5 + $0x1e4] ss:$8 sps:$4 sm:$0xff]  }
 0x879   : > { %9318 = vmatprep.subr.bf16.mxu0 %v14786_v62  ;;  %8049 = vmatprep.subr.bf16.mxu1 %v14954_v60  ;;  %v14958_v62 = vld [vmem:[%s18626_s5 + $0x1f0] ss:$8 sps:$4 sm:$0xff]  }
 0x87a   : > { %8050 = vmatpush1.bf16.msra.mxu1 %v14952_v10  ;;  %v15006_v60 = vld [vmem:[%s18626_s5 + $0x70] ss:$8 sps:$4 sm:$0xff]  }
 0x87c   : > { %9319 = vmatpush1.bf16.msra.mxu0 %v14784_v32  ;;  %v14960_v32 = vld [vmem:[%s18626_s5 + $0x1f4] ss:$8 sps:$4 sm:$0xff]  }
 0x87d   : > { %9320 = vmatprep.subr.bf16.mxu0 %v14789_v2  ;;  %8051 = vmatprep.subr.bf16.mxu1 %v14960_v32  ;;  %v7815_v2 = vld [vmem:[#allocation7] sm:$0x7e]  ;;  %v15012_v32 = vld [vmem:[%s18626_s5 + $0x80] ss:$8 sps:$4 sm:$0xff]  }
 0x87e   : > { %8052 = vmatpush1.bf16.msra.mxu1 %v14958_v62  ;;  %v7817_v6 = vshrl.u32 %v7815_v2, 16  ;;  %v7819_v39 = vshll.u32 %v7815_v2, 16  ;;  %v14852_v62 = vld [vmem:[%s18626_s5 + $0x724] ss:$8 sps:$4 sm:$0xff]   ;;  %v14855_v2 = vld [vmem:[%s18626_s5 + $0x734] ss:$8 sps:$4 sm:$0xff]  }
 0x87f   : > { %8224 = vmatprep.subr.bf16.mxu1 %v14966_v4  ;;  %v15018_v4 = vld [vmem:[%s18626_s5 + $0x90] ss:$8 sps:$4 sm:$0xff]  }
 0x880   : > { %9321 = vmatpush1.bf16.msra.mxu0 %v14787_v23  ;;  %v14825_v23 = vld [vmem:[%s18626_s5 + $0x694] ss:$8 sps:$4 sm:$0xff]  }
 0x881   : > { %9322 = vmatprep.subr.bf16.mxu0 %v14792_v37  ;;  %v7821_v37 = vrot.slane %v7819_v39, 1  ;;  %v14858_v39 = vld [vmem:[%s18626_s5 + $0x744] ss:$8 sps:$4 sm:$0xff]  }
 0x883   : > { %v7822_v22 = vor.u32 %v7821_v37, %v7817_v6  ;;  %v15026_v6 = vld [vmem:[%s18626_s5 + $0xa4] ss:$8 sps:$4 sm:$0xff]   ;;  %v15024_v37 = vld [vmem:[%s18626_s5 + $0xa0] ss:$8 sps:$4 sm:$0xff]  }
 0x884   : > { %9323 = vmatpush1.bf16.msra.mxu0 %v14790_v17  ;;  %v14823_v17 = vld [vmem:[%s18626_s5 + $0x690] ss:$8 sps:$4 sm:$0xff]  }
 0x885   : > { %9324 = vmatprep.subr.bf16.mxu0 %v14795_v40  ;;  %v7857_v40 = vrot.slane %v7814_v7, 1  ;;  %v7858_v14 = vrot.slane %v7822_v22, 1  ;;  %v14856_v7 = vld [vmem:[%s18626_s5 + $0x740] ss:$8 sps:$4 sm:$0xff]   ;;  %v15030_v22 = vld [vmem:[%s18626_s5 + $0xb0] ss:$8 sps:$4 sm:$0xff]  }
 0x887   : > { %8053 = vmatprep.mubr.bf16.mxu1 %v7858_v14  ;;  %v15038_v14 = vld [vmem:[%s18626_s5 + $0xc4] ss:$8 sps:$4 sm:$0xff]  }
 0x888   : > { %9325 = vmatpush1.bf16.msra.mxu0 %v14793_v15  ;;  %v14826_v15 = vld [vmem:[%s18626_s5 + $0x6a0] ss:$8 sps:$4 sm:$0xff]   ;;  %8054 = vmatmul.mubr.bf16.vlgmr.msra.gmra.mrb[20].mxu1 %v7857_v40  ;;  %v14859_v40 = vld [vmem:[%s18626_s5 + $0x750] ss:$8 sps:$4 sm:$0xff]  }
 0x889   : > { %9548 = vmatprep.subr.bf16.mxu0 %v14798_v3  ;;  %8225 = vmatpush1.bf16.msra.mxu1 %v14964_v59  ;;  %v14970_v3 = vld [vmem:[%s18626_s5 + $0x10] ss:$8 sps:$4 sm:$0xff]   ;;  %v14864_v59 = vld [vmem:[%s18626_s5 + $0x764] ss:$8 sps:$4 sm:$0xff]  }
 0x88a   : > { %8226 = vmatprep.subr.bf16.mxu1 %v14972_v25  ;;  %v14862_v25 = vld [vmem:[%s18626_s5 + $0x760] ss:$8 sps:$4 sm:$0xff]  }
 0x88b   : > { %9327 = vmatmul.mubr.bf16.vlgmr.msra.gmra.mrb[36].mxu0 %v9091_v21  ;;  %v14984_v21 = vld [vmem:[%s18626_s5 + $0x34] ss:$8 sps:$4 sm:$0xff]  }
 0x88c   : > { %9549 = vmatpush1.bf16.msra.mxu0 %v14796_v56  ;;  %9580 = vmatprep.mubr.bf16.mxu0 %v9385_v29  ;;  %v14978_v56 = vld [vmem:[%s18626_s5 + $0x24] ss:$8 sps:$4 sm:$0xff]   ;;  %v14837_v29 = vld [vmem:[%s18626_s5 + $0x6d4] ss:$8 sps:$4 sm:$0xff]  }
 0x88d   : > { %9550 = vmatprep.subr.bf16.mxu0 %v14801_v12  ;;  %8227 = vmatpush1.bf16.msra.mxu1 %v14970_v3  ;;  %v14832_v12 = vld [vmem:[%s18626_s5 + $0x6c0] ss:$8 sps:$4 sm:$0xff]   ;;  %v14867_v3 = vld [vmem:[%s18626_s5 + $0x774] ss:$8 sps:$4 sm:$0xff]  }
 0x88e   : > { %8228 = vmatprep.subr.bf16.mxu1 %v14978_v56  ;;  %v14865_v56 = vld [vmem:[%s18626_s5 + $0x770] ss:$8 sps:$4 sm:$0xff]  }
 0x890   : > { %9551 = vmatpush1.bf16.msra.mxu0 %v14799_v46  ;;  %v14982_v46 = vld [vmem:[%s18626_s5 + $0x30] ss:$8 sps:$4 sm:$0xff]  }
 0x891   : > { %9552 = vmatprep.subr.bf16.mxu0 %v14804_v57  ;;  %8229 = vmatpush1.bf16.msra.mxu1 %v14976_v5  ;;  %v14840_v57 = vld [vmem:[%s18626_s5 + $0x6e4] ss:$8 sps:$4 sm:$0xff]  }
 0x892   : > { %8230 = vmatprep.subr.bf16.mxu1 %v14984_v21  ;;  %v14873_v5 = vld [vmem:[%s18626_s5 + $0x784] ss:$8 sps:$4 sm:$0xff]   ;;  %v14871_v21 = vld [vmem:[%s18626_s5 + $0x780] ss:$8 sps:$4 sm:$0xff]  }
 0x894   : > { %9553 = vmatpush1.bf16.msra.mxu0 %v14802_v31  ;;  %v14988_v31 = vld [vmem:[%s18626_s5 + $0x40] ss:$8 sps:$4 sm:$0xff]  }
 0x895   : > { %9554 = vmatprep.subr.bf16.mxu0 %v14807_v48  ;;  %8231 = vmatpush1.bf16.msra.mxu1 %v14982_v46  ;;  %v14996_v48 = vld [vmem:[%s18626_s5 + $0x54] ss:$8 sps:$4 sm:$0xff]  }
 0x896   : > { %8232 = vmatprep.subr.bf16.mxu1 %v14990_v42  ;;  %v7773_v46 = vld [vmem:[#allocation7] sm:$0x3f] }
 0x897   : > { %v7775_v42 = vshrl.u32 %v7773_v46, 16 }
 0x898   : > { %9555 = vmatpush1.bf16.msra.mxu0 %v14805_v24  ;;  %v14843_v24 = vld [vmem:[%s18626_s5 + $0x6f4] ss:$8 sps:$4 sm:$0xff]  }
 0x899   : > { %9556 = vmatprep.subr.bf16.mxu0 %v14810_v35  ;;  %8233 = vmatpush1.bf16.msra.mxu1 %v14988_v31  ;;  %v14994_v35 = vld [vmem:[%s18626_s5 + $0x50] ss:$8 sps:$4 sm:$0xff]  }
 0x89a   : > { %8234 = vmatprep.subr.bf16.mxu1 %v14996_v48  ;;  %v15054_v31 = vld [vmem:[%s18626_s5 + $0xf0] ss:$8 sps:$4 sm:$0xff]   ;;  %v15062_v48 = vld [vmem:[%s18626_s5 + $0x204] ss:$8 sps:$4 sm:$0xff]  }
 0x89c   : > { %9557 = vmatpush1.bf16.msra.mxu0 %v14808_v11  ;;  %v14841_v11 = vld [vmem:[%s18626_s5 + $0x6f0] ss:$8 sps:$4 sm:$0xff]  }
 0x89d   : > { %9558 = vmatprep.subr.bf16.mxu0 %v14813_v55  ;;  %v9602_v55 = vsel %vm1847_vm6, %v9600_v27, %v9601_v19  ;;  %8235 = vmatpush1.bf16.msra.mxu1 %v14994_v35  ;;  %v15060_v19 = vld [vmem:[%s18626_s5 + $0x200] ss:$8 sps:$4 sm:$0xff]   ;;  %v7772_v35 = vld [vmem:[#allocation7] sm:$0x1f] }
 0x89e   : > { %8236 = vmatprep.subr.bf16.mxu1 %v15002_v58  ;;  %v9638_v10 = vrot.slane %v9602_v55, 2  ;;  %v15068_v58 = vld [vmem:[%s18626_s5 + $0x214] ss:$8 sps:$4 sm:$0xff]   ;;  %v14889_v55 = vld [vmem:[%s18626_s5 + $0x7b0] ss:$8 sps:$4 sm:$0xff]  }
 0x8a0   : > { %9559 = vmatpush1.bf16.msra.mxu0 %v14811_v53  ;;  %v15000_v53 = vld [vmem:[%s18626_s5 + $0x60] ss:$8 sps:$4 sm:$0xff]  }
 0x8a1   : > { %9560 = vmatprep.subr.bf16.mxu0 %v14816_v20  ;;  %v14849_v20 = vld [vmem:[%s18626_s5 + $0x714] ss:$8 sps:$4 sm:$0xff]   ;;  %8237 = vmatpush1.bf16.msra.mxu1 %v15000_v53  ;;  %v9855_v53 = vrot.slane %v9853_v13, 1  ;;  %v14895_v13 = vld [vmem:[%s18626_s5 + $0x7c0] ss:$8 sps:$4 sm:$0xff]  }
 0x8a4   : > { %9561 = vmatpush1.bf16.msra.mxu0 %v14814_v16  ;;  %v15008_v16 = vld [vmem:[%s18626_s5 + $0x74] ss:$8 sps:$4 sm:$0xff]  }
 0x8a5   : > { %9562 = vmatprep.subr.bf16.mxu0 %v14819_v63  ;;  %v14847_v63 = vld [vmem:[%s18626_s5 + $0x710] ss:$8 sps:$4 sm:$0xff]   ;;  %8238 = vmatprep.subr.bf16.mxu1 %v15008_v16  ;;  %v15072_v16 = vld [vmem:[%s18626_s5 + $0x220] ss:$8 sps:$4 sm:$0xff]  }
 0x8a6   : > { %8239 = vmatpush1.bf16.msra.mxu1 %v15006_v60  ;;  %v15080_v60 = vld [vmem:[%s18626_s5 + $0x234] ss:$8 sps:$4 sm:$0xff]  }
 0x8a8   : > { %9563 = vmatpush1.bf16.msra.mxu0 %v14817_v43  ;;  %v15014_v43 = vld [vmem:[%s18626_s5 + $0x84] ss:$8 sps:$4 sm:$0xff]  }
 0x8a9   : > { %9564 = vmatprep.subr.bf16.mxu0 %v14822_v51  ;;  %v14850_v51 = vld [vmem:[%s18626_s5 + $0x720] ss:$8 sps:$4 sm:$0xff]   ;;  %8240 = vmatprep.subr.bf16.mxu1 %v15014_v43  ;;  %v15078_v43 = vld [vmem:[%s18626_s5 + $0x230] ss:$8 sps:$4 sm:$0xff]  }
 0x8aa   : > { %8241 = vmatpush1.bf16.msra.mxu1 %v15012_v32 }
 0x8ac   : > { %9565 = vmatpush1.bf16.msra.mxu0 %v14820_v9  ;;  %v15020_v9 = vld [vmem:[%s18626_s5 + $0x94] ss:$8 sps:$4 sm:$0xff]  }
 0x8ad   : > { %9566 = vmatprep.subr.bf16.mxu0 %v14825_v23  ;;  %v14853_v23 = vld [vmem:[%s18626_s5 + $0x730] ss:$8 sps:$4 sm:$0xff]   ;;  %8242 = vmatprep.subr.bf16.mxu1 %v15020_v9 }
 0x8ae   : > { %8243 = vmatpush1.bf16.msra.mxu1 %v15018_v4  ;;  %v14907_v4 = vld [vmem:[%s18626_s5 + $0x7e0] ss:$8 sps:$4 sm:$0xff]  }
 0x8af   : > { %8244 = vmatprep.subr.bf16.mxu1 %v15026_v6  ;;  %v14915_v6 = vld [vmem:[%s18626_s5 + $0x7f4] ss:$8 sps:$4 sm:$0xff]  }
 0x8b0   : > { %9567 = vmatpush1.bf16.msra.mxu0 %v14823_v17  ;;  %v15032_v17 = vld [vmem:[%s18626_s5 + $0xb4] ss:$8 sps:$4 sm:$0xff]  }
 0x8b1   : > { %9568 = vmatprep.subr.bf16.mxu0 %v14828_v0  ;;  %v14861_v0 = vld [vmem:[%s18626_s5 + $0x754] ss:$8 sps:$4 sm:$0xff]  }
 0x8b2   : > { %8245 = vmatpush1.bf16.msra.mxu1 %v15024_v37 }
 0x8b3   : > { %8246 = vmatprep.subr.bf16.mxu1 %v15032_v17 }
 0x8b4   : > { %9569 = vmatpush1.bf16.msra.mxu0 %v14826_v15  ;;  %v15036_v15 = vld [vmem:[%s18626_s5 + $0xc0] ss:$8 sps:$4 sm:$0xff]  }
 0x8b5   : > { %9570 = vmatprep.subr.bf16.mxu0 %v14831_v50  ;;  %v15044_v50 = vld [vmem:[%s18626_s5 + $0xd4] ss:$8 sps:$4 sm:$0xff]  }
 0x8b6   : > { %8247 = vmatpush1.bf16.msra.mxu1 %v15030_v22  ;;  %v14913_v22 = vld [vmem:[%s18626_s5 + $0x7f0] ss:$8 sps:$4 sm:$0xff]  }
 0x8b7   : > { %8248 = vmatprep.subr.bf16.mxu1 %v15038_v14  ;;  %v14921_v14 = vld [vmem:[%s18626_s5 + $0x804] ss:$8 sps:$4 sm:$0xff]  }
 0x8b8   : > { %9571 = vmatpush1.bf16.msra.mxu0 %v14829_v28  ;;  %v15042_v28 = vld [vmem:[%s18626_s5 + $0xd0] ss:$8 sps:$4 sm:$0xff]  }
 0x8b9   : > { %9572 = vmatprep.subr.bf16.mxu0 %v14834_v61  ;;  %v15050_v61 = vld [vmem:[%s18626_s5 + $0xe4] ss:$8 sps:$4 sm:$0xff]  }
 0x8ba   : > { %8249 = vmatpush1.bf16.msra.mxu1 %v15036_v15 }
 0x8bb   : > { %8250 = vmatprep.subr.bf16.mxu1 %v15044_v50  ;;  %v15096_v50 = vld [vmem:[%s18626_s5 + $0x260] ss:$8 sps:$4 sm:$0xff]  }
 0x8bc   : > { %9573 = vmatpush1.bf16.msra.mxu0 %v14832_v12  ;;  %v15048_v12 = vld [vmem:[%s18626_s5 + $0xe0] ss:$8 sps:$4 sm:$0xff]  }
 0x8bd   : > { %9574 = vmatprep.subr.bf16.mxu0 %v14837_v29  ;;  %v15056_v29 = vld [vmem:[%s18626_s5 + $0xf4] ss:$8 sps:$4 sm:$0xff]  }
 0x8be   : > { %8251 = vmatpush1.bf16.msra.mxu1 %v15042_v28 }
 0x8bf   : > { %8252 = vmatprep.subr.bf16.mxu1 %v15050_v61  ;;  %v15104_v61 = vld [vmem:[%s18626_s5 + $0x274] ss:$8 sps:$4 sm:$0xff]  }
 0x8c0   : > { %9575 = vmatpush1.bf16.msra.mxu0 %v14835_v30  ;;  %v14879_v30 = vld [vmem:[%s18626_s5 + $0x794] ss:$8 sps:$4 sm:$0xff]  }
 0x8c1   : > { %9576 = vmatprep.subr.bf16.mxu0 %v14840_v57  ;;  %v7777_v57 = vshll.u32 %v7773_v46, 16  ;;  %v14933_v46 = vld [vmem:[%s18626_s5 + $0x824] ss:$8 sps:$4 sm:$0xff]  }
 0x8c2   : > { %8253 = vmatpush1.bf16.msra.mxu1 %v15048_v12  ;;  %v15102_v12 = vld [vmem:[%s18626_s5 + $0x270] ss:$8 sps:$4 sm:$0xff]  }
 0x8c3   : > { %8254 = vmatprep.subr.bf16.mxu1 %v15056_v29  ;;  %v15110_v29 = vld [vmem:[%s18626_s5 + $0x284] ss:$8 sps:$4 sm:$0xff]  }
 0x8c4   : > { %9577 = vmatpush1.bf16.msra.mxu0 %v14838_v34  ;;  %v7779_v34 = vrot.slane %v7777_v57, 1  ;;  %v15116_v57 = vld [vmem:[%s18626_s5 + $0x294] ss:$8 sps:$4 sm:$0xff]  }
 0x8c5   : > { %9578 = vmatprep.subr.bf16.mxu0 %v14843_v24  ;;  %v14885_v24 = vld [vmem:[%s18626_s5 + $0x7a4] ss:$8 sps:$4 sm:$0xff]  }
 0x8c6   : > { %v7780_v27 = vor.u32 %v7779_v34, %v7775_v42  ;;  %8255 = vmatpush1.bf16.msra.mxu1 %v15054_v31  ;;  %v14931_v42 = vld [vmem:[%s18626_s5 + $0x820] ss:$8 sps:$4 sm:$0xff]   ;;  %v14939_v31 = vld [vmem:[%s18626_s5 + $0x834] ss:$8 sps:$4 sm:$0xff]   ;;  %v15114_v34 = vld [vmem:[%s18626_s5 + $0x290] ss:$8 sps:$4 sm:$0xff]  }
 0x8c7   : > { %8473 = vmatprep.subr.bf16.mxu1 %v15062_v48  ;;  %v15122_v48 = vld [vmem:[%s18626_s5 + $0x2a4] ss:$8 sps:$4 sm:$0xff]  }
 0x8c8   : > { %9579 = vmatpush1.bf16.msra.mxu0 %v14841_v11  ;;  %8256 = vmatprep.mubr.bf16.mxu1 %v7780_v27  ;;  %v14883_v11 = vld [vmem:[%s18626_s5 + $0x7a0] ss:$8 sps:$4 sm:$0xff]  }
 0x8c9   : > { %9801 = vmatprep.subr.bf16.mxu0 %v14846_v33  ;;  %v14891_v33 = vld [vmem:[%s18626_s5 + $0x7b4] ss:$8 sps:$4 sm:$0xff]   ;;  %8257 = vmatmul.mubr.bf16.vlgmr.msra.gmra.mrb[20].mxu1 %v7772_v35  ;;  %v15120_v27 = vld [vmem:[%s18626_s5 + $0x2a0] ss:$8 sps:$4 sm:$0xff]  }
 0x8ca   : > { %8474 = vmatpush1.bf16.msra.mxu1 %v15060_v19  ;;  %v14943_v19 = vld [vmem:[%s18626_s5 + $0x840] ss:$8 sps:$4 sm:$0xff]   ;;  %v15128_v35 = vld [vmem:[%s18626_s5 + $0x2b4] ss:$8 sps:$4 sm:$0xff]  }
 0x8cb   : > { %9581 = vmatmul.mubr.bf16.vlgmr.msra.gmra.mrb[36].mxu0 %v9384_v1  ;;  %8475 = vmatprep.subr.bf16.mxu1 %v15068_v58  ;;  %v14897_v1 = vld [vmem:[%s18626_s5 + $0x7c4] ss:$8 sps:$4 sm:$0xff]   ;;  %v15126_v58 = vld [vmem:[%s18626_s5 + $0x2b0] ss:$8 sps:$4 sm:$0xff]  }
 0x8cc   : > { %9802 = vmatpush1.bf16.msra.mxu0 %v14844_v44  ;;  %9833 = vmatprep.mubr.bf16.mxu0 %v9638_v10  ;;  %v15074_v44 = vld [vmem:[%s18626_s5 + $0x224] ss:$8 sps:$4 sm:$0xff]   ;;  %v9856_v10 = vor.u32 %v9855_v53, %v9851_v26  ;;  %v15132_v53 = vld [vmem:[%s18626_s5 + $0x2c0] ss:$8 sps:$4 sm:$0xff]  }
 0x8cd   : > { %9803 = vmatprep.subr.bf16.mxu0 %v14849_v20  ;;  %v9860_v20 = vrot.slane %v9858_v54, 1  ;;  %v14903_v54 = vld [vmem:[%s18626_s5 + $0x7d4] ss:$8 sps:$4 sm:$0xff]  }
 0x8ce   : > { %8476 = vmatpush1.bf16.msra.mxu1 %v15066_v36  ;;  %v15134_v36 = vld [vmem:[%s18626_s5 + $0x2c4] ss:$8 sps:$4 sm:$0xff]  }
 0x8cf   : > { %8477 = vmatprep.subr.bf16.mxu1 %v15074_v44  ;;  %v9861_v26 = vsel %vm1146_vm2, %v9856_v10, %v9860_v20  ;;  %v14955_v44 = vld [vmem:[%s18626_s5 + $0x860] ss:$8 sps:$4 sm:$0xff]   ;;  %v15146_v10 = vld [vmem:[%s18626_s5 + $0x2e4] ss:$8 sps:$4 sm:$0xff]  }
 0x8d0   : > { %9804 = vmatpush1.bf16.msra.mxu0 %v14847_v63  ;;  %v9864_v63 = vor.u32 %v9862_v38, %v9860_v20  ;;  %v9911_v38 = vshrl.u32 %v9861_v26, 16  ;;  %v9914_v32 = vshll.u32 %v9861_v26, 16  ;;  %v14963_v20 = vld [vmem:[%s18626_s5 + $0x874] ss:$8 sps:$4 sm:$0xff]   ;;  %v15144_v26 = vld [vmem:[%s18626_s5 + $0x2e0] ss:$8 sps:$4 sm:$0xff]  }
 0x8d1   : > { %9805 = vmatprep.subr.bf16.mxu0 %v14852_v62  ;;  %v15086_v62 = vld [vmem:[%s18626_s5 + $0x244] ss:$8 sps:$4 sm:$0xff]  }
 0x8d2   : > { %8478 = vmatpush1.bf16.msra.mxu1 %v15072_v16  ;;  %v9922_v9 = vshll.u32 %v9864_v63, 16  ;;  %v9916_v37 = vrot.slane %v9914_v32, 5  ;;  %v15138_v16 = vld [vmem:[%s18626_s5 + $0x2d0] ss:$8 sps:$4 sm:$0xff]   ;;  %v14975_v32 = vld [vmem:[%s18626_s5 + $0x894] ss:$8 sps:$4 sm:$0xff]  }
 0x8d3   : > { %8479 = vmatprep.subr.bf16.mxu1 %v15080_v60  ;;  %v14969_v60 = vld [vmem:[%s18626_s5 + $0x884] ss:$8 sps:$4 sm:$0xff]  }
 0x8d4   : > { %9806 = vmatpush1.bf16.msra.mxu0 %v14850_v51  ;;  %v9919_v51 = vshrl.u32 %v9864_v63, 16  ;;  %v9924_v17 = vrot.slane %v9922_v9, 5  ;;  %v15255_v63 = vld [vmem:[#allocation7] sm:$0xf0]  ;;  %v10137_v9 = vld [vmem:[#allocation7 + $0x8] sm:$0xc0] }
 0x8d5   : > { %9807 = vmatprep.subr.bf16.mxu0 %v14855_v2  ;;  %v15084_v2 = vld [vmem:[%s18626_s5 + $0x240] ss:$8 sps:$4 sm:$0xff]  }
 0x8d6   : > { %8480 = vmatpush1.bf16.msra.mxu1 %v15078_v43  ;;  %v8272_v43 = vrot.slane %v15255_v63, 2  ;;  %v15059_v63 = vld [vmem:[%s18626_s5 + $0x974] ss:$8 sps:$4 sm:$0xff]  }
 0x8d7   : > { %8481 = vmatprep.subr.bf16.mxu1 %v15086_v62  ;;  %v14967_v62 = vld [vmem:[%s18626_s5 + $0x880] ss:$8 sps:$4 sm:$0xff]  }
 0x8d8   : > { %9808 = vmatpush1.bf16.msra.mxu0 %v14853_v23  ;;  %v15092_v23 = vld [vmem:[%s18626_s5 + $0x254] ss:$8 sps:$4 sm:$0xff]  }
 0x8d9   : > { %9809 = vmatprep.subr.bf16.mxu0 %v14858_v39  ;;  %v9913_v39 = vrot.slane %v9911_v38, 4 }
 0x8da   : > { %8482 = vmatpush1.bf16.msra.mxu1 %v15084_v2  ;;  %v15150_v2 = vld [vmem:[%s18626_s5 + $0x2f0] ss:$8 sps:$4 sm:$0xff]  }
 0x8db   : > { %8483 = vmatprep.subr.bf16.mxu1 %v15092_v23  ;;  %v9917_v15 = vor.u32 %v9916_v37, %v9913_v39  ;;  %v14973_v23 = vld [vmem:[%s18626_s5 + $0x890] ss:$8 sps:$4 sm:$0xff]   ;;  %v10141_v39 = vshll.u32 %v10137_v9, 16 }
 0x8dc   : > { %9810 = vmatpush1.bf16.msra.mxu0 %v14856_v7  ;;  %v9921_v7 = vrot.slane %v9919_v51, 4 }
 0x8dd   : > { %9811 = vmatprep.subr.bf16.mxu0 %v14861_v0  ;;  %v15090_v0 = vld [vmem:[%s18626_s5 + $0x250] ss:$8 sps:$4 sm:$0xff]  }
 0x8de   : > { %8484 = vmatpush1.bf16.msra.mxu1 %v15090_v0  ;;  %v14987_v0 = vld [vmem:[%s18626_s5 + $0x8b4] ss:$8 sps:$4 sm:$0xff]  }
 0x8e0   : > { %9812 = vmatpush1.bf16.msra.mxu0 %v14859_v40  ;;  %v15098_v40 = vld [vmem:[%s18626_s5 + $0x264] ss:$8 sps:$4 sm:$0xff]  }
 0x8e1   : > { %9813 = vmatprep.subr.bf16.mxu0 %v14864_v59  ;;  %v9595_v59 = vld [vmem:[#allocation7 + $0x8] sm:$0x7c]  ;;  %8485 = vmatprep.subr.bf16.mxu1 %v15098_v40  ;;  %v10143_v40 = vrot.slane %v10141_v39, 1 }
 0x8e2   : > { %v9637_v28 = vrot.slane %v9595_v59, 2  ;;  %8486 = vmatpush1.bf16.msra.mxu1 %v15096_v50  ;;  %v14985_v59 = vld [vmem:[%s18626_s5 + $0x8b0] ss:$8 sps:$4 sm:$0xff]   ;;  %v15101_v39 = vld [vmem:[%s18626_s5 + $0x9e4] ss:$8 sps:$4 sm:$0xff]  }
 0x8e3   : > { %8487 = vmatprep.subr.bf16.mxu1 %v15104_v61 }
 0x8e4   : > { %9814 = vmatpush1.bf16.msra.mxu0 %v14862_v25  ;;  %v9925_v25 = vor.u32 %v9924_v17, %v9921_v7  ;;  %v14979_v7 = vld [vmem:[%s18626_s5 + $0x8a0] ss:$8 sps:$4 sm:$0xff]  }
 0x8e5   : > { %9815 = vmatprep.subr.bf16.mxu0 %v14867_v3  ;;  %v14919_v3 = vld [vmem:[%s18626_s5 + $0x800] ss:$8 sps:$4 sm:$0xff]  }
 0x8e6   : > { %8488 = vmatpush1.bf16.msra.mxu1 %v15102_v12  ;;  %v18072_v17 = vld [vmem:[#allocation7 + $0x10] sm:$0x7]  ;;  %v14997_v12 = vld [vmem:[%s18626_s5 + $0x8d0] ss:$8 sps:$4 sm:$0xff]  }
 0x8e7   : > { %8489 = vmatprep.subr.bf16.mxu1 %v15110_v29 }
 0x8e8   : > { %9816 = vmatpush1.bf16.msra.mxu0 %v14865_v56  ;;  %v14927_v56 = vld [vmem:[%s18626_s5 + $0x814] ss:$8 sps:$4 sm:$0xff]  }
 0x8e9   : > { %9817 = vmatprep.subr.bf16.mxu0 %v14873_v5  ;;  %v9926_v5 = vsel %vm6241_vm10, %v9917_v15, %v9925_v25  ;;  %v14993_v15 = vld [vmem:[%s18626_s5 + $0x8c4] ss:$8 sps:$4 sm:$0xff]  }
 0x8ec   : > { %9818 = vmatpush1.bf16.msra.mxu0 %v14871_v21  ;;  %v14925_v21 = vld [vmem:[%s18626_s5 + $0x810] ss:$8 sps:$4 sm:$0xff]  }
 0x8ed   : > { %9819 = vmatprep.subr.bf16.mxu0 %v14879_v30  ;;  %v15108_v30 = vld [vmem:[%s18626_s5 + $0x280] ss:$8 sps:$4 sm:$0xff]  }
 0x8ee   : > { %8490 = vmatpush1.bf16.msra.mxu1 %v15108_v30 }
 0x8ef   : > { %8491 = vmatprep.subr.bf16.mxu1 %v15116_v57  ;;  %v15003_v57 = vld [vmem:[%s18626_s5 + $0x8e0] ss:$8 sps:$4 sm:$0xff]  }
 0x8f0   : > { %9820 = vmatpush1.bf16.msra.mxu0 %v14877_v41  ;;  %v14937_v41 = vld [vmem:[%s18626_s5 + $0x830] ss:$8 sps:$4 sm:$0xff]  }
 0x8f1   : > { %9821 = vmatprep.subr.bf16.mxu0 %v14885_v24  ;;  %v14945_v24 = vld [vmem:[%s18626_s5 + $0x844] ss:$8 sps:$4 sm:$0xff]  }
 0x8f2   : > { %8492 = vmatpush1.bf16.msra.mxu1 %v15114_v34 }
 0x8f3   : > { %8493 = vmatprep.subr.bf16.mxu1 %v15122_v48 }
 0x8f4   : > { %9822 = vmatpush1.bf16.msra.mxu0 %v14883_v11  ;;  %v14951_v11 = vld [vmem:[%s18626_s5 + $0x854] ss:$8 sps:$4 sm:$0xff]  }
 0x8f5   : > { %9823 = vmatprep.subr.bf16.mxu0 %v14891_v33  ;;  %v14949_v33 = vld [vmem:[%s18626_s5 + $0x850] ss:$8 sps:$4 sm:$0xff]  }
 0x8f6   : > { %8494 = vmatpush1.bf16.msra.mxu1 %v15120_v27  ;;  %v15009_v27 = vld [vmem:[%s18626_s5 + $0x8f0] ss:$8 sps:$4 sm:$0xff]  }
 0x8f7   : > { %8495 = vmatprep.subr.bf16.mxu1 %v15128_v35 }
 0x8f8   : > { %9824 = vmatpush1.bf16.msra.mxu0 %v14889_v55  ;;  %v14957_v55 = vld [vmem:[%s18626_s5 + $0x864] ss:$8 sps:$4 sm:$0xff]  }
 0x8f9   : > { %9825 = vmatprep.subr.bf16.mxu0 %v14897_v1  ;;  %v15140_v1 = vld [vmem:[%s18626_s5 + $0x2d4] ss:$8 sps:$4 sm:$0xff]  }
 0x8fa   : > { %8496 = vmatpush1.bf16.msra.mxu1 %v15126_v58  ;;  %v15015_v58 = vld [vmem:[%s18626_s5 + $0x900] ss:$8 sps:$4 sm:$0xff]  }
 0x8fb   : > { %8497 = vmatprep.subr.bf16.mxu1 %v15134_v36 }
 0x8fc   : > { %9826 = vmatpush1.bf16.msra.mxu0 %v14895_v13  ;;  %v14961_v13 = vld [vmem:[%s18626_s5 + $0x870] ss:$8 sps:$4 sm:$0xff]  }
 0x8fd   : > { %9827 = vmatprep.subr.bf16.mxu0 %v14903_v54  ;;  %v8269_v54 = vld [vmem:[#allocation7 + $0x8] sm:$0x1] }
 0x8fe   : > { %8498 = vmatpush1.bf16.msra.mxu1 %v15132_v53  ;;  %v15029_v53 = vld [vmem:[%s18626_s5 + $0x924] ss:$8 sps:$4 sm:$0xff]  }
 0x8ff   : > { %8499 = vmatprep.subr.bf16.mxu1 %v15140_v1  ;;  %v15033_v1 = vld [vmem:[%s18626_s5 + $0x930] ss:$8 sps:$4 sm:$0xff]  }
 0x900   : > { %9828 = vmatpush1.bf16.msra.mxu0 %v14901_v8  ;;  %v8273_v8 = vrot.slane %v8269_v54, 2  ;;  %v15051_v54 = vld [vmem:[%s18626_s5 + $0x960] ss:$8 sps:$4 sm:$0xff]  }
 0x901   : > { %9829 = vmatprep.subr.bf16.mxu0 %v14909_v45  ;;  %v15152_v45 = vld [vmem:[%s18626_s5 + $0x2f4] ss:$8 sps:$4 sm:$0xff]  }
 0x902   : > { %8500 = vmatpush1.bf16.msra.mxu1 %v15138_v16  ;;  %v8274_v38 = vsel %vm1847_vm6, %v8272_v43, %v8273_v8  ;;  %v15039_v16 = vld [vmem:[%s18626_s5 + $0x940] ss:$8 sps:$4 sm:$0xff]   ;;  %v15057_v43 = vld [vmem:[%s18626_s5 + $0x970] ss:$8 sps:$4 sm:$0xff]   ;;  %v15065_v8 = vld [vmem:[%s18626_s5 + $0x984] ss:$8 sps:$4 sm:$0xff]  }
 0x903   : > { %8501 = vmatprep.subr.bf16.mxu1 %v15146_v10  ;;  %v8310_v51 = vrot.slane %v8274_v38, 2  ;;  %v15045_v10 = vld [vmem:[%s18626_s5 + $0x950] ss:$8 sps:$4 sm:$0xff]   ;;  %v15077_v38 = vld [vmem:[%s18626_s5 + $0x9a4] ss:$8 sps:$4 sm:$0xff]  }
 0x904   : > { %9830 = vmatpush1.bf16.msra.mxu0 %v14907_v4  ;;  %v8267_v4 = vld [vmem:[#allocation7] sm:$0x7c] }
 0x905   : > { %9831 = vmatprep.subr.bf16.mxu0 %v14915_v6  ;;  %8505 = vmatprep.mubr.bf16.mxu1 %v8310_v51  ;;  %v14981_v6 = vld [vmem:[%s18626_s5 + $0x8a4] ss:$8 sps:$4 sm:$0xff]   ;;  %v8309_v37 = vrot.slane %v8267_v4, 2  ;;  %v15083_v51 = vld [vmem:[%s18626_s5 + $0x9b4] ss:$8 sps:$4 sm:$0xff]  }
 0x906   : > { %8502 = vmatpush1.bf16.msra.mxu1 %v15144_v26  ;;  %v15063_v26 = vld [vmem:[%s18626_s5 + $0x980] ss:$8 sps:$4 sm:$0xff]  }
 0x907   : > { %8503 = vmatprep.subr.bf16.mxu1 %v15152_v45  ;;  %v15069_v45 = vld [vmem:[%s18626_s5 + $0x990] ss:$8 sps:$4 sm:$0xff]   ;;  %v15087_v4 = vld [vmem:[%s18626_s5 + $0x9c0] ss:$8 sps:$4 sm:$0xff]  }
 0x908   : > { %9832 = vmatpush1.bf16.msra.mxu0 %v14913_v22  ;;  %v10139_v22 = vshrl.u32 %v10137_v9, 16  ;;  %v15081_v9 = vld [vmem:[%s18626_s5 + $0x9b0] ss:$8 sps:$4 sm:$0xff]  }
 0x909   : > { %10089 = vmatprep.subr.bf16.mxu0 %v14921_v14  ;;  %v10146_v14 = vshll.u32 %v18072_v17, 16 }
 0x90a   : > { %8504 = vmatpush1.bf16.msra.mxu1 %v15150_v2  ;;  %v10144_v50 = vor.u32 %v10143_v40, %v10139_v22  ;;  %v15089_v2 = vld [vmem:[%s18626_s5 + $0x9c4] ss:$8 sps:$4 sm:$0xff]   ;;  %v15107_v22 = vld [vmem:[%s18626_s5 + $0x9f4] ss:$8 sps:$4 sm:$0xff]  }
 0x90b   : > { %9834 = vmatmul.mubr.bf16.vlgmr.msra.gmra.mrb[36].mxu0 %v9637_v28  ;;  %v10148_v25 = vrot.slane %v10146_v14, 1  ;;  %v14991_v28 = vld [vmem:[%s18626_s5 + $0x8c0] ss:$8 sps:$4 sm:$0xff]  }
 0x90c   : > { %10090 = vmatpush1.bf16.msra.mxu0 %v14919_v3  ;;  %10121 = vmatprep.mubr.bf16.mxu0 %v9926_v5  ;;  %v10150_v3 = vshrl.u32 %v18072_v17, 16 }
 0x90d   : > { %10091 = vmatprep.subr.bf16.mxu0 %v14927_v56  ;;  %8506 = vmatmul.mubr.bf16.vlgmr.msra.gmra.mrb[20].mxu1 %v8309_v37  ;;  %v14999_v56 = vld [vmem:[%s18626_s5 + $0x8d4] ss:$8 sps:$4 sm:$0xff]   ;;  %v10149_v5 = vsel %vm1146_vm2, %v10144_v50, %v10148_v25  ;;  %v10420_v37 = vld [vmem:[#allocation7 + $0x10] sm:$0x3f] }
 0x90e   : > { %v10152_v61 = vor.u32 %v10150_v3, %v10148_v25  ;;  %v10194_v29 = vshrl.u32 %v10149_v5, 16  ;;  %v10189_v40 = vrot.slane %v10150_v3, 5  ;;  %v10422_v25 = vshrl.u32 %v10420_v37, 16  ;;  %v15111_v3 = vld [vmem:[%s18626_s5 + $0xa00] ss:$8 sps:$4 sm:$0xff]  }
 0x910   : > { %10092 = vmatpush1.bf16.msra.mxu0 %v14925_v21  ;;  %v15005_v21 = vld [vmem:[%s18626_s5 + $0x8e4] ss:$8 sps:$4 sm:$0xff]   ;;  %v10202_v30 = vshrl.u32 %v10152_v61, 16  ;;  %v10196_v34 = vrot.slane %v10194_v29, 5  ;;  %v15135_v29 = vld [vmem:[%s18626_s5 + $0xa40] ss:$8 sps:$4 sm:$0xff]  }
 0x911   : > { %10093 = vmatprep.subr.bf16.mxu0 %v14933_v46  ;;  %v10197_v46 = vshll.u32 %v10149_v5, 16  ;;  %v15117_v5 = vld [vmem:[%s18626_s5 + $0xa10] ss:$8 sps:$4 sm:$0xff]  }
 0x912   : > { %v10204_v48 = vrot.slane %v10202_v30, 5  ;;  %v15141_v30 = vld [vmem:[%s18626_s5 + $0xa50] ss:$8 sps:$4 sm:$0xff]  }
 0x914   : > { %10094 = vmatpush1.bf16.msra.mxu0 %v14931_v42  ;;  %v10205_v42 = vshll.u32 %v10152_v61, 16 }
 0x915   : > { %10095 = vmatprep.subr.bf16.mxu0 %v14939_v31  ;;  %v15011_v31 = vld [vmem:[%s18626_s5 + $0x8f4] ss:$8 sps:$4 sm:$0xff]  }
 0x918   : > { %10096 = vmatpush1.bf16.msra.mxu0 %v14937_v41  ;;  %v10199_v41 = vrot.slane %v10197_v46, 6  ;;  %v15143_v46 = vld [vmem:[%s18626_s5 + $0xa54] ss:$8 sps:$4 sm:$0xff]  }
 0x919   : > { %10097 = vmatprep.subr.bf16.mxu0 %v14945_v24  ;;  %v10207_v24 = vrot.slane %v10205_v42, 6  ;;  %v15149_v42 = vld [vmem:[%s18626_s5 + $0xa64] ss:$8 sps:$4 sm:$0xff]  }
 0x91a   : > { %v10200_v35 = vor.u32 %v10199_v41, %v10196_v34  ;;  %v15153_v34 = vld [vmem:[%s18626_s5 + $0xa70] ss:$8 sps:$4 sm:$0xff]   ;;  %v15158_v41 = vld [vmem:[%s18626_s5 + $0xa84] ss:$8 sps:$4 sm:$0xff]  }
 0x91c   : > { %10098 = vmatpush1.bf16.msra.mxu0 %v14943_v19  ;;  %v15017_v19 = vld [vmem:[%s18626_s5 + $0x904] ss:$8 sps:$4 sm:$0xff]  }
 0x91d   : > { %10099 = vmatprep.subr.bf16.mxu0 %v14951_v11  ;;  %v10208_v11 = vor.u32 %v10207_v24, %v10204_v48  ;;  %v15156_v48 = vld [vmem:[%s18626_s5 + $0xa80] ss:$8 sps:$4 sm:$0xff]   ;;  %v15161_v24 = vld [vmem:[%s18626_s5 + $0xa94] ss:$8 sps:$4 sm:$0xff]  }
 0x91f   : > { %v10209_v36 = vsel %vm6415_vm11, %v10200_v35, %v10208_v11  ;;  %v11106_v35 = vld [vmem:[%s18636_s15 + $0x88] sm:$0xff]  ;;  %v11089_v11 = vld [vmem:[%s18636_s15] sm:$0xff] }
 0x920   : > { %10100 = vmatpush1.bf16.msra.mxu0 %v14949_v33  ;;  %v15023_v33 = vld [vmem:[%s18626_s5 + $0x914] ss:$8 sps:$4 sm:$0xff]  }
 0x921   : > { %10101 = vmatprep.subr.bf16.mxu0 %v14957_v55  ;;  %v15021_v55 = vld [vmem:[%s18626_s5 + $0x910] ss:$8 sps:$4 sm:$0xff]  }
 0x924   : > { %10102 = vmatpush1.bf16.msra.mxu0 %v14955_v44  ;;  %v15027_v44 = vld [vmem:[%s18626_s5 + $0x920] ss:$8 sps:$4 sm:$0xff]  }
 0x925   : > { %10103 = vmatprep.subr.bf16.mxu0 %v14963_v20  ;;  %v15041_v20 = vld [vmem:[%s18626_s5 + $0x944] ss:$8 sps:$4 sm:$0xff]  }
 0x928   : > { %10104 = vmatpush1.bf16.msra.mxu0 %v14961_v13  ;;  %v15047_v13 = vld [vmem:[%s18626_s5 + $0x954] ss:$8 sps:$4 sm:$0xff]  }
 0x929   : > { %10105 = vmatprep.subr.bf16.mxu0 %v14969_v60  ;;  %v15053_v60 = vld [vmem:[%s18626_s5 + $0x964] ss:$8 sps:$4 sm:$0xff]  }
 0x92c   : > { %10106 = vmatpush1.bf16.msra.mxu0 %v14967_v62  ;;  %v15071_v62 = vld [vmem:[%s18626_s5 + $0x994] ss:$8 sps:$4 sm:$0xff]  }
 0x92d   : > { %10107 = vmatprep.subr.bf16.mxu0 %v14975_v32  ;;  %v15075_v32 = vld [vmem:[%s18626_s5 + $0x9a0] ss:$8 sps:$4 sm:$0xff]  }
 0x930   : > { %10108 = vmatpush1.bf16.msra.mxu0 %v14973_v23  ;;  %v15095_v23 = vld [vmem:[%s18626_s5 + $0x9d4] ss:$8 sps:$4 sm:$0xff]  }
 0x931   : > { %10109 = vmatprep.subr.bf16.mxu0 %v14981_v6  ;;  %v15093_v6 = vld [vmem:[%s18626_s5 + $0x9d0] ss:$8 sps:$4 sm:$0xff]  }
 0x934   : > { %10110 = vmatpush1.bf16.msra.mxu0 %v14979_v7  ;;  %v15099_v7 = vld [vmem:[%s18626_s5 + $0x9e0] ss:$8 sps:$4 sm:$0xff]  }
 0x935   : > { %10111 = vmatprep.subr.bf16.mxu0 %v14987_v0  ;;  %v10424_v0 = vshll.u32 %v10420_v37, 16  ;;  %v15188_v37 = vld [vmem:[%s18626_s5 + $0xb24] ss:$8 sps:$4 sm:$0xff]  }
 0x937   : > { %v10426_v50 = vrot.slane %v10424_v0, 1  ;;  %v15191_v0 = vld [vmem:[%s18626_s5 + $0xb34] ss:$8 sps:$4 sm:$0xff]  }
 0x938   : > { %10112 = vmatpush1.bf16.msra.mxu0 %v14985_v59  ;;  %v10190_v59 = vrot.slane %v10146_v14, 6  ;;  %v15119_v14 = vld [vmem:[%s18626_s5 + $0xa14] ss:$8 sps:$4 sm:$0xff]  }
 0x939   : > { %10113 = vmatprep.subr.bf16.mxu0 %v14993_v15  ;;  %v15105_v15 = vld [vmem:[%s18626_s5 + $0x9f0] ss:$8 sps:$4 sm:$0xff]   ;;  %v10427_v17 = vor.u32 %v10426_v50, %v10422_v25  ;;  %v15200_v50 = vld [vmem:[%s18626_s5 + $0xb64] ss:$8 sps:$4 sm:$0xff]  }
 0x93a   : > { %v15195_v25 = vld [vmem:[%s18626_s5 + $0xb50] ss:$8 sps:$4 sm:$0xff]  }
 0x93c   : > { %10114 = vmatpush1.bf16.msra.mxu0 %v14991_v28  ;;  %v15113_v28 = vld [vmem:[%s18626_s5 + $0xa04] ss:$8 sps:$4 sm:$0xff]  }
 0x93d   : > { %10115 = vmatprep.subr.bf16.mxu0 %v14999_v56  ;;  %v10191_v56 = vor.u32 %v10190_v59, %v10189_v40  ;;  %v15194_v40 = vld [vmem:[%s18626_s5 + $0xb44] ss:$8 sps:$4 sm:$0xff]   ;;  %v15192_v59 = vld [vmem:[%s18626_s5 + $0xb40] ss:$8 sps:$4 sm:$0xff]  }
 0x93f   : > { %v10192_v61 = vsel %vm6415_vm11, %v10188_v52, %v10191_v56  ;;  %v15137_v52 = vld [vmem:[%s18626_s5 + $0xa44] ss:$8 sps:$4 sm:$0xff]   ;;  %v15203_v56 = vld [vmem:[%s18626_s5 + $0xb74] ss:$8 sps:$4 sm:$0xff]  }
 0x940   : > { %10116 = vmatpush1.bf16.msra.mxu0 %v14997_v12  ;;  %v15125_v12 = vld [vmem:[%s18626_s5 + $0xa24] ss:$8 sps:$4 sm:$0xff]  }
 0x941   : > { %10117 = vmatprep.subr.bf16.mxu0 %v15005_v21  ;;  %v15123_v21 = vld [vmem:[%s18626_s5 + $0xa20] ss:$8 sps:$4 sm:$0xff]  }
 0x944   : > { %10118 = vmatpush1.bf16.msra.mxu0 %v15003_v57  ;;  %v15147_v57 = vld [vmem:[%s18626_s5 + $0xa60] ss:$8 sps:$4 sm:$0xff]  }
 0x945   : > { %10119 = vmatprep.subr.bf16.mxu0 %v15011_v31  ;;  %v15155_v31 = vld [vmem:[%s18626_s5 + $0xa74] ss:$8 sps:$4 sm:$0xff]  }
 0x948   : > { %10120 = vmatpush1.bf16.msra.mxu0 %v15009_v27  ;;  %v15159_v27 = vld [vmem:[%s18626_s5 + $0xa90] ss:$8 sps:$4 sm:$0xff]  }
 0x949   : > { %10372 = vmatprep.subr.bf16.mxu0 %v15017_v19  ;;  %v11105_v19 = vld [vmem:[%s18636_s15 + $0x80] sm:$0xff] }
 0x94b   : > { %10122 = vmatmul.mubr.bf16.vlgmr.msra.gmra.mrb[36].mxu0 %v17339_v47  ;;  %v15035_v47 = vld [vmem:[%s18626_s5 + $0x934] ss:$8 sps:$4 sm:$0xff]  }
 0x94c   : > { %10373 = vmatpush1.bf16.msra.mxu0 %v15015_v58  ;;  %10404 = vmatprep.mubr.bf16.mxu0 %v10209_v36  ;;  %v13928_v58 = vpack.c.bf16 %v11106_v35, %v11105_v19  ;;  %v11107_v36 = vld [vmem:[%s18636_s15 + $0x90] sm:$0xff] }
 0x94d   : > { %10374 = vmatprep.subr.bf16.mxu0 %v15023_v33  ;;  %v11090_v33 = vld [vmem:[%s18636_s15 + $0x8] sm:$0xff] }
 0x94e   : > { %13929 = vmatprep.subr.bf16.mxu1 %v13928_v58 }
 0x950   : > { %10375 = vmatpush1.bf16.msra.mxu0 %v15021_v55  ;;  %v11108_v55 = vld [vmem:[%s18636_s15 + $0x98] sm:$0xff] }
 0x951   : > { %10376 = vmatprep.subr.bf16.mxu0 %v15029_v53  ;;  %v15164_v53 = vld [vmem:[%s18626_s5 + $0xaa4] ss:$8 sps:$4 sm:$0xff]  }
 0x954   : > { %10377 = vmatpush1.bf16.msra.mxu0 %v15027_v44  ;;  %v13930_v44 = vpack.c.bf16 %v11090_v33, %v11089_v11  ;;  %v15228_v11 = vld [vmem:[%s18627_s6] ss:$8 sps:$4 sm:$0xff]   ;;  %v15233_v33 = vld [vmem:[%s18627_s6 + $0x14] ss:$8 sps:$4 sm:$0xff]  }
 0x955   : > { %10378 = vmatprep.subr.bf16.mxu0 %v15035_v47  ;;  %v13932_v47 = vpack.c.bf16 %v11108_v55, %v11107_v36  ;;  %v15231_v36 = vld [vmem:[%s18627_s6 + $0x10] ss:$8 sps:$4 sm:$0xff]  }
 0x956   : > { %13931 = vmatpush3.bf16.msra.mxu1 %v13930_v44  ;;  %v15256_v55 = vld [vmem:[#allocation7] sm:$0xff]  ;;  %v15234_v44 = vld [vmem:[%s18627_s6 + $0x20] ss:$8 sps:$4 sm:$0xff]  }
 0x957   : > { %13933 = vmatprep.subr.bf16.mxu1 %v13932_v47  ;;  %v15239_v47 = vld [vmem:[%s18627_s6 + $0x34] ss:$8 sps:$4 sm:$0xff]  }
 0x958   : > { %10379 = vmatpush1.bf16.msra.mxu0 %v15033_v1  ;;  %v15162_v1 = vld [vmem:[%s18626_s5 + $0xaa0] ss:$8 sps:$4 sm:$0xff]  }
 0x959   : > { %10380 = vmatprep.subr.bf16.mxu0 %v15041_v20  ;;  %v15167_v20 = vld [vmem:[%s18626_s5 + $0xab4] ss:$8 sps:$4 sm:$0xff]  }
 0x95c   : > { %10381 = vmatpush1.bf16.msra.mxu0 %v15039_v16  ;;  %v15165_v16 = vld [vmem:[%s18626_s5 + $0xab0] ss:$8 sps:$4 sm:$0xff]  }
 0x95d   : > { %10382 = vmatprep.subr.bf16.mxu0 %v15047_v13  ;;  %v15170_v13 = vld [vmem:[%s18626_s5 + $0xac4] ss:$8 sps:$4 sm:$0xff]  }
 0x960   : > { %10383 = vmatpush1.bf16.msra.mxu0 %v15045_v10  ;;  %v15168_v10 = vld [vmem:[%s18626_s5 + $0xac0] ss:$8 sps:$4 sm:$0xff]  }
 0x961   : > { %10384 = vmatprep.subr.bf16.mxu0 %v15053_v60  ;;  %v15173_v60 = vld [vmem:[%s18626_s5 + $0xad4] ss:$8 sps:$4 sm:$0xff]  }
 0x964   : > { %10385 = vmatpush1.bf16.msra.mxu0 %v15051_v54  ;;  %v10670_v54 = vld [vmem:[#allocation7 + $0x10] sm:$0x7e] }
 0x965   : > { %10386 = vmatprep.subr.bf16.mxu0 %v15059_v63  ;;  %v15171_v63 = vld [vmem:[%s18626_s5 + $0xad0] ss:$8 sps:$4 sm:$0xff]  }
 0x968   : > { %10387 = vmatpush1.bf16.msra.mxu0 %v15057_v43  ;;  %v10674_v43 = vshll.u32 %v10670_v54, 16 }
 0x969   : > { %10388 = vmatprep.subr.bf16.mxu0 %v15065_v8  ;;  %v15176_v8 = vld [vmem:[%s18626_s5 + $0xae4] ss:$8 sps:$4 sm:$0xff]  }
 0x96c   : > { %10389 = vmatpush1.bf16.msra.mxu0 %v15063_v26  ;;  %v15174_v26 = vld [vmem:[%s18626_s5 + $0xae0] ss:$8 sps:$4 sm:$0xff]  }
 0x96d   : > { %10390 = vmatprep.subr.bf16.mxu0 %v15071_v62  ;;  %v10672_v62 = vshrl.u32 %v10670_v54, 16  ;;  %v15246_v54 = vld [vmem:[%s18627_s6 + $0x60] ss:$8 sps:$4 sm:$0xff]  }
 0x970   : > { %10391 = vmatpush1.bf16.msra.mxu0 %v15069_v45  ;;  %v10676_v45 = vrot.slane %v10674_v43, 1  ;;  %v15249_v43 = vld [vmem:[%s18627_s6 + $0x70] ss:$8 sps:$4 sm:$0xff]  }
 0x971   : > { %10392 = vmatprep.subr.bf16.mxu0 %v15077_v38  ;;  %v15179_v38 = vld [vmem:[%s18626_s5 + $0xaf4] ss:$8 sps:$4 sm:$0xff]  }
 0x974   : > { %10393 = vmatpush1.bf16.msra.mxu0 %v15075_v32  ;;  %v15177_v32 = vld [vmem:[%s18626_s5 + $0xaf0] ss:$8 sps:$4 sm:$0xff]  }
 0x975   : > { %10394 = vmatprep.subr.bf16.mxu0 %v15083_v51  ;;  %v10677_v51 = vor.u32 %v10676_v45, %v10672_v62  ;;  %v11091_v62 = vld [vmem:[%s18636_s15 + $0x10] sm:$0xff]  ;;  %v11092_v45 = vld [vmem:[%s18636_s15 + $0x18] sm:$0xff] }
 0x978   : > { %10395 = vmatpush1.bf16.msra.mxu0 %v15081_v9  ;;  %v15182_v9 = vld [vmem:[%s18626_s5 + $0xb04] ss:$8 sps:$4 sm:$0xff]  }
 0x979   : > { %10396 = vmatprep.subr.bf16.mxu0 %v15089_v2  ;;  %v15180_v2 = vld [vmem:[%s18626_s5 + $0xb00] ss:$8 sps:$4 sm:$0xff]  }
 0x97c   : > { %10397 = vmatpush1.bf16.msra.mxu0 %v15087_v4  ;;  %v10419_v4 = vld [vmem:[#allocation7 + $0x10] sm:$0x1f] }
 0x97d   : > { %10398 = vmatprep.subr.bf16.mxu0 %v15095_v23  ;;  %v10713_v23 = vrot.slane %v10677_v51, 1  ;;  %v11110_v51 = vld [vmem:[%s18636_s15 + $0xa8] sm:$0xff] }
 0x980   : > { %10399 = vmatpush1.bf16.msra.mxu0 %v15093_v6  ;;  %v15185_v6 = vld [vmem:[%s18626_s5 + $0xb14] ss:$8 sps:$4 sm:$0xff]  }
 0x981   : > { %10400 = vmatprep.subr.bf16.mxu0 %v15101_v39  ;;  %v15183_v39 = vld [vmem:[%s18626_s5 + $0xb10] ss:$8 sps:$4 sm:$0xff]  }
 0x984   : > { %10401 = vmatpush1.bf16.msra.mxu0 %v15099_v7  ;;  %v15186_v7 = vld [vmem:[%s18626_s5 + $0xb20] ss:$8 sps:$4 sm:$0xff]  }
 0x985   : > { %10402 = vmatprep.subr.bf16.mxu0 %v15107_v22  ;;  %v15189_v22 = vld [vmem:[%s18626_s5 + $0xb30] ss:$8 sps:$4 sm:$0xff]  }
 0x988   : > { %10403 = vmatpush1.bf16.msra.mxu0 %v15105_v15  ;;  %v15197_v15 = vld [vmem:[%s18626_s5 + $0xb54] ss:$8 sps:$4 sm:$0xff]  }
 0x989   : > { %10622 = vmatprep.subr.bf16.mxu0 %v15113_v28  ;;  %v15198_v28 = vld [vmem:[%s18626_s5 + $0xb60] ss:$8 sps:$4 sm:$0xff]  }
 0x98b   : > { %10405 = vmatmul.mubr.bf16.vlgmr.msra.gmra.mrb[36].mxu0 %v10192_v61  ;;  %v15209_v61 = vld [vmem:[%s18626_s5 + $0xb94] ss:$8 sps:$4 sm:$0xff]  }
 0x98c   : > { %10623 = vmatpush1.bf16.msra.mxu0 %v15111_v3  ;;  %10654 = vmatprep.mubr.bf16.mxu0 %v10427_v17  ;;  %v15201_v3 = vld [vmem:[%s18626_s5 + $0xb70] ss:$8 sps:$4 sm:$0xff]   ;;  %v15206_v17 = vld [vmem:[%s18626_s5 + $0xb84] ss:$8 sps:$4 sm:$0xff]  }
 0x98d   : > { %10624 = vmatprep.subr.bf16.mxu0 %v15119_v14  ;;  %v15204_v14 = vld [vmem:[%s18626_s5 + $0xb80] ss:$8 sps:$4 sm:$0xff]  }
 0x990   : > { %10625 = vmatpush1.bf16.msra.mxu0 %v15117_v5  ;;  %v15207_v5 = vld [vmem:[%s18626_s5 + $0xb90] ss:$8 sps:$4 sm:$0xff]  }
 0x991   : > { %10626 = vmatprep.subr.bf16.mxu0 %v15125_v12  ;;  %v15212_v12 = vld [vmem:[%s18626_s5 + $0xba4] ss:$8 sps:$4 sm:$0xff]  }
 0x994   : > { %10627 = vmatpush1.bf16.msra.mxu0 %v15123_v21  ;;  %v15210_v21 = vld [vmem:[%s18626_s5 + $0xba0] ss:$8 sps:$4 sm:$0xff]  }
 0x995   : > { %10628 = vmatprep.subr.bf16.mxu0 %v15131_v18  ;;  %v15215_v18 = vld [vmem:[%s18626_s5 + $0xbb4] ss:$8 sps:$4 sm:$0xff]  }
 0x998   : > { %10629 = vmatpush1.bf16.msra.mxu0 %v15129_v49  ;;  %v15213_v49 = vld [vmem:[%s18626_s5 + $0xbb0] ss:$8 sps:$4 sm:$0xff]  }
 0x999   : > { %10630 = vmatprep.subr.bf16.mxu0 %v15137_v52  ;;  %v15218_v52 = vld [vmem:[%s18626_s5 + $0xbc4] ss:$8 sps:$4 sm:$0xff]  }
 0x99c   : > { %10631 = vmatpush1.bf16.msra.mxu0 %v15135_v29  ;;  %v15216_v29 = vld [vmem:[%s18626_s5 + $0xbc0] ss:$8 sps:$4 sm:$0xff]  }
 0x99d   : > { %10632 = vmatprep.subr.bf16.mxu0 %v15143_v46  ;;  %v15221_v46 = vld [vmem:[%s18626_s5 + $0xbd4] ss:$8 sps:$4 sm:$0xff]  }
 0x9a0   : > { %10633 = vmatpush1.bf16.msra.mxu0 %v15141_v30  ;;  %v15219_v30 = vld [vmem:[%s18626_s5 + $0xbd0] ss:$8 sps:$4 sm:$0xff]  }
 0x9a1   : > { %10634 = vmatprep.subr.bf16.mxu0 %v15149_v42  ;;  %v15224_v42 = vld [vmem:[%s18626_s5 + $0xbe4] ss:$8 sps:$4 sm:$0xff]  }
 0x9a4   : > { %10635 = vmatpush1.bf16.msra.mxu0 %v15147_v57  ;;  %v15222_v57 = vld [vmem:[%s18626_s5 + $0xbe0] ss:$8 sps:$4 sm:$0xff]  }
 0x9a5   : > { %10636 = vmatprep.subr.bf16.mxu0 %v15155_v31  ;;  %v15227_v31 = vld [vmem:[%s18626_s5 + $0xbf4] ss:$8 sps:$4 sm:$0xff]  }
 0x9a8   : > { %10637 = vmatpush1.bf16.msra.mxu0 %v15153_v34  ;;  %v15225_v34 = vld [vmem:[%s18626_s5 + $0xbf0] ss:$8 sps:$4 sm:$0xff]  }
 0x9a9   : > { %10638 = vmatprep.subr.bf16.mxu0 %v15158_v41  ;;  %v10669_v41 = vld [vmem:[#allocation7 + $0x10] sm:$0x3e] }
 0x9aa   : > { %v10712_v19 = vrot.slane %v10669_v41, 1 }
 0x9ac   : > { %10639 = vmatpush1.bf16.msra.mxu0 %v15156_v48  ;;  %v15230_v48 = vld [vmem:[%s18627_s6 + $0x4] ss:$8 sps:$4 sm:$0xff]  }
 0x9ad   : > { %10640 = vmatprep.subr.bf16.mxu0 %v15161_v24 }
 0x9b0   : > { %10641 = vmatpush1.bf16.msra.mxu0 %v15159_v27 }
 0x9b1   : > { %10642 = vmatprep.subr.bf16.mxu0 %v15164_v53  ;;  %v15236_v53 = vld [vmem:[%s18627_s6 + $0x24] ss:$8 sps:$4 sm:$0xff]  }
 0x9b4   : > { %10643 = vmatpush1.bf16.msra.mxu0 %v15162_v1  ;;  %v15237_v1 = vld [vmem:[%s18627_s6 + $0x30] ss:$8 sps:$4 sm:$0xff]  }
 0x9b5   : > { %10644 = vmatprep.subr.bf16.mxu0 %v15167_v20  ;;  %v15242_v20 = vld [vmem:[%s18627_s6 + $0x44] ss:$8 sps:$4 sm:$0xff]  }
 0x9b8   : > { %10645 = vmatpush1.bf16.msra.mxu0 %v15165_v16  ;;  %v15240_v16 = vld [vmem:[%s18627_s6 + $0x40] ss:$8 sps:$4 sm:$0xff]  }
 0x9b9   : > { %10646 = vmatprep.subr.bf16.mxu0 %v15170_v13  ;;  %v15245_v13 = vld [vmem:[%s18627_s6 + $0x54] ss:$8 sps:$4 sm:$0xff]  }
 0x9bc   : > { %10647 = vmatpush1.bf16.msra.mxu0 %v15168_v10  ;;  %v15243_v10 = vld [vmem:[%s18627_s6 + $0x50] ss:$8 sps:$4 sm:$0xff]  }
 0x9bd   : > { %10648 = vmatprep.subr.bf16.mxu0 %v15173_v60  ;;  %v15248_v60 = vld [vmem:[%s18627_s6 + $0x64] ss:$8 sps:$4 sm:$0xff]  }
 0x9c0   : > { %10649 = vmatpush1.bf16.msra.mxu0 %v15171_v63  ;;  %v15251_v63 = vld [vmem:[%s18627_s6 + $0x74] ss:$8 sps:$4 sm:$0xff]  }
 0x9c1   : > { %10650 = vmatprep.subr.bf16.mxu0 %v15176_v8  ;;  %v10923_v8 = vld [vmem:[#allocation7 + $0x10] sm:$0x7c] }
 0x9c4   : > { %10651 = vmatpush1.bf16.msra.mxu0 %v15174_v26  ;;  %v10941_v26 = vrot.slane %v10923_v8, 2 }
 0x9c5   : > { %10652 = vmatprep.subr.bf16.mxu0 %v15179_v38  ;;  %v13934_v38 = vpack.c.bf16 %v11092_v45, %v11091_v62 }
 0x9c7   : > { %13935 = vmatpush3.bf16.msra.mxu1 %v13934_v38  ;;  %v11121_v38 = vld [vmem:[%s18637_s16] sm:$0x1] }
 0x9c8   : > { %10653 = vmatpush1.bf16.msra.mxu0 %v15177_v32  ;;  %v11109_v32 = vld [vmem:[%s18636_s15 + $0xa0] sm:$0xff] }
 0x9c9   : > { %10876 = vmatprep.subr.bf16.mxu0 %v15182_v9  ;;  %v11093_v9 = vld [vmem:[%s18636_s15 + $0x20] sm:$0xff] }
 0x9cb   : > { %10655 = vmatmul.mubr.bf16.vlgmr.msra.gmra.mrb[36].mxu0 %v10419_v4  ;;  %v11094_v4 = vld [vmem:[%s18636_s15 + $0x28] sm:$0xff] }
 0x9cc   : > { %10877 = vmatpush1.bf16.msra.mxu0 %v15180_v2  ;;  %10908 = vmatprep.mubr.bf16.mxu0 %v10713_v23  ;;  %v13936_v2 = vpack.c.bf16 %v11110_v51, %v11109_v32  ;;  %v11111_v23 = vld [vmem:[%s18636_s15 + $0xb0] sm:$0xff] }
 0x9cd   : > { %10878 = vmatprep.subr.bf16.mxu0 %v15185_v6  ;;  %v11112_v6 = vld [vmem:[%s18636_s15 + $0xb8] sm:$0xff] }
 0x9ce   : > { %13937 = vmatprep.subr.bf16.mxu1 %v13936_v2 }
 0x9d0   : > { %10879 = vmatpush1.bf16.msra.mxu0 %v15183_v39  ;;  %v13938_v39 = vpack.c.bf16 %v11094_v4, %v11093_v9 }
 0x9d1   : > { %10880 = vmatprep.subr.bf16.mxu0 %v15188_v37  ;;  %v13940_v37 = vpack.c.bf16 %v11112_v6, %v11111_v23 }
 0x9d2   : > { %13939 = vmatpush3.bf16.msra.mxu1 %v13938_v39 }
 0x9d3   : > { %13941 = vmatprep.subr.bf16.mxu1 %v13940_v37 }
 0x9d4   : > { %10881 = vmatpush1.bf16.msra.mxu0 %v15186_v7  ;;  %v11095_v7 = vld [vmem:[%s18636_s15 + $0x30] sm:$0xff] }
 0x9d5   : > { %10882 = vmatprep.subr.bf16.mxu0 %v15191_v0  ;;  %v11096_v0 = vld [vmem:[%s18636_s15 + $0x38] sm:$0xff] }
 0x9d8   : > { %10883 = vmatpush1.bf16.msra.mxu0 %v15189_v22  ;;  %v11113_v22 = vld [vmem:[%s18636_s15 + $0xc0] sm:$0xff] }
 0x9d9   : > { %10884 = vmatprep.subr.bf16.mxu0 %v15194_v40  ;;  %v11114_v40 = vld [vmem:[%s18636_s15 + $0xc8] sm:$0xff] }
 0x9dc   : > { %10885 = vmatpush1.bf16.msra.mxu0 %v15192_v59  ;;  %v13942_v59 = vpack.c.bf16 %v11096_v0, %v11095_v7 }
 0x9dd   : > { %10886 = vmatprep.subr.bf16.mxu0 %v15197_v15  ;;  %v13944_v15 = vpack.c.bf16 %v11114_v40, %v11113_v22 }
 0x9de   : > { %13943 = vmatpush3.bf16.msra.mxu1 %v13942_v59 }
 0x9df   : > { %13945 = vmatprep.subr.bf16.mxu1 %v13944_v15 }
 0x9e0   : > { %10887 = vmatpush1.bf16.msra.mxu0 %v15195_v25  ;;  %v18430_v24 = vpop.f32.mrb[20].mxu1  ;;  %v11097_v25 = vld [vmem:[%s18636_s15 + $0x40] sm:$0xff] }
 0x9e1   : > { %10888 = vmatprep.subr.bf16.mxu0 %v15200_v50  ;;  %v18432_v27 = vpop.f32.mrb[21].mxu1  ;;  %v11098_v50 = vld [vmem:[%s18636_s15 + $0x48] sm:$0xff] }
 0x9e2   : > { %v18434_v35 = vpop.f32.mrb[22].mxu1 }
 0x9e3   : > { %v18439_v58 = vpop.f32.mrb[23].mxu1 }
 0x9e4   : > { %10889 = vmatpush1.bf16.msra.mxu0 %v15198_v28  ;;  %v11115_v28 = vld [vmem:[%s18636_s15 + $0xd0] sm:$0xff] }
 0x9e5   : > { %10890 = vmatprep.subr.bf16.mxu0 %v15203_v56  ;;  %v11116_v56 = vld [vmem:[%s18636_s15 + $0xd8] sm:$0xff] }
 0x9e8   : > { %10891 = vmatpush1.bf16.msra.mxu0 %v15201_v3  ;;  %v13946_v3 = vpack.c.bf16 %v11098_v50, %v11097_v25 }
 0x9e9   : > { %10892 = vmatprep.subr.bf16.mxu0 %v15206_v17  ;;  %v13948_v17 = vpack.c.bf16 %v11116_v56, %v11115_v28 }
 0x9ea   : > { %13947 = vmatpush3.bf16.msra.mxu1 %v13946_v3 }
 0x9eb   : > { %13949 = vmatprep.subr.bf16.mxu1 %v13948_v17 }
 0x9ec   : > { %10893 = vmatpush1.bf16.msra.mxu0 %v15204_v14  ;;  %v11099_v14 = vld [vmem:[%s18636_s15 + $0x50] sm:$0xff] }
 0x9ed   : > { %10894 = vmatprep.subr.bf16.mxu0 %v15209_v61  ;;  %v11100_v61 = vld [vmem:[%s18636_s15 + $0x58] sm:$0xff] }
 0x9f0   : > { %10895 = vmatpush1.bf16.msra.mxu0 %v15207_v5  ;;  %v11117_v5 = vld [vmem:[%s18636_s15 + $0xe0] sm:$0xff] }
 0x9f1   : > { %10896 = vmatprep.subr.bf16.mxu0 %v15212_v12  ;;  %v11118_v12 = vld [vmem:[%s18636_s15 + $0xe8] sm:$0xff] }
 0x9f4   : > { %10897 = vmatpush1.bf16.msra.mxu0 %v15210_v21  ;;  %v13950_v21 = vpack.c.bf16 %v11100_v61, %v11099_v14 }
 0x9f5   : > { %10898 = vmatprep.subr.bf16.mxu0 %v15215_v18  ;;  %v13952_v18 = vpack.c.bf16 %v11118_v12, %v11117_v5 }
 0x9f6   : > { %13951 = vmatpush3.bf16.msra.mxu1 %v13950_v21 }
 0x9f7   : > { %13953 = vmatprep.subr.bf16.mxu1 %v13952_v18 }
 0x9f8   : > { %10899 = vmatpush1.bf16.msra.mxu0 %v15213_v49  ;;  %v11101_v49 = vld [vmem:[%s18636_s15 + $0x60] sm:$0xff] }
 0x9f9   : > { %10900 = vmatprep.subr.bf16.mxu0 %v15218_v52  ;;  %v11102_v52 = vld [vmem:[%s18636_s15 + $0x68] sm:$0xff] }
 0x9fc   : > { %10901 = vmatpush1.bf16.msra.mxu0 %v15216_v29  ;;  %v11119_v29 = vld [vmem:[%s18636_s15 + $0xf0] sm:$0xff] }
 0x9fd   : > { %10902 = vmatprep.subr.bf16.mxu0 %v15221_v46  ;;  %v11120_v46 = vld [vmem:[%s18636_s15 + $0xf8] sm:$0xff] }
 0xa00   : > { %10903 = vmatpush1.bf16.msra.mxu0 %v15219_v30  ;;  %v13954_v30 = vpack.c.bf16 %v11102_v52, %v11101_v49 }
 0xa01   : > { %10904 = vmatprep.subr.bf16.mxu0 %v15224_v42  ;;  %v13956_v42 = vpack.c.bf16 %v11120_v46, %v11119_v29 }
 0xa02   : > { %13955 = vmatpush3.bf16.msra.mxu1 %v13954_v30 }
 0xa03   : > { %13957 = vmatprep.subr.bf16.mxu1 %v13956_v42 }
 0xa04   : > { %10905 = vmatpush1.bf16.msra.mxu0 %v15222_v57  ;;  %v11103_v57 = vld [vmem:[%s18636_s15 + $0x70] sm:$0xff] }
 0xa05   : > { %10906 = vmatprep.subr.bf16.mxu0 %v15227_v31  ;;  %v11104_v31 = vld [vmem:[%s18636_s15 + $0x78] sm:$0xff] }
 0xa08   : > { %10907 = vmatpush1.bf16.msra.mxu0 %v15225_v34  ;;  %v13958_v34 = vpack.c.bf16 %v11104_v31, %v11103_v57 }
 0xa09   : > { %11023 = vmatprep.subr.bf16.mxu0 %v15230_v48 }
 0xa0a   : > { %13959 = vmatpush3.bf16.msra.mxu1 %v13958_v34 }
 0xa0b   : > { %10909 = vmatmul.mubr.bf16.vlgmr.msra.gmra.mrb[36].mxu0 %v10712_v19 }
 0xa0c   : > { %11024 = vmatpush1.bf16.msra.mxu0 %v15228_v11  ;;  %11055 = vmatprep.mubr.bf16.mxu0 %v15256_v55 }
 0xa0d   : > { %11025 = vmatprep.subr.bf16.mxu0 %v15233_v33 }
 0xa10   : > { %11026 = vmatpush1.bf16.msra.mxu0 %v15231_v36 }
 0xa11   : > { %11027 = vmatprep.subr.bf16.mxu0 %v15236_v53 }
 0xa14   : > { %11028 = vmatpush1.bf16.msra.mxu0 %v15234_v44 }
 0xa15   : > { %11029 = vmatprep.subr.bf16.mxu0 %v15239_v47 }
 0xa18   : > { %11030 = vmatpush1.bf16.msra.mxu0 %v15237_v1  ;;  %v11123_v1 = vlaneseq }
 0xa19   : > { %11031 = vmatprep.subr.bf16.mxu0 %v15242_v20 }
 0xa1c   : > { %11032 = vmatpush1.bf16.msra.mxu0 %v15240_v16 }
 0xa1d   : > { %11033 = vmatprep.subr.bf16.mxu0 %v15245_v13 }
 0xa20   : > { %11034 = vmatpush1.bf16.msra.mxu0 %v15243_v10 }
 0xa21   : > { %11035 = vmatprep.subr.bf16.mxu0 %v15248_v60 }
 0xa24   : > { %11036 = vmatpush1.bf16.msra.mxu0 %v15246_v54 }
 0xa25   : > { %11037 = vmatprep.subr.bf16.mxu0 %v15251_v63 }
 0xa28   : > { %11038 = vmatpush1.bf16.msra.mxu0 %v15249_v43 }
 0xa2b   : > { %11056 = vmatmul.mubr.bf16.vlgmr.msra.gmra.mrb[36].mxu0 %v10941_v26 }
 0xafe   : > { %v11057_v41 = vpop.f32.mrb[36].mxu0 }
 0xaff   : > { %v13964_v48 = vadd.f32 %v11057_v41, %v18430_v24  ;;  %v11059_v19 = vpop.f32.mrb[37].mxu0 }
 0xb00   : > { %v13965_v11 = vadd.f32 %v11059_v19, %v18432_v27  ;;  %v11061_v33 = vpop.f32.mrb[38].mxu0  ;;  %v11084_v27 = vld [vmem:[%s18634_s13] sm:$0x3] }
 0xb01   : > { %11070 = vst [vmem:[#allocation8] sm:$0xff] %v13964_v48  ;;  %v13966_v36 = vadd.f32 %v11061_v33, %v18434_v35  ;;  %v11063_v55 = vpop.f32.mrb[39].mxu0  ;;  %v11124_v35 = vshrl.u32 %v11123_v1, 7 }
 0xb02   : > { %11071 = vst [vmem:[#allocation8 + $0x8] sm:$0xff] %v13965_v11  ;;  %v13967_v53 = vadd.f32 %v11063_v55, %v18439_v58  ;;  %v11086_v58 = vld [vmem:[%s18635_s14] sm:$0x3] }
 0xb03   : > { %11072 = vst [vmem:[#allocation8 + $0x10] sm:$0x3] %v13966_v36  ;;  %v11129_v63 = vsub.s32 1, %v11124_v35  ;;  %v11125_v43 = vsub.s32 0, %v11124_v35 }
 0xb04   : > { %11073 = vst [vmem:[#allocation8 + $0x18] sm:$0x3] %v13967_v53 }
 0xb09   : > { %v11074_v44 = vld [vmem:[#allocation8] ss:$8 sm:$0x3]  ;;  %v11076_v47 = vld [vmem:[#allocation8 + $0x1] ss:$8 sm:$0x3] }
 0xb0a   : > { %v11077_v24 = vmax.f32 %v11074_v44, %v11076_v47 }
 0xb0b   : > { %v11079_v20 = vld [vmem:[#allocation8 + $0x10] ss:$8 sm:$0x3]  ;;  %v11081_v16 = vld [vmem:[#allocation8 + $0x11] ss:$8 sm:$0x3] }
 0xb0c   : > { %v11082_v13 = vmax.f32 %v11079_v20, %v11081_v16 }
 0xb0e   : > { %v11083_v10 = vmax.f32 %v11077_v24, %v11082_v13 }
 0xb10   : > { %v11085_v60 = vmul.f32 %v11084_v27, %v11083_v10 }
 0xb12   : > { %v11087_v54 = vadd.f32 %v11086_v58, %v11085_v60 }
 0xb14   : > { %v11088_v8 = vmax.f32 %v11087_v54, 0.0 }
 0xb16   : > { %v11130_v26 = vrot.slane %v11088_v8, %v11129_v63  ;;  %v11126_v62 = vrot.slane %v11088_v8, %v11125_v43 }
 0xb18   : > { %11197 = vmatprep.mubr.f32.mxu1 %v11130_v26 }
 0xb19   : > { %11198 = vmatmul.mubr.f32.vlgmr.msra.gmra.mrb[24].mxu1 %v11126_v62 }
 0xbec   : > { %v13131_v45 = vpop.f32.mrb[24].mxu1 }
 0xbed   : > { %v13132_v32 = vpop.f32.mrb[25].mxu1 }
 0xbee   : > { %v13133_v51 = vadd.f32 %v13132_v32, %v13131_v45 }
 0xbf0   : > { %v11200_v9 = vadd.f32 %v13133_v51, %v11121_v38 }
 0xbf2   : > { %11204 = vst.msk [vmem:[%s540_s26] sm:$0x1] %vm11203_vm12, %v11200_v9 }
 0xbf3   : > { %15270 = shalt.err (!%p15267_p3)
}
 0xbf4   : > { %s15271_s22 = scalar_lea.hbm %s18579_s20, 16  ;;  %s15275_s24 = scalar_lea.hbm %s18638_s17, 32 }
 0xbf5   : > { %p15272_p4 = scmp.ne.s32.totalorder %s18579_s20, %s15271_s22  ;;  %p15276_p9 = scmp.lt.u32.totalorder %s18579_s20, %s18638_s17 }
 0xbf6   : > { %p15277_p10 = scmp.lt.u32.totalorder %s15275_s24, %s15271_s22  ;;  %p15279_p12 = scmp.lt.u32.totalorder %s15271_s22, %s18579_s20 }
 0xbf7   : > { %p15273_p7 = pnand %p15272_p4, %p15452_p5 }
 0xbf8   : > { %p15278_p11 = por %p15277_p10, %p15276_p9 }
 0xbf9   : > { %p15274_p8 = pneg %p15273_p7 }
 0xbfa   : > { %p15280_p13 = por %p15279_p12, %p15278_p11 }
 0xbfc   : > { %p15281_p0 = pnand %p15280_p13, %p15274_p8 }
 0xbfe   : > { %15284 = shalt.err (!%p15281_p0)
}
 0xbff   : > { %14440 = dma.vmem_to_hbm [thread:$0]  (%p15452_p5), %s18581_s0, 16, %s18579_s20, %s11206_s18  }
 0xc00 PF: > { %s18658_s21 = sld [smem:[#allocation12_spill]]  ;;  %p14446_p1 = scmp.ge.s32.totalorder %s15319_s27, 2 }
 0xc02   : > { %p14443_p2 = pnand %p14446_p1, %p15456_p6 }
 0xc06   : > { %s11230_s2 = sand.u32 1, %s18658_s21  }
 0xc07   : > { %s11231_s30 = scalar_lea.sflag [#allocation10], %s11230_s2 }
 0xc08   : > { %15302 = dma.done.wait (!%p14443_p2), %s11231_s30, 16  }
 0xc09   : > { %15304 = vsyncadd (!%p14443_p2), %s11231_s30, 4294967280  ;;  %s18660_s27 = sld [smem:[#allocation14_spill]]  ;;  %s18661_s22 = sld [smem:[#allocation13_spill]] }
 0xc0a   : > { %s18662_s26 = sld [smem:[#allocation15_spill]]  ;;  %s18663_s24 = smov %s15311_s25 }
 0xc0f   : > { %p27_p3 = scmp.ge.s32.totalorder %s18660_s27, 4   ;;  %s18664_s25 = smov %s18661_s22 }
 0xc11   :  { %29 = sbr.rel (!%p27_p3) target bundleno = 7 (0x7), region = 225 }
 0xc18   :  { %11235 = vsyncpa [#allocation10], 1 }
 0xc19   :  { %11237 = vsyncpa [#allocation10 + $0x1], 1 }

</bundles_post_ra>
